<compile_context>
chip_gen: v7x
topology: tpu7x:2x2x1
jax: 0.10.0
libtpu: 0.0.40
codegen_flags: <defaults>
</compile_context>

<pallas_src>
import math
import functools

import numpy as np
import jax
import jax.numpy as jnp
from jax.experimental import pallas as pl
from jax.experimental.pallas import tpu as pltpu

# ---- small hyperparameters consistent with the module ----
NUM_HIDDENS = 32
NUM_RESIDUAL_HIDDENS = 16
NUM_RESIDUAL_LAYERS = 2
NUM_EMBEDDINGS = 128
EMBEDDING_DIM = 32
COMMITMENT_COST = 0.25
# decay = 0  -> plain VectorQuantizer path (Model's default)

VMEM_LIMIT = 32 * 1024 * 1024


def _pick_tm(m):
    if m <= 512:
        return m           # single grid step: no benefit from splitting tiny GEMMs
    for t in (512, 256, 128):
        if m % t == 0:
            return t
    return m


def _full_spec(shape):
    nd = len(shape)
    return pl.BlockSpec(shape, lambda i, _nd=nd: (0,) * _nd)


# ------------------------- Pallas kernels -------------------------

def _conv_gemm_kernel(w_ref, p_ref, b_ref, o_ref, *, relu_out):
    """out(C_out, tm) = W_bf16(C_out, K) @ patches_bf16(K, tm) + bias, opt. ReLU."""
    acc = jnp.dot(w_ref[...], p_ref[...], preferred_element_type=jnp.float32)
    acc = acc + b_ref[...]                      # (C_out, 1) broadcast over lanes
    if relu_out:
        acc = jnp.maximum(acc, 0.0)
    o_ref[...] = acc


def _bottleneck_kernel(x_ref, s_ref,
                       ec3w_ref, ec3b_ref,
                       er0w3_ref, er0w1_ref, er1w3_ref, er1w1_ref,
                       pvqw_ref, pvqb_ref,
                       emb_ref, embt_ref,
                       dc1w_ref, dc1b_ref,
                       dr0w3_ref, dr0w1_ref, dr1w3_ref, dr1w1_ref,
                       y_ref, stats_ref, *, commitment_cost):
    """Fused: enc_c3 -> enc residual stack -> pre_vq -> VQ -> dec_c1 -> dec stack."""
    x = x_ref[...]                                            # (C, M) f32

    def conv3x3(inp, w9_ref, bias=None):
        # inp: (C_in, M); w9_ref: (9, C_out, C_in); s_ref[t]: (M, M) shift matrix.
        acc = None
        for t in range(9):
            shifted = jnp.dot(inp, s_ref[t], preferred_element_type=jnp.float32)
            part = jnp.dot(w9_ref[t], shifted, preferred_element_type=jnp.float32)
            acc = part if acc is None else acc + part
        return acc if bias is None else acc + bias

    def resblock(h, w3_ref, w1_ref):
        # x + Conv1x1(ReLU(Conv3x3(ReLU(x)))), all in VMEM.
        hr = jnp.maximum(h, 0.0)
        mid = jnp.maximum(conv3x3(hr, w3_ref), 0.0)           # (C_rh, M)
        return h + jnp.dot(w1_ref[...], mid, preferred_element_type=jnp.float32)

    # ---- encoder tail: conv3 + residual stack (+ stack-final ReLU) ----
    h = conv3x3(x, ec3w_ref, ec3b_ref[...])
    h = resblock(h, er0w3_ref, er0w1_ref)
    h = resblock(h, er1w3_ref, er1w1_ref)
    h = jnp.maximum(h, 0.0)

    # ---- pre-VQ 1x1 conv ----
    z = jnp.dot(pvqw_ref[...], h, preferred_element_type=jnp.float32) + pvqb_ref[...]

    # ---- vector quantizer (f32, first-index argmin tie-break like torch) ----
    e = emb_ref[...]                                          # (K, D)
    et = embt_ref[...]                                        # (D, K)
    esq = jnp.sum(e * e, axis=1, keepdims=True)               # (K, 1)
    dots = jnp.dot(e, z, preferred_element_type=jnp.float32)  # (K, M)
    # argmin_k(||z||^2 + ||e_k||^2 - 2 z.e_k) == argmin_k(||e_k||^2 - 2 z.e_k)
    dist = esq - 2.0 * dots
    kk = dist.shape[0]
    row = jax.lax.broadcasted_iota(jnp.int32, dist.shape, 0)
    min_d = jnp.min(dist, axis=0, keepdims=True)              # (1, M)
    cand = jnp.where(dist <= min_d, row, kk)
    first = jnp.min(cand, axis=0, keepdims=True)              # (1, M)
    enc = (row == first).astype(jnp.float32)                  # (K, M) one-hot cols
    q = jnp.dot(et, enc, preferred_element_type=jnp.float32)  # (D, M) quantized

    diff = q - z
    tot = jnp.sum(jnp.sum(diff * diff, axis=1, keepdims=True), axis=0, keepdims=True)
    mse = tot / float(z.shape[0] * z.shape[1])                # (1, 1)
    # forward value of q_latent_loss + commitment_cost * e_latent_loss
    loss = (1.0 + commitment_cost) * mse

    avg = jnp.mean(enc, axis=1, keepdims=True)                # (K, 1)
    ent = jnp.sum(avg * jnp.log(avg + 1e-10), axis=0, keepdims=True)
    perp = jnp.exp(-ent)                                      # (1, 1)

    lane = jax.lax.broadcasted_iota(jnp.int32, (1, 128), 1)
    stats_ref[...] = (jnp.where(lane == 0, loss, 0.0)
                      + jnp.where(lane == 1, perp, 0.0))

    # ---- decoder head: conv1 + residual stack (+ stack-final ReLU) ----
    # (straight-through estimator passes q forward unchanged)
    d = conv3x3(q, dc1w_ref, dc1b_ref[...])
    d = resblock(d, dr0w3_ref, dr0w1_ref)
    d = resblock(d, dr1w3_ref, dr1w1_ref)
    y_ref[...] = jnp.maximum(d, 0.0)


# ------------------------- Pallas wrappers -------------------------

def _conv_gemm(w2d_bf16, patches_bf16, bias, relu_out):
    n, k = w2d_bf16.shape
    m = patches_bf16.shape[1]
    tm = _pick_tm(m)
    assert m % tm == 0
    grid = (m // tm,)
    kern = functools.partial(_conv_gemm_kernel, relu_out=relu_out)
    return pl.pallas_call(
        kern,
        out_shape=jax.ShapeDtypeStruct((n, m), jnp.float32),
        grid=grid,
        in_specs=[pl.BlockSpec((n, k), lambda i: (0, 0)),
                  pl.BlockSpec((k, tm), lambda i: (0, i)),
                  pl.BlockSpec((n, 1), lambda i: (0, 0))],
        out_specs=pl.BlockSpec((n, tm), lambda i: (0, i)),
        compiler_params=pltpu.CompilerParams(
            dimension_semantics=("arbitrary",) if grid[0] == 1 else ("parallel",),
            vmem_limit_bytes=VMEM_LIMIT),
    )(w2d_bf16, patches_bf16, bias)


def _im2col_t(x_t, kh, kw, stride, padding):
    # x_t: (C, B, H, W)  ->  patches (C*kh*kw, B*OH*OW); row order (c, ky, kx).
    c, b, h, w = x_t.shape
    xp = jnp.pad(x_t, ((0, 0), (0, 0), (padding, padding), (padding, padding)))
    oh = (h + 2 * padding - kh) // stride + 1
    ow = (w + 2 * padding - kw) // stride + 1
    cols = []
    for di in range(kh):
        for dj in range(kw):
            cols.append(xp[:, :, di:di + stride * oh:stride, dj:dj + stride * ow:stride])
    p = jnp.stack(cols, axis=1)                       # (C, kh*kw, B, OH, OW)
    return p.reshape(c * kh * kw, b * oh * ow), oh, ow


def conv2d_t(x_t, w, b, stride=1, padding=0, relu_out=False):
    # x_t: (C_in, B, H, W); w: PyTorch Conv2d layout (C_out, C_in, kh, kw)
    c_out, c_in, kh, kw = w.shape
    bsz = x_t.shape[1]
    # bf16 cast in the glue -> patches are materialized (and DMA'd) in bf16.
    patches, oh, ow = _im2col_t(x_t.astype(jnp.bfloat16), kh, kw, stride, padding)
    w2d = w.reshape(c_out, c_in * kh * kw).astype(jnp.bfloat16)
    bias = (b if b is not None else jnp.zeros((c_out,), jnp.float32)).reshape(c_out, 1)
    y = _conv_gemm(w2d, patches, bias, relu_out)          # (C_out, B*OH*OW)
    return y.reshape(c_out, bsz, oh, ow)


def _subpixel_weight(w_t):
    # w_t: PyTorch ConvTranspose2d layout (C_in, C_out, 4, 4) with stride=2, padding=1.
    # Pack into a (4*C_out, 9*C_in) matrix acting on a stride-1 3x3 im2col of the
    # (zero-padded by 1) input.  Output rows ordered (ry, rx, c_out):
    #   out[2jy+ry, 2jx+rx] = sum_{dy,dx in {0,1}} w[:, :, 3-ry-2dy, 3-rx-2dx] * xpad[jy+ry+dy, jx+rx+dx]
    c_in, c_out = w_t.shape[0], w_t.shape[1]
    wb = jnp.zeros((2, 2, c_out, c_in, 3, 3), w_t.dtype)
    for ry in range(2):
        for rx in range(2):
            for dy in range(2):
                for dx in range(2):
                    ky = 3 - ry - 2 * dy
                    kx = 3 - rx - 2 * dx
                    wb = wb.at[ry, rx, :, :, ry + dy, rx + dx].set(w_t[:, :, ky, kx].T)
    return wb.reshape(4 * c_out, c_in * 9)


def conv_transpose2d_t(x_t, w_t, b, relu_out=False):
    # Sub-pixel decomposition of ConvTranspose2d(k=4, s=2, p=1); no zero-dilated input.
    c_in, bsz, h, w = x_t.shape
    c_out = w_t.shape[1]
    patches, _, _ = _im2col_t(x_t.astype(jnp.bfloat16), 3, 3, stride=1, padding=1)
    wbig = _subpixel_weight(w_t).astype(jnp.bfloat16)           # (4*C_out, 9*C_in)
    bias = jnp.tile(b, 4).reshape(4 * c_out, 1)
    y = _conv_gemm(wbig, patches, bias, relu_out)               # (4*C_out, B*H*W)
    y = y.reshape(2, 2, c_out, bsz, h, w)
    y = y.transpose(2, 3, 4, 0, 5, 1)                           # (C_out, B, H, 2, W, 2)
    return y.reshape(c_out, bsz, 2 * h, 2 * w)


@functools.lru_cache(maxsize=None)
def _shift_matrices(bsz, hh, ww):
    # 9 (M, M) 0/1 matrices: (X @ S_t)[:, m] = X[:, neighbour_t(m)] with zero padding.
    m = bsz * hh * ww
    idx = np.arange(m)
    b = idx // (hh * ww)
    y = (idx // ww) % hh
    x = idx % ww
    mats = np.zeros((9, m, m), np.float32)
    t = 0
    for dy in (-1, 0, 1):
        for dx in (-1, 0, 1):
            yy, xx = y + dy, x + dx
            valid = (yy >= 0) & (yy < hh) & (xx >= 0) & (xx < ww)
            src = b * hh * ww + np.clip(yy, 0, hh - 1) * ww + np.clip(xx, 0, ww - 1)
            mats[t, src[valid], idx[valid]] = 1.0
            t += 1
    return jnp.asarray(mats)                                    # (9, M, M)


def _w9(w):
    # (C_out, C_in, 3, 3) -> (9, C_out, C_in), tap index t = ky*3 + kx.
    c_out, c_in = w.shape[0], w.shape[1]
    return jnp.transpose(w, (2, 3, 0, 1)).reshape(9, c_out, c_in)


def fused_bottleneck(h_t, params):
    # h_t: (NUM_HIDDENS, B, 8, 8) f32 output of enc_c2 (already ReLU'd).
    c, bsz, hh, ww = h_t.shape
    m = bsz * hh * ww
    smats = _shift_matrices(bsz, hh, ww)

    ec3_w, ec3_b = params['enc_c3']
    (er0_w3, er0_w1), (er1_w3, er1_w1) = params['enc_res']
    pvq_w, pvq_b = params['pre_vq']
    emb = params['embedding']
    dc1_w, dc1_b = params['dec_c1']
    (dr0_w3, dr0_w1), (dr1_w3, dr1_w1) = params['dec_res']

    args = (
        h_t.reshape(c, m), smats,
        _w9(ec3_w), ec3_b.reshape(-1, 1),
        _w9(er0_w3), er0_w1.reshape(er0_w1.shape[0], er0_w1.shape[1]),
        _w9(er1_w3), er1_w1.reshape(er1_w1.shape[0], er1_w1.shape[1]),
        pvq_w.reshape(pvq_w.shape[0], pvq_w.shape[1]), pvq_b.reshape(-1, 1),
        emb, emb.T,
        _w9(dc1_w), dc1_b.reshape(-1, 1),
        _w9(dr0_w3), dr0_w1.reshape(dr0_w1.shape[0], dr0_w1.shape[1]),
        _w9(dr1_w3), dr1_w1.reshape(dr1_w1.shape[0], dr1_w1.shape[1]),
    )
    kern = functools.partial(_bottleneck_kernel, commitment_cost=COMMITMENT_COST)
    y, stats = pl.pallas_call(
        kern,
        out_shape=(jax.ShapeDtypeStruct((NUM_HIDDENS, m), jnp.float32),
                   jax.ShapeDtypeStruct((1, 128), jnp.float32)),
        grid=(1,),
        in_specs=[_full_spec(a.shape) for a in args],
        out_specs=(_full_spec((NUM_HIDDENS, m)), _full_spec((1, 128))),
        compiler_params=pltpu.CompilerParams(
            dimension_semantics=("arbitrary",),
            vmem_limit_bytes=VMEM_LIMIT),
    )(*args)
    return stats[0, 0], y.reshape(NUM_HIDDENS, bsz, hh, ww), stats[0, 1]


# ------------------------- parameters -------------------------

def _conv_init(key, c_out, c_in, kh, kw, bias=True):
    fan_in = c_in * kh * kw
    bound = 1.0 / math.sqrt(fan_in)
    k1, k2 = jax.random.split(key)
    w = jax.random.uniform(k1, (c_out, c_in, kh, kw), jnp.float32, -bound, bound)
    b = jax.random.uniform(k2, (c_out,), jnp.float32, -bound, bound) if bias else None
    return w, b


def init_params(key):
    hh, rh, nl = NUM_HIDDENS, NUM_RESIDUAL_HIDDENS, NUM_RESIDUAL_LAYERS
    keys = iter(jax.random.split(key, 32))
    p = {}
    # encoder
    p['enc_c1'] = _conv_init(next(keys), hh // 2, 3, 4, 4)
    p['enc_c2'] = _conv_init(next(keys), hh, hh // 2, 4, 4)
    p['enc_c3'] = _conv_init(next(keys), hh, hh, 3, 3)
    p['enc_res'] = [(_conv_init(next(keys), rh, hh, 3, 3, bias=False)[0],
                     _conv_init(next(keys), hh, rh, 1, 1, bias=False)[0])
                    for _ in range(nl)]
    # pre-VQ 1x1 conv
    p['pre_vq'] = _conv_init(next(keys), EMBEDDING_DIM, hh, 1, 1)
    # codebook (uniform(-1/K, 1/K) as in VectorQuantizer.__init__)
    p['embedding'] = jax.random.uniform(
        next(keys), (NUM_EMBEDDINGS, EMBEDDING_DIM), jnp.float32,
        -1.0 / NUM_EMBEDDINGS, 1.0 / NUM_EMBEDDINGS)
    # decoder
    p['dec_c1'] = _conv_init(next(keys), hh, EMBEDDING_DIM, 3, 3)
    p['dec_res'] = [(_conv_init(next(keys), rh, hh, 3, 3, bias=False)[0],
                     _conv_init(next(keys), hh, rh, 1, 1, bias=False)[0])
                    for _ in range(nl)]
    # transposed convs: PyTorch weight layout (C_in, C_out, kh, kw)
    k1, k2 = jax.random.split(next(keys))
    b1 = 1.0 / math.sqrt(hh * 16)
    p['dec_t1'] = (jax.random.uniform(k1, (hh, hh // 2, 4, 4), jnp.float32, -b1, b1),
                   jax.random.uniform(k2, (hh // 2,), jnp.float32, -b1, b1))
    k1, k2 = jax.random.split(next(keys))
    b2 = 1.0 / math.sqrt((hh // 2) * 16)
    p['dec_t2'] = (jax.random.uniform(k1, (hh // 2, 3, 4, 4), jnp.float32, -b2, b2),
                   jax.random.uniform(k2, (3,), jnp.float32, -b2, b2))
    return p


# ------------------------- model forward -------------------------

def model_forward(params, x):
    # x: NCHW (B, 3, H, W) -> transposed CNHW layout once at the input
    xt = jnp.transpose(x, (1, 0, 2, 3))
    # Encoder front (strided 4x4 convs, GEMM kernels)
    h = conv2d_t(xt, *params['enc_c1'], stride=2, padding=1, relu_out=True)
    h = conv2d_t(h, *params['enc_c2'], stride=2, padding=1, relu_out=True)
    # Fused bottleneck: enc_c3 -> enc res stack -> pre_vq -> VQ -> dec_c1 -> dec res stack
    loss, q_dec, perplexity = fused_bottleneck(h, params)
    # Decoder upsampling (sub-pixel transposed-conv GEMM kernels)
    d = conv_transpose2d_t(q_dec, *params['dec_t1'], relu_out=True)
    xr_t = conv_transpose2d_t(d, *params['dec_t2'])
    x_recon = jnp.transpose(xr_t, (1, 0, 2, 3))    # back to NCHW once at the output
    return loss, x_recon, perplexity


if __name__ == "__main__":
    key = jax.random.PRNGKey(0)
    pkey, xkey = jax.random.split(key)
    params = init_params(pkey)
    x = jax.random.normal(xkey, (2, 3, 32, 32), jnp.float32)   # NCHW, like PyTorch

    fwd = jax.jit(model_forward)
    loss, x_recon, perplexity = fwd(params, x)
    jax.block_until_ready((loss, x_recon, perplexity))

    assert x_recon.shape == (2, 3, 32, 32)
    assert loss.shape == () and perplexity.shape == ()
    print("KERNEL_OK")
</pallas_src>

<mosaic_0001>
module attributes {stable_mosaic.version = 11 : i64} {
  func.func @_conv_gemm_kernel(%arg0: i32, %arg1: memref<16x48xbf16, #tpu.memory_space<vmem>>, %arg2: memref<48x512xbf16, #tpu.memory_space<vmem>>, %arg3: memref<16x1xf32, #tpu.memory_space<vmem>>, %arg4: memref<16x512xf32, #tpu.memory_space<vmem>>) attributes {dimension_semantics = [#tpu.dimension_semantics<arbitrary>], iteration_bounds = array<i64: 1>, scalar_prefetch = 0 : i64, scratch_operands = 0 : i64, tpu.core_type = #tpu.core_type<tc>, window_params = [{pipeline_mode = #tpu.pipeline_mode<synchronous>, transform_indices = @transform_0, window_bounds = array<i64: 16, 48>}, {transform_indices = @transform_1, window_bounds = array<i64: 48, 512>}, {pipeline_mode = #tpu.pipeline_mode<synchronous>, transform_indices = @transform_2, window_bounds = array<i64: 16, 1>}, {transform_indices = @transform_3, window_bounds = array<i64: 16, 512>}]} {
    %c0 = arith.constant 0 : index
    %c0_0 = arith.constant 0 : index
    %0 = vector.load %arg1[%c0, %c0_0] : memref<16x48xbf16, #tpu.memory_space<vmem>>, vector<16x48xbf16>
    %c0_1 = arith.constant 0 : index
    %c0_2 = arith.constant 0 : index
    %1 = vector.load %arg2[%c0_1, %c0_2] : memref<48x512xbf16, #tpu.memory_space<vmem>>, vector<48x512xbf16>
    %cst = arith.constant dense<0.000000e+00> : vector<16x512xf32>
    %2 = tpu.matmul %0, %1, %cst {dimension_numbers = #tpu.dot_dimension_numbers<[1], [0], [0], [1], [0, 0, 1, 1], [], []>} : vector<16x48xbf16>, vector<48x512xbf16>, vector<16x512xf32> -> vector<16x512xf32>
    %c0_3 = arith.constant 0 : index
    %c0_4 = arith.constant 0 : index
    %3 = vector.load %arg3[%c0_3, %c0_4] : memref<16x1xf32, #tpu.memory_space<vmem>>, vector<16x1xf32>
    %4 = vector.broadcast %3 : vector<16x1xf32> to vector<16x512xf32>
    %5 = arith.addf %2, %4 : vector<16x512xf32>
    %cst_5 = arith.constant 0.000000e+00 : f32
    %6 = vector.broadcast %cst_5 : f32 to vector<16x512xf32>
    %7 = arith.maximumf %5, %6 : vector<16x512xf32>
    %c0_6 = arith.constant 0 : index
    %c0_7 = arith.constant 0 : index
    %8 = vector.load %arg4[%c0_6, %c0_7] : memref<16x512xf32, #tpu.memory_space<vmem>>, vector<16x512xf32>
    tpu.vector_store %arg4[%c0_6, %c0_7], %7 {strides = array<i32>} : memref<16x512xf32, #tpu.memory_space<vmem>>, vector<16x512xf32>,
    return
  }
  func.func @transform_0(%arg0: i32) -> (i32, i32) {
    %c0_i32 = arith.constant 0 : i32
    %c0_i32_0 = arith.constant 0 : i32
    %c0_i32_1 = arith.constant 0 : i32
    return %c0_i32, %c0_i32_0 : i32, i32
  }
  func.func @transform_1(%arg0: i32) -> (i32, i32) {
    %c0_i32 = arith.constant 0 : i32
    %c0_i32_0 = arith.constant 0 : i32
    return %c0_i32, %arg0 : i32, i32
  }
  func.func @transform_2(%arg0: i32) -> (i32, i32) {
    %c0_i32 = arith.constant 0 : i32
    %c0_i32_0 = arith.constant 0 : i32
    %c0_i32_1 = arith.constant 0 : i32
    return %c0_i32, %c0_i32_0 : i32, i32
  }
  func.func @transform_3(%arg0: i32) -> (i32, i32) {
    %c0_i32 = arith.constant 0 : i32
    %c0_i32_0 = arith.constant 0 : i32
    return %c0_i32, %arg0 : i32, i32
  }
}

module attributes {stable_mosaic.version = 11 : i64} {
  func.func @_conv_gemm_kernel(%arg0: i32, %arg1: memref<32x256xbf16, #tpu.memory_space<vmem>>, %arg2: memref<256x128xbf16, #tpu.memory_space<vmem>>, %arg3: memref<32x1xf32, #tpu.memory_space<vmem>>, %arg4: memref<32x128xf32, #tpu.memory_space<vmem>>) attributes {dimension_semantics = [#tpu.dimension_semantics<arbitrary>], iteration_bounds = array<i64: 1>, scalar_prefetch = 0 : i64, scratch_operands = 0 : i64, tpu.core_type = #tpu.core_type<tc>, window_params = [{pipeline_mode = #tpu.pipeline_mode<synchronous>, transform_indices = @transform_0, window_bounds = array<i64: 32, 256>}, {transform_indices = @transform_1, window_bounds = array<i64: 256, 128>}, {pipeline_mode = #tpu.pipeline_mode<synchronous>, transform_indices = @transform_2, window_bounds = array<i64: 32, 1>}, {transform_indices = @transform_3, window_bounds = array<i64: 32, 128>}]} {
    %c0 = arith.constant 0 : index
    %c0_0 = arith.constant 0 : index
    %0 = vector.load %arg1[%c0, %c0_0] : memref<32x256xbf16, #tpu.memory_space<vmem>>, vector<32x256xbf16>
    %c0_1 = arith.constant 0 : index
    %c0_2 = arith.constant 0 : index
    %1 = vector.load %arg2[%c0_1, %c0_2] : memref<256x128xbf16, #tpu.memory_space<vmem>>, vector<256x128xbf16>
    %cst = arith.constant dense<0.000000e+00> : vector<32x128xf32>
    %2 = tpu.matmul %0, %1, %cst {dimension_numbers = #tpu.dot_dimension_numbers<[1], [0], [0], [1], [0, 0, 1, 1], [], []>} : vector<32x256xbf16>, vector<256x128xbf16>, vector<32x128xf32> -> vector<32x128xf32>
    %c0_3 = arith.constant 0 : index
    %c0_4 = arith.constant 0 : index
    %3 = vector.load %arg3[%c0_3, %c0_4] : memref<32x1xf32, #tpu.memory_space<vmem>>, vector<32x1xf32>
    %4 = vector.broadcast %3 : vector<32x1xf32> to vector<32x128xf32>
    %5 = arith.addf %2, %4 : vector<32x128xf32>
    %cst_5 = arith.constant 0.000000e+00 : f32
    %6 = vector.broadcast %cst_5 : f32 to vector<32x128xf32>
    %7 = arith.maximumf %5, %6 : vector<32x128xf32>
    %c0_6 = arith.constant 0 : index
    %c0_7 = arith.constant 0 : index
    %8 = vector.load %arg4[%c0_6, %c0_7] : memref<32x128xf32, #tpu.memory_space<vmem>>, vector<32x128xf32>
    tpu.vector_store %arg4[%c0_6, %c0_7], %7 {strides = array<i32>} : memref<32x128xf32, #tpu.memory_space<vmem>>, vector<32x128xf32>,
    return
  }
  func.func @transform_0(%arg0: i32) -> (i32, i32) {
    %c0_i32 = arith.constant 0 : i32
    %c0_i32_0 = arith.constant 0 : i32
    %c0_i32_1 = arith.constant 0 : i32
    return %c0_i32, %c0_i32_0 : i32, i32
  }
  func.func @transform_1(%arg0: i32) -> (i32, i32) {
    %c0_i32 = arith.constant 0 : i32
    %c0_i32_0 = arith.constant 0 : i32
    return %c0_i32, %arg0 : i32, i32
  }
  func.func @transform_2(%arg0: i32) -> (i32, i32) {
    %c0_i32 = arith.constant 0 : i32
    %c0_i32_0 = arith.constant 0 : i32
    %c0_i32_1 = arith.constant 0 : i32
    return %c0_i32, %c0_i32_0 : i32, i32
  }
  func.func @transform_3(%arg0: i32) -> (i32, i32) {
    %c0_i32 = arith.constant 0 : i32
    %c0_i32_0 = arith.constant 0 : i32
    return %c0_i32, %arg0 : i32, i32
  }
}

module attributes {stable_mosaic.version = 11 : i64} {
  func.func @_bottleneck_kernel(%arg0: i32, %arg1: memref<32x128xf32, #tpu.memory_space<vmem>>, %arg2: memref<9x128x128xf32, #tpu.memory_space<vmem>>, %arg3: memref<9x32x32xf32, #tpu.memory_space<vmem>>, %arg4: memref<32x1xf32, #tpu.memory_space<vmem>>, %arg5: memref<9x16x32xf32, #tpu.memory_space<vmem>>, %arg6: memref<32x16xf32, #tpu.memory_space<vmem>>, %arg7: memref<9x16x32xf32, #tpu.memory_space<vmem>>, %arg8: memref<32x16xf32, #tpu.memory_space<vmem>>, %arg9: memref<32x32xf32, #tpu.memory_space<vmem>>, %arg10: memref<32x1xf32, #tpu.memory_space<vmem>>, %arg11: memref<128x32xf32, #tpu.memory_space<vmem>>, %arg12: memref<32x128xf32, #tpu.memory_space<vmem>>, %arg13: memref<9x32x32xf32, #tpu.memory_space<vmem>>, %arg14: memref<32x1xf32, #tpu.memory_space<vmem>>, %arg15: memref<9x16x32xf32, #tpu.memory_space<vmem>>, %arg16: memref<32x16xf32, #tpu.memory_space<vmem>>, %arg17: memref<9x16x32xf32, #tpu.memory_space<vmem>>, %arg18: memref<32x16xf32, #tpu.memory_space<vmem>>, %arg19: memref<32x128xf32, #tpu.memory_space<vmem>>, %arg20: memref<1x128xf32, #tpu.memory_space<vmem>>) attributes {dimension_semantics = [#tpu.dimension_semantics<arbitrary>], iteration_bounds = array<i64: 1>, scalar_prefetch = 0 : i64, scratch_operands = 0 : i64, tpu.core_type = #tpu.core_type<tc>, window_params = [{pipeline_mode = #tpu.pipeline_mode<synchronous>, transform_indices = @transform_0, window_bounds = array<i64: 32, 128>}, {pipeline_mode = #tpu.pipeline_mode<synchronous>, transform_indices = @transform_1, window_bounds = array<i64: 9, 128, 128>}, {pipeline_mode = #tpu.pipeline_mode<synchronous>, transform_indices = @transform_2, window_bounds = array<i64: 9, 32, 32>}, {pipeline_mode = #tpu.pipeline_mode<synchronous>, transform_indices = @transform_3, window_bounds = array<i64: 32, 1>}, {pipeline_mode = #tpu.pipeline_mode<synchronous>, transform_indices = @transform_4, window_bounds = array<i64: 9, 16, 32>}, {pipeline_mode = #tpu.pipeline_mode<synchronous>, transform_indices = @transform_5, window_bounds = array<i64: 32, 16>}, {pipeline_mode = #tpu.pipeline_mode<synchronous>, transform_indices = @transform_6, window_bounds = array<i64: 9, 16, 32>}, {pipeline_mode = #tpu.pipeline_mode<synchronous>, transform_indices = @transform_7, window_bounds = array<i64: 32, 16>}, {pipeline_mode = #tpu.pipeline_mode<synchronous>, transform_indices = @transform_8, window_bounds = array<i64: 32, 32>}, {pipeline_mode = #tpu.pipeline_mode<synchronous>, transform_indices = @transform_9, window_bounds = array<i64: 32, 1>}, {pipeline_mode = #tpu.pipeline_mode<synchronous>, transform_indices = @transform_10, window_bounds = array<i64: 128, 32>}, {pipeline_mode = #tpu.pipeline_mode<synchronous>, transform_indices = @transform_11, window_bounds = array<i64: 32, 128>}, {pipeline_mode = #tpu.pipeline_mode<synchronous>, transform_indices = @transform_12, window_bounds = array<i64: 9, 32, 32>}, {pipeline_mode = #tpu.pipeline_mode<synchronous>, transform_indices = @transform_13, window_bounds = array<i64: 32, 1>}, {pipeline_mode = #tpu.pipeline_mode<synchronous>, transform_indices = @transform_14, window_bounds = array<i64: 9, 16, 32>}, {pipeline_mode = #tpu.pipeline_mode<synchronous>, transform_indices = @transform_15, window_bounds = array<i64: 32, 16>}, {pipeline_mode = #tpu.pipeline_mode<synchronous>, transform_indices = @transform_16, window_bounds = array<i64: 9, 16, 32>}, {pipeline_mode = #tpu.pipeline_mode<synchronous>, transform_indices = @transform_17, window_bounds = array<i64: 32, 16>}, {pipeline_mode = #tpu.pipeline_mode<synchronous>, transform_indices = @transform_18, window_bounds = array<i64: 32, 128>}, {pipeline_mode = #tpu.pipeline_mode<synchronous>, transform_indices = @transform_19, window_bounds = array<i64: 1, 128>}]} {
    %c0 = arith.constant 0 : index
    %c0_0 = arith.constant 0 : index
    %0 = vector.load %arg1[%c0, %c0_0] : memref<32x128xf32, #tpu.memory_space<vmem>>, vector<32x128xf32>
    %c0_1 = arith.constant 0 : index
    %c0_2 = arith.constant 0 : index
    %1 = vector.load %arg4[%c0_1, %c0_2] : memref<32x1xf32, #tpu.memory_space<vmem>>, vector<32x1xf32>
    %c0_3 = arith.constant 0 : index
    %c0_4 = arith.constant 0 : index
    %c0_5 = arith.constant 0 : index
    %2 = vector.load %arg2[%c0_3, %c0_4, %c0_5] : memref<9x128x128xf32, #tpu.memory_space<vmem>>, vector<1x128x128xf32>
    %3 = vector.shape_cast %2 : vector<1x128x128xf32> to vector<128x128xf32>
    %cst = arith.constant dense<0.000000e+00> : vector<32x128xf32>
    %4 = tpu.matmul %0, %3, %cst {dimension_numbers = #tpu.dot_dimension_numbers<[1], [0], [0], [1], [0, 0, 1, 1], [], []>} : vector<32x128xf32>, vector<128x128xf32>, vector<32x128xf32> -> vector<32x128xf32>
    %c0_6 = arith.constant 0 : index
    %c0_7 = arith.constant 0 : index
    %c0_8 = arith.constant 0 : index
    %5 = vector.load %arg3[%c0_6, %c0_7, %c0_8] : memref<9x32x32xf32, #tpu.memory_space<vmem>>, vector<1x32x32xf32>
    %6 = vector.shape_cast %5 : vector<1x32x32xf32> to vector<32x32xf32>
    %cst_9 = arith.constant dense<0.000000e+00> : vector<32x128xf32>
    %7 = tpu.matmul %6, %4, %cst_9 {dimension_numbers = #tpu.dot_dimension_numbers<[1], [0], [0], [1], [0, 0, 1, 1], [], []>} : vector<32x32xf32>, vector<32x128xf32>, vector<32x128xf32> -> vector<32x128xf32>
    %c1 = arith.constant 1 : index
    %c0_10 = arith.constant 0 : index
    %c0_11 = arith.constant 0 : index
    %8 = vector.load %arg2[%c1, %c0_10, %c0_11] : memref<9x128x128xf32, #tpu.memory_space<vmem>>, vector<1x128x128xf32>
    %9 = vector.shape_cast %8 : vector<1x128x128xf32> to vector<128x128xf32>
    %cst_12 = arith.constant dense<0.000000e+00> : vector<32x128xf32>
    %10 = tpu.matmul %0, %9, %cst_12 {dimension_numbers = #tpu.dot_dimension_numbers<[1], [0], [0], [1], [0, 0, 1, 1], [], []>} : vector<32x128xf32>, vector<128x128xf32>, vector<32x128xf32> -> vector<32x128xf32>
    %c1_13 = arith.constant 1 : index
    %c0_14 = arith.constant 0 : index
    %c0_15 = arith.constant 0 : index
    %11 = vector.load %arg3[%c1_13, %c0_14, %c0_15] : memref<9x32x32xf32, #tpu.memory_space<vmem>>, vector<1x32x32xf32>
    %12 = vector.shape_cast %11 : vector<1x32x32xf32> to vector<32x32xf32>
    %cst_16 = arith.constant dense<0.000000e+00> : vector<32x128xf32>
    %13 = tpu.matmul %12, %10, %cst_16 {dimension_numbers = #tpu.dot_dimension_numbers<[1], [0], [0], [1], [0, 0, 1, 1], [], []>} : vector<32x32xf32>, vector<32x128xf32>, vector<32x128xf32> -> vector<32x128xf32>
    %14 = arith.addf %7, %13 : vector<32x128xf32>
    %c2 = arith.constant 2 : index
    %c0_17 = arith.constant 0 : index
    %c0_18 = arith.constant 0 : index
    %15 = vector.load %arg2[%c2, %c0_17, %c0_18] : memref<9x128x128xf32, #tpu.memory_space<vmem>>, vector<1x128x128xf32>
    %16 = vector.shape_cast %15 : vector<1x128x128xf32> to vector<128x128xf32>
    %cst_19 = arith.constant dense<0.000000e+00> : vector<32x128xf32>
    %17 = tpu.matmul %0, %16, %cst_19 {dimension_numbers = #tpu.dot_dimension_numbers<[1], [0], [0], [1], [0, 0, 1, 1], [], []>} : vector<32x128xf32>, vector<128x128xf32>, vector<32x128xf32> -> vector<32x128xf32>
    %c2_20 = arith.constant 2 : index
    %c0_21 = arith.constant 0 : index
    %c0_22 = arith.constant 0 : index
    %18 = vector.load %arg3[%c2_20, %c0_21, %c0_22] : memref<9x32x32xf32, #tpu.memory_space<vmem>>, vector<1x32x32xf32>
    %19 = vector.shape_cast %18 : vector<1x32x32xf32> to vector<32x32xf32>
    %cst_23 = arith.constant dense<0.000000e+00> : vector<32x128xf32>
    %20 = tpu.matmul %19, %17, %cst_23 {dimension_numbers = #tpu.dot_dimension_numbers<[1], [0], [0], [1], [0, 0, 1, 1], [], []>} : vector<32x32xf32>, vector<32x128xf32>, vector<32x128xf32> -> vector<32x128xf32>
    %21 = arith.addf %14, %20 : vector<32x128xf32>
    %c3 = arith.constant 3 : index
    %c0_24 = arith.constant 0 : index
    %c0_25 = arith.constant 0 : index
    %22 = vector.load %arg2[%c3, %c0_24, %c0_25] : memref<9x128x128xf32, #tpu.memory_space<vmem>>, vector<1x128x128xf32>
    %23 = vector.shape_cast %22 : vector<1x128x128xf32> to vector<128x128xf32>
    %cst_26 = arith.constant dense<0.000000e+00> : vector<32x128xf32>
    %24 = tpu.matmul %0, %23, %cst_26 {dimension_numbers = #tpu.dot_dimension_numbers<[1], [0], [0], [1], [0, 0, 1, 1], [], []>} : vector<32x128xf32>, vector<128x128xf32>, vector<32x128xf32> -> vector<32x128xf32>
    %c3_27 = arith.constant 3 : index
    %c0_28 = arith.constant 0 : index
    %c0_29 = arith.constant 0 : index
    %25 = vector.load %arg3[%c3_27, %c0_28, %c0_29] : memref<9x32x32xf32, #tpu.memory_space<vmem>>, vector<1x32x32xf32>
    %26 = vector.shape_cast %25 : vector<1x32x32xf32> to vector<32x32xf32>
    %cst_30 = arith.constant dense<0.000000e+00> : vector<32x128xf32>
    %27 = tpu.matmul %26, %24, %cst_30 {dimension_numbers = #tpu.dot_dimension_numbers<[1], [0], [0], [1], [0, 0, 1, 1], [], []>} : vector<32x32xf32>, vector<32x128xf32>, vector<32x128xf32> -> vector<32x128xf32>
    %28 = arith.addf %21, %27 : vector<32x128xf32>
    %c4 = arith.constant 4 : index
    %c0_31 = arith.constant 0 : index
    %c0_32 = arith.constant 0 : index
    %29 = vector.load %arg2[%c4, %c0_31, %c0_32] : memref<9x128x128xf32, #tpu.memory_space<vmem>>, vector<1x128x128xf32>
    %30 = vector.shape_cast %29 : vector<1x128x128xf32> to vector<128x128xf32>
    %cst_33 = arith.constant dense<0.000000e+00> : vector<32x128xf32>
    %31 = tpu.matmul %0, %30, %cst_33 {dimension_numbers = #tpu.dot_dimension_numbers<[1], [0], [0], [1], [0, 0, 1, 1], [], []>} : vector<32x128xf32>, vector<128x128xf32>, vector<32x128xf32> -> vector<32x128xf32>
    %c4_34 = arith.constant 4 : index
    %c0_35 = arith.constant 0 : index
    %c0_36 = arith.constant 0 : index
    %32 = vector.load %arg3[%c4_34, %c0_35, %c0_36] : memref<9x32x32xf32, #tpu.memory_space<vmem>>, vector<1x32x32xf32>
    %33 = vector.shape_cast %32 : vector<1x32x32xf32> to vector<32x32xf32>
    %cst_37 = arith.constant dense<0.000000e+00> : vector<32x128xf32>
    %34 = tpu.matmul %33, %31, %cst_37 {dimension_numbers = #tpu.dot_dimension_numbers<[1], [0], [0], [1], [0, 0, 1, 1], [], []>} : vector<32x32xf32>, vector<32x128xf32>, vector<32x128xf32> -> vector<32x128xf32>
    %35 = arith.addf %28, %34 : vector<32x128xf32>
    %c5 = arith.constant 5 : index
    %c0_38 = arith.constant 0 : index
    %c0_39 = arith.constant 0 : index
    %36 = vector.load %arg2[%c5, %c0_38, %c0_39] : memref<9x128x128xf32, #tpu.memory_space<vmem>>, vector<1x128x128xf32>
    %37 = vector.shape_cast %36 : vector<1x128x128xf32> to vector<128x128xf32>
    %cst_40 = arith.constant dense<0.000000e+00> : vector<32x128xf32>
    %38 = tpu.matmul %0, %37, %cst_40 {dimension_numbers = #tpu.dot_dimension_numbers<[1], [0], [0], [1], [0, 0, 1, 1], [], []>} : vector<32x128xf32>, vector<128x128xf32>, vector<32x128xf32> -> vector<32x128xf32>
    %c5_41 = arith.constant 5 : index
    %c0_42 = arith.constant 0 : index
    %c0_43 = arith.constant 0 : index
    %39 = vector.load %arg3[%c5_41, %c0_42, %c0_43] : memref<9x32x32xf32, #tpu.memory_space<vmem>>, vector<1x32x32xf32>
    %40 = vector.shape_cast %39 : vector<1x32x32xf32> to vector<32x32xf32>
    %cst_44 = arith.constant dense<0.000000e+00> : vector<32x128xf32>
    %41 = tpu.matmul %40, %38, %cst_44 {dimension_numbers = #tpu.dot_dimension_numbers<[1], [0], [0], [1], [0, 0, 1, 1], [], []>} : vector<32x32xf32>, vector<32x128xf32>, vector<32x128xf32> -> vector<32x128xf32>
    %42 = arith.addf %35, %41 : vector<32x128xf32>
    %c6 = arith.constant 6 : index
    %c0_45 = arith.constant 0 : index
    %c0_46 = arith.constant 0 : index
    %43 = vector.load %arg2[%c6, %c0_45, %c0_46] : memref<9x128x128xf32, #tpu.memory_space<vmem>>, vector<1x128x128xf32>
    %44 = vector.shape_cast %43 : vector<1x128x128xf32> to vector<128x128xf32>
    %cst_47 = arith.constant dense<0.000000e+00> : vector<32x128xf32>
    %45 = tpu.matmul %0, %44, %cst_47 {dimension_numbers = #tpu.dot_dimension_numbers<[1], [0], [0], [1], [0, 0, 1, 1], [], []>} : vector<32x128xf32>, vector<128x128xf32>, vector<32x128xf32> -> vector<32x128xf32>
    %c6_48 = arith.constant 6 : index
    %c0_49 = arith.constant 0 : index
    %c0_50 = arith.constant 0 : index
    %46 = vector.load %arg3[%c6_48, %c0_49, %c0_50] : memref<9x32x32xf32, #tpu.memory_space<vmem>>, vector<1x32x32xf32>
    %47 = vector.shape_cast %46 : vector<1x32x32xf32> to vector<32x32xf32>
    %cst_51 = arith.constant dense<0.000000e+00> : vector<32x128xf32>
    %48 = tpu.matmul %47, %45, %cst_51 {dimension_numbers = #tpu.dot_dimension_numbers<[1], [0], [0], [1], [0, 0, 1, 1], [], []>} : vector<32x32xf32>, vector<32x128xf32>, vector<32x128xf32> -> vector<32x128xf32>
    %49 = arith.addf %42, %48 : vector<32x128xf32>
    %c7 = arith.constant 7 : index
    %c0_52 = arith.constant 0 : index
    %c0_53 = arith.constant 0 : index
    %50 = vector.load %arg2[%c7, %c0_52, %c0_53] : memref<9x128x128xf32, #tpu.memory_space<vmem>>, vector<1x128x128xf32>
    %51 = vector.shape_cast %50 : vector<1x128x128xf32> to vector<128x128xf32>
    %cst_54 = arith.constant dense<0.000000e+00> : vector<32x128xf32>
    %52 = tpu.matmul %0, %51, %cst_54 {dimension_numbers = #tpu.dot_dimension_numbers<[1], [0], [0], [1], [0, 0, 1, 1], [], []>} : vector<32x128xf32>, vector<128x128xf32>, vector<32x128xf32> -> vector<32x128xf32>
    %c7_55 = arith.constant 7 : index
    %c0_56 = arith.constant 0 : index
    %c0_57 = arith.constant 0 : index
    %53 = vector.load %arg3[%c7_55, %c0_56, %c0_57] : memref<9x32x32xf32, #tpu.memory_space<vmem>>, vector<1x32x32xf32>
    %54 = vector.shape_cast %53 : vector<1x32x32xf32> to vector<32x32xf32>
    %cst_58 = arith.constant dense<0.000000e+00> : vector<32x128xf32>
    %55 = tpu.matmul %54, %52, %cst_58 {dimension_numbers = #tpu.dot_dimension_numbers<[1], [0], [0], [1], [0, 0, 1, 1], [], []>} : vector<32x32xf32>, vector<32x128xf32>, vector<32x128xf32> -> vector<32x128xf32>
    %56 = arith.addf %49, %55 : vector<32x128xf32>
    %c8 = arith.constant 8 : index
    %c0_59 = arith.constant 0 : index
    %c0_60 = arith.constant 0 : index
    %57 = vector.load %arg2[%c8, %c0_59, %c0_60] : memref<9x128x128xf32, #tpu.memory_space<vmem>>, vector<1x128x128xf32>
    %58 = vector.shape_cast %57 : vector<1x128x128xf32> to vector<128x128xf32>
    %cst_61 = arith.constant dense<0.000000e+00> : vector<32x128xf32>
    %59 = tpu.matmul %0, %58, %cst_61 {dimension_numbers = #tpu.dot_dimension_numbers<[1], [0], [0], [1], [0, 0, 1, 1], [], []>} : vector<32x128xf32>, vector<128x128xf32>, vector<32x128xf32> -> vector<32x128xf32>
    %c8_62 = arith.constant 8 : index
    %c0_63 = arith.constant 0 : index
    %c0_64 = arith.constant 0 : index
    %60 = vector.load %arg3[%c8_62, %c0_63, %c0_64] : memref<9x32x32xf32, #tpu.memory_space<vmem>>, vector<1x32x32xf32>
    %61 = vector.shape_cast %60 : vector<1x32x32xf32> to vector<32x32xf32>
    %cst_65 = arith.constant dense<0.000000e+00> : vector<32x128xf32>
    %62 = tpu.matmul %61, %59, %cst_65 {dimension_numbers = #tpu.dot_dimension_numbers<[1], [0], [0], [1], [0, 0, 1, 1], [], []>} : vector<32x32xf32>, vector<32x128xf32>, vector<32x128xf32> -> vector<32x128xf32>
    %63 = arith.addf %56, %62 : vector<32x128xf32>
    %64 = vector.broadcast %1 : vector<32x1xf32> to vector<32x128xf32>
    %65 = arith.addf %63, %64 : vector<32x128xf32>
    %cst_66 = arith.constant 0.000000e+00 : f32
    %66 = vector.broadcast %cst_66 : f32 to vector<32x128xf32>
    %67 = arith.maximumf %65, %66 : vector<32x128xf32>
    %c0_67 = arith.constant 0 : index
    %c0_68 = arith.constant 0 : index
    %c0_69 = arith.constant 0 : index
    %68 = vector.load %arg2[%c0_67, %c0_68, %c0_69] : memref<9x128x128xf32, #tpu.memory_space<vmem>>, vector<1x128x128xf32>
    %69 = vector.shape_cast %68 : vector<1x128x128xf32> to vector<128x128xf32>
    %cst_70 = arith.constant dense<0.000000e+00> : vector<32x128xf32>
    %70 = tpu.matmul %67, %69, %cst_70 {dimension_numbers = #tpu.dot_dimension_numbers<[1], [0], [0], [1], [0, 0, 1, 1], [], []>} : vector<32x128xf32>, vector<128x128xf32>, vector<32x128xf32> -> vector<32x128xf32>
    %c0_71 = arith.constant 0 : index
    %c0_72 = arith.constant 0 : index
    %c0_73 = arith.constant 0 : index
    %71 = vector.load %arg5[%c0_71, %c0_72, %c0_73] : memref<9x16x32xf32, #tpu.memory_space<vmem>>, vector<1x16x32xf32>
    %72 = vector.shape_cast %71 : vector<1x16x32xf32> to vector<16x32xf32>
    %cst_74 = arith.constant dense<0.000000e+00> : vector<16x128xf32>
    %73 = tpu.matmul %72, %70, %cst_74 {dimension_numbers = #tpu.dot_dimension_numbers<[1], [0], [0], [1], [0, 0, 1, 1], [], []>} : vector<16x32xf32>, vector<32x128xf32>, vector<16x128xf32> -> vector<16x128xf32>
    %c1_75 = arith.constant 1 : index
    %c0_76 = arith.constant 0 : index
    %c0_77 = arith.constant 0 : index
    %74 = vector.load %arg2[%c1_75, %c0_76, %c0_77] : memref<9x128x128xf32, #tpu.memory_space<vmem>>, vector<1x128x128xf32>
    %75 = vector.shape_cast %74 : vector<1x128x128xf32> to vector<128x128xf32>
    %cst_78 = arith.constant dense<0.000000e+00> : vector<32x128xf32>
    %76 = tpu.matmul %67, %75, %cst_78 {dimension_numbers = #tpu.dot_dimension_numbers<[1], [0], [0], [1], [0, 0, 1, 1], [], []>} : vector<32x128xf32>, vector<128x128xf32>, vector<32x128xf32> -> vector<32x128xf32>
    %c1_79 = arith.constant 1 : index
    %c0_80 = arith.constant 0 : index
    %c0_81 = arith.constant 0 : index
    %77 = vector.load %arg5[%c1_79, %c0_80, %c0_81] : memref<9x16x32xf32, #tpu.memory_space<vmem>>, vector<1x16x32xf32>
    %78 = vector.shape_cast %77 : vector<1x16x32xf32> to vector<16x32xf32>
    %cst_82 = arith.constant dense<0.000000e+00> : vector<16x128xf32>
    %79 = tpu.matmul %78, %76, %cst_82 {dimension_numbers = #tpu.dot_dimension_numbers<[1], [0], [0], [1], [0, 0, 1, 1], [], []>} : vector<16x32xf32>, vector<32x128xf32>, vector<16x128xf32> -> vector<16x128xf32>
    %80 = arith.addf %73, %79 : vector<16x128xf32>
    %c2_83 = arith.constant 2 : index
    %c0_84 = arith.constant 0 : index
    %c0_85 = arith.constant 0 : index
    %81 = vector.load %arg2[%c2_83, %c0_84, %c0_85] : memref<9x128x128xf32, #tpu.memory_space<vmem>>, vector<1x128x128xf32>
    %82 = vector.shape_cast %81 : vector<1x128x128xf32> to vector<128x128xf32>
    %cst_86 = arith.constant dense<0.000000e+00> : vector<32x128xf32>
    %83 = tpu.matmul %67, %82, %cst_86 {dimension_numbers = #tpu.dot_dimension_numbers<[1], [0], [0], [1], [0, 0, 1, 1], [], []>} : vector<32x128xf32>, vector<128x128xf32>, vector<32x128xf32> -> vector<32x128xf32>
    %c2_87 = arith.constant 2 : index
    %c0_88 = arith.constant 0 : index
    %c0_89 = arith.constant 0 : index
    %84 = vector.load %arg5[%c2_87, %c0_88, %c0_89] : memref<9x16x32xf32, #tpu.memory_space<vmem>>, vector<1x16x32xf32>
    %85 = vector.shape_cast %84 : vector<1x16x32xf32> to vector<16x32xf32>
    %cst_90 = arith.constant dense<0.000000e+00> : vector<16x128xf32>
    %86 = tpu.matmul %85, %83, %cst_90 {dimension_numbers = #tpu.dot_dimension_numbers<[1], [0], [0], [1], [0, 0, 1, 1], [], []>} : vector<16x32xf32>, vector<32x128xf32>, vector<16x128xf32> -> vector<16x128xf32>
    %87 = arith.addf %80, %86 : vector<16x128xf32>
    %c3_91 = arith.constant 3 : index
    %c0_92 = arith.constant 0 : index
    %c0_93 = arith.constant 0 : index
    %88 = vector.load %arg2[%c3_91, %c0_92, %c0_93] : memref<9x128x128xf32, #tpu.memory_space<vmem>>, vector<1x128x128xf32>
    %89 = vector.shape_cast %88 : vector<1x128x128xf32> to vector<128x128xf32>
    %cst_94 = arith.constant dense<0.000000e+00> : vector<32x128xf32>
    %90 = tpu.matmul %67, %89, %cst_94 {dimension_numbers = #tpu.dot_dimension_numbers<[1], [0], [0], [1], [0, 0, 1, 1], [], []>} : vector<32x128xf32>, vector<128x128xf32>, vector<32x128xf32> -> vector<32x128xf32>
    %c3_95 = arith.constant 3 : index
    %c0_96 = arith.constant 0 : index
    %c0_97 = arith.constant 0 : index
    %91 = vector.load %arg5[%c3_95, %c0_96, %c0_97] : memref<9x16x32xf32, #tpu.memory_space<vmem>>, vector<1x16x32xf32>
    %92 = vector.shape_cast %91 : vector<1x16x32xf32> to vector<16x32xf32>
    %cst_98 = arith.constant dense<0.000000e+00> : vector<16x128xf32>
    %93 = tpu.matmul %92, %90, %cst_98 {dimension_numbers = #tpu.dot_dimension_numbers<[1], [0], [0], [1], [0, 0, 1, 1], [], []>} : vector<16x32xf32>, vector<32x128xf32>, vector<16x128xf32> -> vector<16x128xf32>
    %94 = arith.addf %87, %93 : vector<16x128xf32>
    %c4_99 = arith.constant 4 : index
    %c0_100 = arith.constant 0 : index
    %c0_101 = arith.constant 0 : index
    %95 = vector.load %arg2[%c4_99, %c0_100, %c0_101] : memref<9x128x128xf32, #tpu.memory_space<vmem>>, vector<1x128x128xf32>
    %96 = vector.shape_cast %95 : vector<1x128x128xf32> to vector<128x128xf32>
    %cst_102 = arith.constant dense<0.000000e+00> : vector<32x128xf32>
    %97 = tpu.matmul %67, %96, %cst_102 {dimension_numbers = #tpu.dot_dimension_numbers<[1], [0], [0], [1], [0, 0, 1, 1], [], []>} : vector<32x128xf32>, vector<128x128xf32>, vector<32x128xf32> -> vector<32x128xf32>
    %c4_103 = arith.constant 4 : index
    %c0_104 = arith.constant 0 : index
    %c0_105 = arith.constant 0 : index
    %98 = vector.load %arg5[%c4_103, %c0_104, %c0_105] : memref<9x16x32xf32, #tpu.memory_space<vmem>>, vector<1x16x32xf32>
    %99 = vector.shape_cast %98 : vector<1x16x32xf32> to vector<16x32xf32>
    %cst_106 = arith.constant dense<0.000000e+00> : vector<16x128xf32>
    %100 = tpu.matmul %99, %97, %cst_106 {dimension_numbers = #tpu.dot_dimension_numbers<[1], [0], [0], [1], [0, 0, 1, 1], [], []>} : vector<16x32xf32>, vector<32x128xf32>, vector<16x128xf32> -> vector<16x128xf32>
    %101 = arith.addf %94, %100 : vector<16x128xf32>
    %c5_107 = arith.constant 5 : index
    %c0_108 = arith.constant 0 : index
    %c0_109 = arith.constant 0 : index
    %102 = vector.load %arg2[%c5_107, %c0_108, %c0_109] : memref<9x128x128xf32, #tpu.memory_space<vmem>>, vector<1x128x128xf32>
    %103 = vector.shape_cast %102 : vector<1x128x128xf32> to vector<128x128xf32>
    %cst_110 = arith.constant dense<0.000000e+00> : vector<32x128xf32>
    %104 = tpu.matmul %67, %103, %cst_110 {dimension_numbers = #tpu.dot_dimension_numbers<[1], [0], [0], [1], [0, 0, 1, 1], [], []>} : vector<32x128xf32>, vector<128x128xf32>, vector<32x128xf32> -> vector<32x128xf32>
    %c5_111 = arith.constant 5 : index
    %c0_112 = arith.constant 0 : index
    %c0_113 = arith.constant 0 : index
    %105 = vector.load %arg5[%c5_111, %c0_112, %c0_113] : memref<9x16x32xf32, #tpu.memory_space<vmem>>, vector<1x16x32xf32>
    %106 = vector.shape_cast %105 : vector<1x16x32xf32> to vector<16x32xf32>
    %cst_114 = arith.constant dense<0.000000e+00> : vector<16x128xf32>
    %107 = tpu.matmul %106, %104, %cst_114 {dimension_numbers = #tpu.dot_dimension_numbers<[1], [0], [0], [1], [0, 0, 1, 1], [], []>} : vector<16x32xf32>, vector<32x128xf32>, vector<16x128xf32> -> vector<16x128xf32>
    %108 = arith.addf %101, %107 : vector<16x128xf32>
    %c6_115 = arith.constant 6 : index
    %c0_116 = arith.constant 0 : index
    %c0_117 = arith.constant 0 : index
    %109 = vector.load %arg2[%c6_115, %c0_116, %c0_117] : memref<9x128x128xf32, #tpu.memory_space<vmem>>, vector<1x128x128xf32>
    %110 = vector.shape_cast %109 : vector<1x128x128xf32> to vector<128x128xf32>
    %cst_118 = arith.constant dense<0.000000e+00> : vector<32x128xf32>
    %111 = tpu.matmul %67, %110, %cst_118 {dimension_numbers = #tpu.dot_dimension_numbers<[1], [0], [0], [1], [0, 0, 1, 1], [], []>} : vector<32x128xf32>, vector<128x128xf32>, vector<32x128xf32> -> vector<32x128xf32>
    %c6_119 = arith.constant 6 : index
    %c0_120 = arith.constant 0 : index
    %c0_121 = arith.constant 0 : index
    %112 = vector.load %arg5[%c6_119, %c0_120, %c0_121] : memref<9x16x32xf32, #tpu.memory_space<vmem>>, vector<1x16x32xf32>
    %113 = vector.shape_cast %112 : vector<1x16x32xf32> to vector<16x32xf32>
    %cst_122 = arith.constant dense<0.000000e+00> : vector<16x128xf32>
    %114 = tpu.matmul %113, %111, %cst_122 {dimension_numbers = #tpu.dot_dimension_numbers<[1], [0], [0], [1], [0, 0, 1, 1], [], []>} : vector<16x32xf32>, vector<32x128xf32>, vector<16x128xf32> -> vector<16x128xf32>
    %115 = arith.addf %108, %114 : vector<16x128xf32>
    %c7_123 = arith.constant 7 : index
    %c0_124 = arith.constant 0 : index
    %c0_125 = arith.constant 0 : index
    %116 = vector.load %arg2[%c7_123, %c0_124, %c0_125] : memref<9x128x128xf32, #tpu.memory_space<vmem>>, vector<1x128x128xf32>
    %117 = vector.shape_cast %116 : vector<1x128x128xf32> to vector<128x128xf32>
    %cst_126 = arith.constant dense<0.000000e+00> : vector<32x128xf32>
    %118 = tpu.matmul %67, %117, %cst_126 {dimension_numbers = #tpu.dot_dimension_numbers<[1], [0], [0], [1], [0, 0, 1, 1], [], []>} : vector<32x128xf32>, vector<128x128xf32>, vector<32x128xf32> -> vector<32x128xf32>
    %c7_127 = arith.constant 7 : index
    %c0_128 = arith.constant 0 : index
    %c0_129 = arith.constant 0 : index
    %119 = vector.load %arg5[%c7_127, %c0_128, %c0_129] : memref<9x16x32xf32, #tpu.memory_space<vmem>>, vector<1x16x32xf32>
    %120 = vector.shape_cast %119 : vector<1x16x32xf32> to vector<16x32xf32>
    %cst_130 = arith.constant dense<0.000000e+00> : vector<16x128xf32>
    %121 = tpu.matmul %120, %118, %cst_130 {dimension_numbers = #tpu.dot_dimension_numbers<[1], [0], [0], [1], [0, 0, 1, 1], [], []>} : vector<16x32xf32>, vector<32x128xf32>, vector<16x128xf32> -> vector<16x128xf32>
    %122 = arith.addf %115, %121 : vector<16x128xf32>
    %c8_131 = arith.constant 8 : index
    %c0_132 = arith.constant 0 : index
    %c0_133 = arith.constant 0 : index
    %123 = vector.load %arg2[%c8_131, %c0_132, %c0_133] : memref<9x128x128xf32, #tpu.memory_space<vmem>>, vector<1x128x128xf32>
    %124 = vector.shape_cast %123 : vector<1x128x128xf32> to vector<128x128xf32>
    %cst_134 = arith.constant dense<0.000000e+00> : vector<32x128xf32>
    %125 = tpu.matmul %67, %124, %cst_134 {dimension_numbers = #tpu.dot_dimension_numbers<[1], [0], [0], [1], [0, 0, 1, 1], [], []>} : vector<32x128xf32>, vector<128x128xf32>, vector<32x128xf32> -> vector<32x128xf32>
    %c8_135 = arith.constant 8 : index
    %c0_136 = arith.constant 0 : index
    %c0_137 = arith.constant 0 : index
    %126 = vector.load %arg5[%c8_135, %c0_136, %c0_137] : memref<9x16x32xf32, #tpu.memory_space<vmem>>, vector<1x16x32xf32>
    %127 = vector.shape_cast %126 : vector<1x16x32xf32> to vector<16x32xf32>
    %cst_138 = arith.constant dense<0.000000e+00> : vector<16x128xf32>
    %128 = tpu.matmul %127, %125, %cst_138 {dimension_numbers = #tpu.dot_dimension_numbers<[1], [0], [0], [1], [0, 0, 1, 1], [], []>} : vector<16x32xf32>, vector<32x128xf32>, vector<16x128xf32> -> vector<16x128xf32>
    %129 = arith.addf %122, %128 : vector<16x128xf32>
    %cst_139 = arith.constant 0.000000e+00 : f32
    %130 = vector.broadcast %cst_139 : f32 to vector<16x128xf32>
    %131 = arith.maximumf %129, %130 : vector<16x128xf32>
    %c0_140 = arith.constant 0 : index
    %c0_141 = arith.constant 0 : index
    %132 = vector.load %arg6[%c0_140, %c0_141] : memref<32x16xf32, #tpu.memory_space<vmem>>, vector<32x16xf32>
    %cst_142 = arith.constant dense<0.000000e+00> : vector<32x128xf32>
    %133 = tpu.matmul %132, %131, %cst_142 {dimension_numbers = #tpu.dot_dimension_numbers<[1], [0], [0], [1], [0, 0, 1, 1], [], []>} : vector<32x16xf32>, vector<16x128xf32>, vector<32x128xf32> -> vector<32x128xf32>
    %134 = arith.addf %65, %133 : vector<32x128xf32>
    %cst_143 = arith.constant 0.000000e+00 : f32
    %135 = vector.broadcast %cst_143 : f32 to vector<32x128xf32>
    %136 = arith.maximumf %134, %135 : vector<32x128xf32>
    %c0_144 = arith.constant 0 : index
    %c0_145 = arith.constant 0 : index
    %c0_146 = arith.constant 0 : index
    %137 = vector.load %arg2[%c0_144, %c0_145, %c0_146] : memref<9x128x128xf32, #tpu.memory_space<vmem>>, vector<1x128x128xf32>
    %138 = vector.shape_cast %137 : vector<1x128x128xf32> to vector<128x128xf32>
    %cst_147 = arith.constant dense<0.000000e+00> : vector<32x128xf32>
    %139 = tpu.matmul %136, %138, %cst_147 {dimension_numbers = #tpu.dot_dimension_numbers<[1], [0], [0], [1], [0, 0, 1, 1], [], []>} : vector<32x128xf32>, vector<128x128xf32>, vector<32x128xf32> -> vector<32x128xf32>
    %c0_148 = arith.constant 0 : index
    %c0_149 = arith.constant 0 : index
    %c0_150 = arith.constant 0 : index
    %140 = vector.load %arg7[%c0_148, %c0_149, %c0_150] : memref<9x16x32xf32, #tpu.memory_space<vmem>>, vector<1x16x32xf32>
    %141 = vector.shape_cast %140 : vector<1x16x32xf32> to vector<16x32xf32>
    %cst_151 = arith.constant dense<0.000000e+00> : vector<16x128xf32>
    %142 = tpu.matmul %141, %139, %cst_151 {dimension_numbers = #tpu.dot_dimension_numbers<[1], [0], [0], [1], [0, 0, 1, 1], [], []>} : vector<16x32xf32>, vector<32x128xf32>, vector<16x128xf32> -> vector<16x128xf32>
    %c1_152 = arith.constant 1 : index
    %c0_153 = arith.constant 0 : index
    %c0_154 = arith.constant 0 : index
    %143 = vector.load %arg2[%c1_152, %c0_153, %c0_154] : memref<9x128x128xf32, #tpu.memory_space<vmem>>, vector<1x128x128xf32>
    %144 = vector.shape_cast %143 : vector<1x128x128xf32> to vector<128x128xf32>
    %cst_155 = arith.constant dense<0.000000e+00> : vector<32x128xf32>
    %145 = tpu.matmul %136, %144, %cst_155 {dimension_numbers = #tpu.dot_dimension_numbers<[1], [0], [0], [1], [0, 0, 1, 1], [], []>} : vector<32x128xf32>, vector<128x128xf32>, vector<32x128xf32> -> vector<32x128xf32>
    %c1_156 = arith.constant 1 : index
    %c0_157 = arith.constant 0 : index
    %c0_158 = arith.constant 0 : index
    %146 = vector.load %arg7[%c1_156, %c0_157, %c0_158] : memref<9x16x32xf32, #tpu.memory_space<vmem>>, vector<1x16x32xf32>
    %147 = vector.shape_cast %146 : vector<1x16x32xf32> to vector<16x32xf32>
    %cst_159 = arith.constant dense<0.000000e+00> : vector<16x128xf32>
    %148 = tpu.matmul %147, %145, %cst_159 {dimension_numbers = #tpu.dot_dimension_numbers<[1], [0], [0], [1], [0, 0, 1, 1], [], []>} : vector<16x32xf32>, vector<32x128xf32>, vector<16x128xf32> -> vector<16x128xf32>
    %149 = arith.addf %142, %148 : vector<16x128xf32>
    %c2_160 = arith.constant 2 : index
    %c0_161 = arith.constant 0 : index
    %c0_162 = arith.constant 0 : index
    %150 = vector.load %arg2[%c2_160, %c0_161, %c0_162] : memref<9x128x128xf32, #tpu.memory_space<vmem>>, vector<1x128x128xf32>
    %151 = vector.shape_cast %150 : vector<1x128x128xf32> to vector<128x128xf32>
    %cst_163 = arith.constant dense<0.000000e+00> : vector<32x128xf32>
    %152 = tpu.matmul %136, %151, %cst_163 {dimension_numbers = #tpu.dot_dimension_numbers<[1], [0], [0], [1], [0, 0, 1, 1], [], []>} : vector<32x128xf32>, vector<128x128xf32>, vector<32x128xf32> -> vector<32x128xf32>
    %c2_164 = arith.constant 2 : index
    %c0_165 = arith.constant 0 : index
    %c0_166 = arith.constant 0 : index
    %153 = vector.load %arg7[%c2_164, %c0_165, %c0_166] : memref<9x16x32xf32, #tpu.memory_space<vmem>>, vector<1x16x32xf32>
    %154 = vector.shape_cast %153 : vector<1x16x32xf32> to vector<16x32xf32>
    %cst_167 = arith.constant dense<0.000000e+00> : vector<16x128xf32>
    %155 = tpu.matmul %154, %152, %cst_167 {dimension_numbers = #tpu.dot_dimension_numbers<[1], [0], [0], [1], [0, 0, 1, 1], [], []>} : vector<16x32xf32>, vector<32x128xf32>, vector<16x128xf32> -> vector<16x128xf32>
    %156 = arith.addf %149, %155 : vector<16x128xf32>
    %c3_168 = arith.constant 3 : index
    %c0_169 = arith.constant 0 : index
    %c0_170 = arith.constant 0 : index
    %157 = vector.load %arg2[%c3_168, %c0_169, %c0_170] : memref<9x128x128xf32, #tpu.memory_space<vmem>>, vector<1x128x128xf32>
    %158 = vector.shape_cast %157 : vector<1x128x128xf32> to vector<128x128xf32>
    %cst_171 = arith.constant dense<0.000000e+00> : vector<32x128xf32>
    %159 = tpu.matmul %136, %158, %cst_171 {dimension_numbers = #tpu.dot_dimension_numbers<[1], [0], [0], [1], [0, 0, 1, 1], [], []>} : vector<32x128xf32>, vector<128x128xf32>, vector<32x128xf32> -> vector<32x128xf32>
    %c3_172 = arith.constant 3 : index
    %c0_173 = arith.constant 0 : index
    %c0_174 = arith.constant 0 : index
    %160 = vector.load %arg7[%c3_172, %c0_173, %c0_174] : memref<9x16x32xf32, #tpu.memory_space<vmem>>, vector<1x16x32xf32>
    %161 = vector.shape_cast %160 : vector<1x16x32xf32> to vector<16x32xf32>
    %cst_175 = arith.constant dense<0.000000e+00> : vector<16x128xf32>
    %162 = tpu.matmul %161, %159, %cst_175 {dimension_numbers = #tpu.dot_dimension_numbers<[1], [0], [0], [1], [0, 0, 1, 1], [], []>} : vector<16x32xf32>, vector<32x128xf32>, vector<16x128xf32> -> vector<16x128xf32>
    %163 = arith.addf %156, %162 : vector<16x128xf32>
    %c4_176 = arith.constant 4 : index
    %c0_177 = arith.constant 0 : index
    %c0_178 = arith.constant 0 : index
    %164 = vector.load %arg2[%c4_176, %c0_177, %c0_178] : memref<9x128x128xf32, #tpu.memory_space<vmem>>, vector<1x128x128xf32>
    %165 = vector.shape_cast %164 : vector<1x128x128xf32> to vector<128x128xf32>
    %cst_179 = arith.constant dense<0.000000e+00> : vector<32x128xf32>
    %166 = tpu.matmul %136, %165, %cst_179 {dimension_numbers = #tpu.dot_dimension_numbers<[1], [0], [0], [1], [0, 0, 1, 1], [], []>} : vector<32x128xf32>, vector<128x128xf32>, vector<32x128xf32> -> vector<32x128xf32>
    %c4_180 = arith.constant 4 : index
    %c0_181 = arith.constant 0 : index
    %c0_182 = arith.constant 0 : index
    %167 = vector.load %arg7[%c4_180, %c0_181, %c0_182] : memref<9x16x32xf32, #tpu.memory_space<vmem>>, vector<1x16x32xf32>
    %168 = vector.shape_cast %167 : vector<1x16x32xf32> to vector<16x32xf32>
    %cst_183 = arith.constant dense<0.000000e+00> : vector<16x128xf32>
    %169 = tpu.matmul %168, %166, %cst_183 {dimension_numbers = #tpu.dot_dimension_numbers<[1], [0], [0], [1], [0, 0, 1, 1], [], []>} : vector<16x32xf32>, vector<32x128xf32>, vector<16x128xf32> -> vector<16x128xf32>
    %170 = arith.addf %163, %169 : vector<16x128xf32>
    %c5_184 = arith.constant 5 : index
    %c0_185 = arith.constant 0 : index
    %c0_186 = arith.constant 0 : index
    %171 = vector.load %arg2[%c5_184, %c0_185, %c0_186] : memref<9x128x128xf32, #tpu.memory_space<vmem>>, vector<1x128x128xf32>
    %172 = vector.shape_cast %171 : vector<1x128x128xf32> to vector<128x128xf32>
    %cst_187 = arith.constant dense<0.000000e+00> : vector<32x128xf32>
    %173 = tpu.matmul %136, %172, %cst_187 {dimension_numbers = #tpu.dot_dimension_numbers<[1], [0], [0], [1], [0, 0, 1, 1], [], []>} : vector<32x128xf32>, vector<128x128xf32>, vector<32x128xf32> -> vector<32x128xf32>
    %c5_188 = arith.constant 5 : index
    %c0_189 = arith.constant 0 : index
    %c0_190 = arith.constant 0 : index
    %174 = vector.load %arg7[%c5_188, %c0_189, %c0_190] : memref<9x16x32xf32, #tpu.memory_space<vmem>>, vector<1x16x32xf32>
    %175 = vector.shape_cast %174 : vector<1x16x32xf32> to vector<16x32xf32>
    %cst_191 = arith.constant dense<0.000000e+00> : vector<16x128xf32>
    %176 = tpu.matmul %175, %173, %cst_191 {dimension_numbers = #tpu.dot_dimension_numbers<[1], [0], [0], [1], [0, 0, 1, 1], [], []>} : vector<16x32xf32>, vector<32x128xf32>, vector<16x128xf32> -> vector<16x128xf32>
    %177 = arith.addf %170, %176 : vector<16x128xf32>
    %c6_192 = arith.constant 6 : index
    %c0_193 = arith.constant 0 : index
    %c0_194 = arith.constant 0 : index
    %178 = vector.load %arg2[%c6_192, %c0_193, %c0_194] : memref<9x128x128xf32, #tpu.memory_space<vmem>>, vector<1x128x128xf32>
    %179 = vector.shape_cast %178 : vector<1x128x128xf32> to vector<128x128xf32>
    %cst_195 = arith.constant dense<0.000000e+00> : vector<32x128xf32>
    %180 = tpu.matmul %136, %179, %cst_195 {dimension_numbers = #tpu.dot_dimension_numbers<[1], [0], [0], [1], [0, 0, 1, 1], [], []>} : vector<32x128xf32>, vector<128x128xf32>, vector<32x128xf32> -> vector<32x128xf32>
    %c6_196 = arith.constant 6 : index
    %c0_197 = arith.constant 0 : index
    %c0_198 = arith.constant 0 : index
    %181 = vector.load %arg7[%c6_196, %c0_197, %c0_198] : memref<9x16x32xf32, #tpu.memory_space<vmem>>, vector<1x16x32xf32>
    %182 = vector.shape_cast %181 : vector<1x16x32xf32> to vector<16x32xf32>
    %cst_199 = arith.constant dense<0.000000e+00> : vector<16x128xf32>
    %183 = tpu.matmul %182, %180, %cst_199 {dimension_numbers = #tpu.dot_dimension_numbers<[1], [0], [0], [1], [0, 0, 1, 1], [], []>} : vector<16x32xf32>, vector<32x128xf32>, vector<16x128xf32> -> vector<16x128xf32>
    %184 = arith.addf %177, %183 : vector<16x128xf32>
    %c7_200 = arith.constant 7 : index
    %c0_201 = arith.constant 0 : index
    %c0_202 = arith.constant 0 : index
    %185 = vector.load %arg2[%c7_200, %c0_201, %c0_202] : memref<9x128x128xf32, #tpu.memory_space<vmem>>, vector<1x128x128xf32>
    %186 = vector.shape_cast %185 : vector<1x128x128xf32> to vector<128x128xf32>
    %cst_203 = arith.constant dense<0.000000e+00> : vector<32x128xf32>
    %187 = tpu.matmul %136, %186, %cst_203 {dimension_numbers = #tpu.dot_dimension_numbers<[1], [0], [0], [1], [0, 0, 1, 1], [], []>} : vector<32x128xf32>, vector<128x128xf32>, vector<32x128xf32> -> vector<32x128xf32>
    %c7_204 = arith.constant 7 : index
    %c0_205 = arith.constant 0 : index
    %c0_206 = arith.constant 0 : index
    %188 = vector.load %arg7[%c7_204, %c0_205, %c0_206] : memref<9x16x32xf32, #tpu.memory_space<vmem>>, vector<1x16x32xf32>
    %189 = vector.shape_cast %188 : vector<1x16x32xf32> to vector<16x32xf32>
    %cst_207 = arith.constant dense<0.000000e+00> : vector<16x128xf32>
    %190 = tpu.matmul %189, %187, %cst_207 {dimension_numbers = #tpu.dot_dimension_numbers<[1], [0], [0], [1], [0, 0, 1, 1], [], []>} : vector<16x32xf32>, vector<32x128xf32>, vector<16x128xf32> -> vector<16x128xf32>
    %191 = arith.addf %184, %190 : vector<16x128xf32>
    %c8_208 = arith.constant 8 : index
    %c0_209 = arith.constant 0 : index
    %c0_210 = arith.constant 0 : index
    %192 = vector.load %arg2[%c8_208, %c0_209, %c0_210] : memref<9x128x128xf32, #tpu.memory_space<vmem>>, vector<1x128x128xf32>
    %193 = vector.shape_cast %192 : vector<1x128x128xf32> to vector<128x128xf32>
    %cst_211 = arith.constant dense<0.000000e+00> : vector<32x128xf32>
    %194 = tpu.matmul %136, %193, %cst_211 {dimension_numbers = #tpu.dot_dimension_numbers<[1], [0], [0], [1], [0, 0, 1, 1], [], []>} : vector<32x128xf32>, vector<128x128xf32>, vector<32x128xf32> -> vector<32x128xf32>
    %c8_212 = arith.constant 8 : index
    %c0_213 = arith.constant 0 : index
    %c0_214 = arith.constant 0 : index
    %195 = vector.load %arg7[%c8_212, %c0_213, %c0_214] : memref<9x16x32xf32, #tpu.memory_space<vmem>>, vector<1x16x32xf32>
    %196 = vector.shape_cast %195 : vector<1x16x32xf32> to vector<16x32xf32>
    %cst_215 = arith.constant dense<0.000000e+00> : vector<16x128xf32>
    %197 = tpu.matmul %196, %194, %cst_215 {dimension_numbers = #tpu.dot_dimension_numbers<[1], [0], [0], [1], [0, 0, 1, 1], [], []>} : vector<16x32xf32>, vector<32x128xf32>, vector<16x128xf32> -> vector<16x128xf32>
    %198 = arith.addf %191, %197 : vector<16x128xf32>
    %cst_216 = arith.constant 0.000000e+00 : f32
    %199 = vector.broadcast %cst_216 : f32 to vector<16x128xf32>
    %200 = arith.maximumf %198, %199 : vector<16x128xf32>
    %c0_217 = arith.constant 0 : index
    %c0_218 = arith.constant 0 : index
    %201 = vector.load %arg8[%c0_217, %c0_218] : memref<32x16xf32, #tpu.memory_space<vmem>>, vector<32x16xf32>
    %cst_219 = arith.constant dense<0.000000e+00> : vector<32x128xf32>
    %202 = tpu.matmul %201, %200, %cst_219 {dimension_numbers = #tpu.dot_dimension_numbers<[1], [0], [0], [1], [0, 0, 1, 1], [], []>} : vector<32x16xf32>, vector<16x128xf32>, vector<32x128xf32> -> vector<32x128xf32>
    %203 = arith.addf %134, %202 : vector<32x128xf32>
    %cst_220 = arith.constant 0.000000e+00 : f32
    %204 = vector.broadcast %cst_220 : f32 to vector<32x128xf32>
    %205 = arith.maximumf %203, %204 : vector<32x128xf32>
    %c0_221 = arith.constant 0 : index
    %c0_222 = arith.constant 0 : index
    %206 = vector.load %arg9[%c0_221, %c0_222] : memref<32x32xf32, #tpu.memory_space<vmem>>, vector<32x32xf32>
    %cst_223 = arith.constant dense<0.000000e+00> : vector<32x128xf32>
    %207 = tpu.matmul %206, %205, %cst_223 {dimension_numbers = #tpu.dot_dimension_numbers<[1], [0], [0], [1], [0, 0, 1, 1], [], []>} : vector<32x32xf32>, vector<32x128xf32>, vector<32x128xf32> -> vector<32x128xf32>
    %c0_224 = arith.constant 0 : index
    %c0_225 = arith.constant 0 : index
    %208 = vector.load %arg10[%c0_224, %c0_225] : memref<32x1xf32, #tpu.memory_space<vmem>>, vector<32x1xf32>
    %209 = vector.broadcast %208 : vector<32x1xf32> to vector<32x128xf32>
    %210 = arith.addf %207, %209 : vector<32x128xf32>
    %c0_226 = arith.constant 0 : index
    %c0_227 = arith.constant 0 : index
    %211 = vector.load %arg11[%c0_226, %c0_227] : memref<128x32xf32, #tpu.memory_space<vmem>>, vector<128x32xf32>
    %c0_228 = arith.constant 0 : index
    %c0_229 = arith.constant 0 : index
    %212 = vector.load %arg12[%c0_228, %c0_229] : memref<32x128xf32, #tpu.memory_space<vmem>>, vector<32x128xf32>
    %213 = arith.mulf %211, %211 : vector<128x32xf32>
    %cst_230 = arith.constant dense<0.000000e+00> : vector<128xf32>
    %214 = vector.multi_reduction <add>, %213, %cst_230 [1] : vector<128x32xf32> to vector<128xf32>
    %215 = vector.shape_cast %214 : vector<128xf32> to vector<128x1xf32>
    %cst_231 = arith.constant dense<0.000000e+00> : vector<128x128xf32>
    %216 = tpu.matmul %211, %210, %cst_231 {dimension_numbers = #tpu.dot_dimension_numbers<[1], [0], [0], [1], [0, 0, 1, 1], [], []>} : vector<128x32xf32>, vector<32x128xf32>, vector<128x128xf32> -> vector<128x128xf32>
    %cst_232 = arith.constant 2.000000e+00 : f32
    %217 = vector.broadcast %cst_232 : f32 to vector<128x128xf32>
    %218 = arith.mulf %217, %216 : vector<128x128xf32>
    %219 = vector.broadcast %215 : vector<128x1xf32> to vector<128x128xf32>
    %220 = arith.subf %219, %218 : vector<128x128xf32>
    %221 = tpu.iota {dimensions = array<i32: 0>} : vector<128x128xi32>
    %cst_233 = arith.constant dense<0x7F800000> : vector<128xf32>
    %222 = vector.multi_reduction <minimumf>, %220, %cst_233 [0] : vector<128x128xf32> to vector<128xf32>
    %223 = vector.shape_cast %222 : vector<128xf32> to vector<1x128xf32>
    %224 = vector.broadcast %223 : vector<1x128xf32> to vector<128x128xf32>
    %225 = arith.cmpf ole, %220, %224 : vector<128x128xf32>
    %c128_i32 = arith.constant 128 : i32
    %226 = vector.broadcast %c128_i32 : i32 to vector<128x128xi32>
    %227 = arith.select %225, %221, %226 : vector<128x128xi1>, vector<128x128xi32>
    %cst_234 = arith.constant dense<2147483647> : vector<128xi32>
    %228 = vector.multi_reduction <minsi>, %227, %cst_234 [0] : vector<128x128xi32> to vector<128xi32>
    %229 = vector.shape_cast %228 : vector<128xi32> to vector<1x128xi32>
    %230 = vector.broadcast %229 : vector<1x128xi32> to vector<128x128xi32>
    %231 = arith.cmpi eq, %221, %230 : vector<128x128xi32>
    %232 = arith.extui %231 : vector<128x128xi1> to vector<128x128xi32>
    %233 = arith.sitofp %232 : vector<128x128xi32> to vector<128x128xf32>
    %cst_235 = arith.constant dense<0.000000e+00> : vector<32x128xf32>
    %234 = tpu.matmul %212, %233, %cst_235 {dimension_numbers = #tpu.dot_dimension_numbers<[1], [0], [0], [1], [0, 0, 1, 1], [], []>} : vector<32x128xf32>, vector<128x128xf32>, vector<32x128xf32> -> vector<32x128xf32>
    %235 = arith.subf %234, %210 : vector<32x128xf32>
    %236 = arith.mulf %235, %235 : vector<32x128xf32>
    %cst_236 = arith.constant dense<0.000000e+00> : vector<32xf32>
    %237 = vector.multi_reduction <add>, %236, %cst_236 [1] : vector<32x128xf32> to vector<32xf32>
    %238 = vector.shape_cast %237 : vector<32xf32> to vector<32x1xf32>
    %cst_237 = arith.constant dense<0.000000e+00> : vector<1xf32>
    %239 = vector.multi_reduction <add>, %238, %cst_237 [0] : vector<32x1xf32> to vector<1xf32>
    %240 = vector.shape_cast %239 : vector<1xf32> to vector<1x1xf32>
    %cst_238 = arith.constant 4.096000e+03 : f32
    %241 = vector.broadcast %cst_238 : f32 to vector<1x1xf32>
    %242 = arith.divf %240, %241 : vector<1x1xf32>
    %cst_239 = arith.constant 1.250000e+00 : f32
    %243 = vector.broadcast %cst_239 : f32 to vector<1x1xf32>
    %244 = arith.mulf %243, %242 : vector<1x1xf32>
    %cst_240 = arith.constant dense<0.000000e+00> : vector<128xf32>
    %245 = vector.multi_reduction <add>, %233, %cst_240 [1] : vector<128x128xf32> to vector<128xf32>
    %246 = vector.shape_cast %245 : vector<128xf32> to vector<128x1xf32>
    %cst_241 = arith.constant 1.280000e+02 : f32
    %247 = vector.broadcast %cst_241 : f32 to vector<128x1xf32>
    %248 = arith.divf %246, %247 : vector<128x1xf32>
    %cst_242 = arith.constant 1.000000e-10 : f32
    %249 = vector.broadcast %cst_242 : f32 to vector<128x1xf32>
    %250 = arith.addf %248, %249 : vector<128x1xf32>
    %251 = math.log %250 : vector<128x1xf32>
    %252 = arith.mulf %248, %251 : vector<128x1xf32>
    %cst_243 = arith.constant dense<0.000000e+00> : vector<1xf32>
    %253 = vector.multi_reduction <add>, %252, %cst_243 [0] : vector<128x1xf32> to vector<1xf32>
    %254 = vector.shape_cast %253 : vector<1xf32> to vector<1x1xf32>
    %cst_244 = arith.constant 0.000000e+00 : f32
    %255 = vector.broadcast %cst_244 : f32 to vector<1x1xf32>
    %256 = arith.subf %255, %254 : vector<1x1xf32>
    %257 = math.exp %256 : vector<1x1xf32>
    %258 = tpu.iota {dimensions = array<i32: 1>} : vector<1x128xi32>
    %c0_i32 = arith.constant 0 : i32
    %259 = vector.broadcast %c0_i32 : i32 to vector<1x128xi32>
    %260 = arith.cmpi eq, %258, %259 : vector<1x128xi32>
    %cst_245 = arith.constant 0.000000e+00 : f32
    %261 = vector.shape_cast %244 : vector<1x1xf32> to vector<1x1xf32>
    %262 = vector.broadcast %261 : vector<1x1xf32> to vector<1x128xf32>
    %263 = vector.broadcast %cst_245 : f32 to vector<1x128xf32>
    %264 = arith.select %260, %262, %263 : vector<1x128xi1>, vector<1x128xf32>
    %c1_i32 = arith.constant 1 : i32
    %265 = vector.broadcast %c1_i32 : i32 to vector<1x128xi32>
    %266 = arith.cmpi eq, %258, %265 : vector<1x128xi32>
    %cst_246 = arith.constant 0.000000e+00 : f32
    %267 = vector.shape_cast %257 : vector<1x1xf32> to vector<1x1xf32>
    %268 = vector.broadcast %267 : vector<1x1xf32> to vector<1x128xf32>
    %269 = vector.broadcast %cst_246 : f32 to vector<1x128xf32>
    %270 = arith.select %266, %268, %269 : vector<1x128xi1>, vector<1x128xf32>
    %271 = arith.addf %264, %270 : vector<1x128xf32>
    %c0_247 = arith.constant 0 : index
    %c0_248 = arith.constant 0 : index
    %272 = vector.load %arg20[%c0_247, %c0_248] : memref<1x128xf32, #tpu.memory_space<vmem>>, vector<1x128xf32>
    tpu.vector_store %arg20[%c0_247, %c0_248], %271 {strides = array<i32>} : memref<1x128xf32, #tpu.memory_space<vmem>>, vector<1x128xf32>,
    %c0_249 = arith.constant 0 : index
    %c0_250 = arith.constant 0 : index
    %273 = vector.load %arg14[%c0_249, %c0_250] : memref<32x1xf32, #tpu.memory_space<vmem>>, vector<32x1xf32>
    %c0_251 = arith.constant 0 : index
    %c0_252 = arith.constant 0 : index
    %c0_253 = arith.constant 0 : index
    %274 = vector.load %arg2[%c0_251, %c0_252, %c0_253] : memref<9x128x128xf32, #tpu.memory_space<vmem>>, vector<1x128x128xf32>
    %275 = vector.shape_cast %274 : vector<1x128x128xf32> to vector<128x128xf32>
    %cst_254 = arith.constant dense<0.000000e+00> : vector<32x128xf32>
    %276 = tpu.matmul %234, %275, %cst_254 {dimension_numbers = #tpu.dot_dimension_numbers<[1], [0], [0], [1], [0, 0, 1, 1], [], []>} : vector<32x128xf32>, vector<128x128xf32>, vector<32x128xf32> -> vector<32x128xf32>
    %c0_255 = arith.constant 0 : index
    %c0_256 = arith.constant 0 : index
    %c0_257 = arith.constant 0 : index
    %277 = vector.load %arg13[%c0_255, %c0_256, %c0_257] : memref<9x32x32xf32, #tpu.memory_space<vmem>>, vector<1x32x32xf32>
    %278 = vector.shape_cast %277 : vector<1x32x32xf32> to vector<32x32xf32>
    %cst_258 = arith.constant dense<0.000000e+00> : vector<32x128xf32>
    %279 = tpu.matmul %278, %276, %cst_258 {dimension_numbers = #tpu.dot_dimension_numbers<[1], [0], [0], [1], [0, 0, 1, 1], [], []>} : vector<32x32xf32>, vector<32x128xf32>, vector<32x128xf32> -> vector<32x128xf32>
    %c1_259 = arith.constant 1 : index
    %c0_260 = arith.constant 0 : index
    %c0_261 = arith.constant 0 : index
    %280 = vector.load %arg2[%c1_259, %c0_260, %c0_261] : memref<9x128x128xf32, #tpu.memory_space<vmem>>, vector<1x128x128xf32>
    %281 = vector.shape_cast %280 : vector<1x128x128xf32> to vector<128x128xf32>
    %cst_262 = arith.constant dense<0.000000e+00> : vector<32x128xf32>
    %282 = tpu.matmul %234, %281, %cst_262 {dimension_numbers = #tpu.dot_dimension_numbers<[1], [0], [0], [1], [0, 0, 1, 1], [], []>} : vector<32x128xf32>, vector<128x128xf32>, vector<32x128xf32> -> vector<32x128xf32>
    %c1_263 = arith.constant 1 : index
    %c0_264 = arith.constant 0 : index
    %c0_265 = arith.constant 0 : index
    %283 = vector.load %arg13[%c1_263, %c0_264, %c0_265] : memref<9x32x32xf32, #tpu.memory_space<vmem>>, vector<1x32x32xf32>
    %284 = vector.shape_cast %283 : vector<1x32x32xf32> to vector<32x32xf32>
    %cst_266 = arith.constant dense<0.000000e+00> : vector<32x128xf32>
    %285 = tpu.matmul %284, %282, %cst_266 {dimension_numbers = #tpu.dot_dimension_numbers<[1], [0], [0], [1], [0, 0, 1, 1], [], []>} : vector<32x32xf32>, vector<32x128xf32>, vector<32x128xf32> -> vector<32x128xf32>
    %286 = arith.addf %279, %285 : vector<32x128xf32>
    %c2_267 = arith.constant 2 : index
    %c0_268 = arith.constant 0 : index
    %c0_269 = arith.constant 0 : index
    %287 = vector.load %arg2[%c2_267, %c0_268, %c0_269] : memref<9x128x128xf32, #tpu.memory_space<vmem>>, vector<1x128x128xf32>
    %288 = vector.shape_cast %287 : vector<1x128x128xf32> to vector<128x128xf32>
    %cst_270 = arith.constant dense<0.000000e+00> : vector<32x128xf32>
    %289 = tpu.matmul %234, %288, %cst_270 {dimension_numbers = #tpu.dot_dimension_numbers<[1], [0], [0], [1], [0, 0, 1, 1], [], []>} : vector<32x128xf32>, vector<128x128xf32>, vector<32x128xf32> -> vector<32x128xf32>
    %c2_271 = arith.constant 2 : index
    %c0_272 = arith.constant 0 : index
    %c0_273 = arith.constant 0 : index
    %290 = vector.load %arg13[%c2_271, %c0_272, %c0_273] : memref<9x32x32xf32, #tpu.memory_space<vmem>>, vector<1x32x32xf32>
    %291 = vector.shape_cast %290 : vector<1x32x32xf32> to vector<32x32xf32>
    %cst_274 = arith.constant dense<0.000000e+00> : vector<32x128xf32>
    %292 = tpu.matmul %291, %289, %cst_274 {dimension_numbers = #tpu.dot_dimension_numbers<[1], [0], [0], [1], [0, 0, 1, 1], [], []>} : vector<32x32xf32>, vector<32x128xf32>, vector<32x128xf32> -> vector<32x128xf32>
    %293 = arith.addf %286, %292 : vector<32x128xf32>
    %c3_275 = arith.constant 3 : index
    %c0_276 = arith.constant 0 : index
    %c0_277 = arith.constant 0 : index
    %294 = vector.load %arg2[%c3_275, %c0_276, %c0_277] : memref<9x128x128xf32, #tpu.memory_space<vmem>>, vector<1x128x128xf32>
    %295 = vector.shape_cast %294 : vector<1x128x128xf32> to vector<128x128xf32>
    %cst_278 = arith.constant dense<0.000000e+00> : vector<32x128xf32>
    %296 = tpu.matmul %234, %295, %cst_278 {dimension_numbers = #tpu.dot_dimension_numbers<[1], [0], [0], [1], [0, 0, 1, 1], [], []>} : vector<32x128xf32>, vector<128x128xf32>, vector<32x128xf32> -> vector<32x128xf32>
    %c3_279 = arith.constant 3 : index
    %c0_280 = arith.constant 0 : index
    %c0_281 = arith.constant 0 : index
    %297 = vector.load %arg13[%c3_279, %c0_280, %c0_281] : memref<9x32x32xf32, #tpu.memory_space<vmem>>, vector<1x32x32xf32>
    %298 = vector.shape_cast %297 : vector<1x32x32xf32> to vector<32x32xf32>
    %cst_282 = arith.constant dense<0.000000e+00> : vector<32x128xf32>
    %299 = tpu.matmul %298, %296, %cst_282 {dimension_numbers = #tpu.dot_dimension_numbers<[1], [0], [0], [1], [0, 0, 1, 1], [], []>} : vector<32x32xf32>, vector<32x128xf32>, vector<32x128xf32> -> vector<32x128xf32>
    %300 = arith.addf %293, %299 : vector<32x128xf32>
    %c4_283 = arith.constant 4 : index
    %c0_284 = arith.constant 0 : index
    %c0_285 = arith.constant 0 : index
    %301 = vector.load %arg2[%c4_283, %c0_284, %c0_285] : memref<9x128x128xf32, #tpu.memory_space<vmem>>, vector<1x128x128xf32>
    %302 = vector.shape_cast %301 : vector<1x128x128xf32> to vector<128x128xf32>
    %cst_286 = arith.constant dense<0.000000e+00> : vector<32x128xf32>
    %303 = tpu.matmul %234, %302, %cst_286 {dimension_numbers = #tpu.dot_dimension_numbers<[1], [0], [0], [1], [0, 0, 1, 1], [], []>} : vector<32x128xf32>, vector<128x128xf32>, vector<32x128xf32> -> vector<32x128xf32>
    %c4_287 = arith.constant 4 : index
    %c0_288 = arith.constant 0 : index
    %c0_289 = arith.constant 0 : index
    %304 = vector.load %arg13[%c4_287, %c0_288, %c0_289] : memref<9x32x32xf32, #tpu.memory_space<vmem>>, vector<1x32x32xf32>
    %305 = vector.shape_cast %304 : vector<1x32x32xf32> to vector<32x32xf32>
    %cst_290 = arith.constant dense<0.000000e+00> : vector<32x128xf32>
    %306 = tpu.matmul %305, %303, %cst_290 {dimension_numbers = #tpu.dot_dimension_numbers<[1], [0], [0], [1], [0, 0, 1, 1], [], []>} : vector<32x32xf32>, vector<32x128xf32>, vector<32x128xf32> -> vector<32x128xf32>
    %307 = arith.addf %300, %306 : vector<32x128xf32>
    %c5_291 = arith.constant 5 : index
    %c0_292 = arith.constant 0 : index
    %c0_293 = arith.constant 0 : index
    %308 = vector.load %arg2[%c5_291, %c0_292, %c0_293] : memref<9x128x128xf32, #tpu.memory_space<vmem>>, vector<1x128x128xf32>
    %309 = vector.shape_cast %308 : vector<1x128x128xf32> to vector<128x128xf32>
    %cst_294 = arith.constant dense<0.000000e+00> : vector<32x128xf32>
    %310 = tpu.matmul %234, %309, %cst_294 {dimension_numbers = #tpu.dot_dimension_numbers<[1], [0], [0], [1], [0, 0, 1, 1], [], []>} : vector<32x128xf32>, vector<128x128xf32>, vector<32x128xf32> -> vector<32x128xf32>
    %c5_295 = arith.constant 5 : index
    %c0_296 = arith.constant 0 : index
    %c0_297 = arith.constant 0 : index
    %311 = vector.load %arg13[%c5_295, %c0_296, %c0_297] : memref<9x32x32xf32, #tpu.memory_space<vmem>>, vector<1x32x32xf32>
    %312 = vector.shape_cast %311 : vector<1x32x32xf32> to vector<32x32xf32>
    %cst_298 = arith.constant dense<0.000000e+00> : vector<32x128xf32>
    %313 = tpu.matmul %312, %310, %cst_298 {dimension_numbers = #tpu.dot_dimension_numbers<[1], [0], [0], [1], [0, 0, 1, 1], [], []>} : vector<32x32xf32>, vector<32x128xf32>, vector<32x128xf32> -> vector<32x128xf32>
    %314 = arith.addf %307, %313 : vector<32x128xf32>
    %c6_299 = arith.constant 6 : index
    %c0_300 = arith.constant 0 : index
    %c0_301 = arith.constant 0 : index
    %315 = vector.load %arg2[%c6_299, %c0_300, %c0_301] : memref<9x128x128xf32, #tpu.memory_space<vmem>>, vector<1x128x128xf32>
    %316 = vector.shape_cast %315 : vector<1x128x128xf32> to vector<128x128xf32>
    %cst_302 = arith.constant dense<0.000000e+00> : vector<32x128xf32>
    %317 = tpu.matmul %234, %316, %cst_302 {dimension_numbers = #tpu.dot_dimension_numbers<[1], [0], [0], [1], [0, 0, 1, 1], [], []>} : vector<32x128xf32>, vector<128x128xf32>, vector<32x128xf32> -> vector<32x128xf32>
    %c6_303 = arith.constant 6 : index
    %c0_304 = arith.constant 0 : index
    %c0_305 = arith.constant 0 : index
    %318 = vector.load %arg13[%c6_303, %c0_304, %c0_305] : memref<9x32x32xf32, #tpu.memory_space<vmem>>, vector<1x32x32xf32>
    %319 = vector.shape_cast %318 : vector<1x32x32xf32> to vector<32x32xf32>
    %cst_306 = arith.constant dense<0.000000e+00> : vector<32x128xf32>
    %320 = tpu.matmul %319, %317, %cst_306 {dimension_numbers = #tpu.dot_dimension_numbers<[1], [0], [0], [1], [0, 0, 1, 1], [], []>} : vector<32x32xf32>, vector<32x128xf32>, vector<32x128xf32> -> vector<32x128xf32>
    %321 = arith.addf %314, %320 : vector<32x128xf32>
    %c7_307 = arith.constant 7 : index
    %c0_308 = arith.constant 0 : index
    %c0_309 = arith.constant 0 : index
    %322 = vector.load %arg2[%c7_307, %c0_308, %c0_309] : memref<9x128x128xf32, #tpu.memory_space<vmem>>, vector<1x128x128xf32>
    %323 = vector.shape_cast %322 : vector<1x128x128xf32> to vector<128x128xf32>
    %cst_310 = arith.constant dense<0.000000e+00> : vector<32x128xf32>
    %324 = tpu.matmul %234, %323, %cst_310 {dimension_numbers = #tpu.dot_dimension_numbers<[1], [0], [0], [1], [0, 0, 1, 1], [], []>} : vector<32x128xf32>, vector<128x128xf32>, vector<32x128xf32> -> vector<32x128xf32>
    %c7_311 = arith.constant 7 : index
    %c0_312 = arith.constant 0 : index
    %c0_313 = arith.constant 0 : index
    %325 = vector.load %arg13[%c7_311, %c0_312, %c0_313] : memref<9x32x32xf32, #tpu.memory_space<vmem>>, vector<1x32x32xf32>
    %326 = vector.shape_cast %325 : vector<1x32x32xf32> to vector<32x32xf32>
    %cst_314 = arith.constant dense<0.000000e+00> : vector<32x128xf32>
    %327 = tpu.matmul %326, %324, %cst_314 {dimension_numbers = #tpu.dot_dimension_numbers<[1], [0], [0], [1], [0, 0, 1, 1], [], []>} : vector<32x32xf32>, vector<32x128xf32>, vector<32x128xf32> -> vector<32x128xf32>
    %328 = arith.addf %321, %327 : vector<32x128xf32>
    %c8_315 = arith.constant 8 : index
    %c0_316 = arith.constant 0 : index
    %c0_317 = arith.constant 0 : index
    %329 = vector.load %arg2[%c8_315, %c0_316, %c0_317] : memref<9x128x128xf32, #tpu.memory_space<vmem>>, vector<1x128x128xf32>
    %330 = vector.shape_cast %329 : vector<1x128x128xf32> to vector<128x128xf32>
    %cst_318 = arith.constant dense<0.000000e+00> : vector<32x128xf32>
    %331 = tpu.matmul %234, %330, %cst_318 {dimension_numbers = #tpu.dot_dimension_numbers<[1], [0], [0], [1], [0, 0, 1, 1], [], []>} : vector<32x128xf32>, vector<128x128xf32>, vector<32x128xf32> -> vector<32x128xf32>
    %c8_319 = arith.constant 8 : index
    %c0_320 = arith.constant 0 : index
    %c0_321 = arith.constant 0 : index
    %332 = vector.load %arg13[%c8_319, %c0_320, %c0_321] : memref<9x32x32xf32, #tpu.memory_space<vmem>>, vector<1x32x32xf32>
    %333 = vector.shape_cast %332 : vector<1x32x32xf32> to vector<32x32xf32>
    %cst_322 = arith.constant dense<0.000000e+00> : vector<32x128xf32>
    %334 = tpu.matmul %333, %331, %cst_322 {dimension_numbers = #tpu.dot_dimension_numbers<[1], [0], [0], [1], [0, 0, 1, 1], [], []>} : vector<32x32xf32>, vector<32x128xf32>, vector<32x128xf32> -> vector<32x128xf32>
    %335 = arith.addf %328, %334 : vector<32x128xf32>
    %336 = vector.broadcast %273 : vector<32x1xf32> to vector<32x128xf32>
    %337 = arith.addf %335, %336 : vector<32x128xf32>
    %cst_323 = arith.constant 0.000000e+00 : f32
    %338 = vector.broadcast %cst_323 : f32 to vector<32x128xf32>
    %339 = arith.maximumf %337, %338 : vector<32x128xf32>
    %c0_324 = arith.constant 0 : index
    %c0_325 = arith.constant 0 : index
    %c0_326 = arith.constant 0 : index
    %340 = vector.load %arg2[%c0_324, %c0_325, %c0_326] : memref<9x128x128xf32, #tpu.memory_space<vmem>>, vector<1x128x128xf32>
    %341 = vector.shape_cast %340 : vector<1x128x128xf32> to vector<128x128xf32>
    %cst_327 = arith.constant dense<0.000000e+00> : vector<32x128xf32>
    %342 = tpu.matmul %339, %341, %cst_327 {dimension_numbers = #tpu.dot_dimension_numbers<[1], [0], [0], [1], [0, 0, 1, 1], [], []>} : vector<32x128xf32>, vector<128x128xf32>, vector<32x128xf32> -> vector<32x128xf32>
    %c0_328 = arith.constant 0 : index
    %c0_329 = arith.constant 0 : index
    %c0_330 = arith.constant 0 : index
    %343 = vector.load %arg15[%c0_328, %c0_329, %c0_330] : memref<9x16x32xf32, #tpu.memory_space<vmem>>, vector<1x16x32xf32>
    %344 = vector.shape_cast %343 : vector<1x16x32xf32> to vector<16x32xf32>
    %cst_331 = arith.constant dense<0.000000e+00> : vector<16x128xf32>
    %345 = tpu.matmul %344, %342, %cst_331 {dimension_numbers = #tpu.dot_dimension_numbers<[1], [0], [0], [1], [0, 0, 1, 1], [], []>} : vector<16x32xf32>, vector<32x128xf32>, vector<16x128xf32> -> vector<16x128xf32>
    %c1_332 = arith.constant 1 : index
    %c0_333 = arith.constant 0 : index
    %c0_334 = arith.constant 0 : index
    %346 = vector.load %arg2[%c1_332, %c0_333, %c0_334] : memref<9x128x128xf32, #tpu.memory_space<vmem>>, vector<1x128x128xf32>
    %347 = vector.shape_cast %346 : vector<1x128x128xf32> to vector<128x128xf32>
    %cst_335 = arith.constant dense<0.000000e+00> : vector<32x128xf32>
    %348 = tpu.matmul %339, %347, %cst_335 {dimension_numbers = #tpu.dot_dimension_numbers<[1], [0], [0], [1], [0, 0, 1, 1], [], []>} : vector<32x128xf32>, vector<128x128xf32>, vector<32x128xf32> -> vector<32x128xf32>
    %c1_336 = arith.constant 1 : index
    %c0_337 = arith.constant 0 : index
    %c0_338 = arith.constant 0 : index
    %349 = vector.load %arg15[%c1_336, %c0_337, %c0_338] : memref<9x16x32xf32, #tpu.memory_space<vmem>>, vector<1x16x32xf32>
    %350 = vector.shape_cast %349 : vector<1x16x32xf32> to vector<16x32xf32>
    %cst_339 = arith.constant dense<0.000000e+00> : vector<16x128xf32>
    %351 = tpu.matmul %350, %348, %cst_339 {dimension_numbers = #tpu.dot_dimension_numbers<[1], [0], [0], [1], [0, 0, 1, 1], [], []>} : vector<16x32xf32>, vector<32x128xf32>, vector<16x128xf32> -> vector<16x128xf32>
    %352 = arith.addf %345, %351 : vector<16x128xf32>
    %c2_340 = arith.constant 2 : index
    %c0_341 = arith.constant 0 : index
    %c0_342 = arith.constant 0 : index
    %353 = vector.load %arg2[%c2_340, %c0_341, %c0_342] : memref<9x128x128xf32, #tpu.memory_space<vmem>>, vector<1x128x128xf32>
    %354 = vector.shape_cast %353 : vector<1x128x128xf32> to vector<128x128xf32>
    %cst_343 = arith.constant dense<0.000000e+00> : vector<32x128xf32>
    %355 = tpu.matmul %339, %354, %cst_343 {dimension_numbers = #tpu.dot_dimension_numbers<[1], [0], [0], [1], [0, 0, 1, 1], [], []>} : vector<32x128xf32>, vector<128x128xf32>, vector<32x128xf32> -> vector<32x128xf32>
    %c2_344 = arith.constant 2 : index
    %c0_345 = arith.constant 0 : index
    %c0_346 = arith.constant 0 : index
    %356 = vector.load %arg15[%c2_344, %c0_345, %c0_346] : memref<9x16x32xf32, #tpu.memory_space<vmem>>, vector<1x16x32xf32>
    %357 = vector.shape_cast %356 : vector<1x16x32xf32> to vector<16x32xf32>
    %cst_347 = arith.constant dense<0.000000e+00> : vector<16x128xf32>
    %358 = tpu.matmul %357, %355, %cst_347 {dimension_numbers = #tpu.dot_dimension_numbers<[1], [0], [0], [1], [0, 0, 1, 1], [], []>} : vector<16x32xf32>, vector<32x128xf32>, vector<16x128xf32> -> vector<16x128xf32>
    %359 = arith.addf %352, %358 : vector<16x128xf32>
    %c3_348 = arith.constant 3 : index
    %c0_349 = arith.constant 0 : index
    %c0_350 = arith.constant 0 : index
    %360 = vector.load %arg2[%c3_348, %c0_349, %c0_350] : memref<9x128x128xf32, #tpu.memory_space<vmem>>, vector<1x128x128xf32>
    %361 = vector.shape_cast %360 : vector<1x128x128xf32> to vector<128x128xf32>
    %cst_351 = arith.constant dense<0.000000e+00> : vector<32x128xf32>
    %362 = tpu.matmul %339, %361, %cst_351 {dimension_numbers = #tpu.dot_dimension_numbers<[1], [0], [0], [1], [0, 0, 1, 1], [], []>} : vector<32x128xf32>, vector<128x128xf32>, vector<32x128xf32> -> vector<32x128xf32>
    %c3_352 = arith.constant 3 : index
    %c0_353 = arith.constant 0 : index
    %c0_354 = arith.constant 0 : index
    %363 = vector.load %arg15[%c3_352, %c0_353, %c0_354] : memref<9x16x32xf32, #tpu.memory_space<vmem>>, vector<1x16x32xf32>
    %364 = vector.shape_cast %363 : vector<1x16x32xf32> to vector<16x32xf32>
    %cst_355 = arith.constant dense<0.000000e+00> : vector<16x128xf32>
    %365 = tpu.matmul %364, %362, %cst_355 {dimension_numbers = #tpu.dot_dimension_numbers<[1], [0], [0], [1], [0, 0, 1, 1], [], []>} : vector<16x32xf32>, vector<32x128xf32>, vector<16x128xf32> -> vector<16x128xf32>
    %366 = arith.addf %359, %365 : vector<16x128xf32>
    %c4_356 = arith.constant 4 : index
    %c0_357 = arith.constant 0 : index
    %c0_358 = arith.constant 0 : index
    %367 = vector.load %arg2[%c4_356, %c0_357, %c0_358] : memref<9x128x128xf32, #tpu.memory_space<vmem>>, vector<1x128x128xf32>
    %368 = vector.shape_cast %367 : vector<1x128x128xf32> to vector<128x128xf32>
    %cst_359 = arith.constant dense<0.000000e+00> : vector<32x128xf32>
    %369 = tpu.matmul %339, %368, %cst_359 {dimension_numbers = #tpu.dot_dimension_numbers<[1], [0], [0], [1], [0, 0, 1, 1], [], []>} : vector<32x128xf32>, vector<128x128xf32>, vector<32x128xf32> -> vector<32x128xf32>
    %c4_360 = arith.constant 4 : index
    %c0_361 = arith.constant 0 : index
    %c0_362 = arith.constant 0 : index
    %370 = vector.load %arg15[%c4_360, %c0_361, %c0_362] : memref<9x16x32xf32, #tpu.memory_space<vmem>>, vector<1x16x32xf32>
    %371 = vector.shape_cast %370 : vector<1x16x32xf32> to vector<16x32xf32>
    %cst_363 = arith.constant dense<0.000000e+00> : vector<16x128xf32>
    %372 = tpu.matmul %371, %369, %cst_363 {dimension_numbers = #tpu.dot_dimension_numbers<[1], [0], [0], [1], [0, 0, 1, 1], [], []>} : vector<16x32xf32>, vector<32x128xf32>, vector<16x128xf32> -> vector<16x128xf32>
    %373 = arith.addf %366, %372 : vector<16x128xf32>
    %c5_364 = arith.constant 5 : index
    %c0_365 = arith.constant 0 : index
    %c0_366 = arith.constant 0 : index
    %374 = vector.load %arg2[%c5_364, %c0_365, %c0_366] : memref<9x128x128xf32, #tpu.memory_space<vmem>>, vector<1x128x128xf32>
    %375 = vector.shape_cast %374 : vector<1x128x128xf32> to vector<128x128xf32>
    %cst_367 = arith.constant dense<0.000000e+00> : vector<32x128xf32>
    %376 = tpu.matmul %339, %375, %cst_367 {dimension_numbers = #tpu.dot_dimension_numbers<[1], [0], [0], [1], [0, 0, 1, 1], [], []>} : vector<32x128xf32>, vector<128x128xf32>, vector<32x128xf32> -> vector<32x128xf32>
    %c5_368 = arith.constant 5 : index
    %c0_369 = arith.constant 0 : index
    %c0_370 = arith.constant 0 : index
    %377 = vector.load %arg15[%c5_368, %c0_369, %c0_370] : memref<9x16x32xf32, #tpu.memory_space<vmem>>, vector<1x16x32xf32>
    %378 = vector.shape_cast %377 : vector<1x16x32xf32> to vector<16x32xf32>
    %cst_371 = arith.constant dense<0.000000e+00> : vector<16x128xf32>
    %379 = tpu.matmul %378, %376, %cst_371 {dimension_numbers = #tpu.dot_dimension_numbers<[1], [0], [0], [1], [0, 0, 1, 1], [], []>} : vector<16x32xf32>, vector<32x128xf32>, vector<16x128xf32> -> vector<16x128xf32>
    %380 = arith.addf %373, %379 : vector<16x128xf32>
    %c6_372 = arith.constant 6 : index
    %c0_373 = arith.constant 0 : index
    %c0_374 = arith.constant 0 : index
    %381 = vector.load %arg2[%c6_372, %c0_373, %c0_374] : memref<9x128x128xf32, #tpu.memory_space<vmem>>, vector<1x128x128xf32>
    %382 = vector.shape_cast %381 : vector<1x128x128xf32> to vector<128x128xf32>
    %cst_375 = arith.constant dense<0.000000e+00> : vector<32x128xf32>
    %383 = tpu.matmul %339, %382, %cst_375 {dimension_numbers = #tpu.dot_dimension_numbers<[1], [0], [0], [1], [0, 0, 1, 1], [], []>} : vector<32x128xf32>, vector<128x128xf32>, vector<32x128xf32> -> vector<32x128xf32>
    %c6_376 = arith.constant 6 : index
    %c0_377 = arith.constant 0 : index
    %c0_378 = arith.constant 0 : index
    %384 = vector.load %arg15[%c6_376, %c0_377, %c0_378] : memref<9x16x32xf32, #tpu.memory_space<vmem>>, vector<1x16x32xf32>
    %385 = vector.shape_cast %384 : vector<1x16x32xf32> to vector<16x32xf32>
    %cst_379 = arith.constant dense<0.000000e+00> : vector<16x128xf32>
    %386 = tpu.matmul %385, %383, %cst_379 {dimension_numbers = #tpu.dot_dimension_numbers<[1], [0], [0], [1], [0, 0, 1, 1], [], []>} : vector<16x32xf32>, vector<32x128xf32>, vector<16x128xf32> -> vector<16x128xf32>
    %387 = arith.addf %380, %386 : vector<16x128xf32>
    %c7_380 = arith.constant 7 : index
    %c0_381 = arith.constant 0 : index
    %c0_382 = arith.constant 0 : index
    %388 = vector.load %arg2[%c7_380, %c0_381, %c0_382] : memref<9x128x128xf32, #tpu.memory_space<vmem>>, vector<1x128x128xf32>
    %389 = vector.shape_cast %388 : vector<1x128x128xf32> to vector<128x128xf32>
    %cst_383 = arith.constant dense<0.000000e+00> : vector<32x128xf32>
    %390 = tpu.matmul %339, %389, %cst_383 {dimension_numbers = #tpu.dot_dimension_numbers<[1], [0], [0], [1], [0, 0, 1, 1], [], []>} : vector<32x128xf32>, vector<128x128xf32>, vector<32x128xf32> -> vector<32x128xf32>
    %c7_384 = arith.constant 7 : index
    %c0_385 = arith.constant 0 : index
    %c0_386 = arith.constant 0 : index
    %391 = vector.load %arg15[%c7_384, %c0_385, %c0_386] : memref<9x16x32xf32, #tpu.memory_space<vmem>>, vector<1x16x32xf32>
    %392 = vector.shape_cast %391 : vector<1x16x32xf32> to vector<16x32xf32>
    %cst_387 = arith.constant dense<0.000000e+00> : vector<16x128xf32>
    %393 = tpu.matmul %392, %390, %cst_387 {dimension_numbers = #tpu.dot_dimension_numbers<[1], [0], [0], [1], [0, 0, 1, 1], [], []>} : vector<16x32xf32>, vector<32x128xf32>, vector<16x128xf32> -> vector<16x128xf32>
    %394 = arith.addf %387, %393 : vector<16x128xf32>
    %c8_388 = arith.constant 8 : index
    %c0_389 = arith.constant 0 : index
    %c0_390 = arith.constant 0 : index
    %395 = vector.load %arg2[%c8_388, %c0_389, %c0_390] : memref<9x128x128xf32, #tpu.memory_space<vmem>>, vector<1x128x128xf32>
    %396 = vector.shape_cast %395 : vector<1x128x128xf32> to vector<128x128xf32>
    %cst_391 = arith.constant dense<0.000000e+00> : vector<32x128xf32>
    %397 = tpu.matmul %339, %396, %cst_391 {dimension_numbers = #tpu.dot_dimension_numbers<[1], [0], [0], [1], [0, 0, 1, 1], [], []>} : vector<32x128xf32>, vector<128x128xf32>, vector<32x128xf32> -> vector<32x128xf32>
    %c8_392 = arith.constant 8 : index
    %c0_393 = arith.constant 0 : index
    %c0_394 = arith.constant 0 : index
    %398 = vector.load %arg15[%c8_392, %c0_393, %c0_394] : memref<9x16x32xf32, #tpu.memory_space<vmem>>, vector<1x16x32xf32>
    %399 = vector.shape_cast %398 : vector<1x16x32xf32> to vector<16x32xf32>
    %cst_395 = arith.constant dense<0.000000e+00> : vector<16x128xf32>
    %400 = tpu.matmul %399, %397, %cst_395 {dimension_numbers = #tpu.dot_dimension_numbers<[1], [0], [0], [1], [0, 0, 1, 1], [], []>} : vector<16x32xf32>, vector<32x128xf32>, vector<16x128xf32> -> vector<16x128xf32>
    %401 = arith.addf %394, %400 : vector<16x128xf32>
    %cst_396 = arith.constant 0.000000e+00 : f32
    %402 = vector.broadcast %cst_396 : f32 to vector<16x128xf32>
    %403 = arith.maximumf %401, %402 : vector<16x128xf32>
    %c0_397 = arith.constant 0 : index
    %c0_398 = arith.constant 0 : index
    %404 = vector.load %arg16[%c0_397, %c0_398] : memref<32x16xf32, #tpu.memory_space<vmem>>, vector<32x16xf32>
    %cst_399 = arith.constant dense<0.000000e+00> : vector<32x128xf32>
    %405 = tpu.matmul %404, %403, %cst_399 {dimension_numbers = #tpu.dot_dimension_numbers<[1], [0], [0], [1], [0, 0, 1, 1], [], []>} : vector<32x16xf32>, vector<16x128xf32>, vector<32x128xf32> -> vector<32x128xf32>
    %406 = arith.addf %337, %405 : vector<32x128xf32>
    %cst_400 = arith.constant 0.000000e+00 : f32
    %407 = vector.broadcast %cst_400 : f32 to vector<32x128xf32>
    %408 = arith.maximumf %406, %407 : vector<32x128xf32>
    %c0_401 = arith.constant 0 : index
    %c0_402 = arith.constant 0 : index
    %c0_403 = arith.constant 0 : index
    %409 = vector.load %arg2[%c0_401, %c0_402, %c0_403] : memref<9x128x128xf32, #tpu.memory_space<vmem>>, vector<1x128x128xf32>
    %410 = vector.shape_cast %409 : vector<1x128x128xf32> to vector<128x128xf32>
    %cst_404 = arith.constant dense<0.000000e+00> : vector<32x128xf32>
    %411 = tpu.matmul %408, %410, %cst_404 {dimension_numbers = #tpu.dot_dimension_numbers<[1], [0], [0], [1], [0, 0, 1, 1], [], []>} : vector<32x128xf32>, vector<128x128xf32>, vector<32x128xf32> -> vector<32x128xf32>
    %c0_405 = arith.constant 0 : index
    %c0_406 = arith.constant 0 : index
    %c0_407 = arith.constant 0 : index
    %412 = vector.load %arg17[%c0_405, %c0_406, %c0_407] : memref<9x16x32xf32, #tpu.memory_space<vmem>>, vector<1x16x32xf32>
    %413 = vector.shape_cast %412 : vector<1x16x32xf32> to vector<16x32xf32>
    %cst_408 = arith.constant dense<0.000000e+00> : vector<16x128xf32>
    %414 = tpu.matmul %413, %411, %cst_408 {dimension_numbers = #tpu.dot_dimension_numbers<[1], [0], [0], [1], [0, 0, 1, 1], [], []>} : vector<16x32xf32>, vector<32x128xf32>, vector<16x128xf32> -> vector<16x128xf32>
    %c1_409 = arith.constant 1 : index
    %c0_410 = arith.constant 0 : index
    %c0_411 = arith.constant 0 : index
    %415 = vector.load %arg2[%c1_409, %c0_410, %c0_411] : memref<9x128x128xf32, #tpu.memory_space<vmem>>, vector<1x128x128xf32>
    %416 = vector.shape_cast %415 : vector<1x128x128xf32> to vector<128x128xf32>
    %cst_412 = arith.constant dense<0.000000e+00> : vector<32x128xf32>
    %417 = tpu.matmul %408, %416, %cst_412 {dimension_numbers = #tpu.dot_dimension_numbers<[1], [0], [0], [1], [0, 0, 1, 1], [], []>} : vector<32x128xf32>, vector<128x128xf32>, vector<32x128xf32> -> vector<32x128xf32>
    %c1_413 = arith.constant 1 : index
    %c0_414 = arith.constant 0 : index
    %c0_415 = arith.constant 0 : index
    %418 = vector.load %arg17[%c1_413, %c0_414, %c0_415] : memref<9x16x32xf32, #tpu.memory_space<vmem>>, vector<1x16x32xf32>
    %419 = vector.shape_cast %418 : vector<1x16x32xf32> to vector<16x32xf32>
    %cst_416 = arith.constant dense<0.000000e+00> : vector<16x128xf32>
    %420 = tpu.matmul %419, %417, %cst_416 {dimension_numbers = #tpu.dot_dimension_numbers<[1], [0], [0], [1], [0, 0, 1, 1], [], []>} : vector<16x32xf32>, vector<32x128xf32>, vector<16x128xf32> -> vector<16x128xf32>
    %421 = arith.addf %414, %420 : vector<16x128xf32>
    %c2_417 = arith.constant 2 : index
    %c0_418 = arith.constant 0 : index
    %c0_419 = arith.constant 0 : index
    %422 = vector.load %arg2[%c2_417, %c0_418, %c0_419] : memref<9x128x128xf32, #tpu.memory_space<vmem>>, vector<1x128x128xf32>
    %423 = vector.shape_cast %422 : vector<1x128x128xf32> to vector<128x128xf32>
    %cst_420 = arith.constant dense<0.000000e+00> : vector<32x128xf32>
    %424 = tpu.matmul %408, %423, %cst_420 {dimension_numbers = #tpu.dot_dimension_numbers<[1], [0], [0], [1], [0, 0, 1, 1], [], []>} : vector<32x128xf32>, vector<128x128xf32>, vector<32x128xf32> -> vector<32x128xf32>
    %c2_421 = arith.constant 2 : index
    %c0_422 = arith.constant 0 : index
    %c0_423 = arith.constant 0 : index
    %425 = vector.load %arg17[%c2_421, %c0_422, %c0_423] : memref<9x16x32xf32, #tpu.memory_space<vmem>>, vector<1x16x32xf32>
    %426 = vector.shape_cast %425 : vector<1x16x32xf32> to vector<16x32xf32>
    %cst_424 = arith.constant dense<0.000000e+00> : vector<16x128xf32>
    %427 = tpu.matmul %426, %424, %cst_424 {dimension_numbers = #tpu.dot_dimension_numbers<[1], [0], [0], [1], [0, 0, 1, 1], [], []>} : vector<16x32xf32>, vector<32x128xf32>, vector<16x128xf32> -> vector<16x128xf32>
    %428 = arith.addf %421, %427 : vector<16x128xf32>
    %c3_425 = arith.constant 3 : index
    %c0_426 = arith.constant 0 : index
    %c0_427 = arith.constant 0 : index
    %429 = vector.load %arg2[%c3_425, %c0_426, %c0_427] : memref<9x128x128xf32, #tpu.memory_space<vmem>>, vector<1x128x128xf32>
    %430 = vector.shape_cast %429 : vector<1x128x128xf32> to vector<128x128xf32>
    %cst_428 = arith.constant dense<0.000000e+00> : vector<32x128xf32>
    %431 = tpu.matmul %408, %430, %cst_428 {dimension_numbers = #tpu.dot_dimension_numbers<[1], [0], [0], [1], [0, 0, 1, 1], [], []>} : vector<32x128xf32>, vector<128x128xf32>, vector<32x128xf32> -> vector<32x128xf32>
    %c3_429 = arith.constant 3 : index
    %c0_430 = arith.constant 0 : index
    %c0_431 = arith.constant 0 : index
    %432 = vector.load %arg17[%c3_429, %c0_430, %c0_431] : memref<9x16x32xf32, #tpu.memory_space<vmem>>, vector<1x16x32xf32>
    %433 = vector.shape_cast %432 : vector<1x16x32xf32> to vector<16x32xf32>
    %cst_432 = arith.constant dense<0.000000e+00> : vector<16x128xf32>
    %434 = tpu.matmul %433, %431, %cst_432 {dimension_numbers = #tpu.dot_dimension_numbers<[1], [0], [0], [1], [0, 0, 1, 1], [], []>} : vector<16x32xf32>, vector<32x128xf32>, vector<16x128xf32> -> vector<16x128xf32>
    %435 = arith.addf %428, %434 : vector<16x128xf32>
    %c4_433 = arith.constant 4 : index
    %c0_434 = arith.constant 0 : index
    %c0_435 = arith.constant 0 : index
    %436 = vector.load %arg2[%c4_433, %c0_434, %c0_435] : memref<9x128x128xf32, #tpu.memory_space<vmem>>, vector<1x128x128xf32>
    %437 = vector.shape_cast %436 : vector<1x128x128xf32> to vector<128x128xf32>
    %cst_436 = arith.constant dense<0.000000e+00> : vector<32x128xf32>
    %438 = tpu.matmul %408, %437, %cst_436 {dimension_numbers = #tpu.dot_dimension_numbers<[1], [0], [0], [1], [0, 0, 1, 1], [], []>} : vector<32x128xf32>, vector<128x128xf32>, vector<32x128xf32> -> vector<32x128xf32>
    %c4_437 = arith.constant 4 : index
    %c0_438 = arith.constant 0 : index
    %c0_439 = arith.constant 0 : index
    %439 = vector.load %arg17[%c4_437, %c0_438, %c0_439] : memref<9x16x32xf32, #tpu.memory_space<vmem>>, vector<1x16x32xf32>
    %440 = vector.shape_cast %439 : vector<1x16x32xf32> to vector<16x32xf32>
    %cst_440 = arith.constant dense<0.000000e+00> : vector<16x128xf32>
    %441 = tpu.matmul %440, %438, %cst_440 {dimension_numbers = #tpu.dot_dimension_numbers<[1], [0], [0], [1], [0, 0, 1, 1], [], []>} : vector<16x32xf32>, vector<32x128xf32>, vector<16x128xf32> -> vector<16x128xf32>
    %442 = arith.addf %435, %441 : vector<16x128xf32>
    %c5_441 = arith.constant 5 : index
    %c0_442 = arith.constant 0 : index
    %c0_443 = arith.constant 0 : index
    %443 = vector.load %arg2[%c5_441, %c0_442, %c0_443] : memref<9x128x128xf32, #tpu.memory_space<vmem>>, vector<1x128x128xf32>
    %444 = vector.shape_cast %443 : vector<1x128x128xf32> to vector<128x128xf32>
    %cst_444 = arith.constant dense<0.000000e+00> : vector<32x128xf32>
    %445 = tpu.matmul %408, %444, %cst_444 {dimension_numbers = #tpu.dot_dimension_numbers<[1], [0], [0], [1], [0, 0, 1, 1], [], []>} : vector<32x128xf32>, vector<128x128xf32>, vector<32x128xf32> -> vector<32x128xf32>
    %c5_445 = arith.constant 5 : index
    %c0_446 = arith.constant 0 : index
    %c0_447 = arith.constant 0 : index
    %446 = vector.load %arg17[%c5_445, %c0_446, %c0_447] : memref<9x16x32xf32, #tpu.memory_space<vmem>>, vector<1x16x32xf32>
    %447 = vector.shape_cast %446 : vector<1x16x32xf32> to vector<16x32xf32>
    %cst_448 = arith.constant dense<0.000000e+00> : vector<16x128xf32>
    %448 = tpu.matmul %447, %445, %cst_448 {dimension_numbers = #tpu.dot_dimension_numbers<[1], [0], [0], [1], [0, 0, 1, 1], [], []>} : vector<16x32xf32>, vector<32x128xf32>, vector<16x128xf32> -> vector<16x128xf32>
    %449 = arith.addf %442, %448 : vector<16x128xf32>
    %c6_449 = arith.constant 6 : index
    %c0_450 = arith.constant 0 : index
    %c0_451 = arith.constant 0 : index
    %450 = vector.load %arg2[%c6_449, %c0_450, %c0_451] : memref<9x128x128xf32, #tpu.memory_space<vmem>>, vector<1x128x128xf32>
    %451 = vector.shape_cast %450 : vector<1x128x128xf32> to vector<128x128xf32>
    %cst_452 = arith.constant dense<0.000000e+00> : vector<32x128xf32>
    %452 = tpu.matmul %408, %451, %cst_452 {dimension_numbers = #tpu.dot_dimension_numbers<[1], [0], [0], [1], [0, 0, 1, 1], [], []>} : vector<32x128xf32>, vector<128x128xf32>, vector<32x128xf32> -> vector<32x128xf32>
    %c6_453 = arith.constant 6 : index
    %c0_454 = arith.constant 0 : index
    %c0_455 = arith.constant 0 : index
    %453 = vector.load %arg17[%c6_453, %c0_454, %c0_455] : memref<9x16x32xf32, #tpu.memory_space<vmem>>, vector<1x16x32xf32>
    %454 = vector.shape_cast %453 : vector<1x16x32xf32> to vector<16x32xf32>
    %cst_456 = arith.constant dense<0.000000e+00> : vector<16x128xf32>
    %455 = tpu.matmul %454, %452, %cst_456 {dimension_numbers = #tpu.dot_dimension_numbers<[1], [0], [0], [1], [0, 0, 1, 1], [], []>} : vector<16x32xf32>, vector<32x128xf32>, vector<16x128xf32> -> vector<16x128xf32>
    %456 = arith.addf %449, %455 : vector<16x128xf32>
    %c7_457 = arith.constant 7 : index
    %c0_458 = arith.constant 0 : index
    %c0_459 = arith.constant 0 : index
    %457 = vector.load %arg2[%c7_457, %c0_458, %c0_459] : memref<9x128x128xf32, #tpu.memory_space<vmem>>, vector<1x128x128xf32>
    %458 = vector.shape_cast %457 : vector<1x128x128xf32> to vector<128x128xf32>
    %cst_460 = arith.constant dense<0.000000e+00> : vector<32x128xf32>
    %459 = tpu.matmul %408, %458, %cst_460 {dimension_numbers = #tpu.dot_dimension_numbers<[1], [0], [0], [1], [0, 0, 1, 1], [], []>} : vector<32x128xf32>, vector<128x128xf32>, vector<32x128xf32> -> vector<32x128xf32>
    %c7_461 = arith.constant 7 : index
    %c0_462 = arith.constant 0 : index
    %c0_463 = arith.constant 0 : index
    %460 = vector.load %arg17[%c7_461, %c0_462, %c0_463] : memref<9x16x32xf32, #tpu.memory_space<vmem>>, vector<1x16x32xf32>
    %461 = vector.shape_cast %460 : vector<1x16x32xf32> to vector<16x32xf32>
    %cst_464 = arith.constant dense<0.000000e+00> : vector<16x128xf32>
    %462 = tpu.matmul %461, %459, %cst_464 {dimension_numbers = #tpu.dot_dimension_numbers<[1], [0], [0], [1], [0, 0, 1, 1], [], []>} : vector<16x32xf32>, vector<32x128xf32>, vector<16x128xf32> -> vector<16x128xf32>
    %463 = arith.addf %456, %462 : vector<16x128xf32>
    %c8_465 = arith.constant 8 : index
    %c0_466 = arith.constant 0 : index
    %c0_467 = arith.constant 0 : index
    %464 = vector.load %arg2[%c8_465, %c0_466, %c0_467] : memref<9x128x128xf32, #tpu.memory_space<vmem>>, vector<1x128x128xf32>
    %465 = vector.shape_cast %464 : vector<1x128x128xf32> to vector<128x128xf32>
    %cst_468 = arith.constant dense<0.000000e+00> : vector<32x128xf32>
    %466 = tpu.matmul %408, %465, %cst_468 {dimension_numbers = #tpu.dot_dimension_numbers<[1], [0], [0], [1], [0, 0, 1, 1], [], []>} : vector<32x128xf32>, vector<128x128xf32>, vector<32x128xf32> -> vector<32x128xf32>
    %c8_469 = arith.constant 8 : index
    %c0_470 = arith.constant 0 : index
    %c0_471 = arith.constant 0 : index
    %467 = vector.load %arg17[%c8_469, %c0_470, %c0_471] : memref<9x16x32xf32, #tpu.memory_space<vmem>>, vector<1x16x32xf32>
    %468 = vector.shape_cast %467 : vector<1x16x32xf32> to vector<16x32xf32>
    %cst_472 = arith.constant dense<0.000000e+00> : vector<16x128xf32>
    %469 = tpu.matmul %468, %466, %cst_472 {dimension_numbers = #tpu.dot_dimension_numbers<[1], [0], [0], [1], [0, 0, 1, 1], [], []>} : vector<16x32xf32>, vector<32x128xf32>, vector<16x128xf32> -> vector<16x128xf32>
    %470 = arith.addf %463, %469 : vector<16x128xf32>
    %cst_473 = arith.constant 0.000000e+00 : f32
    %471 = vector.broadcast %cst_473 : f32 to vector<16x128xf32>
    %472 = arith.maximumf %470, %471 : vector<16x128xf32>
    %c0_474 = arith.constant 0 : index
    %c0_475 = arith.constant 0 : index
    %473 = vector.load %arg18[%c0_474, %c0_475] : memref<32x16xf32, #tpu.memory_space<vmem>>, vector<32x16xf32>
    %cst_476 = arith.constant dense<0.000000e+00> : vector<32x128xf32>
    %474 = tpu.matmul %473, %472, %cst_476 {dimension_numbers = #tpu.dot_dimension_numbers<[1], [0], [0], [1], [0, 0, 1, 1], [], []>} : vector<32x16xf32>, vector<16x128xf32>, vector<32x128xf32> -> vector<32x128xf32>
    %475 = arith.addf %406, %474 : vector<32x128xf32>
    %cst_477 = arith.constant 0.000000e+00 : f32
    %476 = vector.broadcast %cst_477 : f32 to vector<32x128xf32>
    %477 = arith.maximumf %475, %476 : vector<32x128xf32>
    %c0_478 = arith.constant 0 : index
    %c0_479 = arith.constant 0 : index
    %478 = vector.load %arg19[%c0_478, %c0_479] : memref<32x128xf32, #tpu.memory_space<vmem>>, vector<32x128xf32>
    tpu.vector_store %arg19[%c0_478, %c0_479], %477 {strides = array<i32>} : memref<32x128xf32, #tpu.memory_space<vmem>>, vector<32x128xf32>,
    return
  }
  func.func @transform_0(%arg0: i32) -> (i32, i32) {
    %c0_i32 = arith.constant 0 : i32
    %c0_i32_0 = arith.constant 0 : i32
    %c0_i32_1 = arith.constant 0 : i32
    return %c0_i32, %c0_i32_0 : i32, i32
  }
  func.func @transform_1(%arg0: i32) -> (i32, i32, i32) {
    %c0_i32 = arith.constant 0 : i32
    %c0_i32_0 = arith.constant 0 : i32
    %c0_i32_1 = arith.constant 0 : i32
    %c0_i32_2 = arith.constant 0 : i32
    return %c0_i32, %c0_i32_0, %c0_i32_1 : i32, i32, i32
  }
  func.func @transform_2(%arg0: i32) -> (i32, i32, i32) {
    %c0_i32 = arith.constant 0 : i32
    %c0_i32_0 = arith.constant 0 : i32
    %c0_i32_1 = arith.constant 0 : i32
    %c0_i32_2 = arith.constant 0 : i32
    return %c0_i32, %c0_i32_0, %c0_i32_1 : i32, i32, i32
  }
  func.func @transform_3(%arg0: i32) -> (i32, i32) {
    %c0_i32 = arith.constant 0 : i32
    %c0_i32_0 = arith.constant 0 : i32
    %c0_i32_1 = arith.constant 0 : i32
    return %c0_i32, %c0_i32_0 : i32, i32
  }
  func.func @transform_4(%arg0: i32) -> (i32, i32, i32) {
    %c0_i32 = arith.constant 0 : i32
    %c0_i32_0 = arith.constant 0 : i32
    %c0_i32_1 = arith.constant 0 : i32
    %c0_i32_2 = arith.constant 0 : i32
    return %c0_i32, %c0_i32_0, %c0_i32_1 : i32, i32, i32
  }
  func.func @transform_5(%arg0: i32) -> (i32, i32) {
    %c0_i32 = arith.constant 0 : i32
    %c0_i32_0 = arith.constant 0 : i32
    %c0_i32_1 = arith.constant 0 : i32
    return %c0_i32, %c0_i32_0 : i32, i32
  }
  func.func @transform_6(%arg0: i32) -> (i32, i32, i32) {
    %c0_i32 = arith.constant 0 : i32
    %c0_i32_0 = arith.constant 0 : i32
    %c0_i32_1 = arith.constant 0 : i32
    %c0_i32_2 = arith.constant 0 : i32
    return %c0_i32, %c0_i32_0, %c0_i32_1 : i32, i32, i32
  }
  func.func @transform_7(%arg0: i32) -> (i32, i32) {
    %c0_i32 = arith.constant 0 : i32
    %c0_i32_0 = arith.constant 0 : i32
    %c0_i32_1 = arith.constant 0 : i32
    return %c0_i32, %c0_i32_0 : i32, i32
  }
  func.func @transform_8(%arg0: i32) -> (i32, i32) {
    %c0_i32 = arith.constant 0 : i32
    %c0_i32_0 = arith.constant 0 : i32
    %c0_i32_1 = arith.constant 0 : i32
    return %c0_i32, %c0_i32_0 : i32, i32
  }
  func.func @transform_9(%arg0: i32) -> (i32, i32) {
    %c0_i32 = arith.constant 0 : i32
    %c0_i32_0 = arith.constant 0 : i32
    %c0_i32_1 = arith.constant 0 : i32
    return %c0_i32, %c0_i32_0 : i32, i32
  }
  func.func @transform_10(%arg0: i32) -> (i32, i32) {
    %c0_i32 = arith.constant 0 : i32
    %c0_i32_0 = arith.constant 0 : i32
    %c0_i32_1 = arith.constant 0 : i32
    return %c0_i32, %c0_i32_0 : i32, i32
  }
  func.func @transform_11(%arg0: i32) -> (i32, i32) {
    %c0_i32 = arith.constant 0 : i32
    %c0_i32_0 = arith.constant 0 : i32
    %c0_i32_1 = arith.constant 0 : i32
    return %c0_i32, %c0_i32_0 : i32, i32
  }
  func.func @transform_12(%arg0: i32) -> (i32, i32, i32) {
    %c0_i32 = arith.constant 0 : i32
    %c0_i32_0 = arith.constant 0 : i32
    %c0_i32_1 = arith.constant 0 : i32
    %c0_i32_2 = arith.constant 0 : i32
    return %c0_i32, %c0_i32_0, %c0_i32_1 : i32, i32, i32
  }
  func.func @transform_13(%arg0: i32) -> (i32, i32) {
    %c0_i32 = arith.constant 0 : i32
    %c0_i32_0 = arith.constant 0 : i32
    %c0_i32_1 = arith.constant 0 : i32
    return %c0_i32, %c0_i32_0 : i32, i32
  }
  func.func @transform_14(%arg0: i32) -> (i32, i32, i32) {
    %c0_i32 = arith.constant 0 : i32
    %c0_i32_0 = arith.constant 0 : i32
    %c0_i32_1 = arith.constant 0 : i32
    %c0_i32_2 = arith.constant 0 : i32
    return %c0_i32, %c0_i32_0, %c0_i32_1 : i32, i32, i32
  }
  func.func @transform_15(%arg0: i32) -> (i32, i32) {
    %c0_i32 = arith.constant 0 : i32
    %c0_i32_0 = arith.constant 0 : i32
    %c0_i32_1 = arith.constant 0 : i32
    return %c0_i32, %c0_i32_0 : i32, i32
  }
  func.func @transform_16(%arg0: i32) -> (i32, i32, i32) {
    %c0_i32 = arith.constant 0 : i32
    %c0_i32_0 = arith.constant 0 : i32
    %c0_i32_1 = arith.constant 0 : i32
    %c0_i32_2 = arith.constant 0 : i32
    return %c0_i32, %c0_i32_0, %c0_i32_1 : i32, i32, i32
  }
  func.func @transform_17(%arg0: i32) -> (i32, i32) {
    %c0_i32 = arith.constant 0 : i32
    %c0_i32_0 = arith.constant 0 : i32
    %c0_i32_1 = arith.constant 0 : i32
    return %c0_i32, %c0_i32_0 : i32, i32
  }
  func.func @transform_18(%arg0: i32) -> (i32, i32) {
    %c0_i32 = arith.constant 0 : i32
    %c0_i32_0 = arith.constant 0 : i32
    %c0_i32_1 = arith.constant 0 : i32
    return %c0_i32, %c0_i32_0 : i32, i32
  }
  func.func @transform_19(%arg0: i32) -> (i32, i32) {
    %c0_i32 = arith.constant 0 : i32
    %c0_i32_0 = arith.constant 0 : i32
    %c0_i32_1 = arith.constant 0 : i32
    return %c0_i32, %c0_i32_0 : i32, i32
  }
}

module attributes {stable_mosaic.version = 11 : i64} {
  func.func @_conv_gemm_kernel(%arg0: i32, %arg1: memref<64x288xbf16, #tpu.memory_space<vmem>>, %arg2: memref<288x128xbf16, #tpu.memory_space<vmem>>, %arg3: memref<64x1xf32, #tpu.memory_space<vmem>>, %arg4: memref<64x128xf32, #tpu.memory_space<vmem>>) attributes {dimension_semantics = [#tpu.dimension_semantics<arbitrary>], iteration_bounds = array<i64: 1>, scalar_prefetch = 0 : i64, scratch_operands = 0 : i64, tpu.core_type = #tpu.core_type<tc>, window_params = [{pipeline_mode = #tpu.pipeline_mode<synchronous>, transform_indices = @transform_0, window_bounds = array<i64: 64, 288>}, {transform_indices = @transform_1, window_bounds = array<i64: 288, 128>}, {pipeline_mode = #tpu.pipeline_mode<synchronous>, transform_indices = @transform_2, window_bounds = array<i64: 64, 1>}, {transform_indices = @transform_3, window_bounds = array<i64: 64, 128>}]} {
    %c0 = arith.constant 0 : index
    %c0_0 = arith.constant 0 : index
    %0 = vector.load %arg1[%c0, %c0_0] : memref<64x288xbf16, #tpu.memory_space<vmem>>, vector<64x288xbf16>
    %c0_1 = arith.constant 0 : index
    %c0_2 = arith.constant 0 : index
    %1 = vector.load %arg2[%c0_1, %c0_2] : memref<288x128xbf16, #tpu.memory_space<vmem>>, vector<288x128xbf16>
    %cst = arith.constant dense<0.000000e+00> : vector<64x128xf32>
    %2 = tpu.matmul %0, %1, %cst {dimension_numbers = #tpu.dot_dimension_numbers<[1], [0], [0], [1], [0, 0, 1, 1], [], []>} : vector<64x288xbf16>, vector<288x128xbf16>, vector<64x128xf32> -> vector<64x128xf32>
    %c0_3 = arith.constant 0 : index
    %c0_4 = arith.constant 0 : index
    %3 = vector.load %arg3[%c0_3, %c0_4] : memref<64x1xf32, #tpu.memory_space<vmem>>, vector<64x1xf32>
    %4 = vector.broadcast %3 : vector<64x1xf32> to vector<64x128xf32>
    %5 = arith.addf %2, %4 : vector<64x128xf32>
    %cst_5 = arith.constant 0.000000e+00 : f32
    %6 = vector.broadcast %cst_5 : f32 to vector<64x128xf32>
    %7 = arith.maximumf %5, %6 : vector<64x128xf32>
    %c0_6 = arith.constant 0 : index
    %c0_7 = arith.constant 0 : index
    %8 = vector.load %arg4[%c0_6, %c0_7] : memref<64x128xf32, #tpu.memory_space<vmem>>, vector<64x128xf32>
    tpu.vector_store %arg4[%c0_6, %c0_7], %7 {strides = array<i32>} : memref<64x128xf32, #tpu.memory_space<vmem>>, vector<64x128xf32>,
    return
  }
  func.func @transform_0(%arg0: i32) -> (i32, i32) {
    %c0_i32 = arith.constant 0 : i32
    %c0_i32_0 = arith.constant 0 : i32
    %c0_i32_1 = arith.constant 0 : i32
    return %c0_i32, %c0_i32_0 : i32, i32
  }
  func.func @transform_1(%arg0: i32) -> (i32, i32) {
    %c0_i32 = arith.constant 0 : i32
    %c0_i32_0 = arith.constant 0 : i32
    return %c0_i32, %arg0 : i32, i32
  }
  func.func @transform_2(%arg0: i32) -> (i32, i32) {
    %c0_i32 = arith.constant 0 : i32
    %c0_i32_0 = arith.constant 0 : i32
    %c0_i32_1 = arith.constant 0 : i32
    return %c0_i32, %c0_i32_0 : i32, i32
  }
  func.func @transform_3(%arg0: i32) -> (i32, i32) {
    %c0_i32 = arith.constant 0 : i32
    %c0_i32_0 = arith.constant 0 : i32
    return %c0_i32, %arg0 : i32, i32
  }
}

module attributes {stable_mosaic.version = 11 : i64} {
  func.func @_conv_gemm_kernel(%arg0: i32, %arg1: memref<12x144xbf16, #tpu.memory_space<vmem>>, %arg2: memref<144x512xbf16, #tpu.memory_space<vmem>>, %arg3: memref<12x1xf32, #tpu.memory_space<vmem>>, %arg4: memref<12x512xf32, #tpu.memory_space<vmem>>) attributes {dimension_semantics = [#tpu.dimension_semantics<arbitrary>], iteration_bounds = array<i64: 1>, scalar_prefetch = 0 : i64, scratch_operands = 0 : i64, tpu.core_type = #tpu.core_type<tc>, window_params = [{pipeline_mode = #tpu.pipeline_mode<synchronous>, transform_indices = @transform_0, window_bounds = array<i64: 12, 144>}, {transform_indices = @transform_1, window_bounds = array<i64: 144, 512>}, {pipeline_mode = #tpu.pipeline_mode<synchronous>, transform_indices = @transform_2, window_bounds = array<i64: 12, 1>}, {transform_indices = @transform_3, window_bounds = array<i64: 12, 512>}]} {
    %c0 = arith.constant 0 : index
    %c0_0 = arith.constant 0 : index
    %0 = vector.load %arg1[%c0, %c0_0] : memref<12x144xbf16, #tpu.memory_space<vmem>>, vector<12x144xbf16>
    %c0_1 = arith.constant 0 : index
    %c0_2 = arith.constant 0 : index
    %1 = vector.load %arg2[%c0_1, %c0_2] : memref<144x512xbf16, #tpu.memory_space<vmem>>, vector<144x512xbf16>
    %cst = arith.constant dense<0.000000e+00> : vector<12x512xf32>
    %2 = tpu.matmul %0, %1, %cst {dimension_numbers = #tpu.dot_dimension_numbers<[1], [0], [0], [1], [0, 0, 1, 1], [], []>} : vector<12x144xbf16>, vector<144x512xbf16>, vector<12x512xf32> -> vector<12x512xf32>
    %c0_3 = arith.constant 0 : index
    %c0_4 = arith.constant 0 : index
    %3 = vector.load %arg3[%c0_3, %c0_4] : memref<12x1xf32, #tpu.memory_space<vmem>>, vector<12x1xf32>
    %4 = vector.broadcast %3 : vector<12x1xf32> to vector<12x512xf32>
    %5 = arith.addf %2, %4 : vector<12x512xf32>
    %c0_5 = arith.constant 0 : index
    %c0_6 = arith.constant 0 : index
    %6 = vector.load %arg4[%c0_5, %c0_6] : memref<12x512xf32, #tpu.memory_space<vmem>>, vector<12x512xf32>
    tpu.vector_store %arg4[%c0_5, %c0_6], %5 {strides = array<i32>} : memref<12x512xf32, #tpu.memory_space<vmem>>, vector<12x512xf32>,
    return
  }
  func.func @transform_0(%arg0: i32) -> (i32, i32) {
    %c0_i32 = arith.constant 0 : i32
    %c0_i32_0 = arith.constant 0 : i32
    %c0_i32_1 = arith.constant 0 : i32
    return %c0_i32, %c0_i32_0 : i32, i32
  }
  func.func @transform_1(%arg0: i32) -> (i32, i32) {
    %c0_i32 = arith.constant 0 : i32
    %c0_i32_0 = arith.constant 0 : i32
    return %c0_i32, %arg0 : i32, i32
  }
  func.func @transform_2(%arg0: i32) -> (i32, i32) {
    %c0_i32 = arith.constant 0 : i32
    %c0_i32_0 = arith.constant 0 : i32
    %c0_i32_1 = arith.constant 0 : i32
    return %c0_i32, %c0_i32_0 : i32, i32
  }
  func.func @transform_3(%arg0: i32) -> (i32, i32) {
    %c0_i32 = arith.constant 0 : i32
    %c0_i32_0 = arith.constant 0 : i32
    return %c0_i32, %arg0 : i32, i32
  }
}

</mosaic_0001>

<bundles_post_ra>
// kernel: model_forward.5
= control target key start
LH: loop header
LB: loop body
LE: loop exit
PB: predicated region body
PF: predicated region fallthrough
CT: control target
= control target key end

     0   :  { %v252_v1 = vmov 0   ;;  %vm106_vm0 = vcmask 392192   ;;  %s342_s1 = inlined_call_operand.vmem [shape: bf16[48,512], index: 1, kind: input, shape index: {}]   ;;  %s343_s2 = inlined_call_operand.vmem [shape: f32[16,1], index: 2, kind: input, shape index: {}]   ;;  %s344_s0 = inlined_call_operand.vmem [shape: bf16[16,48], index: 0, kind: input, shape index: {}]   ;;  %s345_s3 = inlined_call_operand.vmem [shape: f32[16,512], index: 3, kind: output, shape index: {}]  }
   0x1   :  { %v233_v0 = vld [vmem:[%s342_s1 + $0x4] ss:$16 sps:$4 sm:$0xff]   ;;  %142 = vmatprep.mubr.bf16.mxu0 %v252_v1  ;;  %185 = vmatprep.mubr.bf16.mxu1 %v252_v1  ;;  %v235_v2 = vld [vmem:[%s342_s1 + $0xc] ss:$16 sps:$4 sm:$0xff]   ;;  %v237_v3 = vld [vmem:[%s342_s1] ss:$16 sps:$4 sm:$0xff]  }
   0x2   :  { %232 = vset.pattern.permute.xlu0 %v252_v1  ;;  %110 = vmatprep.subr.bf16.mxu0 %v233_v0  ;;  %v238_v4 = vld [vmem:[%s342_s1 + $0x8] ss:$16 sps:$4 sm:$0xff]   ;;  %v239_v5 = vld [vmem:[%s342_s1 + $0x24] ss:$16 sps:$4 sm:$0xff]   ;;  %v241_v6 = vld [vmem:[%s342_s1 + $0x2c] ss:$16 sps:$4 sm:$0xff]  }
   0x3   :  { %153 = vmatprep.subr.bf16.mxu1 %v235_v2  ;;  %111 = vmatpush1.bf16.msra.mxu0 %v237_v3  ;;  %v243_v7 = vld [vmem:[%s342_s1 + $0x20] ss:$16 sps:$4 sm:$0xff]   ;;  %v244_v8 = vld [vmem:[%s342_s1 + $0x28] ss:$16 sps:$4 sm:$0xff]   ;;  %v245_v9 = vld [vmem:[%s342_s1 + $0x44] ss:$16 sps:$4 sm:$0xff]  }
   0x4   :  { %154 = vmatpush1.bf16.msra.mxu1 %v238_v4  ;;  %112 = vmatprep.subr.bf16.mxu0 %v239_v5  ;;  %v247_v10 = vld [vmem:[%s342_s1 + $0x4c] ss:$16 sps:$4 sm:$0xff]   ;;  %v249_v11 = vld [vmem:[%s342_s1 + $0x40] ss:$16 sps:$4 sm:$0xff]   ;;  %v250_v12 = vld [vmem:[%s342_s1 + $0x48] ss:$16 sps:$4 sm:$0xff]  }
   0x5   :  { %155 = vmatprep.subr.bf16.mxu1 %v241_v6  ;;  %v29_v13 = vld [vmem:[%s343_s2] sm:$0xff]  ;;  %v30_v15 = vld [vmem:[%s343_s2 + $0x8] sm:$0xff] }
   0x6   :  { %33 = vperm.xlu0 %232, %v29_v13   ;;  %v251_v14 = vld [vmem:[%s344_s0] sm:$0xff]  }
   0x7   :  { %113 = vmatpush1.bf16.msra.mxu0 %v243_v7 }
   0x8   :  { %156 = vmatpush1.bf16.msra.mxu1 %v244_v8  ;;  %114 = vmatprep.subr.bf16.mxu0 %v245_v9 }
   0x9   :  { %157 = vmatprep.subr.bf16.mxu1 %v247_v10 }
   0xa   :  { %38 = vperm.xlu0 %232, %v30_v15  }
   0xb   :  { %115 = vmatpush1.bf16.msra.mxu0 %v249_v11 }
   0xc   :  { %158 = vmatpush1.bf16.msra.mxu1 %v250_v12 }
   0xe   :  { %229 = vmatmul.mubr.msk.bf16.vlgmr.msra.gmra.mrb[0].mxu0 %vm106_vm0, %v251_v14 }
   0xf   :  { %230 = vmatmul.mubr.msk.bf16.vlgmr.msra.gmra.mrb[0].mxu1 %vm106_vm0, %v251_v14 }
  0x85   :  { %v34_v16 = vpop.permute.xlu0 %33 }
  0x89   :  { %v39_v17 = vpop.permute.xlu0 %38 }
  0xe1   :  { %v144_v18 = vpop.f32.mrb[0].mxu0 }
  0xe2   :  { %v187_v19 = vpop.f32.mrb[0].mxu1  ;;  %v145_v20 = vadd.f32 %v144_v18, %v34_v16  ;;  %v146_v22 = vpop.f32.mrb[1].mxu0 }
  0xe3   :  { %v188_v21 = vadd.f32 %v187_v19, %v34_v16  ;;  %v189_v23 = vpop.f32.mrb[1].mxu1  ;;  %v147_v24 = vadd.f32 %v146_v22, %v34_v16  ;;  %v148_v26 = vpop.f32.mrb[2].mxu0 }
  0xe4   :  { %v190_v25 = vadd.f32 %v189_v23, %v34_v16  ;;  %v191_v27 = vpop.f32.mrb[2].mxu1  ;;  %v196_v28 = vmax.f32 %v145_v20, 0.0  ;;  %v149_v30 = vadd.f32 %v148_v26, %v39_v17  ;;  %v150_v32 = vpop.f32.mrb[3].mxu0 }
  0xe5   :  { %v198_v29 = vmax.f32 %v188_v21, 0.0  ;;  %v192_v31 = vadd.f32 %v191_v27, %v39_v17  ;;  %v193_v33 = vpop.f32.mrb[3].mxu1  ;;  %v197_v34 = vmax.f32 %v147_v24, 0.0  ;;  %v151_v36 = vadd.f32 %v150_v32, %v39_v17 }
  0xe6   :  { %v199_v35 = vmax.f32 %v190_v25, 0.0  ;;  %v194_v37 = vadd.f32 %v193_v33, %v39_v17  ;;  %204 = vst [vmem:[%s345_s3] sm:$0xff] %v196_v28  ;;  %v200_v38 = vmax.f32 %v149_v30, 0.0 }
  0xe7   :  { %206 = vst [vmem:[%s345_s3 + $0x10] sm:$0xff] %v198_v29  ;;  %v202_v39 = vmax.f32 %v192_v31, 0.0  ;;  %205 = vst [vmem:[%s345_s3 + $0x8] sm:$0xff] %v197_v34  ;;  %v201_v40 = vmax.f32 %v151_v36, 0.0 }
  0xe8   :  { %207 = vst [vmem:[%s345_s3 + $0x18] sm:$0xff] %v199_v35  ;;  %v203_v41 = vmax.f32 %v194_v37, 0.0  ;;  %208 = vst [vmem:[%s345_s3 + $0x20] sm:$0xff] %v200_v38 }
  0xe9   :  { %210 = vst [vmem:[%s345_s3 + $0x30] sm:$0xff] %v202_v39  ;;  %209 = vst [vmem:[%s345_s3 + $0x28] sm:$0xff] %v201_v40 }
  0xea   :  { %211 = vst [vmem:[%s345_s3 + $0x38] sm:$0xff] %v203_v41 }

// kernel: model_forward.6
= control target key start
LH: loop header
LB: loop body
LE: loop exit
PB: predicated region body
PF: predicated region fallthrough
CT: control target
= control target key end

     0   :  { %v341_v1 = vmov 0   ;;  %s446_s1 = inlined_call_operand.vmem [shape: bf16[256,128], index: 1, kind: input, shape index: {}]   ;;  %s447_s0 = inlined_call_operand.vmem [shape: bf16[32,256], index: 0, kind: input, shape index: {}]   ;;  %s448_s2 = inlined_call_operand.vmem [shape: f32[32,1], index: 2, kind: input, shape index: {}]   ;;  %s449_s3 = inlined_call_operand.vmem [shape: f32[32,128], index: 3, kind: output, shape index: {}]  }
   0x1   :  { %v319_v0 = vld [vmem:[%s446_s1 + $0x40] sm:$0xff]   ;;  %318 = vset.pattern.permute.xlu1 %v341_v1  ;;  %317 = vset.pattern.permute.xlu0 %v341_v1  ;;  %v321_v3 = vld [vmem:[%s446_s1 + $0x48] sm:$0xff]   ;;  %v323_v5 = vld [vmem:[%s446_s1 + $0x50] sm:$0xff]  }
   0x2   :  { %v320_v2 = vld [vmem:[%s446_s1] sm:$0xff]   ;;  %272 = vmatprep.subr.bf16.mxu0 %v319_v0  ;;  %300 = vmatprep.subr.bf16.mxu1 %v319_v0  ;;  %v322_v4 = vld [vmem:[%s446_s1 + $0x8] sm:$0xff]   ;;  %v324_v6 = vld [vmem:[%s446_s1 + $0x10] sm:$0xff]  }
   0x3   :  { %273 = vmatpush3.bf16.msra.mxu0 %v320_v2  ;;  %308 = vmatpush3.bf16.msra.mxu1 %v320_v2  ;;  %v325_v7 = vld [vmem:[%s446_s1 + $0x58] sm:$0xff]   ;;  %v327_v9 = vld [vmem:[%s446_s1 + $0x60] sm:$0xff]   ;;  %v329_v11 = vld [vmem:[%s446_s1 + $0x68] sm:$0xff]  }
   0x4   :  { %274 = vmatprep.subr.bf16.mxu0 %v321_v3  ;;  %301 = vmatprep.subr.bf16.mxu1 %v321_v3  ;;  %v326_v8 = vld [vmem:[%s446_s1 + $0x18] sm:$0xff]   ;;  %v328_v10 = vld [vmem:[%s446_s1 + $0x20] sm:$0xff]   ;;  %v330_v14 = vld [vmem:[%s446_s1 + $0x28] sm:$0xff]  }
   0x5   :  { %v337_v12 = vld [vmem:[%s447_s0 + $0x4] ss:$8 sps:$4 sm:$0xff]   ;;  %v340_v13 = vld [vmem:[%s447_s0 + $0x14] ss:$8 sps:$4 sm:$0xff]   ;;  %v335_v23 = vld [vmem:[%s447_s0] ss:$8 sps:$4 sm:$0xff]  }
   0x6   :  { %v53_v15 = vld [vmem:[%s448_s2 + $0x10] sm:$0xff]  ;;  %v51_v16 = vld [vmem:[%s448_s2] sm:$0xff]  ;;  %223 = vmatprep.mubr.bf16.mxu0 %v337_v12  ;;  %231 = vmatprep.mubr.bf16.mxu1 %v340_v13  ;;  %v54_v19 = vld [vmem:[%s448_s2 + $0x18] sm:$0xff] }
   0x7   :  { %275 = vmatpush3.bf16.msra.mxu0 %v322_v4  ;;  %309 = vmatpush3.bf16.msra.mxu1 %v322_v4  ;;  %v331_v17 = vld [vmem:[%s446_s1 + $0x70] sm:$0xff]   ;;  %v52_v20 = vld [vmem:[%s448_s2 + $0x8] sm:$0xff]  ;;  %v333_v21 = vld [vmem:[%s446_s1 + $0x78] sm:$0xff]  }
   0x8   :  { %276 = vmatprep.subr.bf16.mxu0 %v323_v5  ;;  %302 = vmatprep.subr.bf16.mxu1 %v323_v5  ;;  %v332_v18 = vld [vmem:[%s446_s1 + $0x30] sm:$0xff]   ;;  %v334_v22 = vld [vmem:[%s446_s1 + $0x38] sm:$0xff]  }
   0x9   :  { %67 = vperm.xlu1 %318, %v53_v15   ;;  %57 = vperm.xlu0 %317, %v51_v16   ;;  %v338_v24 = vld [vmem:[%s447_s0 + $0x10] ss:$8 sps:$4 sm:$0xff]  }
   0xb   :  { %277 = vmatpush3.bf16.msra.mxu0 %v324_v6  ;;  %310 = vmatpush3.bf16.msra.mxu1 %v324_v6 }
   0xc   :  { %278 = vmatprep.subr.bf16.mxu0 %v325_v7  ;;  %303 = vmatprep.subr.bf16.mxu1 %v325_v7 }
   0xd   :  { %72 = vperm.xlu1 %318, %v54_v19   ;;  %62 = vperm.xlu0 %317, %v52_v20  }
   0xf   :  { %279 = vmatpush3.bf16.msra.mxu0 %v326_v8  ;;  %311 = vmatpush3.bf16.msra.mxu1 %v326_v8 }
  0x10   :  { %280 = vmatprep.subr.bf16.mxu0 %v327_v9  ;;  %304 = vmatprep.subr.bf16.mxu1 %v327_v9 }
  0x13   :  { %281 = vmatpush3.bf16.msra.mxu0 %v328_v10  ;;  %312 = vmatpush3.bf16.msra.mxu1 %v328_v10 }
  0x14   :  { %282 = vmatprep.subr.bf16.mxu0 %v329_v11  ;;  %305 = vmatprep.subr.bf16.mxu1 %v329_v11 }
  0x17   :  { %283 = vmatpush3.bf16.msra.mxu0 %v330_v14  ;;  %313 = vmatpush3.bf16.msra.mxu1 %v330_v14 }
  0x18   :  { %284 = vmatprep.subr.bf16.mxu0 %v331_v17  ;;  %306 = vmatprep.subr.bf16.mxu1 %v331_v17 }
  0x1b   :  { %285 = vmatpush3.bf16.msra.mxu0 %v332_v18  ;;  %314 = vmatpush3.bf16.msra.mxu1 %v332_v18 }
  0x1c   :  { %286 = vmatprep.subr.bf16.mxu0 %v333_v21  ;;  %307 = vmatprep.subr.bf16.mxu1 %v333_v21 }
  0x1f   :  { %287 = vmatpush3.bf16.msra.mxu0 %v334_v22  ;;  %315 = vmatpush3.bf16.msra.mxu1 %v334_v22 }
  0x22   :  { %224 = vmatmul.mubr.bf16.vlgmr.msra.gmra.mrb[0].mxu0 %v335_v23  ;;  %232 = vmatmul.mubr.bf16.vlgmr.msra.gmra.mrb[0].mxu1 %v338_v24 }
  0x88   :  { %v68_v25 = vpop.permute.xlu1 %67  ;;  %v58_v26 = vpop.permute.xlu0 %57 }
  0x8c   :  { %v73_v41 = vpop.permute.xlu1 %72  ;;  %v63_v42 = vpop.permute.xlu0 %62 }
  0xf5   :  { %v288_v27 = vpop.f32.mrb[0].mxu0  ;;  %v294_v28 = vpop.f32.mrb[0].mxu1 }
  0xf6   :  { %v289_v29 = vpop.f32.mrb[1].mxu0  ;;  %v295_v30 = vpop.f32.mrb[1].mxu1 }
  0xf7   :  { %v290_v31 = vadd.f32 %v289_v29, %v288_v27  ;;  %v296_v32 = vadd.f32 %v295_v30, %v294_v28  ;;  %v291_v33 = vpop.f32.mrb[2].mxu0  ;;  %v297_v34 = vpop.f32.mrb[2].mxu1 }
  0xf8   :  { %v292_v35 = vpop.f32.mrb[3].mxu0  ;;  %v298_v36 = vpop.f32.mrb[3].mxu1 }
  0xf9   :  { %v226_v37 = vadd.f32 %v290_v31, %v58_v26  ;;  %v234_v38 = vadd.f32 %v296_v32, %v68_v25  ;;  %v293_v39 = vadd.f32 %v292_v35, %v291_v33  ;;  %v299_v40 = vadd.f32 %v298_v36, %v297_v34 }
  0xfb   :  { %v240_v43 = vmax.f32 %v226_v37, 0.0  ;;  %v242_v44 = vmax.f32 %v234_v38, 0.0  ;;  %v229_v45 = vadd.f32 %v293_v39, %v63_v42  ;;  %v237_v46 = vadd.f32 %v299_v40, %v73_v41 }
  0xfd   :  { %244 = vst [vmem:[%s449_s3] sm:$0xff] %v240_v43  ;;  %246 = vst [vmem:[%s449_s3 + $0x10] sm:$0xff] %v242_v44  ;;  %v241_v47 = vmax.f32 %v229_v45, 0.0  ;;  %v243_v48 = vmax.f32 %v237_v46, 0.0 }
  0xff   :  { %245 = vst [vmem:[%s449_s3 + $0x8] sm:$0xff] %v241_v47  ;;  %247 = vst [vmem:[%s449_s3 + $0x18] sm:$0xff] %v243_v48 }

// kernel: model_forward.7
= control target key start
LH: loop header
LB: loop body
LE: loop exit
PB: predicated region body
PF: predicated region fallthrough
CT: control target
= control target key end

     0   :  { %vm281_vm0 = vcmask 261120   ;;  %vm3500_vm1 = vcmask 130048   ;;  %s22341_s1 = inlined_call_operand.vmem [shape: f32[9,128,128], index: 1, kind: input, shape index: {}]   ;;  %s22342_s0 = inlined_call_operand.vmem [shape: f32[32,128], index: 0, kind: input, shape index: {}]   ;;  %s22343_s2 = inlined_call_operand.vmem [shape: f32[9,32,32], index: 2, kind: input, shape index: {}]   ;;  %s22344_s3 = inlined_call_operand.vmem [shape: f32[32,1], index: 3, kind: input, shape index: {}]   ;;  %s22345_s9 = inlined_call_operand.vmem [shape: f32[32,1], index: 9, kind: input, shape index: {}]   ;;  %s22346_s10 = inlined_call_operand.vmem [shape: f32[128,32], index: 10, kind: input, shape index: {}]   ;;  %s22347_s13 = inlined_call_operand.vmem [shape: f32[32,1], index: 13, kind: input, shape index: {}]   ;;  %s22348_s4 = inlined_call_operand.vmem [shape: f32[9,16,32], index: 4, kind: input, shape index: {}]   ;;  %s22349_s5 = inlined_call_operand.vmem [shape: f32[32,16], index: 5, kind: input, shape index: {}]   ;;  %s22350_s6 = inlined_call_operand.vmem [shape: f32[9,16,32], index: 6, kind: input, shape index: {}]   ;;  %s22351_s7 = inlined_call_operand.vmem [shape: f32[32,16], index: 7, kind: input, shape index: {}]   ;;  %s22352_s8 = inlined_call_operand.vmem [shape: f32[32,32], index: 8, kind: input, shape index: {}]   ;;  %s22353_s11 = inlined_call_operand.vmem [shape: f32[32,128], index: 11, kind: input, shape index: {}]   ;;  %s22354_s12 = inlined_call_operand.vmem [shape: f32[9,32,32], index: 12, kind: input, shape index: {}]   ;;  %s22355_s19 = inlined_call_operand.vmem [shape: f32[1,128], index: 19, kind: output, shape index: {1}]   ;;  %s22356_s14 = inlined_call_operand.vmem [shape: f32[9,16,32], index: 14, kind: input, shape index: {}]   ;;  %s22357_s15 = inlined_call_operand.vmem [shape: f32[32,16], index: 15, kind: input, shape index: {}]   ;;  %s22358_s16 = inlined_call_operand.vmem [shape: f32[9,16,32], index: 16, kind: input, shape index: {}]   ;;  %s22359_s17 = inlined_call_operand.vmem [shape: f32[32,16], index: 17, kind: input, shape index: {}]   ;;  %s22360_s18 = inlined_call_operand.vmem [shape: f32[32,128], index: 18, kind: output, shape index: {0}]  }
   0x1   :  { %22531 = sst [smem:[#allocation43_spill]] %s22341_s1 }
   0x2   :  { %22532 = sst [smem:[#allocation44_spill]] %s22342_s0  ;;  %s22535_s20 = sld [smem:[#allocation43_spill]] }
   0x3   :  { %22533 = sst [smem:[#allocation45_spill]] %s22343_s2  ;;  %s22536_s21 = sld [smem:[#allocation44_spill]] }
   0x4   :  { %22534 = sst [smem:[#allocation46_spill]] %s22344_s3  ;;  %s22543_s1 = sld [smem:[#allocation45_spill]] }
   0x5   :  { %s22568_s25 = sld [smem:[#allocation46_spill]] }
   0x8   :  { %v11288_v0 = vld [vmem:[%s22535_s20 + $0x80] sm:$0xff]  ;;  %v11289_v1 = vld [vmem:[%s22535_s20 + $0x88] sm:$0xff]  ;;  %v11290_v2 = vld [vmem:[%s22535_s20 + $0x90] sm:$0xff] }
   0x9   :  { %v18740_v3 = vpack.c.bf16 %v11289_v1, %v11288_v0  ;;  %v11291_v4 = vld [vmem:[%s22535_s20 + $0x98] sm:$0xff]  ;;  %v11292_v6 = vld [vmem:[%s22535_s20 + $0xa0] sm:$0xff]  ;;  %v11293_v7 = vld [vmem:[%s22535_s20 + $0xa8] sm:$0xff] }
   0xa   :  { %v18745_v5 = vpack.c.bf16 %v11291_v4, %v11290_v2  ;;  %v69_v8 = vld [vmem:[%s22535_s20] sm:$0xff]  ;;  %v70_v9 = vld [vmem:[%s22535_s20 + $0x8] sm:$0xff]  ;;  %v18762_v10 = vpack.c.bf16 %v11293_v7, %v11292_v6  ;;  %v71_v12 = vld [vmem:[%s22535_s20 + $0x10] sm:$0xff] }
   0xb   :  { %16253 = vmatprep.subr.bf16.mxu1 %v18740_v3  ;;  %v18764_v11 = vpack.c.bf16 %v70_v9, %v69_v8  ;;  %v72_v13 = vld [vmem:[%s22535_s20 + $0x18] sm:$0xff]  ;;  %v11294_v14 = vld [vmem:[%s22535_s20 + $0xb0] sm:$0xff]  ;;  %v73_v17 = vld [vmem:[%s22535_s20 + $0x20] sm:$0xff] }
   0xc   :  { %16255 = vmatpush3.bf16.msra.mxu1 %v18740_v3  ;;  %v11295_v15 = vld [vmem:[%s22535_s20 + $0xb8] sm:$0xff]  ;;  %v18778_v16 = vpack.c.bf16 %v72_v13, %v71_v12  ;;  %v74_v18 = vld [vmem:[%s22535_s20 + $0x28] sm:$0xff]  ;;  %v18790_v19 = vld [vmem:[%s22536_s21] sm:$0xff] }
   0xd   :  { %16257 = vmatprep.subr.bf16.mxu1 %v18745_v5  ;;  %16221 = vmatprep.subr.bf16.mxu0 %v18764_v11  ;;  %v18795_v20 = vpack.c.bf16 %v11295_v15, %v11294_v14  ;;  %v11296_v21 = vld [vmem:[%s22535_s20 + $0xc0] sm:$0xff]  ;;  %v18801_v22 = vpack.c.bf16 %v74_v18, %v73_v17  ;;  %v11297_v23 = vld [vmem:[%s22535_s20 + $0xc8] sm:$0xff]  ;;  %v75_v24 = vld [vmem:[%s22535_s20 + $0x30] sm:$0xff] }
   0xe   :  { %16223 = vmatpush3.bf16.msra.mxu0 %v18764_v11  ;;  %13466 = vmatprep.mubr.f32.mxu1 %v18790_v19  ;;  %v76_v25 = vld [vmem:[%s22535_s20 + $0x38] sm:$0xff]  ;;  %v18817_v26 = vpack.c.bf16 %v11297_v23, %v11296_v21  ;;  %v11298_v27 = vld [vmem:[%s22535_s20 + $0xd0] sm:$0xff]  ;;  %v77_v30 = vld [vmem:[%s22535_s20 + $0x40] sm:$0xff] }
   0xf   :  { %16225 = vmatprep.subr.bf16.mxu0 %v18778_v16  ;;  %13428 = vmatprep.mubr.f32.mxu0 %v18790_v19  ;;  %v18823_v28 = vpack.c.bf16 %v76_v25, %v75_v24  ;;  %v11299_v29 = vld [vmem:[%s22535_s20 + $0xd8] sm:$0xff]  ;;  %v78_v31 = vld [vmem:[%s22535_s20 + $0x48] sm:$0xff]  ;;  %v11300_v33 = vld [vmem:[%s22535_s20 + $0xe0] sm:$0xff] }
  0x10   :  { %16259 = vmatpush3.bf16.msra.mxu1 %v18745_v5  ;;  %v18837_v32 = vpack.c.bf16 %v11299_v29, %v11298_v27  ;;  %v18843_v34 = vpack.c.bf16 %v78_v31, %v77_v30  ;;  %v11301_v35 = vld [vmem:[%s22535_s20 + $0xe8] sm:$0xff]  ;;  %v79_v36 = vld [vmem:[%s22535_s20 + $0x50] sm:$0xff]  ;;  %v80_v37 = vld [vmem:[%s22535_s20 + $0x58] sm:$0xff] }
  0x11   :  { %16261 = vmatprep.subr.bf16.mxu1 %v18762_v10  ;;  %v18857_v38 = vpack.c.bf16 %v11301_v35, %v11300_v33  ;;  %v11302_v39 = vld [vmem:[%s22535_s20 + $0xf0] sm:$0xff]  ;;  %v18863_v40 = vpack.c.bf16 %v80_v37, %v79_v36  ;;  %v11303_v41 = vld [vmem:[%s22535_s20 + $0xf8] sm:$0xff]  ;;  %v81_v42 = vld [vmem:[%s22535_s20 + $0x60] sm:$0xff] }
  0x12   :  { %16227 = vmatpush3.bf16.msra.mxu0 %v18778_v16  ;;  %v82_v43 = vld [vmem:[%s22535_s20 + $0x68] sm:$0xff]  ;;  %v18877_v44 = vpack.c.bf16 %v11303_v41, %v11302_v39  ;;  %v11316_v45 = vld [vmem:[%s22535_s20 + $0x100] sm:$0xff]  ;;  %v83_v48 = vld [vmem:[%s22535_s20 + $0x70] sm:$0xff] }
  0x13   :  { %16229 = vmatprep.subr.bf16.mxu0 %v18801_v22  ;;  %v18883_v46 = vpack.c.bf16 %v82_v43, %v81_v42  ;;  %v11317_v47 = vld [vmem:[%s22535_s20 + $0x108] sm:$0xff]  ;;  %v84_v49 = vld [vmem:[%s22535_s20 + $0x78] sm:$0xff]  ;;  %v11318_v52 = vld [vmem:[%s22535_s20 + $0x110] sm:$0xff] }
  0x14   :  { %16263 = vmatpush3.bf16.msra.mxu1 %v18762_v10  ;;  %v18897_v50 = vpack.c.bf16 %v11317_v47, %v11316_v45  ;;  %v18900_v51 = vpack.c.bf16 %v84_v49, %v83_v48  ;;  %v11319_v53 = vld [vmem:[%s22535_s20 + $0x118] sm:$0xff]  ;;  %v18912_v54 = vld [vmem:[%s22536_s21 + $0x8] sm:$0xff]  ;;  %v18921_v56 = vld [vmem:[%s22536_s21 + $0x10] sm:$0xff] }
  0x15   :  { %16265 = vmatprep.subr.bf16.mxu1 %v18795_v20  ;;  %v18916_v55 = vpack.c.bf16 %v11319_v53, %v11318_v52  ;;  %v11320_v57 = vld [vmem:[%s22535_s20 + $0x120] sm:$0xff]  ;;  %v11321_v58 = vld [vmem:[%s22535_s20 + $0x128] sm:$0xff]  ;;  %v18936_v59 = vld [vmem:[%s22536_s21 + $0x18] sm:$0xff] }
  0x16   :  { %16231 = vmatpush3.bf16.msra.mxu0 %v18801_v22  ;;  %v18939_v60 = vpack.c.bf16 %v11321_v58, %v11320_v57  ;;  %v11322_v61 = vld [vmem:[%s22535_s20 + $0x130] sm:$0xff]  ;;  %v11323_v62 = vld [vmem:[%s22535_s20 + $0x138] sm:$0xff]  ;;  %v11324_v0 = vld [vmem:[%s22535_s20 + $0x140] sm:$0xff] }
  0x17   :  { %16233 = vmatprep.subr.bf16.mxu0 %v18823_v28  ;;  %v18952_v63 = vpack.c.bf16 %v11323_v62, %v11322_v61  ;;  %v11325_v1 = vld [vmem:[%s22535_s20 + $0x148] sm:$0xff]  ;;  %v11326_v4 = vld [vmem:[%s22535_s20 + $0x150] sm:$0xff]  ;;  %v11327_v6 = vld [vmem:[%s22535_s20 + $0x158] sm:$0xff] }
  0x18   :  { %16267 = vmatpush3.bf16.msra.mxu1 %v18795_v20  ;;  %22537 = vst [vmem:[#allocation2_spill] sm:$0xff] %v18939_v60  ;;  %v18965_v2 = vpack.c.bf16 %v11325_v1, %v11324_v0  ;;  %v18975_v7 = vpack.c.bf16 %v11327_v6, %v11326_v4  ;;  %v11328_v8 = vld [vmem:[%s22535_s20 + $0x160] sm:$0xff]  ;;  %v11329_v9 = vld [vmem:[%s22535_s20 + $0x168] sm:$0xff]  ;;  %v11330_v13 = vld [vmem:[%s22535_s20 + $0x170] sm:$0xff] }
  0x19   :  { %16269 = vmatprep.subr.bf16.mxu1 %v18817_v26  ;;  %22538 = vst [vmem:[#allocation3_spill] sm:$0xff] %v18952_v63  ;;  %v18985_v12 = vpack.c.bf16 %v11329_v9, %v11328_v8  ;;  %v11331_v14 = vld [vmem:[%s22535_s20 + $0x178] sm:$0xff]  ;;  %v11304_v17 = vld [vmem:[%s22543_s1 + $0x20] sm:$0xff]  ;;  %v11365_v21 = vld [vmem:[%s22535_s20 + $0x208] sm:$0xff] }
  0x1a   :  { %16235 = vmatpush3.bf16.msra.mxu0 %v18823_v28  ;;  %22539 = vst [vmem:[#allocation4_spill] sm:$0xff] %v18965_v2  ;;  %22540 = vst [vmem:[#allocation5_spill] sm:$0xff] %v18975_v7  ;;  %v18995_v15 = vpack.c.bf16 %v11331_v14, %v11330_v13  ;;  %v11364_v18 = vld [vmem:[%s22535_s20 + $0x200] sm:$0xff]  ;;  %v11366_v24 = vld [vmem:[%s22535_s20 + $0x210] sm:$0xff] }
  0x1b   :  { %16237 = vmatprep.subr.bf16.mxu0 %v18843_v34  ;;  %22541 = vst [vmem:[#allocation6_spill] sm:$0xff] %v18985_v12  ;;  %v19014_v23 = vpack.c.bf16 %v11365_v21, %v11364_v18  ;;  %v11367_v25 = vld [vmem:[%s22535_s20 + $0x218] sm:$0xff]  ;;  %v11368_v29 = vld [vmem:[%s22535_s20 + $0x220] sm:$0xff]  ;;  %v11369_v30 = vld [vmem:[%s22535_s20 + $0x228] sm:$0xff] }
  0x1c   :  { %16271 = vmatpush3.bf16.msra.mxu1 %v18817_v26  ;;  %22542 = vst [vmem:[#allocation7_spill] sm:$0xff] %v18995_v15  ;;  %v19024_v27 = vpack.c.bf16 %v11367_v25, %v11366_v24  ;;  %v19034_v31 = vpack.c.bf16 %v11369_v30, %v11368_v29  ;;  %v11370_v33 = vld [vmem:[%s22535_s20 + $0x230] sm:$0xff]  ;;  %v11371_v35 = vld [vmem:[%s22535_s20 + $0x238] sm:$0xff]  ;;  %v11372_v37 = vld [vmem:[%s22535_s20 + $0x240] sm:$0xff] }
  0x1d   :  { %16273 = vmatprep.subr.bf16.mxu1 %v18837_v32  ;;  %v19044_v36 = vpack.c.bf16 %v11371_v35, %v11370_v33  ;;  %v11373_v39 = vld [vmem:[%s22535_s20 + $0x248] sm:$0xff]  ;;  %v11374_v42 = vld [vmem:[%s22535_s20 + $0x250] sm:$0xff]  ;;  %v11375_v43 = vld [vmem:[%s22535_s20 + $0x258] sm:$0xff] }
  0x1e   :  { %16239 = vmatpush3.bf16.msra.mxu0 %v18843_v34  ;;  %v19054_v41 = vpack.c.bf16 %v11373_v39, %v11372_v37  ;;  %v19064_v45 = vpack.c.bf16 %v11375_v43, %v11374_v42  ;;  %v11376_v47 = vld [vmem:[%s22535_s20 + $0x260] sm:$0xff]  ;;  %v11377_v48 = vld [vmem:[%s22535_s20 + $0x268] sm:$0xff]  ;;  %v11378_v52 = vld [vmem:[%s22535_s20 + $0x270] sm:$0xff] }
  0x1f   :  { %16241 = vmatprep.subr.bf16.mxu0 %v18863_v40  ;;  %v19074_v49 = vpack.c.bf16 %v11377_v48, %v11376_v47  ;;  %v11379_v53 = vld [vmem:[%s22535_s20 + $0x278] sm:$0xff]  ;;  %v11388_v58 = vld [vmem:[%s22535_s20 + $0x280] sm:$0xff]  ;;  %v11389_v61 = vld [vmem:[%s22535_s20 + $0x288] sm:$0xff] }
  0x20   :  { %16275 = vmatpush3.bf16.msra.mxu1 %v18837_v32  ;;  %v19084_v57 = vpack.c.bf16 %v11379_v53, %v11378_v52  ;;  %v19094_v62 = vpack.c.bf16 %v11389_v61, %v11388_v58  ;;  %v11390_v0 = vld [vmem:[%s22535_s20 + $0x290] sm:$0xff]  ;;  %v11391_v1 = vld [vmem:[%s22535_s20 + $0x298] sm:$0xff]  ;;  %v11392_v6 = vld [vmem:[%s22535_s20 + $0x2a0] sm:$0xff] }
  0x21   :  { %16277 = vmatprep.subr.bf16.mxu1 %v18857_v38  ;;  %v19106_v4 = vpack.c.bf16 %v11391_v1, %v11390_v0  ;;  %v11393_v8 = vld [vmem:[%s22535_s20 + $0x2a8] sm:$0xff]  ;;  %v11394_v13 = vld [vmem:[%s22535_s20 + $0x2b0] sm:$0xff]  ;;  %v11395_v14 = vld [vmem:[%s22535_s20 + $0x2b8] sm:$0xff] }
  0x22   :  { %16243 = vmatpush3.bf16.msra.mxu0 %v18863_v40  ;;  %22544 = vst [vmem:[#allocation8_spill] sm:$0xff] %v19094_v62  ;;  %v19118_v9 = vpack.c.bf16 %v11393_v8, %v11392_v6  ;;  %v11396_v18 = vld [vmem:[%s22535_s20 + $0x2c0] sm:$0xff]  ;;  %v11397_v21 = vld [vmem:[%s22535_s20 + $0x2c8] sm:$0xff]  ;;  %v11398_v25 = vld [vmem:[%s22535_s20 + $0x2d0] sm:$0xff] }
  0x23   :  { %16245 = vmatprep.subr.bf16.mxu0 %v18883_v46  ;;  %22545 = vst [vmem:[#allocation9_spill] sm:$0xff] %v19106_v4  ;;  %v19138_v24 = vpack.c.bf16 %v11397_v21, %v11396_v18  ;;  %v11399_v29 = vld [vmem:[%s22535_s20 + $0x2d8] sm:$0xff]  ;;  %v11400_v33 = vld [vmem:[%s22535_s20 + $0x2e0] sm:$0xff]  ;;  %v11401_v35 = vld [vmem:[%s22535_s20 + $0x2e8] sm:$0xff] }
  0x24   :  { %16279 = vmatpush3.bf16.msra.mxu1 %v18857_v38  ;;  %22546 = vst [vmem:[#allocation10_spill] sm:$0xff] %v19118_v9  ;;  %v19148_v30 = vpack.c.bf16 %v11399_v29, %v11398_v25  ;;  %v11402_v37 = vld [vmem:[%s22535_s20 + $0x2f0] sm:$0xff]  ;;  %v19161_v39 = vpack.c.bf16 %v11401_v35, %v11400_v33  ;;  %v11403_v42 = vld [vmem:[%s22535_s20 + $0x2f8] sm:$0xff]  ;;  %v170_v29 = vld [vmem:[%s22543_s1] sm:$0xff] }
  0x25   :  { %16281 = vmatprep.subr.bf16.mxu1 %v18877_v44  ;;  %22548 = vst [vmem:[#allocation12_spill] sm:$0xff] %v19138_v24  ;;  %v19166_v43 = vpack.c.bf16 %v11403_v42, %v11402_v37  ;;  %v11306_v18 = vld [vmem:[%s22543_s1 + $0x30] sm:$0xff]  ;;  %v11307_v25 = vld [vmem:[%s22543_s1 + $0x38] sm:$0xff]  ;;  %v171_v33 = vld [vmem:[%s22543_s1 + $0x8] sm:$0xff] }
  0x26   :  { %16247 = vmatpush3.bf16.msra.mxu0 %v18883_v46  ;;  %22549 = vst [vmem:[#allocation13_spill] sm:$0xff] %v19148_v30  ;;  %22550 = vst [vmem:[#allocation14_spill] sm:$0xff] %v19161_v39  ;;  %v172_v35 = vld [vmem:[%s22543_s1 + $0x10] sm:$0xff]  ;;  %v173_v37 = vld [vmem:[%s22543_s1 + $0x18] sm:$0xff] }
  0x27   :  { %16249 = vmatprep.subr.bf16.mxu0 %v18900_v51  ;;  %22551 = vst [vmem:[#allocation15_spill] sm:$0xff] %v19166_v43  ;;  %v11332_v42 = vld [vmem:[%s22543_s1 + $0x40] sm:$0xff] }
  0x28   :  { %16283 = vmatpush3.bf16.msra.mxu1 %v18877_v44 }
  0x29   :  { %16301 = vmatprep.subr.bf16.mxu1 %v18897_v50 }
  0x2a   :  { %16251 = vmatpush3.bf16.msra.mxu0 %v18900_v51 }
  0x2b   :  { %13467 = vmatmul.mubr.f32.vlgmr.msra.gmra.mrb[0].mxu1 %v18912_v54 }
  0x2c   :  { %16303 = vmatpush3.bf16.msra.mxu1 %v18897_v50  ;;  %13469 = vmatprep.mubr.f32.mxu1 %v18921_v56 }
  0x2d   :  { %16305 = vmatprep.subr.bf16.mxu1 %v18916_v55  ;;  %13429 = vmatmul.mubr.f32.vlgmr.msra.gmra.mrb[0].mxu0 %v18912_v54 }
  0x2e   :  { %13431 = vmatprep.mubr.f32.mxu0 %v18921_v56 }
  0x2f   :  { %13470 = vmatmul.mubr.f32.gmra.mrb[2].mxu1 %v18936_v59 }
  0x30   :  { %16307 = vmatpush3.bf16.msra.mxu1 %v18916_v55  ;;  %13532 = vmatprep.mubr.f32.mxu1 %v18790_v19 }
  0x31   :  { %16309 = vmatprep.subr.bf16.mxu1 %v18939_v60  ;;  %13432 = vmatmul.mubr.f32.gmra.mrb[2].mxu0 %v18936_v59 }
  0x32   :  { %13480 = vmatprep.mubr.msk.f32.mxu0 %vm281_vm0, %v11304_v17  ;;  %v19128_v17 = vpack.c.bf16 %v11395_v14, %v11394_v13  ;;  %v11305_v13 = vld [vmem:[%s22543_s1 + $0x28] sm:$0xff] }
  0x34   :  { %16311 = vmatpush3.bf16.msra.mxu1 %v18939_v60  ;;  %22547 = vst [vmem:[#allocation11_spill] sm:$0xff] %v19128_v17 }
  0x35   :  { %16313 = vmatprep.subr.bf16.mxu1 %v18952_v63 }
  0x38   :  { %16315 = vmatpush3.bf16.msra.mxu1 %v18952_v63 }
  0x39   :  { %16317 = vmatprep.subr.bf16.mxu1 %v18965_v2 }
  0x3c   :  { %16319 = vmatpush3.bf16.msra.mxu1 %v18965_v2 }
  0x3d   :  { %16321 = vmatprep.subr.bf16.mxu1 %v18975_v7 }
  0x40   :  { %16323 = vmatpush3.bf16.msra.mxu1 %v18975_v7 }
  0x41   :  { %16325 = vmatprep.subr.bf16.mxu1 %v18985_v12 }
  0x44   :  { %16327 = vmatpush3.bf16.msra.mxu1 %v18985_v12 }
  0x45   :  { %16329 = vmatprep.subr.bf16.mxu1 %v18995_v15 }
  0x48   :  { %16331 = vmatpush3.bf16.msra.mxu1 %v18995_v15  ;;  %v5381_v15 = vld [vmem:[%s22346_s10 + $0x28] sm:$0xff] }
  0x49   :  { %16381 = vmatprep.subr.bf16.mxu1 %v19014_v23  ;;  %v5401_v12 = vmul.f32 %v5381_v15, %v5381_v15  ;;  %v5387_v15 = vld [vmem:[%s22346_s10 + $0x58] sm:$0xff] }
  0x4b   :  { %13533 = vmatmul.mubr.f32.vlgmr.msra.gmra.mrb[4].mxu1 %v18912_v54 }
  0x4c   :  { %13535 = vmatprep.mubr.f32.mxu1 %v18921_v56  ;;  %16383 = vmatpush3.bf16.msra.mxu1 %v19014_v23 }
  0x4d   :  { %16385 = vmatprep.subr.bf16.mxu1 %v19024_v27 }
  0x4f   :  { %13536 = vmatmul.mubr.f32.gmra.mrb[6].mxu1 %v18936_v59 }
  0x50   :  { %13636 = vmatprep.mubr.f32.mxu1 %v18790_v19  ;;  %16387 = vmatpush3.bf16.msra.mxu1 %v19024_v27 }
  0x51   :  { %16389 = vmatprep.subr.bf16.mxu1 %v19034_v31 }
  0x54   :  { %16391 = vmatpush3.bf16.msra.mxu1 %v19034_v31 }
  0x55   :  { %16393 = vmatprep.subr.bf16.mxu1 %v19044_v36 }
  0x58   :  { %16395 = vmatpush3.bf16.msra.mxu1 %v19044_v36 }
  0x59   :  { %16397 = vmatprep.subr.bf16.mxu1 %v19054_v41 }
  0x5c   :  { %16399 = vmatpush3.bf16.msra.mxu1 %v19054_v41 }
  0x5d   :  { %16401 = vmatprep.subr.bf16.mxu1 %v19064_v45 }
  0x60   :  { %16403 = vmatpush3.bf16.msra.mxu1 %v19064_v45 }
  0x61   :  { %16405 = vmatprep.subr.bf16.mxu1 %v19074_v49 }
  0x64   :  { %16407 = vmatpush3.bf16.msra.mxu1 %v19074_v49 }
  0x65   :  { %16409 = vmatprep.subr.bf16.mxu1 %v19084_v57 }
  0x68   :  { %16411 = vmatpush3.bf16.msra.mxu1 %v19084_v57 }
  0x69   :  { %16421 = vmatprep.subr.bf16.mxu1 %v19094_v62 }
  0x6b   :  { %13637 = vmatmul.mubr.f32.vlgmr.msra.gmra.mrb[8].mxu1 %v18912_v54 }
  0x6c   :  { %16423 = vmatpush3.bf16.msra.mxu1 %v19094_v62  ;;  %13639 = vmatprep.mubr.f32.mxu1 %v18921_v56 }
  0x6d   :  { %16425 = vmatprep.subr.bf16.mxu1 %v19106_v4 }
  0x6f   :  { %13640 = vmatmul.mubr.f32.gmra.mrb[10].mxu1 %v18936_v59 }
  0x70   :  { %16427 = vmatpush3.bf16.msra.mxu1 %v19106_v4  ;;  %13688 = vmatprep.mubr.f32.mxu1 %v18790_v19 }
  0x71   :  { %16429 = vmatprep.subr.bf16.mxu1 %v19118_v9 }
  0x74   :  { %16431 = vmatpush3.bf16.msra.mxu1 %v19118_v9 }
  0x75   :  { %16433 = vmatprep.subr.bf16.mxu1 %v19128_v17 }
  0x78   :  { %16435 = vmatpush3.bf16.msra.mxu1 %v19128_v17 }
  0x79   :  { %16437 = vmatprep.subr.bf16.mxu1 %v19138_v24 }
  0x7c   :  { %16439 = vmatpush3.bf16.msra.mxu1 %v19138_v24  ;;  %v65_v24 = vld [vmem:[%s22568_s25] sm:$0xff] }
  0x7d   :  { %16441 = vmatprep.subr.bf16.mxu1 %v19148_v30 }
  0x80   :  { %16443 = vmatpush3.bf16.msra.mxu1 %v19148_v30  ;;  %v18628_v30 = vmov 0  }
  0x81   :  { %16445 = vmatprep.subr.bf16.mxu1 %v19161_v39  ;;  %18575 = vset.pattern.permute.xlu0 %v18628_v30 }
  0x82   :  { %18576 = vset.pattern.permute.xlu1 %v18628_v30  ;;  %1934 = vperm.xlu0 %18575, %v65_v24   ;;  %v11430_v30 = vld [vmem:[%s22543_s1 + $0xd0] sm:$0xff] }
  0x84   :  { %16447 = vmatpush3.bf16.msra.mxu1 %v19161_v39 }
  0x85   :  { %16449 = vmatprep.subr.bf16.mxu1 %v19166_v43 }
  0x88   :  { %16451 = vmatpush3.bf16.msra.mxu1 %v19166_v43 }
  0x8b   :  { %13689 = vmatmul.mubr.f32.vlgmr.msra.gmra.mrb[12].mxu1 %v18912_v54 }
  0x8c   :  { %13691 = vmatprep.mubr.f32.mxu1 %v18921_v56 }
  0x8f   :  { %13692 = vmatmul.mubr.f32.gmra.mrb[14].mxu1 %v18936_v59 }
  0x90   :  { %13792 = vmatprep.mubr.f32.mxu1 %v18790_v19 }
  0xfe   :  { %v13468_v47 = vpop.f32.mrb[0].mxu1 }
  0xff   :  { %v257_v48 = vpop.f32.mrb[1].mxu1 }
 0x100   :  { %v16284_v52 = vpack.c.bf16 %v13468_v47, %v257_v48  ;;  %v13430_v61 = vpop.f32.mrb[0].mxu0 }
 0x101   :  { %v151_v1 = vpop.f32.mrb[1].mxu0 }
 0x102   :  { %16285 = vmatprep.subr.bf16.mxu0 %v16284_v52  ;;  %v13471_v53 = vpop.f32.mrb[2].mxu1  ;;  %v16292_v6 = vpack.c.bf16 %v13430_v61, %v151_v1 }
 0x103   :  { %16287 = vmatpush3.bf16.msra.mxu0 %v16284_v52  ;;  %v267_v58 = vpop.f32.mrb[3].mxu1 }
 0x104   :  { %v16288_v0 = vpack.c.bf16 %v13471_v53, %v267_v58  ;;  %v13433_v8 = vpop.f32.mrb[2].mxu0  ;;  %v11340_v53 = vld [vmem:[%s22535_s20 + $0x180] sm:$0xff]  ;;  %v11341_v58 = vld [vmem:[%s22535_s20 + $0x188] sm:$0xff] }
 0x105   :  { %v161_v14 = vpop.f32.mrb[3].mxu0 }
 0x106   :  { %16289 = vmatprep.subr.bf16.mxu0 %v16288_v0  ;;  %v16296_v21 = vpack.c.bf16 %v13433_v8, %v161_v14  ;;  %v11342_v8 = vld [vmem:[%s22535_s20 + $0x190] sm:$0xff]  ;;  %v11333_v14 = vld [vmem:[%s22543_s1 + $0x48] sm:$0xff] }
 0x107   :  { %16291 = vmatpush3.bf16.msra.mxu0 %v16288_v0 }
 0x108   :  { %16293 = vmatprep.subr.bf16.mxu0 %v16292_v6 }
 0x10a   :  { %13481 = vmatmul.mubr.msk.f32.vlgmr.msra.gmra.mrb[4].mxu0 %vm281_vm0, %v11305_v13  ;;  %v11343_v13 = vld [vmem:[%s22535_s20 + $0x198] sm:$0xff] }
 0x10b   :  { %16295 = vmatpush3.bf16.msra.mxu0 %v16292_v6  ;;  %13483 = vmatprep.mubr.msk.f32.mxu0 %vm281_vm0, %v11306_v18  ;;  %v19214_v6 = vpack.c.bf16 %v11341_v58, %v11340_v53  ;;  %v19226_v18 = vpack.c.bf16 %v11343_v13, %v11342_v8  ;;  %v11350_v58 = vld [vmem:[%s22535_s20 + $0x1d0] sm:$0xff]  ;;  %v11353_v8 = vld [vmem:[%s22535_s20 + $0x1e8] sm:$0xff] }
 0x10c   :  { %16297 = vmatprep.subr.bf16.mxu0 %v16296_v21 }
 0x10e   :  { %13484 = vmatmul.mubr.msk.f32.gmra.mrb[6].mxu0 %vm281_vm0, %v11307_v25  ;;  %v11344_v25 = vld [vmem:[%s22535_s20 + $0x1a0] sm:$0xff] }
 0x10f   :  { %16299 = vmatpush3.bf16.msra.mxu0 %v16296_v21  ;;  %13494 = vmatprep.mubr.msk.f32.mxu0 %vm281_vm0, %v170_v29  ;;  %v11334_v21 = vld [vmem:[%s22543_s1 + $0x50] sm:$0xff]  ;;  %v11345_v29 = vld [vmem:[%s22535_s20 + $0x1a8] sm:$0xff] }
 0x112   :  { %13495 = vmatmul.mubr.msk.f32.vlgmr.msra.gmra.mrb[4].mxu0 %vm281_vm0, %v171_v33  ;;  %v11335_v33 = vld [vmem:[%s22543_s1 + $0x58] sm:$0xff] }
 0x113   :  { %13497 = vmatprep.mubr.msk.f32.mxu0 %vm281_vm0, %v172_v35  ;;  %v19244_v35 = vpack.c.bf16 %v11345_v29, %v11344_v25 }
 0x116   :  { %13498 = vmatmul.mubr.msk.f32.gmra.mrb[6].mxu0 %vm281_vm0, %v173_v37  ;;  %v11346_v37 = vld [vmem:[%s22535_s20 + $0x1b0] sm:$0xff] }
 0x117   :  { %13546 = vmatprep.mubr.msk.f32.mxu0 %vm281_vm0, %v11332_v42  ;;  %v11347_v42 = vld [vmem:[%s22535_s20 + $0x1b8] sm:$0xff] }
 0x11e   :  { %v13534_v47 = vpop.f32.mrb[4].mxu1 }
 0x11f   :  { %v559_v48 = vpop.f32.mrb[5].mxu1 }
 0x120   :  { %v16332_v52 = vpack.c.bf16 %v13534_v47, %v559_v48  ;;  %v19256_v47 = vpack.c.bf16 %v11347_v42, %v11346_v37  ;;  %v11348_v48 = vld [vmem:[%s22535_s20 + $0x1c0] sm:$0xff] }
 0x122   :  { %v13537_v61 = vpop.f32.mrb[6].mxu1  ;;  %16333 = vmatprep.subr.bf16.mxu0 %v16332_v52 }
 0x123   :  { %v569_v0 = vpop.f32.mrb[7].mxu1  ;;  %16335 = vmatpush3.bf16.msra.mxu0 %v16332_v52  ;;  %v11349_v52 = vld [vmem:[%s22535_s20 + $0x1c8] sm:$0xff] }
 0x124   :  { %v16336_v1 = vpack.c.bf16 %v13537_v61, %v569_v0  ;;  %v19266_v53 = vpack.c.bf16 %v11349_v52, %v11348_v48  ;;  %v11351_v61 = vld [vmem:[%s22535_s20 + $0x1d8] sm:$0xff]  ;;  %v11356_v48 = vld [vmem:[%s22543_s1 + $0x60] sm:$0xff] }
 0x125   :  { %v19276_v0 = vpack.c.bf16 %v11351_v61, %v11350_v58 }
 0x126   :  { %16337 = vmatprep.subr.bf16.mxu0 %v16336_v1 }
 0x127   :  { %16339 = vmatpush3.bf16.msra.mxu0 %v16336_v1  ;;  %v11352_v1 = vld [vmem:[%s22535_s20 + $0x1e0] sm:$0xff] }
 0x128   :  { %16341 = vmatprep.subr.bf16.mxu0 %v19214_v6  ;;  %v19286_v13 = vpack.c.bf16 %v11353_v8, %v11352_v1 }
 0x12a   :  { %13547 = vmatmul.mubr.msk.f32.vlgmr.msra.gmra.mrb[4].mxu0 %vm281_vm0, %v11333_v14  ;;  %v11354_v14 = vld [vmem:[%s22535_s20 + $0x1f0] sm:$0xff] }
 0x12b   :  { %16343 = vmatpush3.bf16.msra.mxu0 %v19214_v6  ;;  %13549 = vmatprep.mubr.msk.f32.mxu0 %vm281_vm0, %v11334_v21  ;;  %v11355_v21 = vld [vmem:[%s22535_s20 + $0x1f8] sm:$0xff] }
 0x12c   :  { %16345 = vmatprep.subr.bf16.mxu0 %v19226_v18  ;;  %v19296_v25 = vpack.c.bf16 %v11355_v21, %v11354_v14 }
 0x12e   :  { %13550 = vmatmul.mubr.msk.f32.gmra.mrb[6].mxu0 %vm281_vm0, %v11335_v33 }
 0x12f   :  { %16347 = vmatpush3.bf16.msra.mxu0 %v19226_v18  ;;  %13584 = vmatprep.mubr.f32.mxu0 %v18790_v19 }
 0x130   :  { %16349 = vmatprep.subr.bf16.mxu0 %v19244_v35 }
 0x133   :  { %16351 = vmatpush3.bf16.msra.mxu0 %v19244_v35 }
 0x134   :  { %16353 = vmatprep.subr.bf16.mxu0 %v19256_v47 }
 0x137   :  { %16355 = vmatpush3.bf16.msra.mxu0 %v19256_v47 }
 0x138   :  { %16357 = vmatprep.subr.bf16.mxu0 %v19266_v53 }
 0x13b   :  { %16359 = vmatpush3.bf16.msra.mxu0 %v19266_v53 }
 0x13c   :  { %16361 = vmatprep.subr.bf16.mxu0 %v19276_v0 }
 0x13e   :  { %v13638_v29 = vpop.f32.mrb[8].mxu1 }
 0x13f   :  { %16363 = vmatpush3.bf16.msra.mxu0 %v19276_v0  ;;  %v975_v33 = vpop.f32.mrb[9].mxu1 }
 0x140   :  { %16365 = vmatprep.subr.bf16.mxu0 %v19286_v13  ;;  %v19304_v37 = vpack.c.bf16 %v13638_v29, %v975_v33  ;;  %v11436_v29 = vld [vmem:[%s22535_s20 + $0x380] sm:$0xff]  ;;  %v11437_v33 = vld [vmem:[%s22535_s20 + $0x388] sm:$0xff] }
 0x142   :  { %v13641_v42 = vpop.f32.mrb[10].mxu1 }
 0x143   :  { %16367 = vmatpush3.bf16.msra.mxu0 %v19286_v13  ;;  %v985_v52 = vpop.f32.mrb[11].mxu1 }
 0x144   :  { %16369 = vmatprep.subr.bf16.mxu0 %v19296_v25  ;;  %v19310_v58 = vpack.c.bf16 %v13641_v42, %v985_v52  ;;  %v11438_v42 = vld [vmem:[%s22535_s20 + $0x390] sm:$0xff]  ;;  %v11439_v52 = vld [vmem:[%s22535_s20 + $0x398] sm:$0xff] }
 0x147   :  { %16371 = vmatpush3.bf16.msra.mxu0 %v19296_v25 }
 0x14a   :  { %13585 = vmatmul.mubr.f32.vlgmr.msra.gmra.mrb[8].mxu0 %v18912_v54 }
 0x14b   :  { %13587 = vmatprep.mubr.f32.mxu0 %v18921_v56 }
 0x14e   :  { %13588 = vmatmul.mubr.f32.gmra.mrb[10].mxu0 %v18936_v59 }
 0x14f   :  { %13598 = vmatprep.mubr.msk.f32.mxu0 %vm281_vm0, %v11356_v48  ;;  %v19322_v48 = vpack.c.bf16 %v11437_v33, %v11436_v29  ;;  %v11442_v29 = vld [vmem:[%s22535_s20 + $0x3b0] sm:$0xff]  ;;  %v11443_v33 = vld [vmem:[%s22535_s20 + $0x3b8] sm:$0xff] }
 0x151   :  { %22552 = vst [vmem:[#allocation16_spill] sm:$0xff] %v19322_v48  ;;  %16501 = vmatprep.subr.bf16.mxu1 %v19322_v48 }
 0x152   :  { %16503 = vmatpush3.bf16.msra.mxu1 %v19322_v48 }
 0x15e   :  { %v13690_v61 = vpop.f32.mrb[12].mxu1 }
 0x15f   :  { %v1183_v1 = vpop.f32.mrb[13].mxu1 }
 0x160   :  { %v19312_v8 = vpack.c.bf16 %v13690_v61, %v1183_v1  ;;  %v19332_v61 = vpack.c.bf16 %v11439_v52, %v11438_v42  ;;  %v11440_v1 = vld [vmem:[%s22535_s20 + $0x3a0] sm:$0xff]  ;;  %v19352_v42 = vpack.c.bf16 %v11443_v33, %v11442_v29  ;;  %v11446_v29 = vld [vmem:[%s22535_s20 + $0x3d0] sm:$0xff]  ;;  %v11447_v33 = vld [vmem:[%s22535_s20 + $0x3d8] sm:$0xff] }
 0x161   :  { %v11444_v52 = vld [vmem:[%s22535_s20 + $0x3c0] sm:$0xff] }
 0x162   :  { %v13693_v14 = vpop.f32.mrb[14].mxu1  ;;  %22553 = vst [vmem:[#allocation17_spill] sm:$0xff] %v19332_v61  ;;  %16505 = vmatprep.subr.bf16.mxu1 %v19332_v61  ;;  %22555 = vst [vmem:[#allocation19_spill] sm:$0xff] %v19352_v42 }
 0x163   :  { %v1193_v21 = vpop.f32.mrb[15].mxu1  ;;  %16507 = vmatpush3.bf16.msra.mxu1 %v19332_v61  ;;  %v11358_v61 = vld [vmem:[%s22543_s1 + $0x70] sm:$0xff] }
 0x164   :  { %v19314_v43 = vpack.c.bf16 %v13693_v14, %v1193_v21  ;;  %v11441_v14 = vld [vmem:[%s22535_s20 + $0x3a8] sm:$0xff] }
 0x165   :  { %v19342_v21 = vpack.c.bf16 %v11441_v14, %v11440_v1  ;;  %v11445_v1 = vld [vmem:[%s22535_s20 + $0x3c8] sm:$0xff] }
 0x166   :  { %v19362_v14 = vpack.c.bf16 %v11445_v1, %v11444_v52  ;;  %v11448_v52 = vld [vmem:[%s22535_s20 + $0x3e0] sm:$0xff]  ;;  %v11449_v1 = vld [vmem:[%s22535_s20 + $0x3e8] sm:$0xff] }
 0x167   :  { %22554 = vst [vmem:[#allocation18_spill] sm:$0xff] %v19342_v21  ;;  %16509 = vmatprep.subr.bf16.mxu1 %v19342_v21 }
 0x168   :  { %16511 = vmatpush3.bf16.msra.mxu1 %v19342_v21  ;;  %22556 = vst [vmem:[#allocation20_spill] sm:$0xff] %v19362_v14  ;;  %v11357_v21 = vld [vmem:[%s22543_s1 + $0x68] sm:$0xff] }
 0x169   :  { %16513 = vmatprep.subr.bf16.mxu1 %v19352_v42 }
 0x16c   :  { %16515 = vmatpush3.bf16.msra.mxu1 %v19352_v42  ;;  %v19372_v42 = vpack.c.bf16 %v11447_v33, %v11446_v29  ;;  %v11450_v29 = vld [vmem:[%s22535_s20 + $0x3f0] sm:$0xff]  ;;  %v11451_v33 = vld [vmem:[%s22535_s20 + $0x3f8] sm:$0xff] }
 0x16d   :  { %16517 = vmatprep.subr.bf16.mxu1 %v19362_v14 }
 0x16e   :  { %22557 = vst [vmem:[#allocation21_spill] sm:$0xff] %v19372_v42 }
 0x170   :  { %16519 = vmatpush3.bf16.msra.mxu1 %v19362_v14  ;;  %v19382_v14 = vpack.c.bf16 %v11449_v1, %v11448_v52 }
 0x171   :  { %16521 = vmatprep.subr.bf16.mxu1 %v19372_v42 }
 0x172   :  { %22558 = vst [vmem:[#allocation22_spill] sm:$0xff] %v19382_v14 }
 0x174   :  { %16523 = vmatpush3.bf16.msra.mxu1 %v19372_v42  ;;  %v19392_v42 = vpack.c.bf16 %v11451_v33, %v11450_v29 }
 0x175   :  { %16525 = vmatprep.subr.bf16.mxu1 %v19382_v14 }
 0x176   :  { %22559 = vst [vmem:[#allocation23_spill] sm:$0xff] %v19392_v42 }
 0x178   :  { %16527 = vmatpush3.bf16.msra.mxu1 %v19382_v14 }
 0x179   :  { %16529 = vmatprep.subr.bf16.mxu1 %v19392_v42 }
 0x17c   :  { %16531 = vmatpush3.bf16.msra.mxu1 %v19392_v42 }
 0x17d   :  { %16581 = vmatprep.subr.bf16.mxu1 %v18764_v11 }
 0x17f   :  { %13793 = vmatmul.mubr.f32.vlgmr.msra.gmra.mrb[16].mxu1 %v18912_v54 }
 0x180   :  { %13795 = vmatprep.mubr.f32.mxu1 %v18921_v56  ;;  %16583 = vmatpush3.bf16.msra.mxu1 %v18764_v11 }
 0x181   :  { %16585 = vmatprep.subr.bf16.mxu1 %v18778_v16 }
 0x183   :  { %13796 = vmatmul.mubr.f32.gmra.mrb[18].mxu1 %v18936_v59 }
 0x184   :  { %16587 = vmatpush3.bf16.msra.mxu1 %v18778_v16 }
 0x185   :  { %16589 = vmatprep.subr.bf16.mxu1 %v18801_v22 }
 0x188   :  { %16591 = vmatpush3.bf16.msra.mxu1 %v18801_v22 }
 0x189   :  { %16593 = vmatprep.subr.bf16.mxu1 %v18823_v28 }
 0x18c   :  { %16595 = vmatpush3.bf16.msra.mxu1 %v18823_v28 }
 0x18d   :  { %16597 = vmatprep.subr.bf16.mxu1 %v18843_v34 }
 0x190   :  { %16599 = vmatpush3.bf16.msra.mxu1 %v18843_v34 }
 0x191   :  { %16601 = vmatprep.subr.bf16.mxu1 %v18863_v40 }
 0x194   :  { %16603 = vmatpush3.bf16.msra.mxu1 %v18863_v40 }
 0x195   :  { %16605 = vmatprep.subr.bf16.mxu1 %v18883_v46 }
 0x198   :  { %16607 = vmatpush3.bf16.msra.mxu1 %v18883_v46 }
 0x199   :  { %16609 = vmatprep.subr.bf16.mxu1 %v18900_v51 }
 0x19c   :  { %16611 = vmatpush3.bf16.msra.mxu1 %v18900_v51 }
 0x19d   :  { %16613 = vmatprep.subr.bf16.mxu1 %v18740_v3 }
 0x21d   :  { %v13586_v52 = vpop.f32.mrb[8].mxu0 }
 0x21e   :  { %v767_v1 = vpop.f32.mrb[9].mxu0 }
 0x21f   :  { %v16372_v29 = vpack.c.bf16 %v13586_v52, %v767_v1  ;;  %v11383_v52 = vld [vmem:[%s22543_s1 + $0x98] sm:$0xff]  ;;  %v11404_v1 = vld [vmem:[%s22543_s1 + $0xa0] sm:$0xff] }
 0x221   :  { %v13589_v33 = vpop.f32.mrb[10].mxu0  ;;  %16373 = vmatprep.subr.bf16.mxu0 %v16372_v29 }
 0x222   :  { %v777_v42 = vpop.f32.mrb[11].mxu0  ;;  %16375 = vmatpush3.bf16.msra.mxu0 %v16372_v29 }
 0x223   :  { %v16376_v14 = vpack.c.bf16 %v13589_v33, %v777_v42  ;;  %v11359_v42 = vld [vmem:[%s22543_s1 + $0x78] sm:$0xff]  ;;  %v11414_v33 = vld [vmem:[%s22535_s20 + $0x310] sm:$0xff] }
 0x225   :  { %16377 = vmatprep.subr.bf16.mxu0 %v16376_v14 }
 0x226   :  { %16379 = vmatpush3.bf16.msra.mxu0 %v16376_v14  ;;  %v11380_v14 = vld [vmem:[%s22543_s1 + $0x80] sm:$0xff] }
 0x227   :  { %16413 = vmatprep.subr.bf16.mxu0 %v19304_v37 }
 0x229   :  { %13599 = vmatmul.mubr.msk.f32.vlgmr.msra.gmra.mrb[4].mxu0 %vm281_vm0, %v11357_v21  ;;  %v11412_v21 = vld [vmem:[%s22535_s20 + $0x300] sm:$0xff] }
 0x22a   :  { %16415 = vmatpush3.bf16.msra.mxu0 %v19304_v37  ;;  %13601 = vmatprep.mubr.msk.f32.mxu0 %vm281_vm0, %v11358_v61  ;;  %v11381_v37 = vld [vmem:[%s22543_s1 + $0x88] sm:$0xff]  ;;  %v11382_v61 = vld [vmem:[%s22543_s1 + $0x90] sm:$0xff] }
 0x22b   :  { %16417 = vmatprep.subr.bf16.mxu0 %v19310_v58 }
 0x22d   :  { %13602 = vmatmul.mubr.msk.f32.gmra.mrb[6].mxu0 %vm281_vm0, %v11359_v42  ;;  %v11405_v42 = vld [vmem:[%s22543_s1 + $0xa8] sm:$0xff] }
 0x22e   :  { %16419 = vmatpush3.bf16.msra.mxu0 %v19310_v58  ;;  %13650 = vmatprep.mubr.msk.f32.mxu0 %vm281_vm0, %v11380_v14  ;;  %v11413_v58 = vld [vmem:[%s22535_s20 + $0x308] sm:$0xff] }
 0x22f   :  { %16453 = vmatprep.subr.bf16.mxu0 %v19312_v8  ;;  %v19459_v29 = vpack.c.bf16 %v11413_v58, %v11412_v21  ;;  %v11407_v21 = vld [vmem:[%s22543_s1 + $0xb8] sm:$0xff] }
 0x231   :  { %13651 = vmatmul.mubr.msk.f32.vlgmr.msra.gmra.mrb[4].mxu0 %vm281_vm0, %v11381_v37  ;;  %22560 = vst [vmem:[#allocation24_spill] sm:$0xff] %v19459_v29  ;;  %v11406_v37 = vld [vmem:[%s22543_s1 + $0xb0] sm:$0xff] }
 0x232   :  { %16455 = vmatpush3.bf16.msra.mxu0 %v19312_v8  ;;  %13653 = vmatprep.mubr.msk.f32.mxu0 %vm281_vm0, %v11382_v61  ;;  %v11415_v8 = vld [vmem:[%s22535_s20 + $0x318] sm:$0xff]  ;;  %v11416_v61 = vld [vmem:[%s22535_s20 + $0x320] sm:$0xff] }
 0x233   :  { %16457 = vmatprep.subr.bf16.mxu0 %v19314_v43  ;;  %v19474_v14 = vpack.c.bf16 %v11415_v8, %v11414_v33  ;;  %v11420_v8 = vld [vmem:[%s22535_s20 + $0x340] sm:$0xff] }
 0x235   :  { %13654 = vmatmul.mubr.msk.f32.gmra.mrb[6].mxu0 %vm281_vm0, %v11383_v52  ;;  %22561 = vst [vmem:[#allocation25_spill] sm:$0xff] %v19474_v14  ;;  %v11418_v52 = vld [vmem:[%s22535_s20 + $0x330] sm:$0xff] }
 0x236   :  { %16459 = vmatpush3.bf16.msra.mxu0 %v19314_v43  ;;  %13702 = vmatprep.mubr.msk.f32.mxu0 %vm281_vm0, %v11404_v1  ;;  %v11417_v43 = vld [vmem:[%s22535_s20 + $0x328] sm:$0xff]  ;;  %v11419_v1 = vld [vmem:[%s22535_s20 + $0x338] sm:$0xff] }
 0x237   :  { %16461 = vmatprep.subr.bf16.mxu0 %v19459_v29  ;;  %v19492_v58 = vpack.c.bf16 %v11417_v43, %v11416_v61  ;;  %v19504_v33 = vpack.c.bf16 %v11419_v1, %v11418_v52  ;;  %v11423_v61 = vld [vmem:[%s22535_s20 + $0x358] sm:$0xff]  ;;  %v11425_v52 = vld [vmem:[%s22535_s20 + $0x368] sm:$0xff] }
 0x239   :  { %13703 = vmatmul.mubr.msk.f32.vlgmr.msra.gmra.mrb[4].mxu0 %vm281_vm0, %v11405_v42  ;;  %22562 = vst [vmem:[#allocation26_spill] sm:$0xff] %v19492_v58  ;;  %22563 = vst [vmem:[#allocation27_spill] sm:$0xff] %v19504_v33  ;;  %v11421_v42 = vld [vmem:[%s22535_s20 + $0x348] sm:$0xff] }
 0x23a   :  { %16463 = vmatpush3.bf16.msra.mxu0 %v19459_v29  ;;  %13705 = vmatprep.mubr.msk.f32.mxu0 %vm281_vm0, %v11406_v37  ;;  %v19514_v37 = vpack.c.bf16 %v11421_v42, %v11420_v8  ;;  %v11426_v8 = vld [vmem:[%s22535_s20 + $0x370] sm:$0xff]  ;;  %v11427_v42 = vld [vmem:[%s22535_s20 + $0x378] sm:$0xff] }
 0x23b   :  { %16465 = vmatprep.subr.bf16.mxu0 %v19474_v14 }
 0x23c   :  { %22564 = vst [vmem:[#allocation28_spill] sm:$0xff] %v19514_v37 }
 0x23d   :  { %13706 = vmatmul.mubr.msk.f32.gmra.mrb[6].mxu0 %vm281_vm0, %v11407_v21  ;;  %v11424_v21 = vld [vmem:[%s22535_s20 + $0x360] sm:$0xff] }
 0x23e   :  { %16467 = vmatpush3.bf16.msra.mxu0 %v19474_v14  ;;  %13740 = vmatprep.mubr.f32.mxu0 %v18790_v19  ;;  %v11422_v19 = vld [vmem:[%s22535_s20 + $0x350] sm:$0xff]  ;;  %v19534_v1 = vpack.c.bf16 %v11425_v52, %v11424_v21 }
 0x23f   :  { %16469 = vmatprep.subr.bf16.mxu0 %v19492_v58  ;;  %v19524_v43 = vpack.c.bf16 %v11423_v61, %v11422_v19  ;;  %v19544_v19 = vpack.c.bf16 %v11427_v42, %v11426_v8  ;;  %v11428_v8 = vld [vmem:[%s22543_s1 + $0xc0] sm:$0xff] }
 0x240   :  { %22566 = vst [vmem:[#allocation30_spill] sm:$0xff] %v19534_v1 }
 0x241   :  { %22565 = vst [vmem:[#allocation29_spill] sm:$0xff] %v19524_v43  ;;  %22567 = vst [vmem:[#allocation31_spill] sm:$0xff] %v19544_v19 }
 0x242   :  { %16471 = vmatpush3.bf16.msra.mxu0 %v19492_v58 }
 0x243   :  { %16473 = vmatprep.subr.bf16.mxu0 %v19504_v33 }
 0x246   :  { %16475 = vmatpush3.bf16.msra.mxu0 %v19504_v33 }
 0x247   :  { %16477 = vmatprep.subr.bf16.mxu0 %v19514_v37 }
 0x24a   :  { %16479 = vmatpush3.bf16.msra.mxu0 %v19514_v37 }
 0x24b   :  { %16481 = vmatprep.subr.bf16.mxu0 %v19524_v43 }
 0x24e   :  { %16483 = vmatpush3.bf16.msra.mxu0 %v19524_v43 }
 0x24f   :  { %16485 = vmatprep.subr.bf16.mxu0 %v19534_v1 }
 0x252   :  { %16487 = vmatpush3.bf16.msra.mxu0 %v19534_v1  ;;  %v13794_v61 = vpop.f32.mrb[16].mxu1 }
 0x253   :  { %16489 = vmatprep.subr.bf16.mxu0 %v19544_v19  ;;  %v1599_v21 = vpop.f32.mrb[17].mxu1 }
 0x254   :  { %v16532_v52 = vpack.c.bf16 %v13794_v61, %v1599_v21 }
 0x256   :  { %16491 = vmatpush3.bf16.msra.mxu0 %v19544_v19  ;;  %v13797_v42 = vpop.f32.mrb[18].mxu1 }
 0x257   :  { %v1609_v48 = vpop.f32.mrb[19].mxu1 }
 0x258   :  { %v16536_v39 = vpack.c.bf16 %v13797_v42, %v1609_v48  ;;  %v11429_v48 = vld [vmem:[%s22543_s1 + $0xc8] sm:$0xff] }
 0x259   :  { %13741 = vmatmul.mubr.f32.vlgmr.msra.gmra.mrb[12].mxu0 %v18912_v54  ;;  %v11453_v42 = vld [vmem:[%s22543_s1 + $0xe8] sm:$0xff] }
 0x25a   :  { %13743 = vmatprep.mubr.f32.mxu0 %v18921_v56 }
 0x25d   :  { %13744 = vmatmul.mubr.f32.gmra.mrb[14].mxu0 %v18936_v59 }
 0x25e   :  { %13754 = vmatprep.mubr.msk.f32.mxu0 %vm281_vm0, %v11428_v8  ;;  %v11462_v8 = vld [vmem:[%s22535_s20 + $0x410] sm:$0xff] }
 0x32c   :  { %v13742_v17 = vpop.f32.mrb[12].mxu0 }
 0x32d   :  { %v1391_v9 = vpop.f32.mrb[13].mxu0 }
 0x32e   :  { %v16492_v61 = vpack.c.bf16 %v13742_v17, %v1391_v9  ;;  %v11460_v9 = vld [vmem:[%s22535_s20 + $0x400] sm:$0xff]  ;;  %v11461_v17 = vld [vmem:[%s22535_s20 + $0x408] sm:$0xff] }
 0x32f   :  { %v19579_v24 = vpack.c.bf16 %v11461_v17, %v11460_v9  ;;  %v11466_v17 = vld [vmem:[%s22535_s20 + $0x430] sm:$0xff] }
 0x330   :  { %v13745_v21 = vpop.f32.mrb[14].mxu0  ;;  %16493 = vmatprep.subr.bf16.mxu0 %v16492_v61 }
 0x331   :  { %v1401_v4 = vpop.f32.mrb[15].mxu0  ;;  %16495 = vmatpush3.bf16.msra.mxu0 %v16492_v61  ;;  %22569 = vst [vmem:[#allocation32_spill] sm:$0xff] %v19579_v24 }
 0x332   :  { %v16496_v62 = vpack.c.bf16 %v13745_v21, %v1401_v4  ;;  %v11452_v4 = vld [vmem:[%s22543_s1 + $0xe0] sm:$0xff]  ;;  %v11454_v21 = vld [vmem:[%s22543_s1 + $0xf0] sm:$0xff] }
 0x334   :  { %16497 = vmatprep.subr.bf16.mxu0 %v16496_v62 }
 0x335   :  { %16499 = vmatpush3.bf16.msra.mxu0 %v16496_v62  ;;  %v11431_v62 = vld [vmem:[%s22543_s1 + $0xd8] sm:$0xff] }
 0x336   :  { %16533 = vmatprep.subr.bf16.mxu0 %v16532_v52 }
 0x338   :  { %13755 = vmatmul.mubr.msk.f32.vlgmr.msra.gmra.mrb[4].mxu0 %vm281_vm0, %v11429_v48  ;;  %v11464_v48 = vld [vmem:[%s22535_s20 + $0x420] sm:$0xff] }
 0x339   :  { %16535 = vmatpush3.bf16.msra.mxu0 %v16532_v52  ;;  %13757 = vmatprep.mubr.msk.f32.mxu0 %vm281_vm0, %v11430_v30  ;;  %v11463_v52 = vld [vmem:[%s22535_s20 + $0x418] sm:$0xff] }
 0x33a   :  { %16537 = vmatprep.subr.bf16.mxu0 %v16536_v39  ;;  %v19593_v61 = vpack.c.bf16 %v11463_v52, %v11462_v8  ;;  %v11455_v30 = vld [vmem:[%s22543_s1 + $0xf8] sm:$0xff]  ;;  %v11468_v52 = vld [vmem:[%s22535_s20 + $0x440] sm:$0xff] }
 0x33c   :  { %13758 = vmatmul.mubr.msk.f32.gmra.mrb[6].mxu0 %vm281_vm0, %v11431_v62  ;;  %22570 = vst [vmem:[#allocation33_spill] sm:$0xff] %v19593_v61  ;;  %v11467_v62 = vld [vmem:[%s22535_s20 + $0x438] sm:$0xff] }
 0x33d   :  { %16539 = vmatpush3.bf16.msra.mxu0 %v16536_v39  ;;  %13806 = vmatprep.mubr.msk.f32.mxu0 %vm281_vm0, %v11452_v4  ;;  %v11465_v39 = vld [vmem:[%s22535_s20 + $0x428] sm:$0xff]  ;;  %v18611_v4 = vld [vmem:[%s22536_s21] sm:$0xff]  ;;  %v19625_v8 = vpack.c.bf16 %v11467_v62, %v11466_v17 }
 0x33e   :  { %16541 = vmatprep.subr.bf16.mxu0 %v19579_v24  ;;  %v19611_v9 = vpack.c.bf16 %v11465_v39, %v11464_v48  ;;  %v11470_v48 = vld [vmem:[%s22535_s20 + $0x450] sm:$0xff]  ;;  %v11471_v39 = vld [vmem:[%s22535_s20 + $0x458] sm:$0xff]  ;;  %v11472_v17 = vld [vmem:[%s22535_s20 + $0x460] sm:$0xff] }
 0x33f   :  { %22572 = vst [vmem:[#allocation35_spill] sm:$0xff] %v19625_v8  ;;  %v11473_v62 = vld [vmem:[%s22535_s20 + $0x468] sm:$0xff] }
 0x340   :  { %13807 = vmatmul.mubr.msk.f32.vlgmr.msra.gmra.mrb[4].mxu0 %vm281_vm0, %v11453_v42  ;;  %22571 = vst [vmem:[#allocation34_spill] sm:$0xff] %v19611_v9  ;;  %v11469_v42 = vld [vmem:[%s22535_s20 + $0x448] sm:$0xff] }
 0x341   :  { %16543 = vmatpush3.bf16.msra.mxu0 %v19579_v24  ;;  %13809 = vmatprep.mubr.msk.f32.mxu0 %vm281_vm0, %v11454_v21  ;;  %v19635_v21 = vpack.c.bf16 %v11469_v42, %v11468_v52  ;;  %v11474_v52 = vld [vmem:[%s22535_s20 + $0x470] sm:$0xff]  ;;  %v11475_v42 = vld [vmem:[%s22535_s20 + $0x478] sm:$0xff] }
 0x342   :  { %16545 = vmatprep.subr.bf16.mxu0 %v19593_v61 }
 0x343   :  { %22573 = vst [vmem:[#allocation36_spill] sm:$0xff] %v19635_v21 }
 0x344   :  { %13810 = vmatmul.mubr.msk.f32.gmra.mrb[6].mxu0 %vm281_vm0, %v11455_v30  ;;  %v19645_v30 = vpack.c.bf16 %v11471_v39, %v11470_v48  ;;  %v19665_v48 = vpack.c.bf16 %v11475_v42, %v11474_v52  ;;  %v66_v39 = vld [vmem:[%s22568_s25 + $0x8] sm:$0xff]  ;;  %v5258_v42 = vld [vmem:[%s22345_s9 + $0x18] sm:$0xff] }
 0x345   :  { %16547 = vmatpush3.bf16.msra.mxu0 %v19593_v61  ;;  %13844 = vmatprep.mubr.f32.mxu0 %v18611_v4  ;;  %v19655_v4 = vpack.c.bf16 %v11473_v62, %v11472_v17  ;;  %v5255_v17 = vld [vmem:[%s22345_s9] sm:$0xff]  ;;  %v5257_v62 = vld [vmem:[%s22345_s9 + $0x10] sm:$0xff]  ;;  %v5256_v52 = vld [vmem:[%s22345_s9 + $0x8] sm:$0xff] }
 0x346   :  { %16549 = vmatprep.subr.bf16.mxu0 %v19611_v9  ;;  %22574 = vst [vmem:[#allocation37_spill] sm:$0xff] %v19645_v30  ;;  %22576 = vst [vmem:[#allocation39_spill] sm:$0xff] %v19665_v48  ;;  %1939 = vperm.xlu0 %18575, %v66_v39   ;;  %v5376_v39 = vld [vmem:[%s22346_s10] sm:$0xff] }
 0x347   :  { %22575 = vst [vmem:[#allocation38_spill] sm:$0xff] %v19655_v4 }
 0x349   :  { %16551 = vmatpush3.bf16.msra.mxu0 %v19611_v9 }
 0x34a   :  { %16553 = vmatprep.subr.bf16.mxu0 %v19625_v8  ;;  %5261 = vperm.xlu0 %18575, %v5255_v17   ;;  %v5396_v17 = vmul.f32 %v5376_v39, %v5376_v39 }
 0x34d   :  { %16555 = vmatpush3.bf16.msra.mxu0 %v19625_v8 }
 0x34e   :  { %16557 = vmatprep.subr.bf16.mxu0 %v19635_v21  ;;  %5271 = vperm.xlu0 %18575, %v5257_v62   ;;  %v5378_v62 = vld [vmem:[%s22346_s10 + $0x10] sm:$0xff] }
 0x351   :  { %16559 = vmatpush3.bf16.msra.mxu0 %v19635_v21 }
 0x352   :  { %16561 = vmatprep.subr.bf16.mxu0 %v19645_v30 }
 0x355   :  { %16563 = vmatpush3.bf16.msra.mxu0 %v19645_v30 }
 0x356   :  { %16565 = vmatprep.subr.bf16.mxu0 %v19655_v4 }
 0x359   :  { %16567 = vmatpush3.bf16.msra.mxu0 %v19655_v4 }
 0x35a   :  { %16569 = vmatprep.subr.bf16.mxu0 %v19665_v48 }
 0x35d   :  { %16571 = vmatpush3.bf16.msra.mxu0 %v19665_v48 }
 0x360   :  { %13845 = vmatmul.mubr.f32.vlgmr.msra.gmra.mrb[16].mxu0 %v18912_v54  ;;  %v11476_v54 = vld [vmem:[%s22543_s1 + $0x100] sm:$0xff] }
 0x361   :  { %13847 = vmatprep.mubr.f32.mxu0 %v18921_v56  ;;  %v67_v56 = vld [vmem:[%s22568_s25 + $0x10] sm:$0xff] }
 0x362   :  { %1944 = vperm.xlu1 %18576, %v67_v56   ;;  %v5398_v56 = vmul.f32 %v5378_v62, %v5378_v62  ;;  %v5427_v62 = vsel %vm281_vm0, %v5401_v12, 0.0 }
 0x364   :  { %13848 = vmatmul.mubr.f32.gmra.mrb[18].mxu0 %v18936_v59  ;;  %v68_v59 = vld [vmem:[%s22568_s25 + $0x18] sm:$0xff] }
 0x365   :  { %13858 = vmatprep.mubr.msk.f32.mxu0 %vm281_vm0, %v11476_v54  ;;  %v5412_v54 = vsel %vm281_vm0, %v5396_v17, 0.0  ;;  %v5383_v17 = vld [vmem:[%s22346_s10 + $0x38] sm:$0xff] }
 0x366   :  { %1949 = vperm.xlu1 %18576, %v68_v59   ;;  %v5379_v59 = vld [vmem:[%s22346_s10 + $0x18] sm:$0xff]  ;;  %v5403_v7 = vmul.f32 %v5383_v17, %v5383_v17 }
 0x36a   :  { %5266 = vperm.xlu1 %18576, %v5256_v52   ;;  %v5418_v52 = vsel %vm281_vm0, %v5398_v56, 0.0  ;;  %v5433_v56 = vsel %vm281_vm0, %v5403_v7, 0.0  ;;  %v5380_v7 = vld [vmem:[%s22346_s10 + $0x20] sm:$0xff] }
 0x36d   :  { %5413 = vadd.xlane.f32.xlu0 %v5412_v54  ;;  %v5385_v54 = vld [vmem:[%s22346_s10 + $0x48] sm:$0xff] }
 0x36e   :  { %5276 = vperm.xlu1 %18576, %v5258_v42   ;;  %v5399_v42 = vmul.f32 %v5379_v59, %v5379_v59  ;;  %v5405_v59 = vmul.f32 %v5385_v54, %v5385_v54 }
 0x370   :  { %v5421_v39 = vsel %vm281_vm0, %v5399_v42, 0.0  ;;  %v5439_v12 = vsel %vm281_vm0, %v5405_v59, 0.0  ;;  %v5407_v42 = vmul.f32 %v5387_v15, %v5387_v15  ;;  %v5400_v59 = vmul.f32 %v5380_v7, %v5380_v7  ;;  %v5382_v15 = vld [vmem:[%s22346_s10 + $0x30] sm:$0xff] }
 0x371   :  { %5419 = vadd.xlane.f32.xlu0 %v5418_v52  ;;  %v5377_v52 = vld [vmem:[%s22346_s10 + $0x8] sm:$0xff] }
 0x372   :  { %v5397_v17 = vmul.f32 %v5377_v52, %v5377_v52 }
 0x374   :  { %v5415_v2 = vsel %vm281_vm0, %v5397_v17, 0.0 }
 0x375   :  { %5422 = vadd.xlane.f32.xlu0 %v5421_v39  ;;  %v5389_v39 = vld [vmem:[%s22346_s10 + $0x68] sm:$0xff] }
 0x376   :  { %v5409_v54 = vmul.f32 %v5389_v39, %v5389_v39  ;;  %v5384_v39 = vld [vmem:[%s22346_s10 + $0x40] sm:$0xff] }
 0x377   :  { %v5404_v60 = vmul.f32 %v5384_v39, %v5384_v39  ;;  %v6100_v39 = vld [vmem:[%s22347_s13] sm:$0xff] }
 0x378   :  { %v5451_v52 = vsel %vm281_vm0, %v5409_v54, 0.0 }
 0x379   :  { %5428 = vadd.xlane.f32.xlu0 %v5427_v62  ;;  %v5445_v62 = vsel %vm281_vm0, %v5407_v42, 0.0  ;;  %v5402_v42 = vmul.f32 %v5382_v15, %v5382_v15  ;;  %v5390_v15 = vld [vmem:[%s22346_s10 + $0x70] sm:$0xff] }
 0x37b   :  { %v5430_v7 = vsel %vm281_vm0, %v5402_v42, 0.0  ;;  %v6101_v42 = vld [vmem:[%s22347_s13 + $0x8] sm:$0xff] }
 0x37d   :  { %5434 = vadd.xlane.f32.xlu0 %v5433_v56  ;;  %v5391_v56 = vld [vmem:[%s22346_s10 + $0x78] sm:$0xff] }
 0x37e   :  { %v5411_v63 = vmul.f32 %v5391_v56, %v5391_v56  ;;  %v5388_v56 = vld [vmem:[%s22346_s10 + $0x60] sm:$0xff] }
 0x380   :  { %v5457_v17 = vsel %vm281_vm0, %v5411_v63, 0.0 }
 0x381   :  { %5440 = vadd.xlane.f32.xlu0 %v5439_v12  ;;  %v5424_v12 = vsel %vm281_vm0, %v5400_v59, 0.0  ;;  %v5408_v59 = vmul.f32 %v5388_v56, %v5388_v56 }
 0x385   :  { %5446 = vadd.xlane.f32.xlu0 %v5445_v62  ;;  %v5386_v62 = vld [vmem:[%s22346_s10 + $0x50] sm:$0xff] }
 0x386   :  { %v5406_v54 = vmul.f32 %v5386_v62, %v5386_v62 }
 0x388   :  { %v5442_v63 = vsel %vm281_vm0, %v5406_v54, 0.0 }
 0x389   :  { %5452 = vadd.xlane.f32.xlu0 %v5451_v52  ;;  %v5448_v52 = vsel %vm281_vm0, %v5408_v59, 0.0 }
 0x38d   :  { %5458 = vadd.xlane.f32.xlu0 %v5457_v17  ;;  %v6102_v17 = vld [vmem:[%s22347_s13 + $0x10] sm:$0xff] }
 0x392   :  { %5416 = vadd.xlane.f32.xlu1 %v5415_v2  ;;  %v5436_v2 = vsel %vm281_vm0, %v5404_v60, 0.0 }
 0x396   :  { %5425 = vadd.xlane.f32.xlu1 %v5424_v12  ;;  %v5410_v12 = vmul.f32 %v5390_v15, %v5390_v15  ;;  %v11477_v15 = vld [vmem:[%s22543_s1 + $0x108] sm:$0xff] }
 0x398   :  { %v5454_v60 = vsel %vm281_vm0, %v5410_v12, 0.0  ;;  %v11479_v12 = vld [vmem:[%s22543_s1 + $0x118] sm:$0xff] }
 0x39a   :  { %5431 = vadd.xlane.f32.xlu1 %v5430_v7  ;;  %v6103_v7 = vld [vmem:[%s22347_s13 + $0x18] sm:$0xff] }
 0x39e   :  { %5437 = vadd.xlane.f32.xlu1 %v5436_v2 }
 0x3a2   :  { %5443 = vadd.xlane.f32.xlu1 %v5442_v63 }
 0x3a3   :  { %7965 = vperm.xlu0 %18575, %v6101_v42  }
 0x3a6   :  { %5449 = vadd.xlane.f32.xlu1 %v5448_v52  ;;  %v11478_v52 = vld [vmem:[%s22543_s1 + $0x110] sm:$0xff] }
 0x3aa   :  { %5455 = vadd.xlane.f32.xlu1 %v5454_v60  ;;  %v1935_v60 = vpop.permute.xlu0 %1934 }
 0x3bb   :  { %7960 = vperm.xlu1 %18576, %v6100_v39  }
 0x3bf   :  { %7970 = vperm.xlu1 %18576, %v6102_v17  }
 0x3c3   :  { %7975 = vperm.xlu1 %18576, %v6103_v7  }
 0x3c5   :  { %v1940_v39 = vpop.permute.xlu0 %1939 }
 0x3e1   :  { %v1945_v42 = vpop.permute.xlu1 %1944 }
 0x433   :  { %v13846_v62 = vpop.f32.mrb[16].mxu0 }
 0x434   :  { %v1807_v2 = vpop.f32.mrb[17].mxu0 }
 0x435   :  { %v16572_v54 = vpack.c.bf16 %v13846_v62, %v1807_v2 }
 0x437   :  { %v13849_v56 = vpop.f32.mrb[18].mxu0  ;;  %16573 = vmatprep.subr.bf16.mxu0 %v16572_v54 }
 0x438   :  { %v1817_v63 = vpop.f32.mrb[19].mxu0  ;;  %16575 = vmatpush3.bf16.msra.mxu0 %v16572_v54  ;;  %v1950_v54 = vpop.permute.xlu1 %1949 }
 0x439   :  { %v16576_v59 = vpack.c.bf16 %v13849_v56, %v1817_v63 }
 0x43b   :  { %16577 = vmatprep.subr.bf16.mxu0 %v16576_v59 }
 0x43c   :  { %16579 = vmatpush3.bf16.msra.mxu0 %v16576_v59 }
 0x43f   :  { %13859 = vmatmul.mubr.msk.f32.vlgmr.msra.gmra.mrb[4].mxu0 %vm281_vm0, %v11477_v15 }
 0x440   :  { %13861 = vmatprep.mubr.msk.f32.mxu0 %vm281_vm0, %v11478_v52 }
 0x443   :  { %13862 = vmatmul.mubr.msk.f32.gmra.mrb[6].mxu0 %vm281_vm0, %v11479_v12 }
 0x512   :  { %v13860_v17 = vpop.f32.mrb[4].mxu0 }
 0x513   :  { %v19786_v7 = vadd.f32 %v13860_v17, %v1940_v39  ;;  %v1909_v62 = vpop.f32.mrb[5].mxu0 }
 0x514   :  { %v19788_v2 = vadd.f32 %v1935_v60, %v1909_v62 }
 0x515   :  { %v19794_v59 = vmax.f32 %v19786_v7, 0.0 }
 0x516   :  { %v19791_v56 = vmax.f32 %v19788_v2, 0.0  ;;  %v13863_v63 = vpop.f32.mrb[6].mxu0 }
 0x517   :  { %v19796_v15 = vadd.f32 %v13863_v63, %v1950_v54  ;;  %v1919_v52 = vpop.f32.mrb[7].mxu0 }
 0x518   :  { %v19798_v12 = vadd.f32 %v1945_v42, %v1919_v52  ;;  %13896 = vmatprep.mubr.f32.mxu1 %v19791_v56  ;;  %v11484_v42 = vld [vmem:[%s22348_s4 + $0x10] sm:$0xff] }
 0x519   :  { %13897 = vmatmul.mubr.f32.vlgmr.msra.gmra.mrb[20].mxu1 %v19794_v59  ;;  %v19807_v39 = vmax.f32 %v19796_v15, 0.0  ;;  %13948 = vmatprep.mubr.msk.f32.mxu0 %vm281_vm0, %v11484_v42 }
 0x51a   :  { %v19803_v60 = vmax.f32 %v19798_v12, 0.0  ;;  %16615 = vmatpush3.bf16.msra.mxu1 %v18740_v3 }
 0x51b   :  { %16617 = vmatprep.subr.bf16.mxu1 %v18745_v5 }
 0x51c   :  { %13899 = vmatprep.mubr.f32.mxu1 %v19803_v60 }
 0x51d   :  { %13900 = vmatmul.mubr.f32.gmra.mrb[22].mxu1 %v19807_v39 }
 0x51e   :  { %16619 = vmatpush3.bf16.msra.mxu1 %v18745_v5  ;;  %13934 = vmatprep.mubr.f32.mxu1 %v19791_v56 }
 0x51f   :  { %16621 = vmatprep.subr.bf16.mxu1 %v18762_v10 }
 0x522   :  { %16623 = vmatpush3.bf16.msra.mxu1 %v18762_v10 }
 0x523   :  { %16625 = vmatprep.subr.bf16.mxu1 %v18795_v20 }
 0x526   :  { %16627 = vmatpush3.bf16.msra.mxu1 %v18795_v20 }
 0x527   :  { %16629 = vmatprep.subr.bf16.mxu1 %v18817_v26 }
 0x52a   :  { %16631 = vmatpush3.bf16.msra.mxu1 %v18817_v26 }
 0x52b   :  { %16633 = vmatprep.subr.bf16.mxu1 %v18837_v32 }
 0x52e   :  { %16635 = vmatpush3.bf16.msra.mxu1 %v18837_v32 }
 0x52f   :  { %16637 = vmatprep.subr.bf16.mxu1 %v18857_v38 }
 0x532   :  { %16639 = vmatpush3.bf16.msra.mxu1 %v18857_v38 }
 0x533   :  { %16641 = vmatprep.subr.bf16.mxu1 %v18877_v44 }
 0x536   :  { %16643 = vmatpush3.bf16.msra.mxu1 %v18877_v44 }
 0x537   :  { %16701 = vmatprep.subr.bf16.mxu1 %v19214_v6 }
 0x539   :  { %13935 = vmatmul.mubr.f32.vlgmr.msra.gmra.mrb[24].mxu1 %v19794_v59 }
 0x53a   :  { %13937 = vmatprep.mubr.f32.mxu1 %v19803_v60  ;;  %16703 = vmatpush3.bf16.msra.mxu1 %v19214_v6 }
 0x53b   :  { %16705 = vmatprep.subr.bf16.mxu1 %v19226_v18 }
 0x53d   :  { %13938 = vmatmul.mubr.f32.gmra.mrb[26].mxu1 %v19807_v39 }
 0x53e   :  { %16707 = vmatpush3.bf16.msra.mxu1 %v19226_v18  ;;  %14043 = vmatprep.mubr.f32.mxu1 %v19791_v56 }
 0x53f   :  { %16709 = vmatprep.subr.bf16.mxu1 %v19244_v35 }
 0x542   :  { %16711 = vmatpush3.bf16.msra.mxu1 %v19244_v35 }
 0x543   :  { %16713 = vmatprep.subr.bf16.mxu1 %v19256_v47 }
 0x546   :  { %16715 = vmatpush3.bf16.msra.mxu1 %v19256_v47 }
 0x547   :  { %16717 = vmatprep.subr.bf16.mxu1 %v19266_v53 }
 0x54a   :  { %16719 = vmatpush3.bf16.msra.mxu1 %v19266_v53 }
 0x54b   :  { %16721 = vmatprep.subr.bf16.mxu1 %v19276_v0 }
 0x54e   :  { %16723 = vmatpush3.bf16.msra.mxu1 %v19276_v0 }
 0x54f   :  { %16725 = vmatprep.subr.bf16.mxu1 %v19286_v13 }
 0x552   :  { %16727 = vmatpush3.bf16.msra.mxu1 %v19286_v13 }
 0x553   :  { %16729 = vmatprep.subr.bf16.mxu1 %v19296_v25 }
 0x556   :  { %16731 = vmatpush3.bf16.msra.mxu1 %v19296_v25 }
 0x557   :  { %16741 = vmatprep.subr.bf16.mxu1 %v19014_v23 }
 0x559   :  { %14044 = vmatmul.mubr.f32.vlgmr.msra.gmra.mrb[28].mxu1 %v19794_v59 }
 0x55a   :  { %14046 = vmatprep.mubr.f32.mxu1 %v19803_v60  ;;  %16743 = vmatpush3.bf16.msra.mxu1 %v19014_v23 }
 0x55b   :  { %16745 = vmatprep.subr.bf16.mxu1 %v19024_v27 }
 0x55d   :  { %14047 = vmatmul.mubr.f32.gmra.mrb[30].mxu1 %v19807_v39 }
 0x55e   :  { %16747 = vmatpush3.bf16.msra.mxu1 %v19024_v27  ;;  %14092 = vmatprep.mubr.f32.mxu1 %v19791_v56 }
 0x55f   :  { %16749 = vmatprep.subr.bf16.mxu1 %v19034_v31 }
 0x562   :  { %16751 = vmatpush3.bf16.msra.mxu1 %v19034_v31 }
 0x563   :  { %16753 = vmatprep.subr.bf16.mxu1 %v19044_v36 }
 0x566   :  { %16755 = vmatpush3.bf16.msra.mxu1 %v19044_v36 }
 0x567   :  { %16757 = vmatprep.subr.bf16.mxu1 %v19054_v41 }
 0x56a   :  { %16759 = vmatpush3.bf16.msra.mxu1 %v19054_v41 }
 0x56b   :  { %16761 = vmatprep.subr.bf16.mxu1 %v19064_v45 }
 0x56e   :  { %16763 = vmatpush3.bf16.msra.mxu1 %v19064_v45 }
 0x56f   :  { %16765 = vmatprep.subr.bf16.mxu1 %v19074_v49 }
 0x572   :  { %16767 = vmatpush3.bf16.msra.mxu1 %v19074_v49 }
 0x573   :  { %16769 = vmatprep.subr.bf16.mxu1 %v19084_v57 }
 0x576   :  { %16771 = vmatpush3.bf16.msra.mxu1 %v19084_v57 }
 0x577   :  { %16821 = vmatprep.subr.bf16.mxu1 %v19459_v29 }
 0x579   :  { %14093 = vmatmul.mubr.f32.vlgmr.msra.gmra.mrb[32].mxu1 %v19794_v59 }
 0x57a   :  { %14095 = vmatprep.mubr.f32.mxu1 %v19803_v60  ;;  %16823 = vmatpush3.bf16.msra.mxu1 %v19459_v29 }
 0x57b   :  { %16825 = vmatprep.subr.bf16.mxu1 %v19474_v14 }
 0x57d   :  { %14096 = vmatmul.mubr.f32.gmra.mrb[34].mxu1 %v19807_v39 }
 0x57e   :  { %16827 = vmatpush3.bf16.msra.mxu1 %v19474_v14  ;;  %14190 = vmatprep.mubr.f32.mxu1 %v19791_v56 }
 0x57f   :  { %16829 = vmatprep.subr.bf16.mxu1 %v19492_v58 }
 0x582   :  { %16831 = vmatpush3.bf16.msra.mxu1 %v19492_v58 }
 0x583   :  { %16833 = vmatprep.subr.bf16.mxu1 %v19504_v33 }
 0x586   :  { %16835 = vmatpush3.bf16.msra.mxu1 %v19504_v33 }
 0x587   :  { %16837 = vmatprep.subr.bf16.mxu1 %v19514_v37 }
 0x58a   :  { %16839 = vmatpush3.bf16.msra.mxu1 %v19514_v37 }
 0x58b   :  { %16841 = vmatprep.subr.bf16.mxu1 %v19524_v43 }
 0x58e   :  { %16843 = vmatpush3.bf16.msra.mxu1 %v19524_v43 }
 0x58f   :  { %16845 = vmatprep.subr.bf16.mxu1 %v19534_v1 }
 0x592   :  { %16847 = vmatpush3.bf16.msra.mxu1 %v19534_v1 }
 0x593   :  { %16849 = vmatprep.subr.bf16.mxu1 %v19544_v19 }
 0x596   :  { %16851 = vmatpush3.bf16.msra.mxu1 %v19544_v19 }
 0x597   :  { %16901 = vmatprep.subr.bf16.mxu1 %v19579_v24 }
 0x599   :  { %14191 = vmatmul.mubr.f32.vlgmr.msra.gmra.mrb[36].mxu1 %v19794_v59 }
 0x59a   :  { %14193 = vmatprep.mubr.f32.mxu1 %v19803_v60  ;;  %16903 = vmatpush3.bf16.msra.mxu1 %v19579_v24 }
 0x59b   :  { %16905 = vmatprep.subr.bf16.mxu1 %v19593_v61 }
 0x59d   :  { %14194 = vmatmul.mubr.f32.gmra.mrb[38].mxu1 %v19807_v39 }
 0x59e   :  { %16907 = vmatpush3.bf16.msra.mxu1 %v19593_v61  ;;  %14288 = vmatprep.mubr.f32.mxu1 %v19791_v56 }
 0x59f   :  { %16909 = vmatprep.subr.bf16.mxu1 %v19611_v9 }
 0x5a2   :  { %16911 = vmatpush3.bf16.msra.mxu1 %v19611_v9 }
 0x5a3   :  { %16913 = vmatprep.subr.bf16.mxu1 %v19625_v8 }
 0x5a6   :  { %16915 = vmatpush3.bf16.msra.mxu1 %v19625_v8 }
 0x5a7   :  { %16917 = vmatprep.subr.bf16.mxu1 %v19635_v21 }
 0x5aa   :  { %16919 = vmatpush3.bf16.msra.mxu1 %v19635_v21 }
 0x5ab   :  { %16921 = vmatprep.subr.bf16.mxu1 %v19645_v30 }
 0x5ae   :  { %16923 = vmatpush3.bf16.msra.mxu1 %v19645_v30 }
 0x5af   :  { %16925 = vmatprep.subr.bf16.mxu1 %v19655_v4 }
 0x5b2   :  { %16927 = vmatpush3.bf16.msra.mxu1 %v19655_v4 }
 0x5b3   :  { %16929 = vmatprep.subr.bf16.mxu1 %v19665_v48 }
 0x5b6   :  { %16931 = vmatpush3.bf16.msra.mxu1 %v19665_v48 }
 0x5b7   :  { %16945 = vmatprep.subr.bf16.mxu1 %v18764_v11 }
 0x5b9   :  { %14289 = vmatmul.mubr.f32.vlgmr.msra.gmra.mrb[40].mxu1 %v19794_v59 }
 0x5ba   :  { %14291 = vmatprep.mubr.f32.mxu1 %v19803_v60  ;;  %16947 = vmatpush3.bf16.msra.mxu1 %v18764_v11 }
 0x5bb   :  { %16949 = vmatprep.subr.bf16.mxu1 %v18778_v16 }
 0x5bd   :  { %14292 = vmatmul.mubr.f32.gmra.mrb[42].mxu1 %v19807_v39 }
 0x5be   :  { %16951 = vmatpush3.bf16.msra.mxu1 %v18778_v16 }
 0x5bf   :  { %16953 = vmatprep.subr.bf16.mxu1 %v18801_v22 }
 0x5c2   :  { %16955 = vmatpush3.bf16.msra.mxu1 %v18801_v22 }
 0x5c3   :  { %16957 = vmatprep.subr.bf16.mxu1 %v18823_v28 }
 0x5c6   :  { %16959 = vmatpush3.bf16.msra.mxu1 %v18823_v28 }
 0x5c7   :  { %16961 = vmatprep.subr.bf16.mxu1 %v18843_v34 }
 0x5ca   :  { %16963 = vmatpush3.bf16.msra.mxu1 %v18843_v34 }
 0x5cb   :  { %16965 = vmatprep.subr.bf16.mxu1 %v18863_v40 }
 0x5ce   :  { %16967 = vmatpush3.bf16.msra.mxu1 %v18863_v40 }
 0x5cf   :  { %16969 = vmatprep.subr.bf16.mxu1 %v18883_v46 }
 0x5d2   :  { %16971 = vmatpush3.bf16.msra.mxu1 %v18883_v46  ;;  %v11485_v46 = vld [vmem:[%s22348_s4 + $0x18] sm:$0xff] }
 0x5d3   :  { %16973 = vmatprep.subr.bf16.mxu1 %v18900_v51 }
 0x5d6   :  { %16975 = vmatpush3.bf16.msra.mxu1 %v18900_v51  ;;  %v2045_v51 = vld [vmem:[%s22348_s4] sm:$0xff] }
 0x5ec   :  { %v13898_v11 = vpop.f32.mrb[20].mxu1 }
 0x5ed   :  { %v2026_v16 = vpop.f32.mrb[21].mxu1 }
 0x5ee   :  { %v16652_v22 = vpack.c.bf16 %v13898_v11, %v2026_v16  ;;  %v2046_v11 = vld [vmem:[%s22348_s4 + $0x8] sm:$0xff]  ;;  %v22577_v16 = vld [vmem:[#allocation2_spill] sm:$0xff] }
 0x5f0   :  { %v13901_v28 = vpop.f32.mrb[22].mxu1 }
 0x5f1   :  { %v2036_v17 = vpop.f32.mrb[23].mxu1 }
 0x5f2   :  { %v16656_v62 = vpack.c.bf16 %v13901_v28, %v2036_v17 }
 0x60c   :  { %v13936_v54 = vpop.f32.mrb[24].mxu1 }
 0x60d   :  { %v2113_v34 = vpop.f32.mrb[25].mxu1 }
 0x60e   :  { %v16644_v63 = vpack.c.bf16 %v13936_v54, %v2113_v34  ;;  %v22579_v54 = vld [vmem:[#allocation4_spill] sm:$0xff] }
 0x610   :  { %v13939_v52 = vpop.f32.mrb[26].mxu1  ;;  %16645 = vmatprep.subr.bf16.mxu0 %v16644_v63 }
 0x611   :  { %v2123_v40 = vpop.f32.mrb[27].mxu1  ;;  %16647 = vmatpush3.bf16.msra.mxu0 %v16644_v63 }
 0x612   :  { %v16648_v42 = vpack.c.bf16 %v13939_v52, %v2123_v40  ;;  %v22580_v40 = vld [vmem:[#allocation5_spill] sm:$0xff] }
 0x614   :  { %16649 = vmatprep.subr.bf16.mxu0 %v16648_v42 }
 0x615   :  { %16651 = vmatpush3.bf16.msra.mxu0 %v16648_v42  ;;  %v22581_v42 = vld [vmem:[#allocation6_spill] sm:$0xff] }
 0x616   :  { %16653 = vmatprep.subr.bf16.mxu0 %v16652_v22 }
 0x618   :  { %13949 = vmatmul.mubr.msk.f32.vlgmr.msra.gmra.mrb[20].mxu0 %vm281_vm0, %v11485_v46  ;;  %v22582_v46 = vld [vmem:[#allocation7_spill] sm:$0xff] }
 0x619   :  { %16655 = vmatpush3.bf16.msra.mxu0 %v16652_v22  ;;  %13959 = vmatprep.mubr.msk.f32.mxu0 %vm281_vm0, %v2045_v51  ;;  %v22578_v22 = vld [vmem:[#allocation3_spill] sm:$0xff] }
 0x61a   :  { %16657 = vmatprep.subr.bf16.mxu0 %v16656_v62 }
 0x61d   :  { %16659 = vmatpush3.bf16.msra.mxu0 %v16656_v62 }
 0x61e   :  { %16661 = vmatprep.subr.bf16.mxu0 %v18897_v50 }
 0x620   :  { %13960 = vmatmul.mubr.msk.f32.vlgmr.msra.gmra.mrb[20].mxu0 %vm281_vm0, %v2046_v11 }
 0x621   :  { %16663 = vmatpush3.bf16.msra.mxu0 %v18897_v50  ;;  %13994 = vmatprep.mubr.f32.mxu0 %v19791_v56 }
 0x622   :  { %16665 = vmatprep.subr.bf16.mxu0 %v18916_v55 }
 0x625   :  { %16667 = vmatpush3.bf16.msra.mxu0 %v18916_v55 }
 0x626   :  { %16669 = vmatprep.subr.bf16.mxu0 %v22577_v16 }
 0x629   :  { %16671 = vmatpush3.bf16.msra.mxu0 %v22577_v16 }
 0x62a   :  { %16673 = vmatprep.subr.bf16.mxu0 %v22578_v22 }
 0x62c   :  { %v14045_v28 = vpop.f32.mrb[28].mxu1 }
 0x62d   :  { %16675 = vmatpush3.bf16.msra.mxu0 %v22578_v22  ;;  %v2534_v17 = vpop.f32.mrb[29].mxu1 }
 0x62e   :  { %v16732_v62 = vpack.c.bf16 %v14045_v28, %v2534_v17  ;;  %16677 = vmatprep.subr.bf16.mxu0 %v22579_v54 }
 0x630   :  { %v14048_v34 = vpop.f32.mrb[30].mxu1 }
 0x631   :  { %16679 = vmatpush3.bf16.msra.mxu0 %v22579_v54  ;;  %v2544_v63 = vpop.f32.mrb[31].mxu1 }
 0x632   :  { %v16736_v52 = vpack.c.bf16 %v14048_v34, %v2544_v63  ;;  %16681 = vmatprep.subr.bf16.mxu0 %v22580_v40 }
 0x635   :  { %16683 = vmatpush3.bf16.msra.mxu0 %v22580_v40 }
 0x636   :  { %16685 = vmatprep.subr.bf16.mxu0 %v22581_v42 }
 0x639   :  { %16687 = vmatpush3.bf16.msra.mxu0 %v22581_v42 }
 0x63a   :  { %16689 = vmatprep.subr.bf16.mxu0 %v22582_v46 }
 0x63d   :  { %16691 = vmatpush3.bf16.msra.mxu0 %v22582_v46 }
 0x640   :  { %13995 = vmatmul.mubr.f32.vlgmr.msra.gmra.mrb[22].mxu0 %v19794_v59 }
 0x641   :  { %13997 = vmatprep.mubr.f32.mxu0 %v19803_v60 }
 0x644   :  { %13998 = vmatmul.mubr.f32.gmra.mrb[24].mxu0 %v19807_v39 }
 0x64c   :  { %v14094_v51 = vpop.f32.mrb[32].mxu1 }
 0x64d   :  { %v2705_v11 = vpop.f32.mrb[33].mxu1 }
 0x64e   :  { %v16772_v28 = vpack.c.bf16 %v14094_v51, %v2705_v11  ;;  %v11490_v51 = vld [vmem:[%s22348_s4 + $0x20] sm:$0xff] }
 0x64f   :  { %14008 = vmatprep.mubr.msk.f32.mxu0 %vm281_vm0, %v11490_v51  ;;  %v22587_v51 = vld [vmem:[#allocation12_spill] sm:$0xff] }
 0x650   :  { %v14097_v17 = vpop.f32.mrb[34].mxu1 }
 0x651   :  { %v2715_v34 = vpop.f32.mrb[35].mxu1 }
 0x652   :  { %v16776_v63 = vpack.c.bf16 %v14097_v17, %v2715_v34  ;;  %v22584_v34 = vld [vmem:[#allocation9_spill] sm:$0xff] }
 0x66c   :  { %v14192_v48 = vpop.f32.mrb[36].mxu1 }
 0x66d   :  { %v3047_v4 = vpop.f32.mrb[37].mxu1 }
 0x66e   :  { %v19961_v30 = vpack.c.bf16 %v14192_v48, %v3047_v4 }
 0x670   :  { %v14195_v21 = vpop.f32.mrb[38].mxu1 }
 0x671   :  { %v3057_v8 = vpop.f32.mrb[39].mxu1 }
 0x672   :  { %v19963_v9 = vpack.c.bf16 %v14195_v21, %v3057_v8 }
 0x68c   :  { %v14290_v61 = vpop.f32.mrb[40].mxu1 }
 0x68d   :  { %v3389_v24 = vpop.f32.mrb[41].mxu1 }
 0x68e   :  { %v19965_v19 = vpack.c.bf16 %v14290_v61, %v3389_v24  ;;  %v11495_v24 = vld [vmem:[%s22348_s4 + $0x38] sm:$0xff]  ;;  %v11498_v61 = vld [vmem:[%s22348_s4 + $0x40] sm:$0xff] }
 0x690   :  { %v14293_v1 = vpop.f32.mrb[42].mxu1 }
 0x691   :  { %v3399_v43 = vpop.f32.mrb[43].mxu1 }
 0x692   :  { %v19967_v37 = vpack.c.bf16 %v14293_v1, %v3399_v43  ;;  %v11491_v43 = vld [vmem:[%s22348_s4 + $0x28] sm:$0xff]  ;;  %v11494_v1 = vld [vmem:[%s22348_s4 + $0x30] sm:$0xff] }
 0x713   :  { %v13996_v4 = vpop.f32.mrb[22].mxu0 }
 0x714   :  { %v2363_v48 = vpop.f32.mrb[23].mxu0 }
 0x715   :  { %v16692_v11 = vpack.c.bf16 %v13996_v4, %v2363_v48  ;;  %v22588_v4 = vld [vmem:[#allocation13_spill] sm:$0xff]  ;;  %v22589_v48 = vld [vmem:[#allocation14_spill] sm:$0xff] }
 0x717   :  { %v13999_v17 = vpop.f32.mrb[24].mxu0  ;;  %16693 = vmatprep.subr.bf16.mxu0 %v16692_v11 }
 0x718   :  { %v2373_v8 = vpop.f32.mrb[25].mxu0  ;;  %16695 = vmatpush3.bf16.msra.mxu0 %v16692_v11  ;;  %v22590_v11 = vld [vmem:[#allocation15_spill] sm:$0xff] }
 0x719   :  { %v16696_v21 = vpack.c.bf16 %v13999_v17, %v2373_v8  ;;  %v11502_v17 = vld [vmem:[%s22348_s4 + $0x50] sm:$0xff] }
 0x71b   :  { %16697 = vmatprep.subr.bf16.mxu0 %v16696_v21 }
 0x71c   :  { %16699 = vmatpush3.bf16.msra.mxu0 %v16696_v21 }
 0x71d   :  { %16733 = vmatprep.subr.bf16.mxu0 %v16732_v62 }
 0x71f   :  { %14009 = vmatmul.mubr.msk.f32.vlgmr.msra.gmra.mrb[20].mxu0 %vm281_vm0, %v11491_v43 }
 0x720   :  { %16735 = vmatpush3.bf16.msra.mxu0 %v16732_v62  ;;  %14057 = vmatprep.mubr.msk.f32.mxu0 %vm281_vm0, %v11494_v1  ;;  %v11499_v62 = vld [vmem:[%s22348_s4 + $0x48] sm:$0xff] }
 0x721   :  { %16737 = vmatprep.subr.bf16.mxu0 %v16736_v52 }
 0x724   :  { %16739 = vmatpush3.bf16.msra.mxu0 %v16736_v52  ;;  %v22583_v52 = vld [vmem:[#allocation8_spill] sm:$0xff] }
 0x725   :  { %16773 = vmatprep.subr.bf16.mxu0 %v16772_v28 }
 0x727   :  { %14058 = vmatmul.mubr.msk.f32.vlgmr.msra.gmra.mrb[20].mxu0 %vm281_vm0, %v11495_v24 }
 0x728   :  { %16775 = vmatpush3.bf16.msra.mxu0 %v16772_v28  ;;  %14106 = vmatprep.mubr.msk.f32.mxu0 %vm281_vm0, %v11498_v61  ;;  %v22585_v28 = vld [vmem:[#allocation10_spill] sm:$0xff] }
 0x729   :  { %16777 = vmatprep.subr.bf16.mxu0 %v16776_v63 }
 0x72c   :  { %16779 = vmatpush3.bf16.msra.mxu0 %v16776_v63  ;;  %v22586_v63 = vld [vmem:[#allocation11_spill] sm:$0xff] }
 0x72d   :  { %16781 = vmatprep.subr.bf16.mxu0 %v22583_v52 }
 0x72f   :  { %14107 = vmatmul.mubr.msk.f32.vlgmr.msra.gmra.mrb[20].mxu0 %vm281_vm0, %v11499_v62  ;;  %v11503_v62 = vld [vmem:[%s22348_s4 + $0x58] sm:$0xff] }
 0x730   :  { %16783 = vmatpush3.bf16.msra.mxu0 %v22583_v52  ;;  %14141 = vmatprep.mubr.f32.mxu0 %v19791_v56 }
 0x731   :  { %16785 = vmatprep.subr.bf16.mxu0 %v22584_v34 }
 0x734   :  { %16787 = vmatpush3.bf16.msra.mxu0 %v22584_v34 }
 0x735   :  { %16789 = vmatprep.subr.bf16.mxu0 %v22585_v28 }
 0x738   :  { %16791 = vmatpush3.bf16.msra.mxu0 %v22585_v28 }
 0x739   :  { %16793 = vmatprep.subr.bf16.mxu0 %v22586_v63 }
 0x73c   :  { %16795 = vmatpush3.bf16.msra.mxu0 %v22586_v63 }
 0x73d   :  { %16797 = vmatprep.subr.bf16.mxu0 %v22587_v51 }
 0x740   :  { %16799 = vmatpush3.bf16.msra.mxu0 %v22587_v51 }
 0x741   :  { %16801 = vmatprep.subr.bf16.mxu0 %v22588_v4 }
 0x744   :  { %16803 = vmatpush3.bf16.msra.mxu0 %v22588_v4 }
 0x745   :  { %16805 = vmatprep.subr.bf16.mxu0 %v22589_v48 }
 0x748   :  { %16807 = vmatpush3.bf16.msra.mxu0 %v22589_v48 }
 0x749   :  { %16809 = vmatprep.subr.bf16.mxu0 %v22590_v11 }
 0x74c   :  { %16811 = vmatpush3.bf16.msra.mxu0 %v22590_v11 }
 0x74f   :  { %14142 = vmatmul.mubr.f32.vlgmr.msra.gmra.mrb[26].mxu0 %v19794_v59 }
 0x750   :  { %14144 = vmatprep.mubr.f32.mxu0 %v19803_v60 }
 0x753   :  { %14145 = vmatmul.mubr.f32.gmra.mrb[28].mxu0 %v19807_v39 }
 0x754   :  { %14155 = vmatprep.mubr.msk.f32.mxu0 %vm281_vm0, %v11502_v17  ;;  %v11506_v17 = vld [vmem:[%s22348_s4 + $0x60] sm:$0xff] }
 0x822   :  { %v14143_v8 = vpop.f32.mrb[26].mxu0 }
 0x823   :  { %v2876_v21 = vpop.f32.mrb[27].mxu0 }
 0x824   :  { %v16812_v43 = vpack.c.bf16 %v14143_v8, %v2876_v21  ;;  %v11507_v8 = vld [vmem:[%s22348_s4 + $0x68] sm:$0xff]  ;;  %v22591_v21 = vld [vmem:[#allocation16_spill] sm:$0xff] }
 0x826   :  { %v14146_v1 = vpop.f32.mrb[28].mxu0  ;;  %16813 = vmatprep.subr.bf16.mxu0 %v16812_v43 }
 0x827   :  { %v2886_v24 = vpop.f32.mrb[29].mxu0  ;;  %16815 = vmatpush3.bf16.msra.mxu0 %v16812_v43  ;;  %v22592_v43 = vld [vmem:[#allocation17_spill] sm:$0xff] }
 0x828   :  { %v16816_v61 = vpack.c.bf16 %v14146_v1, %v2886_v24  ;;  %v22595_v1 = vld [vmem:[#allocation20_spill] sm:$0xff]  ;;  %v22596_v24 = vld [vmem:[#allocation21_spill] sm:$0xff] }
 0x82a   :  { %16817 = vmatprep.subr.bf16.mxu0 %v16816_v61 }
 0x82b   :  { %16819 = vmatpush3.bf16.msra.mxu0 %v16816_v61  ;;  %v22598_v61 = vld [vmem:[#allocation23_spill] sm:$0xff] }
 0x82c   :  { %16853 = vmatprep.subr.bf16.mxu0 %v19961_v30 }
 0x82e   :  { %14156 = vmatmul.mubr.msk.f32.vlgmr.msra.gmra.mrb[20].mxu0 %vm281_vm0, %v11503_v62  ;;  %v11510_v62 = vld [vmem:[%s22348_s4 + $0x70] sm:$0xff] }
 0x82f   :  { %16855 = vmatpush3.bf16.msra.mxu0 %v19961_v30  ;;  %14204 = vmatprep.mubr.msk.f32.mxu0 %vm281_vm0, %v11506_v17  ;;  %v22593_v30 = vld [vmem:[#allocation18_spill] sm:$0xff] }
 0x830   :  { %16857 = vmatprep.subr.bf16.mxu0 %v19963_v9 }
 0x833   :  { %16859 = vmatpush3.bf16.msra.mxu0 %v19963_v9  ;;  %v22594_v9 = vld [vmem:[#allocation19_spill] sm:$0xff] }
 0x834   :  { %16861 = vmatprep.subr.bf16.mxu0 %v22591_v21 }
 0x836   :  { %14205 = vmatmul.mubr.msk.f32.vlgmr.msra.gmra.mrb[20].mxu0 %vm281_vm0, %v11507_v8 }
 0x837   :  { %16863 = vmatpush3.bf16.msra.mxu0 %v22591_v21  ;;  %14239 = vmatprep.mubr.f32.mxu0 %v19791_v56  ;;  %v22597_v56 = vld [vmem:[#allocation22_spill] sm:$0xff] }
 0x838   :  { %16865 = vmatprep.subr.bf16.mxu0 %v22592_v43 }
 0x83b   :  { %16867 = vmatpush3.bf16.msra.mxu0 %v22592_v43 }
 0x83c   :  { %16869 = vmatprep.subr.bf16.mxu0 %v22593_v30 }
 0x83f   :  { %16871 = vmatpush3.bf16.msra.mxu0 %v22593_v30 }
 0x840   :  { %16873 = vmatprep.subr.bf16.mxu0 %v22594_v9 }
 0x843   :  { %16875 = vmatpush3.bf16.msra.mxu0 %v22594_v9 }
 0x844   :  { %16877 = vmatprep.subr.bf16.mxu0 %v22595_v1 }
 0x847   :  { %16879 = vmatpush3.bf16.msra.mxu0 %v22595_v1 }
 0x848   :  { %16881 = vmatprep.subr.bf16.mxu0 %v22596_v24 }
 0x84b   :  { %16883 = vmatpush3.bf16.msra.mxu0 %v22596_v24 }
 0x84c   :  { %16885 = vmatprep.subr.bf16.mxu0 %v22597_v56 }
 0x84f   :  { %16887 = vmatpush3.bf16.msra.mxu0 %v22597_v56 }
 0x850   :  { %16889 = vmatprep.subr.bf16.mxu0 %v22598_v61 }
 0x853   :  { %16891 = vmatpush3.bf16.msra.mxu0 %v22598_v61 }
 0x856   :  { %14240 = vmatmul.mubr.f32.vlgmr.msra.gmra.mrb[30].mxu0 %v19794_v59  ;;  %v11511_v59 = vld [vmem:[%s22348_s4 + $0x78] sm:$0xff] }
 0x857   :  { %14242 = vmatprep.mubr.f32.mxu0 %v19803_v60  ;;  %v11514_v60 = vld [vmem:[%s22348_s4 + $0x80] sm:$0xff] }
 0x85a   :  { %14243 = vmatmul.mubr.f32.gmra.mrb[32].mxu0 %v19807_v39 }
 0x85b   :  { %14253 = vmatprep.mubr.msk.f32.mxu0 %vm281_vm0, %v11510_v62 }
 0x929   :  { %v14241_v17 = vpop.f32.mrb[30].mxu0 }
 0x92a   :  { %v3218_v8 = vpop.f32.mrb[31].mxu0 }
 0x92b   :  { %v16892_v33 = vpack.c.bf16 %v14241_v17, %v3218_v8  ;;  %v3498_v17 = vld [vmem:[%s22349_s5 + $0x10] sm:$0xff]  ;;  %v3499_v8 = vld [vmem:[%s22349_s5 + $0x18] sm:$0xff] }
 0x92d   :  { %v14244_v58 = vpop.f32.mrb[32].mxu0  ;;  %16893 = vmatprep.subr.bf16.mxu0 %v16892_v33 }
 0x92e   :  { %v3228_v14 = vpop.f32.mrb[33].mxu0  ;;  %16895 = vmatpush3.bf16.msra.mxu0 %v16892_v33 }
 0x92f   :  { %v16896_v29 = vpack.c.bf16 %v14244_v58, %v3228_v14  ;;  %v3496_v14 = vld [vmem:[%s22349_s5] sm:$0xff] }
 0x931   :  { %16897 = vmatprep.subr.bf16.mxu0 %v16896_v29 }
 0x932   :  { %16899 = vmatpush3.bf16.msra.mxu0 %v16896_v29  ;;  %v11515_v29 = vld [vmem:[%s22348_s4 + $0x88] sm:$0xff] }
 0x933   :  { %16933 = vmatprep.subr.bf16.mxu0 %v19965_v19 }
 0x935   :  { %14254 = vmatmul.mubr.msk.f32.vlgmr.msra.gmra.mrb[20].mxu0 %vm281_vm0, %v11511_v59 }
 0x936   :  { %16935 = vmatpush3.bf16.msra.mxu0 %v19965_v19  ;;  %14302 = vmatprep.mubr.msk.f32.mxu0 %vm281_vm0, %v11514_v60 }
 0x937   :  { %16937 = vmatprep.subr.bf16.mxu0 %v19967_v37 }
 0x93a   :  { %16939 = vmatpush3.bf16.msra.mxu0 %v19967_v37  ;;  %v3497_v37 = vld [vmem:[%s22349_s5 + $0x8] sm:$0xff] }
 0x93d   :  { %14303 = vmatmul.mubr.msk.f32.vlgmr.msra.gmra.mrb[20].mxu0 %vm281_vm0, %v11515_v29 }
 0x93e   :  { %14309 = vmatprep.mubr.msk.f32.mxu0 %vm3500_vm1, %v3496_v14 }
 0xa10   :  { %v14304_v58 = vpop.f32.mrb[20].mxu0 }
 0xa11   :  { %v3495_v33 = vmax.f32 %v14304_v58, 0.0  ;;  %v3483_v19 = vpop.f32.mrb[21].mxu0 }
 0xa12   :  { %v3494_v39 = vmax.f32 %v3483_v19, 0.0 }
 0xa14   :  { %v16940_v62 = vpack.c.bf16 %v3495_v33, %v3494_v39 }
 0xa16   :  { %16941 = vmatprep.subr.bf16.mxu0 %v16940_v62 }
 0xa17   :  { %16943 = vmatpush3.bf16.msra.mxu0 %v16940_v62 }
 0xa18   :  { %16977 = vmatprep.subr.bf16.mxu0 %v18740_v3 }
 0xa1a   :  { %14310 = vmatmul.mubr.msk.f32.vlgmr.msra.gmra.mrb[34].mxu0 %vm3500_vm1, %v3497_v37  ;;  %v11533_v37 = vld [vmem:[%s22350_s6 + $0x38] sm:$0xff] }
 0xa1b   :  { %14312 = vmatprep.mubr.msk.f32.mxu0 %vm3500_vm1, %v3498_v17  ;;  %16979 = vmatpush3.bf16.msra.mxu0 %v18740_v3  ;;  %v11536_v17 = vld [vmem:[%s22350_s6 + $0x40] sm:$0xff] }
 0xa1c   :  { %16981 = vmatprep.subr.bf16.mxu0 %v18745_v5 }
 0xa1e   :  { %14313 = vmatmul.mubr.msk.f32.gmra.mrb[36].mxu0 %vm3500_vm1, %v3499_v8  ;;  %v11537_v8 = vld [vmem:[%s22350_s6 + $0x48] sm:$0xff] }
 0xa1f   :  { %16983 = vmatpush3.bf16.msra.mxu0 %v18745_v5 }
 0xa20   :  { %16985 = vmatprep.subr.bf16.mxu0 %v18762_v10 }
 0xa23   :  { %16987 = vmatpush3.bf16.msra.mxu0 %v18762_v10 }
 0xa24   :  { %16989 = vmatprep.subr.bf16.mxu0 %v18795_v20 }
 0xa27   :  { %16991 = vmatpush3.bf16.msra.mxu0 %v18795_v20 }
 0xa28   :  { %16993 = vmatprep.subr.bf16.mxu0 %v18817_v26 }
 0xa2b   :  { %16995 = vmatpush3.bf16.msra.mxu0 %v18817_v26 }
 0xa2c   :  { %16997 = vmatprep.subr.bf16.mxu0 %v18837_v32 }
 0xa2f   :  { %16999 = vmatpush3.bf16.msra.mxu0 %v18837_v32 }
 0xa30   :  { %17001 = vmatprep.subr.bf16.mxu0 %v18857_v38 }
 0xa33   :  { %17003 = vmatpush3.bf16.msra.mxu0 %v18857_v38 }
 0xa34   :  { %17005 = vmatprep.subr.bf16.mxu0 %v18877_v44 }
 0xa37   :  { %17007 = vmatpush3.bf16.msra.mxu0 %v18877_v44 }
 0xa38   :  { %17025 = vmatprep.subr.bf16.mxu0 %v18897_v50 }
 0xaed   :  { %v14311_v3 = vpop.f32.mrb[34].mxu0 }
 0xaee   :  { %v20107_v5 = vadd.f32 %v14311_v3, %v19786_v7  ;;  %v3579_v10 = vpop.f32.mrb[35].mxu0  ;;  %v11540_v3 = vld [vmem:[%s22350_s6 + $0x50] sm:$0xff] }
 0xaef   :  { %v20110_v20 = vadd.f32 %v3579_v10, %v19788_v2  ;;  %v11541_v10 = vld [vmem:[%s22350_s6 + $0x58] sm:$0xff] }
 0xaf0   :  { %v20116_v38 = vmax.f32 %v20107_v5, 0.0 }
 0xaf1   :  { %v20113_v26 = vmax.f32 %v20110_v20, 0.0  ;;  %v14314_v32 = vpop.f32.mrb[36].mxu0 }
 0xaf2   :  { %v20119_v59 = vadd.f32 %v14314_v32, %v19796_v15  ;;  %v3589_v44 = vpop.f32.mrb[37].mxu0  ;;  %v22599_v32 = vld [vmem:[#allocation24_spill] sm:$0xff] }
 0xaf3   :  { %v20122_v60 = vadd.f32 %v3589_v44, %v19798_v12  ;;  %14347 = vmatprep.mubr.f32.mxu1 %v20113_v26  ;;  %14385 = vmatprep.mubr.f32.mxu0 %v20113_v26  ;;  %v22600_v44 = vld [vmem:[#allocation25_spill] sm:$0xff] }
 0xaf4   :  { %14348 = vmatmul.mubr.f32.vlgmr.msra.gmra.mrb[44].mxu1 %v20116_v38  ;;  %14386 = vmatmul.mubr.f32.vlgmr.msra.gmra.mrb[38].mxu0 %v20116_v38  ;;  %v20133_v2 = vmax.f32 %v20119_v59, 0.0 }
 0xaf5   :  { %v20129_v7 = vmax.f32 %v20122_v60, 0.0  ;;  %17027 = vmatpush3.bf16.msra.mxu0 %v18897_v50  ;;  %v11522_v50 = vld [vmem:[%s22350_s6 + $0x10] sm:$0xff] }
 0xaf6   :  { %17029 = vmatprep.subr.bf16.mxu0 %v18916_v55 }
 0xaf7   :  { %14350 = vmatprep.mubr.f32.mxu1 %v20129_v7  ;;  %14388 = vmatprep.mubr.f32.mxu0 %v20129_v7 }
 0xaf8   :  { %14351 = vmatmul.mubr.f32.gmra.mrb[46].mxu1 %v20133_v2  ;;  %14389 = vmatmul.mubr.f32.gmra.mrb[40].mxu0 %v20133_v2 }
 0xaf9   :  { %17031 = vmatpush3.bf16.msra.mxu0 %v18916_v55  ;;  %14445 = vmatprep.mubr.f32.mxu0 %v20113_v26 }
 0xafa   :  { %17033 = vmatprep.subr.bf16.mxu0 %v22577_v16  ;;  %14399 = vmatprep.mubr.msk.f32.mxu1 %vm281_vm0, %v11522_v50  ;;  %v22601_v50 = vld [vmem:[#allocation26_spill] sm:$0xff] }
 0xafd   :  { %17035 = vmatpush3.bf16.msra.mxu0 %v22577_v16 }
 0xafe   :  { %17037 = vmatprep.subr.bf16.mxu0 %v22578_v22 }
 0xb01   :  { %17039 = vmatpush3.bf16.msra.mxu0 %v22578_v22  ;;  %v11523_v22 = vld [vmem:[%s22350_s6 + $0x18] sm:$0xff] }
 0xb02   :  { %17041 = vmatprep.subr.bf16.mxu0 %v22579_v54 }
 0xb05   :  { %17043 = vmatpush3.bf16.msra.mxu0 %v22579_v54  ;;  %v3691_v54 = vld [vmem:[%s22350_s6] sm:$0xff] }
 0xb06   :  { %17045 = vmatprep.subr.bf16.mxu0 %v22580_v40 }
 0xb09   :  { %17047 = vmatpush3.bf16.msra.mxu0 %v22580_v40  ;;  %v3692_v40 = vld [vmem:[%s22350_s6 + $0x8] sm:$0xff] }
 0xb0a   :  { %17049 = vmatprep.subr.bf16.mxu0 %v22581_v42 }
 0xb0d   :  { %17051 = vmatpush3.bf16.msra.mxu0 %v22581_v42  ;;  %v11528_v42 = vld [vmem:[%s22350_s6 + $0x20] sm:$0xff] }
 0xb0e   :  { %17053 = vmatprep.subr.bf16.mxu0 %v22582_v46 }
 0xb11   :  { %17055 = vmatpush3.bf16.msra.mxu0 %v22582_v46 }
 0xb12   :  { %17105 = vmatprep.subr.bf16.mxu0 %v19014_v23 }
 0xb14   :  { %14446 = vmatmul.mubr.f32.vlgmr.msra.gmra.mrb[42].mxu0 %v20116_v38 }
 0xb15   :  { %14448 = vmatprep.mubr.f32.mxu0 %v20129_v7  ;;  %17107 = vmatpush3.bf16.msra.mxu0 %v19014_v23 }
 0xb16   :  { %17109 = vmatprep.subr.bf16.mxu0 %v19024_v27 }
 0xb18   :  { %14449 = vmatmul.mubr.f32.gmra.mrb[44].mxu0 %v20133_v2 }
 0xb19   :  { %17111 = vmatpush3.bf16.msra.mxu0 %v19024_v27  ;;  %14543 = vmatprep.mubr.f32.mxu0 %v20113_v26 }
 0xb1a   :  { %17113 = vmatprep.subr.bf16.mxu0 %v19034_v31 }
 0xb1d   :  { %17115 = vmatpush3.bf16.msra.mxu0 %v19034_v31 }
 0xb1e   :  { %17117 = vmatprep.subr.bf16.mxu0 %v19044_v36 }
 0xb21   :  { %17119 = vmatpush3.bf16.msra.mxu0 %v19044_v36 }
 0xb22   :  { %17121 = vmatprep.subr.bf16.mxu0 %v19054_v41 }
 0xb25   :  { %17123 = vmatpush3.bf16.msra.mxu0 %v19054_v41 }
 0xb26   :  { %17125 = vmatprep.subr.bf16.mxu0 %v19064_v45 }
 0xb29   :  { %17127 = vmatpush3.bf16.msra.mxu0 %v19064_v45 }
 0xb2a   :  { %17129 = vmatprep.subr.bf16.mxu0 %v19074_v49 }
 0xb2d   :  { %17131 = vmatpush3.bf16.msra.mxu0 %v19074_v49 }
 0xb2e   :  { %17133 = vmatprep.subr.bf16.mxu0 %v19084_v57 }
 0xb31   :  { %17135 = vmatpush3.bf16.msra.mxu0 %v19084_v57 }
 0xb32   :  { %17145 = vmatprep.subr.bf16.mxu0 %v22583_v52 }
 0xb34   :  { %14544 = vmatmul.mubr.f32.vlgmr.msra.gmra.mrb[46].mxu0 %v20116_v38 }
 0xb35   :  { %14546 = vmatprep.mubr.f32.mxu0 %v20129_v7  ;;  %17147 = vmatpush3.bf16.msra.mxu0 %v22583_v52 }
 0xb36   :  { %17149 = vmatprep.subr.bf16.mxu0 %v22584_v34 }
 0xb38   :  { %14547 = vmatmul.mubr.f32.gmra.mrb[48].mxu0 %v20133_v2 }
 0xb39   :  { %17151 = vmatpush3.bf16.msra.mxu0 %v22584_v34  ;;  %14592 = vmatprep.mubr.f32.mxu0 %v20113_v26 }
 0xb3a   :  { %17153 = vmatprep.subr.bf16.mxu0 %v22585_v28 }
 0xb3d   :  { %17155 = vmatpush3.bf16.msra.mxu0 %v22585_v28 }
 0xb3e   :  { %17157 = vmatprep.subr.bf16.mxu0 %v22586_v63 }
 0xb41   :  { %17159 = vmatpush3.bf16.msra.mxu0 %v22586_v63 }
 0xb42   :  { %17161 = vmatprep.subr.bf16.mxu0 %v22587_v51 }
 0xb45   :  { %17163 = vmatpush3.bf16.msra.mxu0 %v22587_v51 }
 0xb46   :  { %17165 = vmatprep.subr.bf16.mxu0 %v22588_v4 }
 0xb49   :  { %17167 = vmatpush3.bf16.msra.mxu0 %v22588_v4  ;;  %v11529_v4 = vld [vmem:[%s22350_s6 + $0x28] sm:$0xff] }
 0xb4a   :  { %17169 = vmatprep.subr.bf16.mxu0 %v22589_v48 }
 0xb4d   :  { %17171 = vmatpush3.bf16.msra.mxu0 %v22589_v48 }
 0xb4e   :  { %17173 = vmatprep.subr.bf16.mxu0 %v22590_v11 }
 0xb51   :  { %17175 = vmatpush3.bf16.msra.mxu0 %v22590_v11 }
 0xb52   :  { %17225 = vmatprep.subr.bf16.mxu0 %v22591_v21 }
 0xb54   :  { %14593 = vmatmul.mubr.f32.vlgmr.msra.gmra.mrb[50].mxu0 %v20116_v38 }
 0xb55   :  { %14595 = vmatprep.mubr.f32.mxu0 %v20129_v7  ;;  %17227 = vmatpush3.bf16.msra.mxu0 %v22591_v21 }
 0xb56   :  { %17229 = vmatprep.subr.bf16.mxu0 %v22592_v43 }
 0xb58   :  { %14596 = vmatmul.mubr.f32.gmra.mrb[52].mxu0 %v20133_v2 }
 0xb59   :  { %17231 = vmatpush3.bf16.msra.mxu0 %v22592_v43  ;;  %14690 = vmatprep.mubr.f32.mxu0 %v20113_v26 }
 0xb5a   :  { %17233 = vmatprep.subr.bf16.mxu0 %v22593_v30 }
 0xb5d   :  { %17235 = vmatpush3.bf16.msra.mxu0 %v22593_v30 }
 0xb5e   :  { %17237 = vmatprep.subr.bf16.mxu0 %v22594_v9 }
 0xb61   :  { %17239 = vmatpush3.bf16.msra.mxu0 %v22594_v9 }
 0xb62   :  { %17241 = vmatprep.subr.bf16.mxu0 %v22595_v1 }
 0xb65   :  { %17243 = vmatpush3.bf16.msra.mxu0 %v22595_v1 }
 0xb66   :  { %17245 = vmatprep.subr.bf16.mxu0 %v22596_v24 }
 0xb69   :  { %17247 = vmatpush3.bf16.msra.mxu0 %v22596_v24 }
 0xb6a   :  { %17249 = vmatprep.subr.bf16.mxu0 %v22597_v56 }
 0xb6d   :  { %17251 = vmatpush3.bf16.msra.mxu0 %v22597_v56 }
 0xb6e   :  { %17253 = vmatprep.subr.bf16.mxu0 %v22598_v61 }
 0xb71   :  { %17255 = vmatpush3.bf16.msra.mxu0 %v22598_v61 }
 0xb74   :  { %14691 = vmatmul.mubr.f32.vlgmr.msra.gmra.mrb[54].mxu0 %v20116_v38 }
 0xb75   :  { %14693 = vmatprep.mubr.f32.mxu0 %v20129_v7 }
 0xb78   :  { %14694 = vmatmul.mubr.f32.gmra.mrb[56].mxu0 %v20133_v2 }
 0xbc7   :  { %v14349_v55 = vpop.f32.mrb[44].mxu1  ;;  %v14387_v23 = vpop.f32.mrb[38].mxu0 }
 0xbc8   :  { %v3672_v27 = vpop.f32.mrb[45].mxu1  ;;  %v3759_v31 = vpop.f32.mrb[39].mxu0 }
 0xbc9   :  { %v17016_v36 = vpack.c.bf16 %v14349_v55, %v3672_v27  ;;  %v17008_v41 = vpack.c.bf16 %v14387_v23, %v3759_v31  ;;  %v22602_v55 = vld [vmem:[#allocation27_spill] sm:$0xff]  ;;  %v22603_v23 = vld [vmem:[#allocation28_spill] sm:$0xff]  ;;  %v22604_v27 = vld [vmem:[#allocation29_spill] sm:$0xff] }
 0xbca   :  { %v22605_v31 = vld [vmem:[#allocation30_spill] sm:$0xff] }
 0xbcb   :  { %v14352_v45 = vpop.f32.mrb[46].mxu1  ;;  %v14390_v49 = vpop.f32.mrb[40].mxu0  ;;  %17009 = vmatprep.subr.bf16.mxu1 %v17008_v41 }
 0xbcc   :  { %v3682_v57 = vpop.f32.mrb[47].mxu1  ;;  %v3769_v15 = vpop.f32.mrb[41].mxu0  ;;  %17011 = vmatpush3.bf16.msra.mxu1 %v17008_v41  ;;  %v11544_v41 = vld [vmem:[%s22350_s6 + $0x60] sm:$0xff] }
 0xbcd   :  { %v17020_v12 = vpack.c.bf16 %v14352_v45, %v3682_v57  ;;  %v17012_v16 = vpack.c.bf16 %v14390_v49, %v3769_v15 }
 0xbcf   :  { %17013 = vmatprep.subr.bf16.mxu1 %v17012_v16 }
 0xbd0   :  { %17015 = vmatpush3.bf16.msra.mxu1 %v17012_v16 }
 0xbd1   :  { %17017 = vmatprep.subr.bf16.mxu1 %v17016_v36 }
 0xbd3   :  { %14400 = vmatmul.mubr.msk.f32.vlgmr.msra.gmra.mrb[48].mxu1 %vm281_vm0, %v11523_v22  ;;  %v11545_v22 = vld [vmem:[%s22350_s6 + $0x68] sm:$0xff] }
 0xbd4   :  { %17019 = vmatpush3.bf16.msra.mxu1 %v17016_v36  ;;  %14410 = vmatprep.mubr.msk.f32.mxu1 %vm281_vm0, %v3691_v54  ;;  %v22606_v36 = vld [vmem:[#allocation31_spill] sm:$0xff]  ;;  %v11548_v54 = vld [vmem:[%s22350_s6 + $0x70] sm:$0xff] }
 0xbd5   :  { %17021 = vmatprep.subr.bf16.mxu1 %v17020_v12 }
 0xbd8   :  { %17023 = vmatpush3.bf16.msra.mxu1 %v17020_v12 }
 0xbdb   :  { %14411 = vmatmul.mubr.msk.f32.vlgmr.msra.gmra.mrb[48].mxu1 %vm281_vm0, %v3692_v40  ;;  %v11549_v40 = vld [vmem:[%s22350_s6 + $0x78] sm:$0xff] }
 0xbdc   :  { %14459 = vmatprep.mubr.msk.f32.mxu1 %vm281_vm0, %v11528_v42  ;;  %v22607_v42 = vld [vmem:[#allocation32_spill] sm:$0xff] }
 0xbe7   :  { %v14447_v46 = vpop.f32.mrb[42].mxu0 }
 0xbe8   :  { %v4009_v52 = vpop.f32.mrb[43].mxu0 }
 0xbe9   :  { %v17056_v34 = vpack.c.bf16 %v14447_v46, %v4009_v52  ;;  %v22608_v46 = vld [vmem:[#allocation33_spill] sm:$0xff]  ;;  %v22609_v52 = vld [vmem:[#allocation34_spill] sm:$0xff] }
 0xbeb   :  { %v14450_v28 = vpop.f32.mrb[44].mxu0  ;;  %17057 = vmatprep.subr.bf16.mxu1 %v17056_v34 }
 0xbec   :  { %v4019_v63 = vpop.f32.mrb[45].mxu0  ;;  %17059 = vmatpush3.bf16.msra.mxu1 %v17056_v34  ;;  %v22610_v34 = vld [vmem:[#allocation35_spill] sm:$0xff] }
 0xbed   :  { %v17060_v51 = vpack.c.bf16 %v14450_v28, %v4019_v63  ;;  %v22611_v28 = vld [vmem:[#allocation36_spill] sm:$0xff]  ;;  %v22612_v63 = vld [vmem:[#allocation37_spill] sm:$0xff] }
 0xbef   :  { %17061 = vmatprep.subr.bf16.mxu1 %v17060_v51 }
 0xbf0   :  { %17063 = vmatpush3.bf16.msra.mxu1 %v17060_v51  ;;  %v22614_v51 = vld [vmem:[#allocation39_spill] sm:$0xff] }
 0xbf1   :  { %17065 = vmatprep.subr.bf16.mxu1 %v19214_v6 }
 0xbf3   :  { %14460 = vmatmul.mubr.msk.f32.vlgmr.msra.gmra.mrb[48].mxu1 %vm281_vm0, %v11529_v4  ;;  %v11552_v4 = vld [vmem:[%s22350_s6 + $0x80] sm:$0xff] }
 0xbf4   :  { %17067 = vmatpush3.bf16.msra.mxu1 %v19214_v6  ;;  %14494 = vmatprep.mubr.f32.mxu1 %v20113_v26 }
 0xbf5   :  { %17069 = vmatprep.subr.bf16.mxu1 %v19226_v18 }
 0xbf8   :  { %17071 = vmatpush3.bf16.msra.mxu1 %v19226_v18 }
 0xbf9   :  { %17073 = vmatprep.subr.bf16.mxu1 %v19244_v35 }
 0xbfc   :  { %17075 = vmatpush3.bf16.msra.mxu1 %v19244_v35 }
 0xbfd   :  { %17077 = vmatprep.subr.bf16.mxu1 %v19256_v47 }
 0xc00   :  { %17079 = vmatpush3.bf16.msra.mxu1 %v19256_v47 }
 0xc01   :  { %17081 = vmatprep.subr.bf16.mxu1 %v19266_v53 }
 0xc04   :  { %17083 = vmatpush3.bf16.msra.mxu1 %v19266_v53 }
 0xc05   :  { %17085 = vmatprep.subr.bf16.mxu1 %v19276_v0 }
 0xc07   :  { %v14545_v6 = vpop.f32.mrb[46].mxu0 }
 0xc08   :  { %17087 = vmatpush3.bf16.msra.mxu1 %v19276_v0  ;;  %v4351_v48 = vpop.f32.mrb[47].mxu0 }
 0xc09   :  { %v17136_v11 = vpack.c.bf16 %v14545_v6, %v4351_v48  ;;  %17089 = vmatprep.subr.bf16.mxu1 %v19286_v13 }
 0xc0b   :  { %v14548_v18 = vpop.f32.mrb[48].mxu0 }
 0xc0c   :  { %17091 = vmatpush3.bf16.msra.mxu1 %v19286_v13  ;;  %v4361_v35 = vpop.f32.mrb[49].mxu0 }
 0xc0d   :  { %v17140_v21 = vpack.c.bf16 %v14548_v18, %v4361_v35  ;;  %17093 = vmatprep.subr.bf16.mxu1 %v19296_v25 }
 0xc10   :  { %17095 = vmatpush3.bf16.msra.mxu1 %v19296_v25  ;;  %v11532_v25 = vld [vmem:[%s22350_s6 + $0x30] sm:$0xff] }
 0xc13   :  { %14495 = vmatmul.mubr.f32.vlgmr.msra.gmra.mrb[50].mxu1 %v20116_v38 }
 0xc14   :  { %14497 = vmatprep.mubr.f32.mxu1 %v20129_v7 }
 0xc17   :  { %14498 = vmatmul.mubr.f32.gmra.mrb[52].mxu1 %v20133_v2 }
 0xc18   :  { %14508 = vmatprep.mubr.msk.f32.mxu1 %vm281_vm0, %v11532_v25 }
 0xc27   :  { %v14594_v47 = vpop.f32.mrb[50].mxu0 }
 0xc28   :  { %v4522_v53 = vpop.f32.mrb[51].mxu0 }
 0xc29   :  { %v17176_v0 = vpack.c.bf16 %v14594_v47, %v4522_v53 }
 0xc2b   :  { %v14597_v43 = vpop.f32.mrb[52].mxu0 }
 0xc2c   :  { %v4532_v30 = vpop.f32.mrb[53].mxu0 }
 0xc2d   :  { %v17180_v9 = vpack.c.bf16 %v14597_v43, %v4532_v30  ;;  %v5143_v30 = vld [vmem:[%s22351_s7 + $0x8] sm:$0xff] }
 0xc47   :  { %v14692_v1 = vpop.f32.mrb[54].mxu0 }
 0xc48   :  { %v4864_v13 = vpop.f32.mrb[55].mxu0 }
 0xc49   :  { %v20261_v24 = vpack.c.bf16 %v14692_v1, %v4864_v13  ;;  %v5145_v1 = vld [vmem:[%s22351_s7 + $0x18] sm:$0xff]  ;;  %v5251_v13 = vld [vmem:[%s22352_s8] sm:$0xff] }
 0xc4b   :  { %v14695_v56 = vpop.f32.mrb[56].mxu0 }
 0xc4c   :  { %v4874_v61 = vpop.f32.mrb[57].mxu0 }
 0xc4d   :  { %v20263_v29 = vpack.c.bf16 %v14695_v56, %v4874_v61 }
 0xce6   :  { %v14496_v14 = vpop.f32.mrb[50].mxu1 }
 0xce7   :  { %v4180_v58 = vpop.f32.mrb[51].mxu1 }
 0xce8   :  { %v17096_v33 = vpack.c.bf16 %v14496_v14, %v4180_v58 }
 0xcea   :  { %v14499_v19 = vpop.f32.mrb[52].mxu1  ;;  %17097 = vmatprep.subr.bf16.mxu1 %v17096_v33 }
 0xceb   :  { %v4190_v39 = vpop.f32.mrb[53].mxu1  ;;  %17099 = vmatpush3.bf16.msra.mxu1 %v17096_v33 }
 0xcec   :  { %v17100_v62 = vpack.c.bf16 %v14499_v19, %v4190_v39 }
 0xcee   :  { %17101 = vmatprep.subr.bf16.mxu1 %v17100_v62 }
 0xcef   :  { %17103 = vmatpush3.bf16.msra.mxu1 %v17100_v62 }
 0xcf0   :  { %17137 = vmatprep.subr.bf16.mxu1 %v17136_v11 }
 0xcf2   :  { %14509 = vmatmul.mubr.msk.f32.vlgmr.msra.gmra.mrb[48].mxu1 %vm281_vm0, %v11533_v37 }
 0xcf3   :  { %17139 = vmatpush3.bf16.msra.mxu1 %v17136_v11  ;;  %14557 = vmatprep.mubr.msk.f32.mxu1 %vm281_vm0, %v11536_v17 }
 0xcf4   :  { %17141 = vmatprep.subr.bf16.mxu1 %v17140_v21 }
 0xcf7   :  { %17143 = vmatpush3.bf16.msra.mxu1 %v17140_v21 }
 0xcf8   :  { %17177 = vmatprep.subr.bf16.mxu1 %v17176_v0 }
 0xcfa   :  { %14558 = vmatmul.mubr.msk.f32.vlgmr.msra.gmra.mrb[48].mxu1 %vm281_vm0, %v11537_v8 }
 0xcfb   :  { %17179 = vmatpush3.bf16.msra.mxu1 %v17176_v0  ;;  %14606 = vmatprep.mubr.msk.f32.mxu1 %vm281_vm0, %v11540_v3  ;;  %v5267_v3 = vpop.permute.xlu1 %5266 }
 0xcfc   :  { %17181 = vmatprep.subr.bf16.mxu1 %v17180_v9 }
 0xcff   :  { %17183 = vmatpush3.bf16.msra.mxu1 %v17180_v9  ;;  %v5144_v9 = vld [vmem:[%s22351_s7 + $0x10] sm:$0xff] }
 0xd00   :  { %17185 = vmatprep.subr.bf16.mxu1 %v22599_v32 }
 0xd02   :  { %14607 = vmatmul.mubr.msk.f32.vlgmr.msra.gmra.mrb[48].mxu1 %vm281_vm0, %v11541_v10  ;;  %v5262_v10 = vpop.permute.xlu0 %5261 }
 0xd03   :  { %17187 = vmatpush3.bf16.msra.mxu1 %v22599_v32  ;;  %14641 = vmatprep.mubr.f32.mxu1 %v20113_v26 }
 0xd04   :  { %17189 = vmatprep.subr.bf16.mxu1 %v22600_v44 }
 0xd07   :  { %17191 = vmatpush3.bf16.msra.mxu1 %v22600_v44 }
 0xd08   :  { %17193 = vmatprep.subr.bf16.mxu1 %v22601_v50 }
 0xd0b   :  { %17195 = vmatpush3.bf16.msra.mxu1 %v22601_v50 }
 0xd0c   :  { %17197 = vmatprep.subr.bf16.mxu1 %v22602_v55 }
 0xd0f   :  { %17199 = vmatpush3.bf16.msra.mxu1 %v22602_v55 }
 0xd10   :  { %17201 = vmatprep.subr.bf16.mxu1 %v22603_v23 }
 0xd13   :  { %17203 = vmatpush3.bf16.msra.mxu1 %v22603_v23  ;;  %v5277_v23 = vpop.permute.xlu1 %5276 }
 0xd14   :  { %17205 = vmatprep.subr.bf16.mxu1 %v22604_v27 }
 0xd17   :  { %17207 = vmatpush3.bf16.msra.mxu1 %v22604_v27 }
 0xd18   :  { %17209 = vmatprep.subr.bf16.mxu1 %v22605_v31 }
 0xd1b   :  { %17211 = vmatpush3.bf16.msra.mxu1 %v22605_v31 }
 0xd1c   :  { %17213 = vmatprep.subr.bf16.mxu1 %v22606_v36 }
 0xd1f   :  { %17215 = vmatpush3.bf16.msra.mxu1 %v22606_v36  ;;  %v5272_v36 = vpop.permute.xlu0 %5271 }
 0xd22   :  { %14642 = vmatmul.mubr.f32.vlgmr.msra.gmra.mrb[54].mxu1 %v20116_v38 }
 0xd23   :  { %14644 = vmatprep.mubr.f32.mxu1 %v20129_v7 }
 0xd26   :  { %14645 = vmatmul.mubr.f32.gmra.mrb[56].mxu1 %v20133_v2 }
 0xd27   :  { %14655 = vmatprep.mubr.msk.f32.mxu1 %vm281_vm0, %v11544_v41 }
 0xdf5   :  { %v14643_v45 = vpop.f32.mrb[54].mxu1 }
 0xdf6   :  { %v4693_v49 = vpop.f32.mrb[55].mxu1 }
 0xdf7   :  { %v17216_v57 = vpack.c.bf16 %v14643_v45, %v4693_v49 }
 0xdf9   :  { %v14646_v15 = vpop.f32.mrb[56].mxu1  ;;  %17217 = vmatprep.subr.bf16.mxu1 %v17216_v57 }
 0xdfa   :  { %v4703_v12 = vpop.f32.mrb[57].mxu1  ;;  %17219 = vmatpush3.bf16.msra.mxu1 %v17216_v57 }
 0xdfb   :  { %v17220_v16 = vpack.c.bf16 %v14646_v15, %v4703_v12  ;;  %v18613_v15 = vld [vmem:[%s22346_s10 + $0x8] sm:$0xff]  ;;  %v18614_v12 = vld [vmem:[%s22346_s10 + $0x10] sm:$0xff] }
 0xdfd   :  { %17221 = vmatprep.subr.bf16.mxu1 %v17220_v16 }
 0xdfe   :  { %17223 = vmatpush3.bf16.msra.mxu1 %v17220_v16  ;;  %v18615_v16 = vld [vmem:[%s22346_s10 + $0x18] sm:$0xff] }
 0xdff   :  { %17257 = vmatprep.subr.bf16.mxu1 %v20261_v24 }
 0xe01   :  { %14656 = vmatmul.mubr.msk.f32.vlgmr.msra.gmra.mrb[48].mxu1 %vm281_vm0, %v11545_v22  ;;  %v18616_v22 = vld [vmem:[%s22346_s10 + $0x20] sm:$0xff] }
 0xe02   :  { %17259 = vmatpush3.bf16.msra.mxu1 %v20261_v24  ;;  %14704 = vmatprep.mubr.msk.f32.mxu1 %vm281_vm0, %v11548_v54  ;;  %v18617_v54 = vld [vmem:[%s22346_s10 + $0x28] sm:$0xff] }
 0xe03   :  { %17261 = vmatprep.subr.bf16.mxu1 %v20263_v29 }
 0xe06   :  { %17263 = vmatpush3.bf16.msra.mxu1 %v20263_v29 }
 0xe07   :  { %17265 = vmatprep.subr.bf16.mxu1 %v22607_v42 }
 0xe09   :  { %14705 = vmatmul.mubr.msk.f32.vlgmr.msra.gmra.mrb[48].mxu1 %vm281_vm0, %v11549_v40  ;;  %v18618_v40 = vld [vmem:[%s22346_s10 + $0x30] sm:$0xff] }
 0xe0a   :  { %17267 = vmatpush3.bf16.msra.mxu1 %v22607_v42  ;;  %14739 = vmatprep.mubr.f32.mxu1 %v20113_v26  ;;  %v22613_v26 = vld [vmem:[#allocation38_spill] sm:$0xff]  ;;  %v18619_v42 = vld [vmem:[%s22346_s10 + $0x38] sm:$0xff] }
 0xe0b   :  { %17269 = vmatprep.subr.bf16.mxu1 %v22608_v46 }
 0xe0e   :  { %17271 = vmatpush3.bf16.msra.mxu1 %v22608_v46  ;;  %v18620_v46 = vld [vmem:[%s22346_s10 + $0x40] sm:$0xff] }
 0xe0f   :  { %17273 = vmatprep.subr.bf16.mxu1 %v22609_v52 }
 0xe12   :  { %17275 = vmatpush3.bf16.msra.mxu1 %v22609_v52  ;;  %v18621_v52 = vld [vmem:[%s22346_s10 + $0x48] sm:$0xff] }
 0xe13   :  { %17277 = vmatprep.subr.bf16.mxu1 %v22610_v34 }
 0xe16   :  { %17279 = vmatpush3.bf16.msra.mxu1 %v22610_v34  ;;  %v18622_v34 = vld [vmem:[%s22346_s10 + $0x50] sm:$0xff] }
 0xe17   :  { %17281 = vmatprep.subr.bf16.mxu1 %v22611_v28 }
 0xe1a   :  { %17283 = vmatpush3.bf16.msra.mxu1 %v22611_v28  ;;  %v18623_v28 = vld [vmem:[%s22346_s10 + $0x58] sm:$0xff] }
 0xe1b   :  { %17285 = vmatprep.subr.bf16.mxu1 %v22612_v63 }
 0xe1e   :  { %17287 = vmatpush3.bf16.msra.mxu1 %v22612_v63  ;;  %v18624_v63 = vld [vmem:[%s22346_s10 + $0x60] sm:$0xff] }
 0xe1f   :  { %17289 = vmatprep.subr.bf16.mxu1 %v22613_v26 }
 0xe22   :  { %17291 = vmatpush3.bf16.msra.mxu1 %v22613_v26  ;;  %v18625_v26 = vld [vmem:[%s22346_s10 + $0x68] sm:$0xff] }
 0xe23   :  { %17293 = vmatprep.subr.bf16.mxu1 %v22614_v51 }
 0xe26   :  { %17295 = vmatpush3.bf16.msra.mxu1 %v22614_v51  ;;  %v18626_v51 = vld [vmem:[%s22346_s10 + $0x70] sm:$0xff] }
 0xe29   :  { %14740 = vmatmul.mubr.f32.vlgmr.msra.gmra.mrb[58].mxu1 %v20116_v38  ;;  %v11553_v38 = vld [vmem:[%s22350_s6 + $0x88] sm:$0xff] }
 0xe2a   :  { %14742 = vmatprep.mubr.f32.mxu1 %v20129_v7  ;;  %v5142_v7 = vld [vmem:[%s22351_s7] sm:$0xff] }
 0xe2b   :  { %14760 = vmatprep.mubr.msk.f32.mxu0 %vm3500_vm1, %v5142_v7 }
 0xe2d   :  { %14743 = vmatmul.mubr.f32.gmra.mrb[60].mxu1 %v20133_v2 }
 0xe2e   :  { %14753 = vmatprep.mubr.msk.f32.mxu1 %vm281_vm0, %v11552_v4  ;;  %v18627_v4 = vld [vmem:[%s22346_s10 + $0x78] sm:$0xff] }
 0xefc   :  { %v14741_v6 = vpop.f32.mrb[58].mxu1 }
 0xefd   :  { %v5035_v48 = vpop.f32.mrb[59].mxu1 }
 0xefe   :  { %v17296_v11 = vpack.c.bf16 %v14741_v6, %v5035_v48  ;;  %v5414_v6 = vpop.xlane.xlu0 %5413 }
 0xf00   :  { %v14744_v18 = vpop.f32.mrb[60].mxu1  ;;  %17297 = vmatprep.subr.bf16.mxu1 %v17296_v11 }
 0xf01   :  { %v5045_v35 = vpop.f32.mrb[61].mxu1  ;;  %17299 = vmatpush3.bf16.msra.mxu1 %v17296_v11  ;;  %v5392_v11 = vld [vmem:[%s22353_s11] sm:$0xff] }
 0xf02   :  { %v17300_v21 = vpack.c.bf16 %v14744_v18, %v5045_v35  ;;  %v5420_v48 = vpop.xlane.xlu0 %5419  ;;  %v5417_v35 = vpop.xlane.xlu1 %5416 }
 0xf04   :  { %17301 = vmatprep.subr.bf16.mxu1 %v17300_v21 }
 0xf05   :  { %17303 = vmatpush3.bf16.msra.mxu1 %v17300_v21 }
 0xf06   :  { %v5423_v18 = vpop.xlane.xlu0 %5422  ;;  %v5426_v7 = vpop.xlane.xlu1 %5425 }
 0xf08   :  { %14754 = vmatmul.mubr.msk.f32.vlgmr.msra.gmra.mrb[48].mxu1 %vm281_vm0, %v11553_v38 }
 0xf0a   :  { %v5429_v21 = vpop.xlane.xlu0 %5428 }
 0xfdb   :  { %v14755_v2 = vpop.f32.mrb[48].mxu1 }
 0xfdc   :  { %v5141_v47 = vmax.f32 %v14755_v2, 0.0  ;;  %v5129_v53 = vpop.f32.mrb[49].mxu1 }
 0xfdd   :  { %v5140_v0 = vmax.f32 %v5129_v53, 0.0 }
 0xfdf   :  { %v17304_v43 = vpack.c.bf16 %v5141_v47, %v5140_v0  ;;  %v5435_v0 = vpop.xlane.xlu0 %5434 }
 0xfe1   :  { %17305 = vmatprep.subr.bf16.mxu0 %v17304_v43 }
 0xfe2   :  { %17307 = vmatpush3.bf16.msra.mxu0 %v17304_v43  ;;  %v5432_v43 = vpop.xlane.xlu1 %5431 }
 0xfe5   :  { %14761 = vmatmul.mubr.msk.f32.vlgmr.msra.gmra.mrb[58].mxu0 %vm3500_vm1, %v5143_v30 }
 0xfe6   :  { %14763 = vmatprep.mubr.msk.f32.mxu0 %vm3500_vm1, %v5144_v9 }
 0xfe9   :  { %14764 = vmatmul.mubr.msk.f32.gmra.mrb[60].mxu0 %vm3500_vm1, %v5145_v1 }
 0xfea   :  { %14774 = vmatprep.mubr.msk.f32.mxu0 %vm281_vm0, %v5251_v13 }
0x10b8   :  { %v14762_v24 = vpop.f32.mrb[58].mxu0 }
0x10b9   :  { %v5244_v56 = vadd.f32 %v14762_v24, %v20107_v5  ;;  %v5224_v61 = vpop.f32.mrb[59].mxu0  ;;  %v5252_v5 = vld [vmem:[%s22352_s8 + $0x8] sm:$0xff] }
0x10ba   :  { %v5243_v29 = vadd.f32 %v5224_v61, %v20110_v20  ;;  %v5253_v20 = vld [vmem:[%s22352_s8 + $0x10] sm:$0xff] }
0x10bb   :  { %v5248_v25 = vmax.f32 %v5244_v56, 0.0 }
0x10bc   :  { %v5247_v14 = vmax.f32 %v5243_v29, 0.0  ;;  %v14765_v58 = vpop.f32.mrb[60].mxu0 }
0x10bd   :  { %v5246_v33 = vadd.f32 %v14765_v58, %v20119_v59  ;;  %v5234_v19 = vpop.f32.mrb[61].mxu0  ;;  %v5254_v59 = vld [vmem:[%s22352_s8 + $0x18] sm:$0xff] }
0x10be   :  { %v17308_v39 = vpack.c.bf16 %v5248_v25, %v5247_v14  ;;  %v5245_v62 = vadd.f32 %v5234_v19, %v20122_v60  ;;  %v18612_v60 = vld [vmem:[%s22346_s10] sm:$0xff]  ;;  %v5441_v14 = vpop.xlane.xlu0 %5440 }
0x10bf   :  { %v5250_v37 = vmax.f32 %v5246_v33, 0.0 }
0x10c0   :  { %v5249_v17 = vmax.f32 %v5245_v62, 0.0  ;;  %17309 = vmatprep.subr.bf16.mxu0 %v17308_v39  ;;  %v5438_v62 = vpop.xlane.xlu1 %5437 }
0x10c1   :  { %17311 = vmatpush3.bf16.msra.mxu0 %v17308_v39 }
0x10c2   :  { %v17312_v8 = vpack.c.bf16 %v5250_v37, %v5249_v17 }
0x10c4   :  { %17313 = vmatprep.subr.bf16.mxu0 %v17312_v8 }
0x10c5   :  { %17315 = vmatpush3.bf16.msra.mxu0 %v17312_v8 }
0x10c8   :  { %14775 = vmatmul.mubr.msk.f32.vlgmr.msra.gmra.mrb[62].mxu0 %vm281_vm0, %v5252_v5 }
0x10c9   :  { %14777 = vmatprep.mubr.msk.f32.mxu0 %vm281_vm0, %v5253_v20 }
0x10cc   :  { %14778 = vmatmul.mubr.msk.f32.gmra.mrb[64].mxu0 %vm281_vm0, %v5254_v59 }
0x10cd   :  { %14788 = vmatprep.mubr.msk.f32.mxu0 %vm281_vm0, %v18612_v60 }
0x119b   :  { %v14776_v32 = vpop.f32.mrb[62].mxu0 }
0x119c   :  { %v20397_v44 = vadd.f32 %v14776_v32, %v5267_v3  ;;  %v5357_v50 = vpop.f32.mrb[63].mxu0 }
0x119d   :  { %v20399_v55 = vadd.f32 %v5357_v50, %v5262_v10 }
0x119f   :  { %v17316_v27 = vpack.c.bf16 %v20397_v44, %v20399_v55  ;;  %v14779_v31 = vpop.f32.mrb[64].mxu0 }
0x11a0   :  { %v20403_v41 = vadd.f32 %v14779_v31, %v5277_v23  ;;  %v5367_v45 = vpop.f32.mrb[65].mxu0  ;;  %v5447_v31 = vpop.xlane.xlu0 %5446 }
0x11a1   :  { %v20405_v49 = vadd.f32 %v5367_v45, %v5272_v36  ;;  %17317 = vmatprep.subr.bf16.mxu0 %v17316_v27 }
0x11a2   :  { %17319 = vmatpush3.bf16.msra.mxu0 %v17316_v27 }
0x11a3   :  { %v17320_v57 = vpack.c.bf16 %v20403_v41, %v20405_v49 }
0x11a5   :  { %17321 = vmatprep.subr.bf16.mxu0 %v17320_v57 }
0x11a6   :  { %17323 = vmatpush3.bf16.msra.mxu0 %v17320_v57  ;;  %v5444_v57 = vpop.xlane.xlu1 %5443 }
0x11a9   :  { %14789 = vmatmul.mubr.msk.f32.vlgmr.msra.gmra.mrb[66].mxu0 %vm281_vm0, %v18613_v15 }
0x11aa   :  { %14791 = vmatprep.mubr.msk.f32.mxu0 %vm281_vm0, %v18614_v12 }
0x11ad   :  { %14792 = vmatmul.mubr.msk.f32.gmra.mrb[68].mxu0 %vm281_vm0, %v18615_v16 }
0x11ae   :  { %14794 = vmatprep.mubr.msk.f32.mxu0 %vm281_vm0, %v18616_v22 }
0x11b1   :  { %14795 = vmatmul.mubr.msk.f32.gmra.mrb[70].mxu0 %vm281_vm0, %v18617_v54 }
0x11b2   :  { %14797 = vmatprep.mubr.msk.f32.mxu0 %vm281_vm0, %v18618_v40 }
0x11b5   :  { %14798 = vmatmul.mubr.msk.f32.gmra.mrb[72].mxu0 %vm281_vm0, %v18619_v42 }
0x11b6   :  { %14800 = vmatprep.mubr.msk.f32.mxu0 %vm281_vm0, %v18620_v46 }
0x11b9   :  { %14801 = vmatmul.mubr.msk.f32.gmra.mrb[74].mxu0 %vm281_vm0, %v18621_v52 }
0x11ba   :  { %14803 = vmatprep.mubr.msk.f32.mxu0 %vm281_vm0, %v18622_v34  ;;  %v5453_v34 = vpop.xlane.xlu0 %5452 }
0x11bd   :  { %14804 = vmatmul.mubr.msk.f32.gmra.mrb[76].mxu0 %vm281_vm0, %v18623_v28 }
0x11be   :  { %14806 = vmatprep.mubr.msk.f32.mxu0 %vm281_vm0, %v18624_v63 }
0x11c1   :  { %14807 = vmatmul.mubr.msk.f32.gmra.mrb[78].mxu0 %vm281_vm0, %v18625_v26  ;;  %v5450_v26 = vpop.xlane.xlu1 %5449 }
0x11c2   :  { %14809 = vmatprep.mubr.msk.f32.mxu0 %vm281_vm0, %v18626_v51 }
0x11c5   :  { %14810 = vmatmul.mubr.msk.f32.gmra.mrb[80].mxu0 %vm281_vm0, %v18627_v4 }
0x11c6   :  { %14844 = vmatprep.mubr.f32.mxu0 %v5392_v11 }
0x127c   :  { %v14790_v38 = vpop.f32.mrb[66].mxu0 }
0x127d   :  { %v5574_v2 = vpop.f32.mrb[67].mxu0  ;;  %v5654_v30 = vmul.f32 2.0, %v14790_v38 }
0x127e   :  { %v5653_v9 = vmul.f32 2.0, %v5574_v2 }
0x127f   :  { %v20472_v61 = vsub.f32 %v5417_v35, %v5654_v30 }
0x1280   :  { %v14793_v47 = vpop.f32.mrb[68].mxu0  ;;  %v20476_v58 = vsub.f32 %v5414_v6, %v5653_v9 }
0x1281   :  { %v5584_v53 = vpop.f32.mrb[69].mxu0  ;;  %v5656_v29 = vmul.f32 2.0, %v14793_v47  ;;  %v5459_v47 = vpop.xlane.xlu0 %5458 }
0x1282   :  { %v5655_v33 = vmul.f32 2.0, %v5584_v53 }
0x1283   :  { %v20484_v59 = vsub.f32 %v5423_v18, %v5656_v29 }
0x1284   :  { %v14796_v1 = vpop.f32.mrb[70].mxu0  ;;  %v20488_v3 = vsub.f32 %v5420_v48, %v5655_v33 }
0x1285   :  { %v5658_v13 = vmul.f32 2.0, %v14796_v1  ;;  %v5594_v24 = vpop.f32.mrb[71].mxu0 }
0x1286   :  { %v5657_v56 = vmul.f32 2.0, %v5594_v24 }
0x1287   :  { %v20474_v25 = vsub.f32 %v5429_v21, %v5658_v13 }
0x1288   :  { %v20478_v19 = vsub.f32 %v5426_v7, %v5657_v56  ;;  %v14799_v39 = vpop.f32.mrb[72].mxu0 }
0x1289   :  { %v5703_v37 = vmin.f32 %v20472_v61, %v20474_v25  ;;  %v5660_v17 = vmul.f32 2.0, %v14799_v39  ;;  %v5604_v8 = vpop.f32.mrb[73].mxu0 }
0x128a   :  { %v5702_v5 = vmin.f32 %v20476_v58, %v20478_v19  ;;  %v5659_v20 = vmul.f32 2.0, %v5604_v8 }
0x128b   :  { %v20486_v60 = vsub.f32 %v5435_v0, %v5660_v17 }
0x128c   :  { %v20490_v10 = vsub.f32 %v5432_v43, %v5659_v20  ;;  %v14802_v32 = vpop.f32.mrb[74].mxu0  ;;  %v5456_v43 = vpop.xlane.xlu1 %5455 }
0x128d   :  { %v5705_v50 = vmin.f32 %v20484_v59, %v20486_v60  ;;  %v5662_v23 = vmul.f32 2.0, %v14802_v32  ;;  %v5614_v27 = vpop.f32.mrb[75].mxu0 }
0x128e   :  { %v5704_v36 = vmin.f32 %v20488_v3, %v20490_v10  ;;  %v5661_v45 = vmul.f32 2.0, %v5614_v27 }
0x128f   :  { %v20496_v15 = vsub.f32 %v5441_v14, %v5662_v23  ;;  %v22441_v14 = vlaneseq }
0x1290   :  { %v20498_v12 = vsub.f32 %v5438_v62, %v5661_v45  ;;  %v14805_v16 = vpop.f32.mrb[76].mxu0 }
0x1291   :  { %v5707_v22 = vmin.f32 %v5703_v37, %v20496_v15  ;;  %v5664_v54 = vmul.f32 2.0, %v14805_v16  ;;  %v5624_v40 = vpop.f32.mrb[77].mxu0  ;;  %v20509_v62 = vshrl.u32 %v22441_v14, 7 }
0x1292   :  { %v5706_v42 = vmin.f32 %v5702_v5, %v20498_v12  ;;  %v5663_v46 = vmul.f32 2.0, %v5624_v40 }
0x1293   :  { %v5680_v52 = vsub.f32 %v5447_v31, %v5664_v54  ;;  %v20512_v8 = vadd.s32 16, %v20509_v62  ;;  %v20515_v5 = vadd.s32 24, %v20509_v62  ;;  %v20518_v32 = vadd.s32 48, %v20509_v62 }
0x1294   :  { %v5679_v28 = vsub.f32 %v5444_v57, %v5663_v46  ;;  %v14808_v63 = vpop.f32.mrb[78].mxu0  ;;  %v20524_v23 = vadd.s32 80, %v20509_v62  ;;  %v20527_v27 = vadd.s32 88, %v20509_v62  ;;  %v20530_v31 = vadd.s32 112, %v20509_v62 }
0x1295   :  { %v5709_v51 = vmin.f32 %v5705_v50, %v5680_v52  ;;  %v5666_v4 = vmul.f32 2.0, %v14808_v63  ;;  %v5634_v6 = vpop.f32.mrb[79].mxu0  ;;  %v20521_v50 = vadd.s32 56, %v20509_v62  ;;  %v20536_v57 = vadd.s32 8, %v20509_v62 }
0x1296   :  { %v5708_v48 = vmin.f32 %v5704_v36, %v5679_v28  ;;  %v5665_v11 = vmul.f32 2.0, %v5634_v6  ;;  %v20533_v36 = vadd.s32 120, %v20509_v62  ;;  %v20539_v16 = vadd.s32 32, %v20509_v62 }
0x1297   :  { %v20502_v18 = vsub.f32 %v5453_v34, %v5666_v4  ;;  %v20545_v54 = vadd.s32 64, %v20509_v62  ;;  %v20548_v40 = vadd.s32 72, %v20509_v62 }
0x1298   :  { %v20504_v35 = vsub.f32 %v5450_v26, %v5665_v11  ;;  %v14811_v21 = vpop.f32.mrb[80].mxu0 }
0x1299   :  { %v5711_v38 = vmin.f32 %v5707_v22, %v20502_v18  ;;  %v5668_v7 = vmul.f32 2.0, %v14811_v21  ;;  %v5644_v2 = vpop.f32.mrb[81].mxu0  ;;  %v20542_v22 = vadd.s32 40, %v20509_v62 }
0x129a   :  { %v5710_v53 = vmin.f32 %v5706_v42, %v20504_v35  ;;  %v5667_v0 = vmul.f32 2.0, %v5644_v2 }
0x129b   :  { %v5684_v30 = vsub.f32 %v5459_v47, %v5668_v7  ;;  %v20583_v7 = vadd.s32 96, %v20509_v62 }
0x129c   :  { %v5714_v9 = vmin.f32 %v5710_v53, %v5711_v38  ;;  %v5683_v1 = vsub.f32 %v5456_v43, %v5667_v0 }
0x129d   :  { %v5713_v13 = vmin.f32 %v5709_v51, %v5684_v30 }
0x129e   :  { %v5712_v24 = vmin.f32 %v5708_v48, %v5683_v1 }
0x12a0   :  { %v5715_v56 = vmin.f32 %v5712_v24, %v5713_v13 }
0x12a2   :  { %v5716_v29 = vmin.f32 %v5714_v9, %v5715_v56 }
0x12a4   :  { %v5717_v33 = vrot.slane %v5716_v29, 4 }
0x12a6   :  { %v5718_v39 = vmin.f32 %v5716_v29, %v5717_v33  ;;  %v18629_v33 = vmov 0.0  }
0x12a8   :  { %v5719_v37 = vrot.slane %v5718_v39, 2 }
0x12aa   :  { %v5720_v17 = vmin.f32 %v5718_v39, %v5719_v37 }
0x12ac   :  { %v5721_v20 = vrot.slane %v5720_v17, 1 }
0x12ae   :  { %v5722_v45 = vmin.f32 %v5720_v17, %v5721_v20  ;;  %v18630_v17 = vmov 1.0|1.0  }
0x12b0   :  { %vm5725_vm2 = vcmp.le.f32.partialorder %v20488_v3, %v5722_v45  ;;  %vm5726_vm3 = vcmp.le.f32.partialorder %v20484_v59, %v5722_v45  ;;  %vm5729_vm4 = vcmp.le.f32.partialorder %v20490_v10, %v5722_v45  ;;  %vm5730_vm5 = vcmp.le.f32.partialorder %v20486_v60, %v5722_v45 }
0x12b1   :  { %vm5733_vm6 = vcmp.le.f32.partialorder %v5679_v28, %v5722_v45  ;;  %vm5734_vm7 = vcmp.le.f32.partialorder %v5680_v52, %v5722_v45  ;;  %vm5737_vm8 = vcmp.le.f32.partialorder %v5683_v1, %v5722_v45  ;;  %vm5738_vm9 = vcmp.le.f32.partialorder %v5684_v30, %v5722_v45 }
0x12b2   :  { %v5741_v42 = vsel %vm5725_vm2, %v20512_v8, 128  ;;  %v5742_v46 = vsel %vm5726_vm3, %v20515_v5, 128  ;;  %v5745_v34 = vsel %vm5729_vm4, %v20518_v32, 128  ;;  %v5746_v63 = vsel %vm5730_vm5, %v20521_v50, 128 }
0x12b3   :  { %v5749_v3 = vsel %vm5733_vm6, %v20524_v23, 128  ;;  %v5750_v59 = vsel %vm5734_vm7, %v20527_v27, 128  ;;  %v5753_v10 = vsel %vm5737_vm8, %v20530_v31, 128  ;;  %v5754_v60 = vsel %vm5738_vm9, %v20533_v36, 128 }
0x12b4   :  { %vm5759_vm10 = vcmp.lt.s32.totalorder %v5741_v42, %v5745_v34  ;;  %vm5761_vm11 = vcmp.lt.s32.totalorder %v5742_v46, %v5746_v63  ;;  %vm5723_vm12 = vcmp.le.f32.partialorder %v20476_v58, %v5722_v45  ;;  %vm5724_vm13 = vcmp.le.f32.partialorder %v20472_v61, %v5722_v45 }
0x12b5   :  { %v5760_v52 = vsel %vm5759_vm10, %v5741_v42, %v5745_v34  ;;  %v5762_v28 = vsel %vm5761_vm11, %v5742_v46, %v5746_v63  ;;  %vm5727_vm14 = vcmp.le.f32.partialorder %v20478_v19, %v5722_v45  ;;  %vm5728_vm15 = vcmp.le.f32.partialorder %v20474_v25, %v5722_v45  ;;  %v5395_v42 = vld [vmem:[%s22353_s11 + $0x18] sm:$0xff]  ;;  %v11612_v46 = vld [vmem:[%s22535_s20 + $0x80] sm:$0xff]  ;;  %v11613_v34 = vld [vmem:[%s22535_s20 + $0x88] sm:$0xff] }
0x12b6   :  { %vm5767_vm2 = vcmp.lt.s32.totalorder %v5760_v52, %v5749_v3  ;;  %vm5769_vm3 = vcmp.lt.s32.totalorder %v5762_v28, %v5750_v59  ;;  %vm5731_vm4 = vcmp.le.f32.partialorder %v20498_v12, %v5722_v45  ;;  %vm5732_vm5 = vcmp.le.f32.partialorder %v20496_v15, %v5722_v45  ;;  %v6104_v63 = vld [vmem:[%s22535_s20] sm:$0xff] }
0x12b7   :  { %v5768_v26 = vsel %vm5767_vm2, %v5760_v52, %v5749_v3  ;;  %v5770_v51 = vsel %vm5769_vm3, %v5762_v28, %v5750_v59  ;;  %vm5735_vm6 = vcmp.le.f32.partialorder %v20504_v35, %v5722_v45  ;;  %vm5736_vm7 = vcmp.le.f32.partialorder %v20502_v18, %v5722_v45  ;;  %v6105_v59 = vld [vmem:[%s22535_s20 + $0x8] sm:$0xff] }
0x12b8   :  { %vm5775_vm8 = vcmp.lt.s32.totalorder %v5768_v26, %v5753_v10  ;;  %vm5777_vm9 = vcmp.lt.s32.totalorder %v5770_v51, %v5754_v60  ;;  %v5739_v4 = vsel %vm5723_vm12, %v20509_v62, 128  ;;  %v5740_v6 = vsel %vm5724_vm13, %v20536_v57, 128 }
0x12b9   :  { %v5776_v48 = vsel %vm5775_vm8, %v5768_v26, %v5753_v10  ;;  %v5778_v11 = vsel %vm5777_vm9, %v5770_v51, %v5754_v60  ;;  %v5743_v21 = vsel %vm5727_vm14, %v20539_v16, 128  ;;  %v5744_v38 = vsel %vm5728_vm15, %v20542_v22, 128  ;;  %v11614_v10 = vld [vmem:[%s22535_s20 + $0x90] sm:$0xff]  ;;  %v11615_v60 = vld [vmem:[%s22535_s20 + $0x98] sm:$0xff] }
0x12ba   :  { %vm5781_vm10 = vcmp.lt.s32.totalorder %v5776_v48, %v5778_v11  ;;  %v20586_v58 = vadd.s32 104, %v20509_v62  ;;  %vm5755_vm11 = vcmp.lt.s32.totalorder %v5739_v4, %v5743_v21  ;;  %vm5757_vm12 = vcmp.lt.s32.totalorder %v5740_v6, %v5744_v38  ;;  %v6106_v26 = vld [vmem:[%s22535_s20 + $0x10] sm:$0xff]  ;;  %v6107_v51 = vld [vmem:[%s22535_s20 + $0x18] sm:$0xff] }
0x12bb   :  { %v5782_v2 = vsel %vm5781_vm10, %v5776_v48, %v5778_v11  ;;  %v5747_v61 = vsel %vm5731_vm4, %v20545_v54, 128  ;;  %v5748_v19 = vsel %vm5732_vm5, %v20548_v40, 128  ;;  %v5756_v25 = vsel %vm5755_vm11, %v5739_v4, %v5743_v21  ;;  %v11616_v4 = vld [vmem:[%s22535_s20 + $0xa0] sm:$0xff]  ;;  %v11617_v48 = vld [vmem:[%s22535_s20 + $0xa8] sm:$0xff] }
0x12bc   :  { %v5758_v47 = vsel %vm5757_vm12, %v5740_v6, %v5744_v38  ;;  %vm5763_vm13 = vcmp.lt.s32.totalorder %v5756_v25, %v5747_v61  ;;  %v5751_v53 = vsel %vm5735_vm6, %v20583_v7, 128  ;;  %v5752_v0 = vsel %vm5736_vm7, %v20586_v58, 128  ;;  %v6108_v11 = vld [vmem:[%s22535_s20 + $0x20] sm:$0xff]  ;;  %v6109_v21 = vld [vmem:[%s22535_s20 + $0x28] sm:$0xff] }
0x12bd   :  { %vm5765_vm14 = vcmp.lt.s32.totalorder %v5758_v47, %v5748_v19  ;;  %v5764_v43 = vsel %vm5763_vm13, %v5756_v25, %v5747_v61  ;;  %v20710_v3 = vpack.c.bf16 %v11613_v34, %v11612_v46  ;;  %v20721_v52 = vpack.c.bf16 %v6105_v59, %v6104_v63  ;;  %v6110_v61 = vld [vmem:[%s22535_s20 + $0x30] sm:$0xff]  ;;  %v11668_v46 = vld [vmem:[%s22535_s20 + $0x1a0] sm:$0xff] }
0x12be   :  { %v5766_v30 = vsel %vm5765_vm14, %v5758_v47, %v5748_v19  ;;  %vm5771_vm15 = vcmp.lt.s32.totalorder %v5764_v43, %v5751_v53  ;;  %v20723_v28 = vpack.c.bf16 %v11615_v60, %v11614_v10  ;;  %v20735_v6 = vpack.c.bf16 %v6107_v51, %v6106_v26  ;;  %v6111_v19 = vld [vmem:[%s22535_s20 + $0x38] sm:$0xff]  ;;  %v11670_v51 = vld [vmem:[%s22535_s20 + $0x1b0] sm:$0xff] }
0x12bf   :  { %vm5773_vm2 = vcmp.lt.s32.totalorder %v5766_v30, %v5752_v0  ;;  %v5772_v12 = vsel %vm5771_vm15, %v5764_v43, %v5751_v53  ;;  %22615 = vst [vmem:[#allocation2_spill] sm:$0xff] %v20721_v52  ;;  %17357 = vmatprep.subr.bf16.mxu1 %v20721_v52  ;;  %v20750_v38 = vpack.c.bf16 %v11617_v48, %v11616_v4  ;;  %v11620_v53 = vld [vmem:[%s22535_s20 + $0xc0] sm:$0xff] }
0x12c0   :  { %v5774_v9 = vsel %vm5773_vm2, %v5766_v30, %v5752_v0  ;;  %22616 = vst [vmem:[#allocation3_spill] sm:$0xff] %v20735_v6  ;;  %17359 = vmatpush3.bf16.msra.mxu1 %v20721_v52  ;;  %v20773_v47 = vpack.c.bf16 %v6111_v19, %v6110_v61  ;;  %v11621_v0 = vld [vmem:[%s22535_s20 + $0xc8] sm:$0xff]  ;;  %v6112_v43 = vld [vmem:[%s22535_s20 + $0x40] sm:$0xff] }
0x12c1   :  { %vm5779_vm3 = vcmp.lt.s32.totalorder %v5772_v12, %v5774_v9  ;;  %17361 = vmatprep.subr.bf16.mxu1 %v20735_v6  ;;  %v6113_v30 = vld [vmem:[%s22535_s20 + $0x48] sm:$0xff]  ;;  %v11672_v48 = vld [vmem:[%s22535_s20 + $0x1c0] sm:$0xff] }
0x12c2   :  { %v5780_v15 = vsel %vm5779_vm3, %v5772_v12, %v5774_v9  ;;  %22618 = vst [vmem:[#allocation5_spill] sm:$0xff] %v20773_v47  ;;  %v20790_v12 = vpack.c.bf16 %v11621_v0, %v11620_v53  ;;  %v20793_v9 = vpack.c.bf16 %v6113_v30, %v6112_v43  ;;  %v11676_v19 = vld [vmem:[%s22535_s20 + $0x1e0] sm:$0xff]  ;;  %v11677_v53 = vld [vmem:[%s22535_s20 + $0x1e8] sm:$0xff]  ;;  %v20953_v43 = vpop.permute.xlu1 %7960  ;;  %v11678_v30 = vld [vmem:[%s22535_s20 + $0x1f0] sm:$0xff] }
0x12c3   :  { %vm5783_vm4 = vcmp.lt.s32.totalorder %v5780_v15, %v5782_v2  ;;  %v20951_v0 = vpack.c.bf16 %v11677_v53, %v11676_v19 }
0x12c4   :  { %v5784_v1 = vsel %vm5783_vm4, %v5780_v15, %v5782_v2  ;;  %v11619_v2 = vld [vmem:[%s22535_s20 + $0xb8] sm:$0xff]  ;;  %17363 = vmatpush3.bf16.msra.mxu1 %v20735_v6  ;;  %22619 = vst [vmem:[#allocation6_spill] sm:$0xff] %v20793_v9  ;;  %v11622_v15 = vld [vmem:[%s22535_s20 + $0xd0] sm:$0xff] }
0x12c5   :  { %v5785_v13 = vrot.slane %v5784_v1, 4  ;;  %22629 = vst [vmem:[#allocation16_spill] sm:$0xff] %v20951_v0 }
0x12c7   :  { %vm5786_vm5 = vcmp.lt.s32.totalorder %v5784_v1, %v5785_v13 }
0x12c8   :  { %v5787_v24 = vsel %vm5786_vm5, %v5784_v1, %v5785_v13  ;;  %v11623_v1 = vld [vmem:[%s22535_s20 + $0xd8] sm:$0xff]  ;;  %v6114_v13 = vld [vmem:[%s22535_s20 + $0x50] sm:$0xff] }
0x12c9   :  { %v5788_v56 = vrot.slane %v5787_v24, 2 }
0x12cb   :  { %vm5789_vm8 = vcmp.lt.s32.totalorder %v5787_v24, %v5788_v56 }
0x12cc   :  { %v5790_v35 = vsel %vm5789_vm8, %v5787_v24, %v5788_v56  ;;  %v6115_v24 = vld [vmem:[%s22535_s20 + $0x58] sm:$0xff]  ;;  %v20810_v56 = vpack.c.bf16 %v11623_v1, %v11622_v15 }
0x12cd   :  { %v5791_v29 = vrot.slane %v5790_v35, 1  ;;  %v11679_v15 = vld [vmem:[%s22535_s20 + $0x1f8] sm:$0xff] }
0x12ce   :  { %v20963_v1 = vpack.c.bf16 %v11679_v15, %v11678_v30 }
0x12cf   :  { %vm5792_vm6 = vcmp.lt.s32.totalorder %v5790_v35, %v5791_v29 }
0x12d0   :  { %v20600_v18 = vsel %vm5792_vm6, %v5790_v35, %v5791_v29  ;;  %v20813_v35 = vpack.c.bf16 %v6115_v24, %v6114_v13  ;;  %v11624_v29 = vld [vmem:[%s22535_s20 + $0xe0] sm:$0xff]  ;;  %22630 = vst [vmem:[#allocation17_spill] sm:$0xff] %v20963_v1  ;;  %v11689_v24 = vld [vmem:[%s22535_s20 + $0x208] sm:$0xff] }
0x12d1   :  { %vm5795_vm7 = vcmp.eq.s32.totalorder %v20536_v57, %v20600_v18  ;;  %vm5794_vm9 = vcmp.eq.s32.totalorder %v20509_v62, %v20600_v18  ;;  %vm5796_vm10 = vcmp.eq.s32.totalorder %v20512_v8, %v20600_v18  ;;  %vm5797_vm11 = vcmp.eq.s32.totalorder %v20515_v5, %v20600_v18  ;;  %v11688_v13 = vld [vmem:[%s22535_s20 + $0x200] sm:$0xff] }
0x12d2   :  { %v11581_v39 = vsel %vm5795_vm7, 1.0, %v18629_v33  ;;  %vm17324_vm12 = vmpackc.low %vm5795_vm7, %vm5794_vm9  ;;  %v11580_v37 = vsel %vm5794_vm9, 1.0, %v18629_v33  ;;  %vm5798_vm13 = vcmp.eq.s32.totalorder %v20539_v16, %v20600_v18  ;;  %vm5799_vm15 = vcmp.eq.s32.totalorder %v20542_v22, %v20600_v18  ;;  %22620 = vst [vmem:[#allocation7_spill] sm:$0xff] %v20813_v35 }
0x12d3   :  { %5957 = vadd.xlane.f32.xlu1 %v11581_v39  ;;  %17325 = vmatprep.subr.msk.bf16.mxu0 %vm17324_vm12, %v18630_v17  ;;  %vm17328_vm14 = vmpackc.low %vm5797_vm11, %vm5796_vm10  ;;  %v11584_v62 = vsel %vm5798_vm13, 1.0, %v18629_v33  ;;  %v11582_v20 = vsel %vm5796_vm10, 1.0, %v18629_v33  ;;  %vm5800_vm2 = vcmp.eq.s32.totalorder %v20518_v32, %v20600_v18  ;;  %vm5801_vm4 = vcmp.eq.s32.totalorder %v20521_v50, %v20600_v18  ;;  %v6117_v39 = vld [vmem:[%s22535_s20 + $0x68] sm:$0xff] }
0x12d4   :  { %5955 = vadd.xlane.f32.xlu0 %v11580_v37  ;;  %17327 = vmatpush3.bf16.msk.msra.mxu0 %vm17324_vm12, %v18630_v17  ;;  %vm17332_vm3 = vmpackc.low %vm5799_vm15, %vm5798_vm13  ;;  %v11586_v45 = vsel %vm5800_vm2, 1.0, %v18629_v33  ;;  %v11583_v8 = vsel %vm5797_vm11, 1.0, %v18629_v33  ;;  %vm5802_vm5 = vcmp.eq.s32.totalorder %v20545_v54, %v20600_v18  ;;  %vm5803_vm6 = vcmp.eq.s32.totalorder %v20548_v40, %v20600_v18 }
0x12d5   :  { %17329 = vmatprep.subr.msk.bf16.mxu0 %vm17328_vm14, %v18630_v17  ;;  %vm17336_vm8 = vmpackc.low %vm5801_vm4, %vm5800_vm2  ;;  %v11588_v32 = vsel %vm5802_vm5, 1.0, %v18629_v33  ;;  %v11585_v5 = vsel %vm5799_vm15, 1.0, %v18629_v33  ;;  %vm5804_vm7 = vcmp.eq.s32.totalorder %v20524_v23, %v20600_v18  ;;  %vm5805_vm10 = vcmp.eq.s32.totalorder %v20527_v27, %v20600_v18  ;;  %v5394_v27 = vld [vmem:[%s22353_s11 + $0x10] sm:$0xff] }
0x12d6   :  { %vm17340_vm9 = vmpackc.low %vm5803_vm6, %vm5802_vm5  ;;  %v11590_v57 = vsel %vm5804_vm7, 1.0, %v18629_v33  ;;  %v11587_v16 = vsel %vm5801_vm4, 1.0, %v18629_v33  ;;  %vm5806_vm11 = vcmp.eq.s32.totalorder %v20583_v7, %v20600_v18  ;;  %vm5807_vm13 = vcmp.eq.s32.totalorder %v20586_v58, %v20600_v18  ;;  %v11618_v58 = vld [vmem:[%s22535_s20 + $0xb0] sm:$0xff] }
0x12d7   :  { %5963 = vadd.xlane.f32.xlu1 %v11584_v62  ;;  %vm17344_vm12 = vmpackc.low %vm5805_vm10, %vm5804_vm7  ;;  %v11592_v23 = vsel %vm5806_vm11, 1.0, %v18629_v33  ;;  %v11589_v50 = vsel %vm5803_vm6, 1.0, %v18629_v33  ;;  %vm5809_vm2 = vcmp.eq.s32.totalorder %v20533_v36, %v20600_v18  ;;  %v11591_v54 = vsel %vm5805_vm10, 1.0, %v18629_v33  ;;  %v5393_v36 = vld [vmem:[%s22353_s11 + $0x8] sm:$0xff]  ;;  %v11626_v62 = vld [vmem:[%s22535_s20 + $0xf0] sm:$0xff] }
0x12d8   :  { %5959 = vadd.xlane.f32.xlu0 %v11582_v20  ;;  %17331 = vmatpush3.bf16.msk.msra.mxu0 %vm17328_vm14, %v18630_v17  ;;  %vm5808_vm14 = vcmp.eq.s32.totalorder %v20530_v31, %v20600_v18  ;;  %vm17348_vm15 = vmpackc.low %vm5807_vm13, %vm5806_vm11  ;;  %v11593_v31 = vsel %vm5807_vm13, 1.0, %v18629_v33  ;;  %v11595_v40 = vsel %vm5809_vm2, 1.0, %v18629_v33  ;;  %v20753_v7 = vpack.c.bf16 %v6109_v21, %v6108_v11  ;;  %v11625_v18 = vld [vmem:[%s22535_s20 + $0xe8] sm:$0xff]  ;;  %v11627_v20 = vld [vmem:[%s22535_s20 + $0xf8] sm:$0xff] }
0x12d9   :  { %17333 = vmatprep.subr.msk.bf16.mxu0 %vm17332_vm3, %v18630_v17  ;;  %v11594_v22 = vsel %vm5808_vm14, 1.0, %v18629_v33  ;;  %v20770_v25 = vpack.c.bf16 %v11619_v2, %v11618_v58  ;;  %v6116_v33 = vld [vmem:[%s22535_s20 + $0x60] sm:$0xff]  ;;  %v20830_v37 = vpack.c.bf16 %v11625_v18, %v11624_v29  ;;  %v11673_v11 = vld [vmem:[%s22535_s20 + $0x1c8] sm:$0xff]  ;;  %v11674_v58 = vld [vmem:[%s22535_s20 + $0x1d0] sm:$0xff]  ;;  %v20971_v29 = vpop.permute.xlu0 %7965  ;;  %v20973_v18 = vpop.permute.xlu1 %7970 }
0x12da   :  { %22617 = vst [vmem:[#allocation4_spill] sm:$0xff] %v20753_v7  ;;  %17365 = vmatprep.subr.bf16.mxu1 %v20753_v7  ;;  %v20931_v21 = vpack.c.bf16 %v11673_v11, %v11672_v48  ;;  %v11675_v2 = vld [vmem:[%s22535_s20 + $0x1d8] sm:$0xff] }
0x12db   :  { %5967 = vadd.xlane.f32.xlu1 %v11586_v45  ;;  %17367 = vmatpush3.bf16.msra.mxu1 %v20753_v7  ;;  %v6118_v45 = vld [vmem:[%s22535_s20 + $0x70] sm:$0xff]  ;;  %v20941_v61 = vpack.c.bf16 %v11675_v2, %v11674_v58  ;;  %v11699_v2 = vld [vmem:[%s22535_s20 + $0x258] sm:$0xff] }
0x12dc   :  { %5961 = vadd.xlane.f32.xlu0 %v11583_v8  ;;  %17335 = vmatpush3.bf16.msk.msra.mxu0 %vm17332_vm3, %v18630_v17  ;;  %vm17352_vm3 = vmpackc.low %vm5809_vm2, %vm5808_vm14  ;;  %v6119_v8 = vld [vmem:[%s22535_s20 + $0x78] sm:$0xff]  ;;  %22627 = vst [vmem:[#allocation14_spill] sm:$0xff] %v20931_v21  ;;  %v11698_v58 = vld [vmem:[%s22535_s20 + $0x250] sm:$0xff] }
0x12dd   :  { %17337 = vmatprep.subr.msk.bf16.mxu0 %vm17336_vm8, %v18630_v17  ;;  %17369 = vmatprep.subr.bf16.mxu1 %v20773_v47  ;;  %22628 = vst [vmem:[#allocation15_spill] sm:$0xff] %v20941_v61  ;;  %v21044_v30 = vpack.c.bf16 %v11699_v2, %v11698_v58 }
0x12df   :  { %5971 = vadd.xlane.f32.xlu1 %v11588_v32  ;;  %17371 = vmatpush3.bf16.msra.mxu1 %v20773_v47  ;;  %v20850_v32 = vpack.c.bf16 %v11627_v20, %v11626_v62  ;;  %v11691_v62 = vld [vmem:[%s22535_s20 + $0x218] sm:$0xff] }
0x12e0   :  { %5965 = vadd.xlane.f32.xlu0 %v11585_v5  ;;  %17339 = vmatpush3.bf16.msk.msra.mxu0 %vm17336_vm8, %v18630_v17  ;;  %v20853_v5 = vpack.c.bf16 %v6119_v8, %v6118_v45  ;;  %v20989_v8 = vpop.permute.xlu1 %7975 }
0x12e1   :  { %17341 = vmatprep.subr.msk.bf16.mxu0 %vm17340_vm9, %v18630_v17  ;;  %17373 = vmatprep.subr.bf16.mxu1 %v20793_v9 }
0x12e2   :  { %22622 = vst [vmem:[#allocation9_spill] sm:$0xff] %v20853_v5 }
0x12e3   :  { %5975 = vadd.xlane.f32.xlu1 %v11590_v57  ;;  %17375 = vmatpush3.bf16.msra.mxu1 %v20793_v9  ;;  %v11664_v57 = vld [vmem:[%s22535_s20 + $0x180] sm:$0xff] }
0x12e4   :  { %5969 = vadd.xlane.f32.xlu0 %v11587_v16  ;;  %17343 = vmatpush3.bf16.msk.msra.mxu0 %vm17340_vm9, %v18630_v17  ;;  %v11665_v16 = vld [vmem:[%s22535_s20 + $0x188] sm:$0xff] }
0x12e5   :  { %17345 = vmatprep.subr.msk.bf16.mxu0 %vm17344_vm12, %v18630_v17  ;;  %17377 = vmatprep.subr.bf16.mxu1 %v20813_v35 }
0x12e7   :  { %5979 = vadd.xlane.f32.xlu1 %v11592_v23  ;;  %17379 = vmatpush3.bf16.msra.mxu1 %v20813_v35  ;;  %v20867_v23 = vpack.c.bf16 %v11665_v16, %v11664_v57  ;;  %v11692_v57 = vld [vmem:[%s22535_s20 + $0x220] sm:$0xff]  ;;  %v11693_v16 = vld [vmem:[%s22535_s20 + $0x228] sm:$0xff] }
0x12e8   :  { %5973 = vadd.xlane.f32.xlu0 %v11589_v50  ;;  %17347 = vmatpush3.bf16.msk.msra.mxu0 %vm17344_vm12, %v18630_v17  ;;  %v11666_v50 = vld [vmem:[%s22535_s20 + $0x190] sm:$0xff] }
0x12e9   :  { %17349 = vmatprep.subr.msk.bf16.mxu0 %vm17348_vm15, %v18630_v17  ;;  %22623 = vst [vmem:[#allocation10_spill] sm:$0xff] %v20867_v23 }
0x12eb   :  { %5983 = vadd.xlane.f32.xlu1 %v11594_v22  ;;  %v11667_v22 = vld [vmem:[%s22535_s20 + $0x198] sm:$0xff] }
0x12ec   :  { %5977 = vadd.xlane.f32.xlu0 %v11591_v54  ;;  %17351 = vmatpush3.bf16.msk.msra.mxu0 %vm17348_vm15, %v18630_v17 }
0x12ed   :  { %17353 = vmatprep.subr.msk.bf16.mxu0 %vm17352_vm3, %v18630_v17 }
0x12f0   :  { %5981 = vadd.xlane.f32.xlu0 %v11593_v31  ;;  %17355 = vmatpush3.bf16.msk.msra.mxu0 %vm17352_vm3, %v18630_v17  ;;  %v20833_v17 = vpack.c.bf16 %v6117_v39, %v6116_v33  ;;  %v20977_v33 = vpack.c.bf16 %v11689_v24, %v11688_v13  ;;  %v11690_v39 = vld [vmem:[%s22535_s20 + $0x210] sm:$0xff]  ;;  %v11700_v13 = vld [vmem:[%s22535_s20 + $0x260] sm:$0xff]  ;;  %v11701_v24 = vld [vmem:[%s22535_s20 + $0x268] sm:$0xff] }
0x12f1   :  { %17389 = vmatprep.subr.bf16.mxu0 %v20710_v3  ;;  %v20987_v45 = vpack.c.bf16 %v11691_v62, %v11690_v39 }
0x12f2   :  { %22621 = vst [vmem:[#allocation8_spill] sm:$0xff] %v20833_v17  ;;  %17381 = vmatprep.subr.bf16.mxu1 %v20833_v17 }
0x12f3   :  { %14845 = vmatmul.mubr.f32.vlgmr.msra.gmra.mrb[82].mxu0 %v5393_v36  ;;  %17383 = vmatpush3.bf16.msra.mxu1 %v20833_v17 }
0x12f4   :  { %5985 = vadd.xlane.f32.xlu0 %v11595_v40  ;;  %14847 = vmatprep.mubr.f32.mxu0 %v5394_v27  ;;  %v20882_v27 = vpack.c.bf16 %v11667_v22, %v11666_v50  ;;  %v21001_v22 = vpack.c.bf16 %v11693_v16, %v11692_v57  ;;  %v11702_v16 = vld [vmem:[%s22535_s20 + $0x270] sm:$0xff] }
0x12f5   :  { %17391 = vmatpush3.bf16.msra.mxu0 %v20710_v3  ;;  %17385 = vmatprep.subr.bf16.mxu1 %v20853_v5 }
0x12f6   :  { %17393 = vmatprep.subr.bf16.mxu0 %v20723_v28  ;;  %22624 = vst [vmem:[#allocation11_spill] sm:$0xff] %v20882_v27 }
0x12f7   :  { %14848 = vmatmul.mubr.f32.gmra.mrb[84].mxu0 %v5395_v42  ;;  %17387 = vmatpush3.bf16.msra.mxu1 %v20853_v5 }
0x12f9   :  { %17395 = vmatpush3.bf16.msra.mxu0 %v20723_v28 }
0x12fa   :  { %17397 = vmatprep.subr.bf16.mxu0 %v20750_v38 }
0x12fd   :  { %17399 = vmatpush3.bf16.msra.mxu0 %v20750_v38 }
0x12fe   :  { %17401 = vmatprep.subr.bf16.mxu0 %v20770_v25 }
0x1301   :  { %17403 = vmatpush3.bf16.msra.mxu0 %v20770_v25 }
0x1302   :  { %17405 = vmatprep.subr.bf16.mxu0 %v20790_v12 }
0x1305   :  { %17407 = vmatpush3.bf16.msra.mxu0 %v20790_v12 }
0x1306   :  { %17409 = vmatprep.subr.bf16.mxu0 %v20810_v56 }
0x1309   :  { %17411 = vmatpush3.bf16.msra.mxu0 %v20810_v56 }
0x130a   :  { %17413 = vmatprep.subr.bf16.mxu0 %v20830_v37 }
0x130d   :  { %17415 = vmatpush3.bf16.msra.mxu0 %v20830_v37 }
0x130e   :  { %17417 = vmatprep.subr.bf16.mxu0 %v20850_v32 }
0x1311   :  { %17419 = vmatpush3.bf16.msra.mxu0 %v20850_v32 }
0x1312   :  { %17477 = vmatprep.subr.bf16.mxu0 %v20867_v23 }
0x1361   :  { %v5956_v20 = vpop.xlane.xlu0 %5955 }
0x1365   :  { %v5960_v50 = vpop.xlane.xlu0 %5959 }
0x13c6   :  { %v20876_v54 = vpop.f32.mrb[82].mxu0 }
0x13c7   :  { %v20878_v31 = vpop.f32.mrb[83].mxu0  ;;  %v5928_v36 = vsub.f32 %v20876_v54, %v20397_v44  ;;  %v11669_v44 = vld [vmem:[%s22535_s20 + $0x1a8] sm:$0xff] }
0x13c8   :  { %14882 = vmatprep.mubr.f32.mxu1 %v20878_v31  ;;  %14920 = vmatprep.mubr.f32.mxu0 %v20878_v31  ;;  %v5927_v40 = vsub.f32 %v20878_v31, %v20399_v55  ;;  %v20905_v10 = vpack.c.bf16 %v11669_v44, %v11668_v46 }
0x13c9   :  { %14883 = vmatmul.mubr.f32.vlgmr.msra.gmra.mrb[62].mxu1 %v20876_v54  ;;  %14921 = vmatmul.mubr.f32.vlgmr.msra.gmra.mrb[86].mxu0 %v20876_v54  ;;  %v5932_v42 = vmul.f32 %v5928_v36, %v5928_v36  ;;  %v5958_v36 = vpop.xlane.xlu1 %5957 }
0x13ca   :  { %17479 = vmatpush3.bf16.msra.mxu0 %v20867_v23  ;;  %v20897_v34 = vpop.f32.mrb[84].mxu0  ;;  %v5931_v63 = vmul.f32 %v5927_v40, %v5927_v40  ;;  %22625 = vst [vmem:[#allocation12_spill] sm:$0xff] %v20905_v10  ;;  %v11694_v40 = vld [vmem:[%s22535_s20 + $0x230] sm:$0xff]  ;;  %v21012_v46 = vmul.f32 0.0078125, %v5958_v36 }
0x13cb   :  { %v20899_v59 = vpop.f32.mrb[85].mxu0  ;;  %5937 = vadd.xlane.f32.xlu0 %v5932_v42  ;;  %17481 = vmatprep.subr.bf16.mxu0 %v20882_v27  ;;  %v5930_v55 = vsub.f32 %v20897_v34, %v20403_v41  ;;  %v11671_v41 = vld [vmem:[%s22535_s20 + $0x1b8] sm:$0xff] }
0x13cc   :  { %5935 = vadd.xlane.f32.xlu1 %v5931_v63  ;;  %14885 = vmatprep.mubr.f32.mxu1 %v20899_v59  ;;  %v5929_v60 = vsub.f32 %v20899_v59, %v20405_v49  ;;  %v20921_v49 = vpack.c.bf16 %v11671_v41, %v11670_v51  ;;  %v11695_v42 = vld [vmem:[%s22535_s20 + $0x238] sm:$0xff]  ;;  %v21017_v63 = vmul.f32 0.0078125, %v5956_v20  ;;  %v21025_v51 = vmul.f32 0.0078125, %v5960_v50 }
0x13cd   :  { %14923 = vmatprep.mubr.f32.mxu0 %v20899_v59  ;;  %14886 = vmatmul.mubr.f32.gmra.mrb[64].mxu1 %v20897_v34  ;;  %v5934_v26 = vmul.f32 %v5930_v55, %v5930_v55  ;;  %v21015_v44 = vpack.c.bf16 %v11695_v42, %v11694_v40  ;;  %v11696_v55 = vld [vmem:[%s22535_s20 + $0x240] sm:$0xff]  ;;  %v6005_v41 = vadd.f32 1e-10, %v21012_v46  ;;  %v5964_v53 = vpop.xlane.xlu1 %5963  ;;  %v21057_v20 = vpack.c.bf16 %v11701_v24, %v11700_v13  ;;  %v11703_v50 = vld [vmem:[%s22535_s20 + $0x278] sm:$0xff]  ;;  %v11738_v13 = vld [vmem:[%s22535_s20 + $0x310] sm:$0xff] }
0x13ce   :  { %14924 = vmatmul.mubr.f32.gmra.mrb[88].mxu0 %v20897_v34  ;;  %v5933_v4 = vmul.f32 %v5929_v60, %v5929_v60  ;;  %22626 = vst [vmem:[#allocation13_spill] sm:$0xff] %v20921_v49  ;;  %v11697_v60 = vld [vmem:[%s22535_s20 + $0x248] sm:$0xff]  ;;  %v6004_v48 = vadd.f32 1e-10, %v21017_v63  ;;  %v6006_v19 = vadd.f32 1e-10, %v21025_v51  ;;  %v21070_v42 = vpack.c.bf16 %v11703_v50, %v11702_v16 }
0x13cf   :  { %17483 = vmatpush3.bf16.msra.mxu0 %v20882_v27  ;;  %15038 = vmatprep.mubr.f32.mxu0 %v20878_v31  ;;  %18577 = vlog2.f32 %v6005_v41  ;;  %v21053_v62 = vmul.f32 0.0078125, %v5964_v53  ;;  %22631 = vst [vmem:[#allocation18_spill] sm:$0xff] %v21057_v20  ;;  %v11739_v24 = vld [vmem:[%s22535_s20 + $0x318] sm:$0xff] }
0x13d0   :  { %5941 = vadd.xlane.f32.xlu0 %v5934_v26  ;;  %17485 = vmatprep.subr.bf16.mxu0 %v20905_v10  ;;  %v5962_v26 = vpop.xlane.xlu0 %5961  ;;  %18579 = vlog2.f32 %v6004_v48  ;;  %22632 = vst [vmem:[#allocation19_spill] sm:$0xff] %v21070_v42 }
0x13d1   :  { %5939 = vadd.xlane.f32.xlu1 %v5933_v4  ;;  %v21030_v4 = vpack.c.bf16 %v11697_v60, %v11696_v55  ;;  %v21033_v11 = vmul.f32 0.0078125, %v5962_v26  ;;  %18581 = vlog2.f32 %v6006_v19  ;;  %v6008_v36 = vadd.f32 1e-10, %v21053_v62  ;;  %v5968_v40 = vpop.xlane.xlu1 %5967  ;;  %v11736_v60 = vld [vmem:[%s22535_s20 + $0x300] sm:$0xff]  ;;  %v11737_v26 = vld [vmem:[%s22535_s20 + $0x308] sm:$0xff] }
0x13d2   :  { %v21079_v2 = vmul.f32 0.0078125, %v5968_v40  ;;  %v21083_v19 = vpack.c.bf16 %v11737_v26, %v11736_v60 }
0x13d3   :  { %17487 = vmatpush3.bf16.msra.mxu0 %v20905_v10  ;;  %v6007_v15 = vadd.f32 1e-10, %v21033_v11 }
0x13d4   :  { %17489 = vmatprep.subr.bf16.mxu0 %v20921_v49  ;;  %v5966_v39 = vpop.xlane.xlu0 %5965  ;;  %22633 = vst [vmem:[#allocation20_spill] sm:$0xff] %v21083_v19 }
0x13d5   :  { %18583 = vlog2.f32 %v6007_v15  ;;  %v21059_v57 = vmul.f32 0.0078125, %v5966_v39  ;;  %v5972_v60 = vpop.xlane.xlu1 %5971 }
0x13d6   :  { %18585 = vlog2.f32 %v6008_v36  ;;  %v6010_v36 = vadd.f32 1e-10, %v21079_v2 }
0x13d7   :  { %17491 = vmatpush3.bf16.msra.mxu0 %v20921_v49  ;;  %v6009_v55 = vadd.f32 1e-10, %v21059_v57 }
0x13d8   :  { %17493 = vmatprep.subr.bf16.mxu0 %v20931_v21  ;;  %v5970_v48 = vpop.xlane.xlu0 %5969 }
0x13d9   :  { %v18578_v41 = vpop.eup %18577  ;;  %18587 = vlog2.f32 %v6009_v55  ;;  %v21085_v15 = vmul.f32 0.0078125, %v5970_v48  ;;  %v21096_v55 = vpack.c.bf16 %v11739_v24, %v11738_v13  ;;  %v11740_v48 = vld [vmem:[%s22535_s20 + $0x320] sm:$0xff]  ;;  %v21108_v13 = vmul.f32 0.0078125, %v5972_v60 }
0x13da   :  { %v18580_v58 = vpop.eup %18579  ;;  %v6023_v39 = vmul.f32 0.6931472, %v18578_v41  ;;  %v11741_v41 = vld [vmem:[%s22535_s20 + $0x328] sm:$0xff]  ;;  %18589 = vlog2.f32 %v6010_v36 }
0x13db   :  { %17495 = vmatpush3.bf16.msra.mxu0 %v20931_v21  ;;  %v18582_v53 = vpop.eup %18581  ;;  %v6021_v16 = vmul.f32 0.6931472, %v18580_v58  ;;  %22634 = vst [vmem:[#allocation21_spill] sm:$0xff] %v21096_v55  ;;  %v6011_v26 = vadd.f32 1e-10, %v21085_v15 }
0x13dc   :  { %17497 = vmatprep.subr.bf16.mxu0 %v20941_v61  ;;  %v6025_v40 = vmul.f32 0.6931472, %v18582_v53  ;;  %v6053_v58 = vmul.f32 %v6023_v39, %v21012_v46  ;;  %v11742_v39 = vld [vmem:[%s22535_s20 + $0x330] sm:$0xff] }
0x13dd   :  { %v6052_v14 = vmul.f32 %v6021_v16, %v21017_v63  ;;  %18591 = vlog2.f32 %v6011_v26  ;;  %v11743_v16 = vld [vmem:[%s22535_s20 + $0x338] sm:$0xff]  ;;  %v5976_v26 = vpop.xlane.xlu1 %5975 }
0x13de   :  { %v6054_v24 = vmul.f32 %v6025_v40, %v21025_v51  ;;  %v6012_v40 = vadd.f32 1e-10, %v21108_v13 }
0x13df   :  { %17499 = vmatpush3.bf16.msra.mxu0 %v20941_v61  ;;  %v18584_v50 = vpop.eup %18583 }
0x13e0   :  { %17501 = vmatprep.subr.bf16.mxu0 %v20951_v0  ;;  %v6027_v53 = vmul.f32 0.6931472, %v18584_v50  ;;  %v18586_v46 = vpop.eup %18585  ;;  %v6068_v50 = vadd.f32 %v6053_v58, %v6052_v14  ;;  %18593 = vlog2.f32 %v6012_v40 }
0x13e2   :  { %v6055_v36 = vmul.f32 %v6027_v53, %v21033_v11  ;;  %v6069_v60 = vadd.f32 %v6068_v50, %v6054_v24  ;;  %v11744_v11 = vld [vmem:[%s22535_s20 + $0x340] sm:$0xff]  ;;  %v21139_v24 = vmul.f32 0.0078125, %v5976_v26 }
0x13e3   :  { %17503 = vmatpush3.bf16.msra.mxu0 %v20951_v0  ;;  %v18588_v51 = vpop.eup %18587 }
0x13e4   :  { %17505 = vmatprep.subr.bf16.mxu0 %v20963_v1  ;;  %v6070_v58 = vadd.f32 %v6069_v60, %v6055_v36  ;;  %v6031_v53 = vmul.f32 0.6931472, %v18588_v51  ;;  %v11746_v36 = vld [vmem:[%s22535_s20 + $0x350] sm:$0xff]  ;;  %v11747_v51 = vld [vmem:[%s22535_s20 + $0x358] sm:$0xff] }
0x13e6   :  { %v6057_v60 = vmul.f32 %v6031_v53, %v21059_v57  ;;  %v11749_v57 = vld [vmem:[%s22535_s20 + $0x368] sm:$0xff] }
0x13e7   :  { %17507 = vmatpush3.bf16.msra.mxu0 %v20963_v1 }
0x13e8   :  { %17517 = vmatprep.subr.bf16.mxu0 %v20977_v33 }
0x13ea   :  { %15039 = vmatmul.mubr.f32.vlgmr.msra.gmra.mrb[90].mxu0 %v20876_v54 }
0x13eb   :  { %15041 = vmatprep.mubr.f32.mxu0 %v20899_v59  ;;  %17519 = vmatpush3.bf16.msra.mxu0 %v20977_v33 }
0x13ec   :  { %17521 = vmatprep.subr.bf16.mxu0 %v20987_v45 }
0x13ee   :  { %15042 = vmatmul.mubr.f32.gmra.mrb[92].mxu0 %v20897_v34 }
0x13ef   :  { %17523 = vmatpush3.bf16.msra.mxu0 %v20987_v45  ;;  %15090 = vmatprep.mubr.f32.mxu0 %v20878_v31 }
0x13f0   :  { %17525 = vmatprep.subr.bf16.mxu0 %v21001_v22 }
0x13f3   :  { %17527 = vmatpush3.bf16.msra.mxu0 %v21001_v22 }
0x13f4   :  { %17529 = vmatprep.subr.bf16.mxu0 %v21015_v44 }
0x13f7   :  { %17531 = vmatpush3.bf16.msra.mxu0 %v21015_v44 }
0x13f8   :  { %17533 = vmatprep.subr.bf16.mxu0 %v21030_v4 }
0x13fb   :  { %17535 = vmatpush3.bf16.msra.mxu0 %v21030_v4 }
0x13fc   :  { %17537 = vmatprep.subr.bf16.mxu0 %v21044_v30 }
0x13ff   :  { %17539 = vmatpush3.bf16.msra.mxu0 %v21044_v30 }
0x1400   :  { %17541 = vmatprep.subr.bf16.mxu0 %v21057_v20 }
0x1403   :  { %17543 = vmatpush3.bf16.msra.mxu0 %v21057_v20  ;;  %v21114_v20 = vpack.c.bf16 %v11741_v41, %v11740_v48  ;;  %v21130_v48 = vpack.c.bf16 %v11743_v16, %v11742_v39  ;;  %v11745_v41 = vld [vmem:[%s22535_s20 + $0x348] sm:$0xff]  ;;  %v18590_v16 = vpop.eup %18589 }
0x1404   :  { %17545 = vmatprep.subr.bf16.mxu0 %v21070_v42  ;;  %v21144_v39 = vpack.c.bf16 %v11745_v41, %v11744_v11  ;;  %v6033_v26 = vmul.f32 0.6931472, %v18590_v16  ;;  %v11748_v41 = vld [vmem:[%s22535_s20 + $0x360] sm:$0xff] }
0x1405   :  { %22635 = vst [vmem:[#allocation22_spill] sm:$0xff] %v21114_v20  ;;  %22636 = vst [vmem:[#allocation23_spill] sm:$0xff] %v21130_v48 }
0x1406   :  { %22637 = vst [vmem:[#allocation24_spill] sm:$0xff] %v21144_v39 }
0x1407   :  { %17547 = vmatpush3.bf16.msra.mxu0 %v21070_v42  ;;  %v5974_v42 = vpop.xlane.xlu0 %5973 }
0x1408   :  { %17597 = vmatprep.subr.bf16.mxu0 %v21083_v19  ;;  %v21116_v63 = vmul.f32 0.0078125, %v5974_v42  ;;  %v6029_v42 = vmul.f32 0.6931472, %v18586_v46 }
0x140a   :  { %15091 = vmatmul.mubr.f32.vlgmr.msra.gmra.mrb[94].mxu0 %v20876_v54  ;;  %v6013_v14 = vadd.f32 1e-10, %v21116_v63  ;;  %v6056_v46 = vmul.f32 %v6029_v42, %v21053_v62  ;;  %v18592_v62 = vpop.eup %18591  ;;  %v6014_v42 = vadd.f32 1e-10, %v21139_v24 }
0x140b   :  { %15093 = vmatprep.mubr.f32.mxu0 %v20899_v59  ;;  %17599 = vmatpush3.bf16.msra.mxu0 %v21083_v19  ;;  %v6035_v53 = vmul.f32 0.6931472, %v18592_v62 }
0x140c   :  { %17601 = vmatprep.subr.bf16.mxu0 %v21096_v55  ;;  %18595 = vlog2.f32 %v6013_v14  ;;  %v6071_v40 = vadd.f32 %v6070_v58, %v6056_v46  ;;  %v5980_v14 = vpop.xlane.xlu1 %5979 }
0x140d   :  { %18597 = vlog2.f32 %v6014_v42  ;;  %v21167_v16 = vmul.f32 0.0078125, %v5980_v14  ;;  %v6059_v42 = vmul.f32 %v6035_v53, %v21085_v15  ;;  %v11761_v15 = vld [vmem:[%s22535_s20 + $0x388] sm:$0xff] }
0x140e   :  { %15094 = vmatmul.mubr.f32.gmra.mrb[96].mxu0 %v20897_v34  ;;  %v6072_v58 = vadd.f32 %v6071_v40, %v6057_v60  ;;  %v11750_v40 = vld [vmem:[%s22535_s20 + $0x370] sm:$0xff]  ;;  %v11751_v60 = vld [vmem:[%s22535_s20 + $0x378] sm:$0xff] }
0x140f   :  { %17603 = vmatpush3.bf16.msra.mxu0 %v21096_v55  ;;  %15194 = vmatprep.mubr.f32.mxu0 %v20878_v31  ;;  %v5978_v55 = vpop.xlane.xlu0 %5977 }
0x1410   :  { %17605 = vmatprep.subr.bf16.mxu0 %v21114_v20  ;;  %v21146_v50 = vmul.f32 0.0078125, %v5978_v55  ;;  %v21158_v55 = vpack.c.bf16 %v11747_v51, %v11746_v36  ;;  %v6058_v36 = vmul.f32 %v6033_v26, %v21079_v2  ;;  %v21172_v51 = vpack.c.bf16 %v11749_v57, %v11748_v41 }
0x1411   :  { %v6016_v26 = vadd.f32 1e-10, %v21167_v16  ;;  %v21186_v41 = vpack.c.bf16 %v11751_v60, %v11750_v40 }
0x1412   :  { %22638 = vst [vmem:[#allocation25_spill] sm:$0xff] %v21158_v55  ;;  %v6015_v11 = vadd.f32 1e-10, %v21146_v50  ;;  %22639 = vst [vmem:[#allocation26_spill] sm:$0xff] %v21172_v51  ;;  %v6073_v62 = vadd.f32 %v6072_v58, %v6058_v36 }
0x1413   :  { %17607 = vmatpush3.bf16.msra.mxu0 %v21114_v20  ;;  %v5982_v46 = vpop.xlane.xlu0 %5981  ;;  %22640 = vst [vmem:[#allocation27_spill] sm:$0xff] %v21186_v41 }
0x1414   :  { %17609 = vmatprep.subr.bf16.mxu0 %v21130_v48  ;;  %18599 = vlog2.f32 %v6015_v11  ;;  %v21174_v20 = vmul.f32 0.0078125, %v5982_v46  ;;  %v5984_v11 = vpop.xlane.xlu1 %5983  ;;  %v11760_v46 = vld [vmem:[%s22535_s20 + $0x380] sm:$0xff]  ;;  %v6074_v58 = vadd.f32 %v6073_v62, %v6059_v42  ;;  %v11762_v62 = vld [vmem:[%s22535_s20 + $0x390] sm:$0xff]  ;;  %v11763_v42 = vld [vmem:[%s22535_s20 + $0x398] sm:$0xff] }
0x1415   :  { %18601 = vlog2.f32 %v6016_v26  ;;  %v21200_v60 = vpack.c.bf16 %v11761_v15, %v11760_v46  ;;  %v11628_v46 = vld [vmem:[%s22354_s12 + $0x20] sm:$0xff] }
0x1416   :  { %v6017_v57 = vadd.f32 1e-10, %v21174_v20  ;;  %14934 = vmatprep.mubr.msk.f32.mxu1 %vm281_vm0, %v11628_v46  ;;  %v11768_v46 = vld [vmem:[%s22535_s20 + $0x3c0] sm:$0xff] }
0x1417   :  { %17611 = vmatpush3.bf16.msra.mxu0 %v21130_v48  ;;  %v18594_v48 = vpop.eup %18593  ;;  %v5986_v36 = vpop.xlane.xlu0 %5985  ;;  %22641 = vst [vmem:[#allocation28_spill] sm:$0xff] %v21200_v60 }
0x1418   :  { %17613 = vmatprep.subr.bf16.mxu0 %v21144_v39  ;;  %v18596_v2 = vpop.eup %18595  ;;  %v6037_v14 = vmul.f32 0.6931472, %v18594_v48  ;;  %v21195_v48 = vmul.f32 0.0078125, %v5984_v11  ;;  %18603 = vlog2.f32 %v6017_v57  ;;  %v21214_v57 = vpack.c.bf16 %v11763_v42, %v11762_v62  ;;  %v11766_v42 = vld [vmem:[%s22535_s20 + $0x3b0] sm:$0xff] }
0x1419   :  { %v6039_v53 = vmul.f32 0.6931472, %v18596_v2 }
0x141a   :  { %v6060_v40 = vmul.f32 %v6037_v14, %v21108_v13  ;;  %v6018_v14 = vadd.f32 1e-10, %v21195_v48  ;;  %22642 = vst [vmem:[#allocation29_spill] sm:$0xff] %v21214_v57 }
0x141b   :  { %17615 = vmatpush3.bf16.msra.mxu0 %v21144_v39  ;;  %v21202_v39 = vmul.f32 0.0078125, %v5986_v36  ;;  %v6061_v26 = vmul.f32 %v6039_v53, %v21116_v63  ;;  %v11764_v63 = vld [vmem:[%s22535_s20 + $0x3a0] sm:$0xff] }
0x141c   :  { %17617 = vmatprep.subr.bf16.mxu0 %v21158_v55  ;;  %v6075_v2 = vadd.f32 %v6074_v58, %v6060_v40  ;;  %v11765_v58 = vld [vmem:[%s22535_s20 + $0x3a8] sm:$0xff]  ;;  %18605 = vlog2.f32 %v6018_v14 }
0x141d   :  { %v6019_v15 = vadd.f32 1e-10, %v21202_v39  ;;  %v21232_v40 = vpack.c.bf16 %v11765_v58, %v11764_v63 }
0x141f   :  { %17619 = vmatpush3.bf16.msra.mxu0 %v21158_v55  ;;  %v18598_v55 = vpop.eup %18597  ;;  %22643 = vst [vmem:[#allocation30_spill] sm:$0xff] %v21232_v40  ;;  %18607 = vlog2.f32 %v6019_v15 }
0x1420   :  { %17621 = vmatprep.subr.bf16.mxu0 %v21172_v51  ;;  %v18600_v13 = vpop.eup %18599  ;;  %v6041_v11 = vmul.f32 0.6931472, %v18598_v55  ;;  %v6076_v55 = vadd.f32 %v6075_v2, %v6061_v26  ;;  %v11767_v2 = vld [vmem:[%s22535_s20 + $0x3b8] sm:$0xff] }
0x1421   :  { %v6043_v53 = vmul.f32 0.6931472, %v18600_v13  ;;  %v18602_v62 = vpop.eup %18601 }
0x1422   :  { %v6062_v36 = vmul.f32 %v6041_v11, %v21139_v24  ;;  %v18604_v24 = vpop.eup %18603  ;;  %v6045_v14 = vmul.f32 0.6931472, %v18602_v62  ;;  %v21245_v11 = vpack.c.bf16 %v11767_v2, %v11766_v42  ;;  %v11771_v62 = vld [vmem:[%s22535_s20 + $0x3d8] sm:$0xff] }
0x1423   :  { %17623 = vmatpush3.bf16.msra.mxu0 %v21172_v51  ;;  %v6063_v13 = vmul.f32 %v6043_v53, %v21146_v50  ;;  %v11769_v50 = vld [vmem:[%s22535_s20 + $0x3c8] sm:$0xff]  ;;  %v6047_v63 = vmul.f32 0.6931472, %v18604_v24  ;;  %v11772_v24 = vld [vmem:[%s22535_s20 + $0x3e0] sm:$0xff] }
0x1424   :  { %17625 = vmatprep.subr.bf16.mxu0 %v21186_v41  ;;  %v6077_v26 = vadd.f32 %v6076_v55, %v6062_v36  ;;  %22644 = vst [vmem:[#allocation31_spill] sm:$0xff] %v21245_v11  ;;  %v6064_v58 = vmul.f32 %v6045_v14, %v21167_v16  ;;  %v21256_v55 = vpack.c.bf16 %v11769_v50, %v11768_v46  ;;  %v11770_v36 = vld [vmem:[%s22535_s20 + $0x3d0] sm:$0xff]  ;;  %v11773_v14 = vld [vmem:[%s22535_s20 + $0x3e8] sm:$0xff] }
0x1425   :  { %v6065_v2 = vmul.f32 %v6047_v63, %v21174_v20  ;;  %v11774_v63 = vld [vmem:[%s22535_s20 + $0x3f0] sm:$0xff] }
0x1426   :  { %v6078_v15 = vadd.f32 %v6077_v26, %v6063_v13  ;;  %22645 = vst [vmem:[#allocation32_spill] sm:$0xff] %v21256_v55  ;;  %v18606_v53 = vpop.eup %18605  ;;  %v21267_v13 = vpack.c.bf16 %v11771_v62, %v11770_v36 }
0x1427   :  { %17627 = vmatpush3.bf16.msra.mxu0 %v21186_v41  ;;  %v6049_v16 = vmul.f32 0.6931472, %v18606_v53 }
0x1428   :  { %17637 = vmatprep.subr.bf16.mxu0 %v21200_v60  ;;  %v6079_v42 = vadd.f32 %v6078_v15, %v6064_v58  ;;  %22646 = vst [vmem:[#allocation33_spill] sm:$0xff] %v21267_v13  ;;  %v21278_v15 = vpack.c.bf16 %v11773_v14, %v11772_v24  ;;  %v11775_v58 = vld [vmem:[%s22535_s20 + $0x3f8] sm:$0xff] }
0x1429   :  { %v18608_v26 = vpop.eup %18607  ;;  %v6066_v20 = vmul.f32 %v6049_v16, %v21195_v48  ;;  %v21289_v48 = vpack.c.bf16 %v11775_v58, %v11774_v63 }
0x142a   :  { %15195 = vmatmul.mubr.f32.vlgmr.msra.gmra.mrb[98].mxu0 %v20876_v54  ;;  %v6080_v46 = vadd.f32 %v6079_v42, %v6065_v2  ;;  %v6051_v50 = vmul.f32 0.6931472, %v18608_v26  ;;  %22647 = vst [vmem:[#allocation34_spill] sm:$0xff] %v21278_v15 }
0x142b   :  { %15197 = vmatprep.mubr.f32.mxu0 %v20899_v59  ;;  %17639 = vmatpush3.bf16.msra.mxu0 %v21200_v60  ;;  %22648 = vst [vmem:[#allocation35_spill] sm:$0xff] %v21289_v48 }
0x142c   :  { %17641 = vmatprep.subr.bf16.mxu0 %v21214_v57  ;;  %v6081_v53 = vadd.f32 %v6080_v46, %v6066_v20  ;;  %v6067_v36 = vmul.f32 %v6051_v50, %v21202_v39 }
0x142e   :  { %15198 = vmatmul.mubr.f32.gmra.mrb[100].mxu0 %v20897_v34  ;;  %v6082_v62 = vadd.f32 %v6081_v53, %v6067_v36 }
0x142f   :  { %17643 = vmatpush3.bf16.msra.mxu0 %v21214_v57  ;;  %15246 = vmatprep.mubr.f32.mxu0 %v20878_v31 }
0x1430   :  { %17645 = vmatprep.subr.bf16.mxu0 %v21232_v40  ;;  %v6083_v42 = vrot.slane %v6082_v62, 4 }
0x1432   :  { %v6084_v2 = vadd.f32 %v6083_v42, %v6082_v62 }
0x1433   :  { %17647 = vmatpush3.bf16.msra.mxu0 %v21232_v40 }
0x1434   :  { %17649 = vmatprep.subr.bf16.mxu0 %v21245_v11  ;;  %v6085_v39 = vrot.slane %v6084_v2, 2 }
0x1436   :  { %v6086_v26 = vadd.f32 %v6085_v39, %v6084_v2 }
0x1437   :  { %17651 = vmatpush3.bf16.msra.mxu0 %v21245_v11 }
0x1438   :  { %17653 = vmatprep.subr.bf16.mxu0 %v21256_v55  ;;  %v6087_v16 = vrot.slane %v6086_v26, 1 }
0x143a   :  { %v6088_v14 = vadd.f32 %v6087_v16, %v6086_v26 }
0x143b   :  { %17655 = vmatpush3.bf16.msra.mxu0 %v21256_v55 }
0x143c   :  { %17657 = vmatprep.subr.bf16.mxu0 %v21267_v13  ;;  %v6089_v20 = vsub.f32 0.0, %v6088_v14 }
0x143e   :  { %v6090_v62 = vmul.f32 1.442695, %v6089_v20 }
0x143f   :  { %17659 = vmatpush3.bf16.msra.mxu0 %v21267_v13 }
0x1440   :  { %17661 = vmatprep.subr.bf16.mxu0 %v21278_v15  ;;  %18609 = vpow2.f32 %v6090_v62 }
0x1443   :  { %17663 = vmatpush3.bf16.msra.mxu0 %v21278_v15 }
0x1444   :  { %17665 = vmatprep.subr.bf16.mxu0 %v21289_v48 }
0x1447   :  { %17667 = vmatpush3.bf16.msra.mxu0 %v21289_v48 }
0x1448   :  { %17717 = vmatprep.subr.bf16.mxu0 %v20721_v52 }
0x144a   :  { %15247 = vmatmul.mubr.f32.vlgmr.msra.gmra.mrb[102].mxu0 %v20876_v54 }
0x144b   :  { %15249 = vmatprep.mubr.f32.mxu0 %v20899_v59  ;;  %17719 = vmatpush3.bf16.msra.mxu0 %v20721_v52 }
0x144c   :  { %17721 = vmatprep.subr.bf16.mxu0 %v20735_v6 }
0x144e   :  { %15250 = vmatmul.mubr.f32.gmra.mrb[104].mxu0 %v20897_v34 }
0x144f   :  { %17723 = vmatpush3.bf16.msra.mxu0 %v20735_v6 }
0x1450   :  { %17725 = vmatprep.subr.bf16.mxu0 %v20753_v7 }
0x1453   :  { %17727 = vmatpush3.bf16.msra.mxu0 %v20753_v7 }
0x1454   :  { %17729 = vmatprep.subr.bf16.mxu0 %v20773_v47 }
0x1457   :  { %17731 = vmatpush3.bf16.msra.mxu0 %v20773_v47 }
0x1458   :  { %17733 = vmatprep.subr.bf16.mxu0 %v20793_v9  ;;  %v5938_v46 = vpop.xlane.xlu0 %5937 }
0x1459   :  { %v5936_v24 = vpop.xlane.xlu1 %5935 }
0x145a   :  { %v5943_v50 = vadd.f32 %v5938_v46, %v5936_v24  ;;  %v22649_v24 = vlaneseq }
0x145b   :  { %17735 = vmatpush3.bf16.msra.mxu0 %v20793_v9 }
0x145c   :  { %17737 = vmatprep.subr.bf16.mxu0 %v20813_v35  ;;  %v6093_v14 = vand.u32 127, %v22649_v24 }
0x145d   :  { %v5942_v53 = vpop.xlane.xlu0 %5941 }
0x145e   :  { %v5940_v63 = vpop.xlane.xlu1 %5939  ;;  %vm6094_vm4 = vcmp.eq.s32.totalorder %v6093_v14, 0  ;;  %vm6096_vm5 = vcmp.eq.s32.totalorder %v6093_v14, 1 }
0x145f   :  { %v5944_v58 = vadd.f32 %v5943_v50, %v5940_v63  ;;  %17739 = vmatpush3.bf16.msra.mxu0 %v20813_v35  ;;  %v18610_v63 = vpop.eup %18609 }
0x1460   :  { %17741 = vmatprep.subr.bf16.mxu0 %v20833_v17 }
0x1461   :  { %v5945_v36 = vadd.f32 %v5944_v58, %v5942_v53  ;;  %v6097_v53 = vsel %vm6096_vm5, %v18610_v63, 0.0  ;;  %v11630_v63 = vld [vmem:[%s22354_s12 + $0x30] sm:$0xff] }
0x1463   :  { %v5946_v42 = vrot.slane %v5945_v36, 4  ;;  %17743 = vmatpush3.bf16.msra.mxu0 %v20833_v17 }
0x1464   :  { %17745 = vmatprep.subr.bf16.mxu0 %v20853_v5 }
0x1465   :  { %v5947_v2 = vadd.f32 %v5946_v42, %v5945_v36 }
0x1467   :  { %v5948_v39 = vrot.slane %v5947_v2, 2  ;;  %17747 = vmatpush3.bf16.msra.mxu0 %v20853_v5 }
0x1469   :  { %v5949_v26 = vadd.f32 %v5948_v39, %v5947_v2 }
0x146b   :  { %v5950_v16 = vrot.slane %v5949_v26, 1 }
0x146d   :  { %v5951_v46 = vadd.f32 %v5950_v16, %v5949_v26 }
0x146f   :  { %v5953_v50 = vmul.f32 0.00024414063, %v5951_v46 }
0x1471   :  { %v5954_v20 = vmul.f32 1.25, %v5953_v50 }
0x1473   :  { %v6095_v58 = vsel %vm6094_vm4, %v5954_v20, 0.0  ;;  %v11640_v20 = vld [vmem:[%s22535_s20 + $0x100] sm:$0xff] }
0x1474   :  { %v6098_v17 = vadd.f32 %v6097_v53, %v6095_v58  ;;  %v11631_v58 = vld [vmem:[%s22354_s12 + $0x38] sm:$0xff]  ;;  %v6205_v53 = vld [vmem:[%s22354_s12] sm:$0xff] }
0x1476   :  { %6099 = vst [vmem:[%s22355_s19] sm:$0x1] %v6098_v17  ;;  %v11629_v17 = vld [vmem:[%s22354_s12 + $0x28] sm:$0xff] }
0x149c   :  { %v14884_v36 = vpop.f32.mrb[62].mxu1  ;;  %v14922_v62 = vpop.f32.mrb[86].mxu0 }
0x149d   :  { %v6186_v42 = vpop.f32.mrb[63].mxu1  ;;  %v6291_v2 = vpop.f32.mrb[87].mxu0 }
0x149e   :  { %v17428_v39 = vpack.c.bf16 %v14884_v36, %v6186_v42  ;;  %v17420_v5 = vpack.c.bf16 %v14922_v62, %v6291_v2  ;;  %v11642_v62 = vld [vmem:[%s22535_s20 + $0x110] sm:$0xff]  ;;  %v11643_v42 = vld [vmem:[%s22535_s20 + $0x118] sm:$0xff]  ;;  %v6206_v2 = vld [vmem:[%s22354_s12 + $0x8] sm:$0xff] }
0x14a0   :  { %v14887_v24 = vpop.f32.mrb[64].mxu1  ;;  %17421 = vmatprep.subr.bf16.mxu1 %v17420_v5 }
0x14a1   :  { %v14925_v26 = vpop.f32.mrb[88].mxu0  ;;  %v6196_v16 = vpop.f32.mrb[65].mxu1  ;;  %17423 = vmatpush3.bf16.msra.mxu1 %v17420_v5  ;;  %v11641_v5 = vld [vmem:[%s22535_s20 + $0x108] sm:$0xff] }
0x14a2   :  { %v17432_v14 = vpack.c.bf16 %v14887_v24, %v6196_v16  ;;  %v6301_v46 = vpop.f32.mrb[89].mxu0  ;;  %v21337_v36 = vpack.c.bf16 %v11641_v5, %v11640_v20  ;;  %v21354_v24 = vpack.c.bf16 %v11643_v42, %v11642_v62  ;;  %v11645_v16 = vld [vmem:[%s22535_s20 + $0x128] sm:$0xff]  ;;  %v11648_v20 = vld [vmem:[%s22535_s20 + $0x140] sm:$0xff]  ;;  %v11651_v62 = vld [vmem:[%s22535_s20 + $0x158] sm:$0xff] }
0x14a3   :  { %v17424_v50 = vpack.c.bf16 %v14925_v26, %v6301_v46  ;;  %v11644_v26 = vld [vmem:[%s22535_s20 + $0x120] sm:$0xff]  ;;  %v11649_v5 = vld [vmem:[%s22535_s20 + $0x148] sm:$0xff] }
0x14a4   :  { %v21369_v46 = vpack.c.bf16 %v11645_v16, %v11644_v26  ;;  %v11652_v16 = vld [vmem:[%s22535_s20 + $0x160] sm:$0xff] }
0x14a5   :  { %17425 = vmatprep.subr.bf16.mxu1 %v17424_v50 }
0x14a6   :  { %17427 = vmatpush3.bf16.msra.mxu1 %v17424_v50  ;;  %v11646_v50 = vld [vmem:[%s22535_s20 + $0x130] sm:$0xff] }
0x14a7   :  { %17429 = vmatprep.subr.bf16.mxu1 %v17428_v39 }
0x14a9   :  { %14935 = vmatmul.mubr.msk.f32.vlgmr.msra.gmra.mrb[66].mxu1 %vm281_vm0, %v11629_v17  ;;  %v11647_v17 = vld [vmem:[%s22535_s20 + $0x138] sm:$0xff] }
0x14aa   :  { %17431 = vmatpush3.bf16.msra.mxu1 %v17428_v39  ;;  %14937 = vmatprep.mubr.msk.f32.mxu1 %vm281_vm0, %v11630_v63  ;;  %v6207_v39 = vld [vmem:[%s22354_s12 + $0x10] sm:$0xff]  ;;  %v21381_v63 = vpack.c.bf16 %v11647_v17, %v11646_v50 }
0x14ab   :  { %17433 = vmatprep.subr.bf16.mxu1 %v17432_v14 }
0x14ac   :  { %22650 = vst [vmem:[#allocation36_spill] sm:$0xff] %v21381_v63 }
0x14ad   :  { %14938 = vmatmul.mubr.msk.f32.gmra.mrb[68].mxu1 %vm281_vm0, %v11631_v58  ;;  %v21391_v58 = vpack.c.bf16 %v11649_v5, %v11648_v20 }
0x14ae   :  { %17435 = vmatpush3.bf16.msra.mxu1 %v17432_v14  ;;  %14948 = vmatprep.mubr.msk.f32.mxu1 %vm281_vm0, %v6205_v53  ;;  %v6208_v14 = vld [vmem:[%s22354_s12 + $0x18] sm:$0xff]  ;;  %v11650_v53 = vld [vmem:[%s22535_s20 + $0x150] sm:$0xff] }
0x14af   :  { %17437 = vmatprep.subr.bf16.mxu1 %v21337_v36  ;;  %22651 = vst [vmem:[#allocation37_spill] sm:$0xff] %v21391_v58  ;;  %v21401_v26 = vpack.c.bf16 %v11651_v62, %v11650_v53  ;;  %v11654_v53 = vld [vmem:[%s22535_s20 + $0x170] sm:$0xff]  ;;  %v11655_v62 = vld [vmem:[%s22535_s20 + $0x178] sm:$0xff] }
0x14b1   :  { %14949 = vmatmul.mubr.msk.f32.vlgmr.msra.gmra.mrb[66].mxu1 %vm281_vm0, %v6206_v2  ;;  %22652 = vst [vmem:[#allocation38_spill] sm:$0xff] %v21401_v26 }
0x14b2   :  { %17439 = vmatpush3.bf16.msra.mxu1 %v21337_v36  ;;  %14951 = vmatprep.mubr.msk.f32.mxu1 %vm281_vm0, %v6207_v39 }
0x14b3   :  { %17441 = vmatprep.subr.bf16.mxu1 %v21354_v24 }
0x14b5   :  { %14952 = vmatmul.mubr.msk.f32.gmra.mrb[68].mxu1 %vm281_vm0, %v6208_v14  ;;  %v11653_v14 = vld [vmem:[%s22535_s20 + $0x168] sm:$0xff] }
0x14b6   :  { %17443 = vmatpush3.bf16.msra.mxu1 %v21354_v24  ;;  %14986 = vmatprep.mubr.f32.mxu1 %v20878_v31  ;;  %v21411_v5 = vpack.c.bf16 %v11653_v14, %v11652_v16 }
0x14b7   :  { %17445 = vmatprep.subr.bf16.mxu1 %v21369_v46 }
0x14b8   :  { %22653 = vst [vmem:[#allocation39_spill] sm:$0xff] %v21411_v5 }
0x14ba   :  { %17447 = vmatpush3.bf16.msra.mxu1 %v21369_v46 }
0x14bb   :  { %17449 = vmatprep.subr.bf16.mxu1 %v21381_v63 }
0x14bd   :  { %v15040_v42 = vpop.f32.mrb[90].mxu0 }
0x14be   :  { %v6798_v2 = vpop.f32.mrb[91].mxu0  ;;  %17451 = vmatpush3.bf16.msra.mxu1 %v21381_v63 }
0x14bf   :  { %v17508_v39 = vpack.c.bf16 %v15040_v42, %v6798_v2  ;;  %17453 = vmatprep.subr.bf16.mxu1 %v21391_v58  ;;  %v21421_v42 = vpack.c.bf16 %v11655_v62, %v11654_v53 }
0x14c1   :  { %v15043_v50 = vpop.f32.mrb[92].mxu0  ;;  %22654 = vst [vmem:[#allocation40_spill] sm:$0xff] %v21421_v42 }
0x14c2   :  { %v6808_v17 = vpop.f32.mrb[93].mxu0  ;;  %17455 = vmatpush3.bf16.msra.mxu1 %v21391_v58 }
0x14c3   :  { %v17512_v20 = vpack.c.bf16 %v15043_v50, %v6808_v17  ;;  %17457 = vmatprep.subr.bf16.mxu1 %v21401_v26 }
0x14c6   :  { %17459 = vmatpush3.bf16.msra.mxu1 %v21401_v26 }
0x14c7   :  { %17461 = vmatprep.subr.bf16.mxu1 %v21411_v5 }
0x14ca   :  { %17463 = vmatpush3.bf16.msra.mxu1 %v21411_v5 }
0x14cb   :  { %17465 = vmatprep.subr.bf16.mxu1 %v21421_v42 }
0x14ce   :  { %17467 = vmatpush3.bf16.msra.mxu1 %v21421_v42 }
0x14d1   :  { %14987 = vmatmul.mubr.f32.vlgmr.msra.gmra.mrb[70].mxu1 %v20876_v54 }
0x14d2   :  { %14989 = vmatprep.mubr.f32.mxu1 %v20899_v59 }
0x14d5   :  { %14990 = vmatmul.mubr.f32.gmra.mrb[72].mxu1 %v20897_v34 }
0x14dd   :  { %v15092_v2 = vpop.f32.mrb[94].mxu0 }
0x14de   :  { %v7005_v16 = vpop.f32.mrb[95].mxu0 }
0x14df   :  { %v17548_v14 = vpack.c.bf16 %v15092_v2, %v7005_v16  ;;  %v11656_v2 = vld [vmem:[%s22354_s12 + $0x40] sm:$0xff] }
0x14e0   :  { %15000 = vmatprep.mubr.msk.f32.mxu1 %vm281_vm0, %v11656_v2  ;;  %v11712_v2 = vld [vmem:[%s22535_s20 + $0x280] sm:$0xff] }
0x14e1   :  { %v15095_v50 = vpop.f32.mrb[96].mxu0 }
0x14e2   :  { %v7015_v17 = vpop.f32.mrb[97].mxu0 }
0x14e3   :  { %v17552_v35 = vpack.c.bf16 %v15095_v50, %v7015_v17 }
0x14fd   :  { %v15196_v53 = vpop.f32.mrb[98].mxu0 }
0x14fe   :  { %v7419_v62 = vpop.f32.mrb[99].mxu0 }
0x14ff   :  { %v21429_v9 = vpack.c.bf16 %v15196_v53, %v7419_v62  ;;  %v11682_v62 = vld [vmem:[%s22354_s12 + $0x70] sm:$0xff] }
0x1501   :  { %v15199_v47 = vpop.f32.mrb[100].mxu0 }
0x1502   :  { %v7429_v7 = vpop.f32.mrb[101].mxu0 }
0x1503   :  { %v21431_v6 = vpack.c.bf16 %v15199_v47, %v7429_v7 }
0x151d   :  { %v15248_v52 = vpop.f32.mrb[102].mxu0 }
0x151e   :  { %v7626_v42 = vpop.f32.mrb[103].mxu0 }
0x151f   :  { %v21433_v5 = vpack.c.bf16 %v15248_v52, %v7626_v42  ;;  %v11657_v52 = vld [vmem:[%s22354_s12 + $0x48] sm:$0xff]  ;;  %v11680_v42 = vld [vmem:[%s22354_s12 + $0x60] sm:$0xff] }
0x1521   :  { %v15251_v26 = vpop.f32.mrb[104].mxu0 }
0x1522   :  { %v7636_v58 = vpop.f32.mrb[105].mxu0 }
0x1523   :  { %v21435_v63 = vpack.c.bf16 %v15251_v26, %v7636_v58  ;;  %v11658_v58 = vld [vmem:[%s22354_s12 + $0x50] sm:$0xff]  ;;  %v11659_v26 = vld [vmem:[%s22354_s12 + $0x58] sm:$0xff] }
0x15a4   :  { %v14988_v16 = vpop.f32.mrb[70].mxu1 }
0x15a5   :  { %v6591_v50 = vpop.f32.mrb[71].mxu1 }
0x15a6   :  { %v17468_v17 = vpack.c.bf16 %v14988_v16, %v6591_v50  ;;  %v11713_v16 = vld [vmem:[%s22535_s20 + $0x288] sm:$0xff]  ;;  %v11704_v50 = vld [vmem:[%s22354_s12 + $0x80] sm:$0xff] }
0x15a8   :  { %v14991_v53 = vpop.f32.mrb[72].mxu1  ;;  %17469 = vmatprep.subr.bf16.mxu1 %v17468_v17 }
0x15a9   :  { %v6601_v7 = vpop.f32.mrb[73].mxu1  ;;  %17471 = vmatpush3.bf16.msra.mxu1 %v17468_v17  ;;  %v21477_v17 = vpack.c.bf16 %v11713_v16, %v11712_v2  ;;  %v11720_v16 = vld [vmem:[%s22535_s20 + $0x2c0] sm:$0xff] }
0x15aa   :  { %v17472_v47 = vpack.c.bf16 %v14991_v53, %v6601_v7  ;;  %v11714_v53 = vld [vmem:[%s22535_s20 + $0x290] sm:$0xff]  ;;  %v11705_v7 = vld [vmem:[%s22354_s12 + $0x88] sm:$0xff] }
0x15ac   :  { %17473 = vmatprep.subr.bf16.mxu1 %v17472_v47 }
0x15ad   :  { %17475 = vmatpush3.bf16.msra.mxu1 %v17472_v47  ;;  %v11706_v47 = vld [vmem:[%s22354_s12 + $0x90] sm:$0xff] }
0x15ae   :  { %17509 = vmatprep.subr.bf16.mxu1 %v17508_v39 }
0x15b0   :  { %15001 = vmatmul.mubr.msk.f32.vlgmr.msra.gmra.mrb[66].mxu1 %vm281_vm0, %v11657_v52 }
0x15b1   :  { %17511 = vmatpush3.bf16.msra.mxu1 %v17508_v39  ;;  %15003 = vmatprep.mubr.msk.f32.mxu1 %vm281_vm0, %v11658_v58  ;;  %v11681_v39 = vld [vmem:[%s22354_s12 + $0x68] sm:$0xff]  ;;  %v11716_v58 = vld [vmem:[%s22535_s20 + $0x2a0] sm:$0xff] }
0x15b2   :  { %17513 = vmatprep.subr.bf16.mxu1 %v17512_v20 }
0x15b4   :  { %15004 = vmatmul.mubr.msk.f32.gmra.mrb[68].mxu1 %vm281_vm0, %v11659_v26  ;;  %v11707_v26 = vld [vmem:[%s22354_s12 + $0x98] sm:$0xff] }
0x15b5   :  { %17515 = vmatpush3.bf16.msra.mxu1 %v17512_v20  ;;  %15052 = vmatprep.mubr.msk.f32.mxu1 %vm281_vm0, %v11680_v42  ;;  %v11683_v20 = vld [vmem:[%s22354_s12 + $0x78] sm:$0xff] }
0x15b6   :  { %17549 = vmatprep.subr.bf16.mxu1 %v17548_v14 }
0x15b8   :  { %15053 = vmatmul.mubr.msk.f32.vlgmr.msra.gmra.mrb[66].mxu1 %vm281_vm0, %v11681_v39  ;;  %v11718_v39 = vld [vmem:[%s22535_s20 + $0x2b0] sm:$0xff] }
0x15b9   :  { %17551 = vmatpush3.bf16.msra.mxu1 %v17548_v14  ;;  %15055 = vmatprep.mubr.msk.f32.mxu1 %vm281_vm0, %v11682_v62  ;;  %v11715_v14 = vld [vmem:[%s22535_s20 + $0x298] sm:$0xff] }
0x15ba   :  { %17553 = vmatprep.subr.bf16.mxu1 %v17552_v35  ;;  %v21494_v52 = vpack.c.bf16 %v11715_v14, %v11714_v53  ;;  %v11719_v62 = vld [vmem:[%s22535_s20 + $0x2b8] sm:$0xff]  ;;  %v11722_v53 = vld [vmem:[%s22535_s20 + $0x2d0] sm:$0xff] }
0x15bb   :  { %v21521_v2 = vpack.c.bf16 %v11719_v62, %v11718_v39  ;;  %v11723_v14 = vld [vmem:[%s22535_s20 + $0x2d8] sm:$0xff] }
0x15bc   :  { %15056 = vmatmul.mubr.msk.f32.gmra.mrb[68].mxu1 %vm281_vm0, %v11683_v20  ;;  %v11721_v20 = vld [vmem:[%s22535_s20 + $0x2c8] sm:$0xff]  ;;  %v11727_v39 = vld [vmem:[%s22535_s20 + $0x2f8] sm:$0xff] }
0x15bd   :  { %17555 = vmatpush3.bf16.msra.mxu1 %v17552_v35  ;;  %15104 = vmatprep.mubr.msk.f32.mxu1 %vm281_vm0, %v11704_v50  ;;  %v11717_v35 = vld [vmem:[%s22535_s20 + $0x2a8] sm:$0xff]  ;;  %v21531_v50 = vpack.c.bf16 %v11721_v20, %v11720_v16  ;;  %v11728_v16 = vld [vmem:[%s22354_s12 + $0xa0] sm:$0xff] }
0x15be   :  { %17557 = vmatprep.subr.bf16.mxu1 %v21477_v17  ;;  %v21509_v42 = vpack.c.bf16 %v11717_v35, %v11716_v58  ;;  %v11725_v58 = vld [vmem:[%s22535_s20 + $0x2e8] sm:$0xff] }
0x15c0   :  { %15105 = vmatmul.mubr.msk.f32.vlgmr.msra.gmra.mrb[66].mxu1 %vm281_vm0, %v11705_v7  ;;  %v21541_v7 = vpack.c.bf16 %v11723_v14, %v11722_v53 }
0x15c1   :  { %17559 = vmatpush3.bf16.msra.mxu1 %v21477_v17  ;;  %15107 = vmatprep.mubr.msk.f32.mxu1 %vm281_vm0, %v11706_v47  ;;  %v11724_v47 = vld [vmem:[%s22535_s20 + $0x2e0] sm:$0xff] }
0x15c2   :  { %17561 = vmatprep.subr.bf16.mxu1 %v21494_v52  ;;  %v21551_v35 = vpack.c.bf16 %v11725_v58, %v11724_v47 }
0x15c4   :  { %15108 = vmatmul.mubr.msk.f32.gmra.mrb[68].mxu1 %vm281_vm0, %v11707_v26  ;;  %v11726_v26 = vld [vmem:[%s22535_s20 + $0x2f0] sm:$0xff] }
0x15c5   :  { %17563 = vmatpush3.bf16.msra.mxu1 %v21494_v52  ;;  %15142 = vmatprep.mubr.f32.mxu1 %v20878_v31  ;;  %v21561_v62 = vpack.c.bf16 %v11727_v39, %v11726_v26  ;;  %v11729_v39 = vld [vmem:[%s22354_s12 + $0xa8] sm:$0xff] }
0x15c6   :  { %17565 = vmatprep.subr.bf16.mxu1 %v21509_v42 }
0x15c9   :  { %17567 = vmatpush3.bf16.msra.mxu1 %v21509_v42 }
0x15ca   :  { %17569 = vmatprep.subr.bf16.mxu1 %v21521_v2 }
0x15cd   :  { %17571 = vmatpush3.bf16.msra.mxu1 %v21521_v2 }
0x15ce   :  { %17573 = vmatprep.subr.bf16.mxu1 %v21531_v50 }
0x15d1   :  { %17575 = vmatpush3.bf16.msra.mxu1 %v21531_v50 }
0x15d2   :  { %17577 = vmatprep.subr.bf16.mxu1 %v21541_v7 }
0x15d5   :  { %17579 = vmatpush3.bf16.msra.mxu1 %v21541_v7 }
0x15d6   :  { %17581 = vmatprep.subr.bf16.mxu1 %v21551_v35 }
0x15d9   :  { %17583 = vmatpush3.bf16.msra.mxu1 %v21551_v35 }
0x15da   :  { %17585 = vmatprep.subr.bf16.mxu1 %v21561_v62 }
0x15dd   :  { %17587 = vmatpush3.bf16.msra.mxu1 %v21561_v62 }
0x15e0   :  { %15143 = vmatmul.mubr.f32.vlgmr.msra.gmra.mrb[74].mxu1 %v20876_v54 }
0x15e1   :  { %15145 = vmatprep.mubr.f32.mxu1 %v20899_v59 }
0x15e4   :  { %15146 = vmatmul.mubr.f32.gmra.mrb[76].mxu1 %v20897_v34 }
0x15e5   :  { %15156 = vmatprep.mubr.msk.f32.mxu1 %vm281_vm0, %v11728_v16  ;;  %v11730_v16 = vld [vmem:[%s22354_s12 + $0xb0] sm:$0xff] }
0x16b3   :  { %v15144_v20 = vpop.f32.mrb[74].mxu1 }
0x16b4   :  { %v7212_v53 = vpop.f32.mrb[75].mxu1 }
0x16b5   :  { %v17588_v14 = vpack.c.bf16 %v15144_v20, %v7212_v53  ;;  %v11731_v20 = vld [vmem:[%s22354_s12 + $0xb8] sm:$0xff]  ;;  %v11752_v53 = vld [vmem:[%s22354_s12 + $0xc0] sm:$0xff] }
0x16b7   :  { %v15147_v47 = vpop.f32.mrb[76].mxu1  ;;  %17589 = vmatprep.subr.bf16.mxu1 %v17588_v14 }
0x16b8   :  { %v7222_v58 = vpop.f32.mrb[77].mxu1  ;;  %17591 = vmatpush3.bf16.msra.mxu1 %v17588_v14  ;;  %v11754_v14 = vld [vmem:[%s22354_s12 + $0xd0] sm:$0xff] }
0x16b9   :  { %v17592_v26 = vpack.c.bf16 %v15147_v47, %v7222_v58  ;;  %v11784_v47 = vld [vmem:[%s22535_s20 + $0x400] sm:$0xff]  ;;  %v11755_v58 = vld [vmem:[%s22354_s12 + $0xd8] sm:$0xff] }
0x16bb   :  { %17593 = vmatprep.subr.bf16.mxu1 %v17592_v26 }
0x16bc   :  { %17595 = vmatpush3.bf16.msra.mxu1 %v17592_v26  ;;  %v11776_v26 = vld [vmem:[%s22354_s12 + $0xe0] sm:$0xff] }
0x16bd   :  { %17629 = vmatprep.subr.bf16.mxu1 %v21429_v9 }
0x16bf   :  { %15157 = vmatmul.mubr.msk.f32.vlgmr.msra.gmra.mrb[66].mxu1 %vm281_vm0, %v11729_v39 }
0x16c0   :  { %17631 = vmatpush3.bf16.msra.mxu1 %v21429_v9  ;;  %15159 = vmatprep.mubr.msk.f32.mxu1 %vm281_vm0, %v11730_v16  ;;  %v11753_v9 = vld [vmem:[%s22354_s12 + $0xc8] sm:$0xff]  ;;  %v11786_v16 = vld [vmem:[%s22535_s20 + $0x410] sm:$0xff] }
0x16c1   :  { %17633 = vmatprep.subr.bf16.mxu1 %v21431_v6 }
0x16c3   :  { %15160 = vmatmul.mubr.msk.f32.gmra.mrb[68].mxu1 %vm281_vm0, %v11731_v20  ;;  %v11777_v20 = vld [vmem:[%s22354_s12 + $0xe8] sm:$0xff] }
0x16c4   :  { %17635 = vmatpush3.bf16.msra.mxu1 %v21431_v6  ;;  %15208 = vmatprep.mubr.msk.f32.mxu1 %vm281_vm0, %v11752_v53  ;;  %v11785_v6 = vld [vmem:[%s22535_s20 + $0x408] sm:$0xff]  ;;  %v11778_v53 = vld [vmem:[%s22354_s12 + $0xf0] sm:$0xff] }
0x16c5   :  { %17669 = vmatprep.subr.bf16.mxu1 %v21433_v5  ;;  %v21616_v39 = vpack.c.bf16 %v11785_v6, %v11784_v47  ;;  %v11779_v47 = vld [vmem:[%s22354_s12 + $0xf8] sm:$0xff] }
0x16c7   :  { %15209 = vmatmul.mubr.msk.f32.vlgmr.msra.gmra.mrb[66].mxu1 %vm281_vm0, %v11753_v9 }
0x16c8   :  { %17671 = vmatpush3.bf16.msra.mxu1 %v21433_v5  ;;  %15211 = vmatprep.mubr.msk.f32.mxu1 %vm281_vm0, %v11754_v14  ;;  %v11787_v5 = vld [vmem:[%s22535_s20 + $0x418] sm:$0xff]  ;;  %v11788_v14 = vld [vmem:[%s22535_s20 + $0x420] sm:$0xff] }
0x16c9   :  { %17673 = vmatprep.subr.bf16.mxu1 %v21435_v63  ;;  %v21634_v9 = vpack.c.bf16 %v11787_v5, %v11786_v16  ;;  %v11792_v5 = vld [vmem:[%s22535_s20 + $0x440] sm:$0xff] }
0x16cb   :  { %15212 = vmatmul.mubr.msk.f32.gmra.mrb[68].mxu1 %vm281_vm0, %v11755_v58  ;;  %v11790_v58 = vld [vmem:[%s22535_s20 + $0x430] sm:$0xff] }
0x16cc   :  { %17675 = vmatpush3.bf16.msra.mxu1 %v21435_v63  ;;  %15260 = vmatprep.mubr.msk.f32.mxu1 %vm281_vm0, %v11776_v26  ;;  %v11789_v63 = vld [vmem:[%s22535_s20 + $0x428] sm:$0xff]  ;;  %v11791_v26 = vld [vmem:[%s22535_s20 + $0x438] sm:$0xff] }
0x16cd   :  { %17677 = vmatprep.subr.bf16.mxu1 %v21616_v39  ;;  %v21649_v6 = vpack.c.bf16 %v11789_v63, %v11788_v14  ;;  %v21661_v16 = vpack.c.bf16 %v11791_v26, %v11790_v58  ;;  %v11795_v14 = vld [vmem:[%s22535_s20 + $0x458] sm:$0xff]  ;;  %v11797_v58 = vld [vmem:[%s22535_s20 + $0x468] sm:$0xff] }
0x16cf   :  { %15261 = vmatmul.mubr.msk.f32.vlgmr.msra.gmra.mrb[66].mxu1 %vm281_vm0, %v11777_v20  ;;  %v11793_v20 = vld [vmem:[%s22535_s20 + $0x448] sm:$0xff] }
0x16d0   :  { %17679 = vmatpush3.bf16.msra.mxu1 %v21616_v39  ;;  %15263 = vmatprep.mubr.msk.f32.mxu1 %vm281_vm0, %v11778_v53  ;;  %v21671_v53 = vpack.c.bf16 %v11793_v20, %v11792_v5  ;;  %v11798_v5 = vld [vmem:[%s22535_s20 + $0x470] sm:$0xff]  ;;  %v11799_v20 = vld [vmem:[%s22535_s20 + $0x478] sm:$0xff] }
0x16d1   :  { %17681 = vmatprep.subr.bf16.mxu1 %v21634_v9 }
0x16d3   :  { %15264 = vmatmul.mubr.msk.f32.gmra.mrb[68].mxu1 %vm281_vm0, %v11779_v47  ;;  %v11796_v47 = vld [vmem:[%s22535_s20 + $0x460] sm:$0xff] }
0x16d4   :  { %17683 = vmatpush3.bf16.msra.mxu1 %v21634_v9  ;;  %15298 = vmatprep.mubr.f32.mxu1 %v20878_v31  ;;  %v11794_v31 = vld [vmem:[%s22535_s20 + $0x450] sm:$0xff]  ;;  %v21691_v26 = vpack.c.bf16 %v11797_v58, %v11796_v47 }
0x16d5   :  { %17685 = vmatprep.subr.bf16.mxu1 %v21649_v6  ;;  %v21681_v63 = vpack.c.bf16 %v11795_v14, %v11794_v31  ;;  %v21701_v31 = vpack.c.bf16 %v11799_v20, %v11798_v5  ;;  %v11800_v14 = vld [vmem:[%s22354_s12 + $0x100] sm:$0xff] }
0x16d6   :  { %22655 = vst [vmem:[#allocation41_spill] sm:$0xff] %v21691_v26 }
0x16d7   :  { %22656 = vst [vmem:[#allocation42_spill] sm:$0xff] %v21701_v31 }
0x16d8   :  { %17687 = vmatpush3.bf16.msra.mxu1 %v21649_v6 }
0x16d9   :  { %17689 = vmatprep.subr.bf16.mxu1 %v21661_v16 }
0x16dc   :  { %17691 = vmatpush3.bf16.msra.mxu1 %v21661_v16 }
0x16dd   :  { %17693 = vmatprep.subr.bf16.mxu1 %v21671_v53 }
0x16e0   :  { %17695 = vmatpush3.bf16.msra.mxu1 %v21671_v53 }
0x16e1   :  { %17697 = vmatprep.subr.bf16.mxu1 %v21681_v63 }
0x16e4   :  { %17699 = vmatpush3.bf16.msra.mxu1 %v21681_v63 }
0x16e5   :  { %17701 = vmatprep.subr.bf16.mxu1 %v21691_v26 }
0x16e8   :  { %17703 = vmatpush3.bf16.msra.mxu1 %v21691_v26 }
0x16e9   :  { %17705 = vmatprep.subr.bf16.mxu1 %v21701_v31 }
0x16ec   :  { %17707 = vmatpush3.bf16.msra.mxu1 %v21701_v31 }
0x16ef   :  { %15299 = vmatmul.mubr.f32.vlgmr.msra.gmra.mrb[78].mxu1 %v20876_v54  ;;  %v11801_v54 = vld [vmem:[%s22354_s12 + $0x108] sm:$0xff] }
0x16f0   :  { %15301 = vmatprep.mubr.f32.mxu1 %v20899_v59  ;;  %v11803_v59 = vld [vmem:[%s22354_s12 + $0x118] sm:$0xff] }
0x16f3   :  { %15302 = vmatmul.mubr.f32.gmra.mrb[80].mxu1 %v20897_v34  ;;  %v11802_v34 = vld [vmem:[%s22354_s12 + $0x110] sm:$0xff] }
0x16f4   :  { %15312 = vmatprep.mubr.msk.f32.mxu1 %vm281_vm0, %v11800_v14 }
0x17c2   :  { %v15300_v47 = vpop.f32.mrb[78].mxu1 }
0x17c3   :  { %v7833_v58 = vpop.f32.mrb[79].mxu1 }
0x17c4   :  { %v17708_v5 = vpack.c.bf16 %v15300_v47, %v7833_v58 }
0x17c6   :  { %v15303_v20 = vpop.f32.mrb[80].mxu1  ;;  %17709 = vmatprep.subr.bf16.mxu1 %v17708_v5 }
0x17c7   :  { %v7843_v26 = vpop.f32.mrb[81].mxu1  ;;  %17711 = vmatpush3.bf16.msra.mxu1 %v17708_v5 }
0x17c8   :  { %v17712_v31 = vpack.c.bf16 %v15303_v20, %v7843_v26 }
0x17ca   :  { %17713 = vmatprep.subr.bf16.mxu1 %v17712_v31 }
0x17cb   :  { %17715 = vmatpush3.bf16.msra.mxu1 %v17712_v31 }
0x17cc   :  { %17749 = vmatprep.subr.bf16.mxu1 %v20710_v3 }
0x17ce   :  { %15313 = vmatmul.mubr.msk.f32.vlgmr.msra.gmra.mrb[66].mxu1 %vm281_vm0, %v11801_v54 }
0x17cf   :  { %15315 = vmatprep.mubr.msk.f32.mxu1 %vm281_vm0, %v11802_v34  ;;  %17751 = vmatpush3.bf16.msra.mxu1 %v20710_v3 }
0x17d0   :  { %17753 = vmatprep.subr.bf16.mxu1 %v20723_v28 }
0x17d2   :  { %15316 = vmatmul.mubr.msk.f32.gmra.mrb[68].mxu1 %vm281_vm0, %v11803_v59 }
0x17d3   :  { %17755 = vmatpush3.bf16.msra.mxu1 %v20723_v28 }
0x17d4   :  { %17757 = vmatprep.subr.bf16.mxu1 %v20750_v38 }
0x17d7   :  { %17759 = vmatpush3.bf16.msra.mxu1 %v20750_v38 }
0x17d8   :  { %17761 = vmatprep.subr.bf16.mxu1 %v20770_v25 }
0x17db   :  { %17763 = vmatpush3.bf16.msra.mxu1 %v20770_v25 }
0x17dc   :  { %17765 = vmatprep.subr.bf16.mxu1 %v20790_v12 }
0x17df   :  { %17767 = vmatpush3.bf16.msra.mxu1 %v20790_v12 }
0x17e0   :  { %17769 = vmatprep.subr.bf16.mxu1 %v20810_v56 }
0x17e3   :  { %17771 = vmatpush3.bf16.msra.mxu1 %v20810_v56 }
0x17e4   :  { %17773 = vmatprep.subr.bf16.mxu1 %v20830_v37 }
0x17e7   :  { %17775 = vmatpush3.bf16.msra.mxu1 %v20830_v37 }
0x17e8   :  { %17777 = vmatprep.subr.bf16.mxu1 %v20850_v32 }
0x17eb   :  { %17779 = vmatpush3.bf16.msra.mxu1 %v20850_v32 }
0x17ec   :  { %17837 = vmatprep.subr.bf16.mxu1 %v20867_v23 }
0x18a1   :  { %v15314_v26 = vpop.f32.mrb[66].mxu1 }
0x18a2   :  { %v21743_v31 = vadd.f32 %v15314_v26, %v20971_v29  ;;  %v7935_v14 = vpop.f32.mrb[67].mxu1  ;;  %v22659_v26 = vld [vmem:[#allocation21_spill] sm:$0xff] }
0x18a3   :  { %v21746_v47 = vadd.f32 %v20953_v43, %v7935_v14  ;;  %v22660_v14 = vld [vmem:[#allocation22_spill] sm:$0xff] }
0x18a4   :  { %v21752_v20 = vmax.f32 %v21743_v31, 0.0 }
0x18a5   :  { %v21749_v58 = vmax.f32 %v21746_v47, 0.0  ;;  %v15317_v5 = vpop.f32.mrb[68].mxu1 }
0x18a6   :  { %v21755_v54 = vadd.f32 %v15317_v5, %v20989_v8  ;;  %v7945_v34 = vpop.f32.mrb[69].mxu1  ;;  %v22658_v8 = vld [vmem:[#allocation19_spill] sm:$0xff] }
0x18a7   :  { %v21758_v59 = vadd.f32 %v20973_v18, %v7945_v34  ;;  %15350 = vmatprep.mubr.f32.mxu0 %v21749_v58  ;;  %15388 = vmatprep.mubr.f32.mxu1 %v21749_v58  ;;  %v22657_v18 = vld [vmem:[#allocation18_spill] sm:$0xff]  ;;  %v22661_v5 = vld [vmem:[#allocation23_spill] sm:$0xff]  ;;  %v22662_v34 = vld [vmem:[#allocation24_spill] sm:$0xff] }
0x18a8   :  { %15351 = vmatmul.mubr.f32.vlgmr.msra.gmra.mrb[106].mxu0 %v21752_v20  ;;  %15389 = vmatmul.mubr.f32.vlgmr.msra.gmra.mrb[82].mxu1 %v21752_v20  ;;  %v21769_v29 = vmax.f32 %v21755_v54, 0.0 }
0x18a9   :  { %v21765_v43 = vmax.f32 %v21758_v59, 0.0  ;;  %17839 = vmatpush3.bf16.msra.mxu1 %v20867_v23 }
0x18aa   :  { %17841 = vmatprep.subr.bf16.mxu1 %v20882_v27 }
0x18ab   :  { %15353 = vmatprep.mubr.f32.mxu0 %v21765_v43  ;;  %15391 = vmatprep.mubr.f32.mxu1 %v21765_v43 }
0x18ac   :  { %15354 = vmatmul.mubr.f32.gmra.mrb[108].mxu0 %v21769_v29  ;;  %15392 = vmatmul.mubr.f32.gmra.mrb[84].mxu1 %v21769_v29 }
0x18ad   :  { %17843 = vmatpush3.bf16.msra.mxu1 %v20882_v27  ;;  %15497 = vmatprep.mubr.f32.mxu1 %v21749_v58 }
0x18ae   :  { %17845 = vmatprep.subr.bf16.mxu1 %v20905_v10 }
0x18b1   :  { %17847 = vmatpush3.bf16.msra.mxu1 %v20905_v10 }
0x18b2   :  { %17849 = vmatprep.subr.bf16.mxu1 %v20921_v49 }
0x18b5   :  { %17851 = vmatpush3.bf16.msra.mxu1 %v20921_v49 }
0x18b6   :  { %17853 = vmatprep.subr.bf16.mxu1 %v20931_v21 }
0x18b9   :  { %17855 = vmatpush3.bf16.msra.mxu1 %v20931_v21 }
0x18ba   :  { %17857 = vmatprep.subr.bf16.mxu1 %v20941_v61 }
0x18bd   :  { %17859 = vmatpush3.bf16.msra.mxu1 %v20941_v61 }
0x18be   :  { %17861 = vmatprep.subr.bf16.mxu1 %v20951_v0 }
0x18c1   :  { %17863 = vmatpush3.bf16.msra.mxu1 %v20951_v0  ;;  %v11808_v0 = vld [vmem:[%s22356_s14 + $0x10] sm:$0xff] }
0x18c2   :  { %17865 = vmatprep.subr.bf16.mxu1 %v20963_v1  ;;  %15402 = vmatprep.mubr.msk.f32.mxu0 %vm281_vm0, %v11808_v0 }
0x18c5   :  { %17867 = vmatpush3.bf16.msra.mxu1 %v20963_v1  ;;  %v22663_v1 = vld [vmem:[#allocation25_spill] sm:$0xff] }
0x18c6   :  { %17877 = vmatprep.subr.bf16.mxu1 %v20977_v33 }
0x18c8   :  { %15498 = vmatmul.mubr.f32.vlgmr.msra.gmra.mrb[86].mxu1 %v21752_v20 }
0x18c9   :  { %15500 = vmatprep.mubr.f32.mxu1 %v21765_v43  ;;  %17879 = vmatpush3.bf16.msra.mxu1 %v20977_v33 }
0x18ca   :  { %17881 = vmatprep.subr.bf16.mxu1 %v20987_v45 }
0x18cc   :  { %15501 = vmatmul.mubr.f32.gmra.mrb[88].mxu1 %v21769_v29 }
0x18cd   :  { %17883 = vmatpush3.bf16.msra.mxu1 %v20987_v45  ;;  %15546 = vmatprep.mubr.f32.mxu1 %v21749_v58 }
0x18ce   :  { %17885 = vmatprep.subr.bf16.mxu1 %v21001_v22 }
0x18d1   :  { %17887 = vmatpush3.bf16.msra.mxu1 %v21001_v22 }
0x18d2   :  { %17889 = vmatprep.subr.bf16.mxu1 %v21015_v44 }
0x18d5   :  { %17891 = vmatpush3.bf16.msra.mxu1 %v21015_v44 }
0x18d6   :  { %17893 = vmatprep.subr.bf16.mxu1 %v21030_v4 }
0x18d9   :  { %17895 = vmatpush3.bf16.msra.mxu1 %v21030_v4 }
0x18da   :  { %17897 = vmatprep.subr.bf16.mxu1 %v21044_v30 }
0x18dd   :  { %17899 = vmatpush3.bf16.msra.mxu1 %v21044_v30 }
0x18de   :  { %17901 = vmatprep.subr.bf16.mxu1 %v22657_v18 }
0x18e1   :  { %17903 = vmatpush3.bf16.msra.mxu1 %v22657_v18 }
0x18e2   :  { %17905 = vmatprep.subr.bf16.mxu1 %v22658_v8 }
0x18e5   :  { %17907 = vmatpush3.bf16.msra.mxu1 %v22658_v8 }
0x18e6   :  { %17957 = vmatprep.subr.bf16.mxu1 %v21083_v19 }
0x18e8   :  { %15547 = vmatmul.mubr.f32.vlgmr.msra.gmra.mrb[90].mxu1 %v21752_v20 }
0x18e9   :  { %15549 = vmatprep.mubr.f32.mxu1 %v21765_v43  ;;  %17959 = vmatpush3.bf16.msra.mxu1 %v21083_v19 }
0x18ea   :  { %17961 = vmatprep.subr.bf16.mxu1 %v22659_v26 }
0x18ec   :  { %15550 = vmatmul.mubr.f32.gmra.mrb[92].mxu1 %v21769_v29 }
0x18ed   :  { %17963 = vmatpush3.bf16.msra.mxu1 %v22659_v26  ;;  %15644 = vmatprep.mubr.f32.mxu1 %v21749_v58 }
0x18ee   :  { %17965 = vmatprep.subr.bf16.mxu1 %v22660_v14 }
0x18f1   :  { %17967 = vmatpush3.bf16.msra.mxu1 %v22660_v14 }
0x18f2   :  { %17969 = vmatprep.subr.bf16.mxu1 %v22661_v5 }
0x18f5   :  { %17971 = vmatpush3.bf16.msra.mxu1 %v22661_v5 }
0x18f6   :  { %17973 = vmatprep.subr.bf16.mxu1 %v22662_v34 }
0x18f9   :  { %17975 = vmatpush3.bf16.msra.mxu1 %v22662_v34 }
0x18fa   :  { %17977 = vmatprep.subr.bf16.mxu1 %v22663_v1 }
0x18fd   :  { %17979 = vmatpush3.bf16.msra.mxu1 %v22663_v1 }
0x18fe   :  { %17981 = vmatprep.subr.bf16.mxu1 %v21172_v51 }
0x1901   :  { %17983 = vmatpush3.bf16.msra.mxu1 %v21172_v51 }
0x1902   :  { %17985 = vmatprep.subr.bf16.mxu1 %v21186_v41 }
0x1905   :  { %17987 = vmatpush3.bf16.msra.mxu1 %v21186_v41 }
0x1906   :  { %17997 = vmatprep.subr.bf16.mxu1 %v21200_v60 }
0x1908   :  { %15645 = vmatmul.mubr.f32.vlgmr.msra.gmra.mrb[94].mxu1 %v21752_v20 }
0x1909   :  { %15647 = vmatprep.mubr.f32.mxu1 %v21765_v43  ;;  %17999 = vmatpush3.bf16.msra.mxu1 %v21200_v60 }
0x190a   :  { %18001 = vmatprep.subr.bf16.mxu1 %v21214_v57 }
0x190c   :  { %15648 = vmatmul.mubr.f32.gmra.mrb[96].mxu1 %v21769_v29 }
0x190d   :  { %18003 = vmatpush3.bf16.msra.mxu1 %v21214_v57  ;;  %15693 = vmatprep.mubr.f32.mxu1 %v21749_v58 }
0x190e   :  { %18005 = vmatprep.subr.bf16.mxu1 %v21232_v40 }
0x1911   :  { %18007 = vmatpush3.bf16.msra.mxu1 %v21232_v40  ;;  %v11809_v40 = vld [vmem:[%s22356_s14 + $0x18] sm:$0xff] }
0x1912   :  { %18009 = vmatprep.subr.bf16.mxu1 %v21245_v11 }
0x1915   :  { %18011 = vmatpush3.bf16.msra.mxu1 %v21245_v11 }
0x1916   :  { %18013 = vmatprep.subr.bf16.mxu1 %v21256_v55 }
0x1919   :  { %18015 = vmatpush3.bf16.msra.mxu1 %v21256_v55 }
0x191a   :  { %18017 = vmatprep.subr.bf16.mxu1 %v21267_v13 }
0x191d   :  { %18019 = vmatpush3.bf16.msra.mxu1 %v21267_v13 }
0x191e   :  { %18021 = vmatprep.subr.bf16.mxu1 %v21278_v15 }
0x1921   :  { %18023 = vmatpush3.bf16.msra.mxu1 %v21278_v15 }
0x1922   :  { %18025 = vmatprep.subr.bf16.mxu1 %v21289_v48 }
0x1925   :  { %18027 = vmatpush3.bf16.msra.mxu1 %v21289_v48 }
0x1928   :  { %15694 = vmatmul.mubr.f32.vlgmr.msra.gmra.mrb[98].mxu1 %v21752_v20 }
0x1929   :  { %15696 = vmatprep.mubr.f32.mxu1 %v21765_v43 }
0x192c   :  { %15697 = vmatmul.mubr.f32.gmra.mrb[100].mxu1 %v21769_v29 }
0x197b   :  { %v15352_v0 = vpop.f32.mrb[106].mxu0  ;;  %v15390_v61 = vpop.f32.mrb[82].mxu1 }
0x197c   :  { %v8052_v21 = vpop.f32.mrb[107].mxu0  ;;  %v8139_v49 = vpop.f32.mrb[83].mxu1 }
0x197d   :  { %v17788_v10 = vpack.c.bf16 %v15352_v0, %v8052_v21  ;;  %v17780_v27 = vpack.c.bf16 %v15390_v61, %v8139_v49  ;;  %v8071_v21 = vld [vmem:[%s22356_s14] sm:$0xff]  ;;  %v22668_v0 = vld [vmem:[#allocation40_spill] sm:$0xff] }
0x197f   :  { %v15355_v23 = vpop.f32.mrb[108].mxu0  ;;  %v15393_v13 = vpop.f32.mrb[84].mxu1  ;;  %17781 = vmatprep.subr.bf16.mxu0 %v17780_v27 }
0x1980   :  { %v8062_v15 = vpop.f32.mrb[109].mxu0  ;;  %v8149_v55 = vpop.f32.mrb[85].mxu1  ;;  %17783 = vmatpush3.bf16.msra.mxu0 %v17780_v27  ;;  %v22664_v27 = vld [vmem:[#allocation36_spill] sm:$0xff] }
0x1981   :  { %v17792_v11 = vpack.c.bf16 %v15355_v23, %v8062_v15  ;;  %v17784_v48 = vpack.c.bf16 %v15393_v13, %v8149_v55  ;;  %v8072_v23 = vld [vmem:[%s22356_s14 + $0x8] sm:$0xff]  ;;  %v22666_v15 = vld [vmem:[#allocation38_spill] sm:$0xff] }
0x1983   :  { %17785 = vmatprep.subr.bf16.mxu0 %v17784_v48 }
0x1984   :  { %17787 = vmatpush3.bf16.msra.mxu0 %v17784_v48  ;;  %v22667_v48 = vld [vmem:[#allocation39_spill] sm:$0xff] }
0x1985   :  { %17789 = vmatprep.subr.bf16.mxu0 %v17788_v10 }
0x1987   :  { %15403 = vmatmul.mubr.msk.f32.vlgmr.msra.gmra.mrb[110].mxu0 %vm281_vm0, %v11809_v40  ;;  %v22665_v40 = vld [vmem:[#allocation37_spill] sm:$0xff] }
0x1988   :  { %17791 = vmatpush3.bf16.msra.mxu0 %v17788_v10  ;;  %15413 = vmatprep.mubr.msk.f32.mxu0 %vm281_vm0, %v8071_v21 }
0x1989   :  { %17793 = vmatprep.subr.bf16.mxu0 %v17792_v11 }
0x198c   :  { %17795 = vmatpush3.bf16.msra.mxu0 %v17792_v11 }
0x198d   :  { %17797 = vmatprep.subr.bf16.mxu0 %v21337_v36 }
0x198f   :  { %15414 = vmatmul.mubr.msk.f32.vlgmr.msra.gmra.mrb[110].mxu0 %vm281_vm0, %v8072_v23 }
0x1990   :  { %17799 = vmatpush3.bf16.msra.mxu0 %v21337_v36  ;;  %15448 = vmatprep.mubr.f32.mxu0 %v21749_v58 }
0x1991   :  { %17801 = vmatprep.subr.bf16.mxu0 %v21354_v24 }
0x1994   :  { %17803 = vmatpush3.bf16.msra.mxu0 %v21354_v24 }
0x1995   :  { %17805 = vmatprep.subr.bf16.mxu0 %v21369_v46 }
0x1998   :  { %17807 = vmatpush3.bf16.msra.mxu0 %v21369_v46 }
0x1999   :  { %17809 = vmatprep.subr.bf16.mxu0 %v22664_v27 }
0x199b   :  { %v15499_v10 = vpop.f32.mrb[86].mxu1 }
0x199c   :  { %v8560_v49 = vpop.f32.mrb[87].mxu1  ;;  %17811 = vmatpush3.bf16.msra.mxu0 %v22664_v27 }
0x199d   :  { %v17868_v61 = vpack.c.bf16 %v15499_v10, %v8560_v49  ;;  %17813 = vmatprep.subr.bf16.mxu0 %v22665_v40 }
0x199f   :  { %v15502_v11 = vpop.f32.mrb[88].mxu1 }
0x19a0   :  { %v8570_v55 = vpop.f32.mrb[89].mxu1  ;;  %17815 = vmatpush3.bf16.msra.mxu0 %v22665_v40 }
0x19a1   :  { %v17872_v13 = vpack.c.bf16 %v15502_v11, %v8570_v55  ;;  %17817 = vmatprep.subr.bf16.mxu0 %v22666_v15 }
0x19a4   :  { %17819 = vmatpush3.bf16.msra.mxu0 %v22666_v15 }
0x19a5   :  { %17821 = vmatprep.subr.bf16.mxu0 %v22667_v48 }
0x19a8   :  { %17823 = vmatpush3.bf16.msra.mxu0 %v22667_v48 }
0x19a9   :  { %17825 = vmatprep.subr.bf16.mxu0 %v22668_v0 }
0x19ac   :  { %17827 = vmatpush3.bf16.msra.mxu0 %v22668_v0 }
0x19af   :  { %15449 = vmatmul.mubr.f32.vlgmr.msra.gmra.mrb[112].mxu0 %v21752_v20 }
0x19b0   :  { %15451 = vmatprep.mubr.f32.mxu0 %v21765_v43 }
0x19b3   :  { %15452 = vmatmul.mubr.f32.gmra.mrb[114].mxu0 %v21769_v29 }
0x19bb   :  { %v15548_v21 = vpop.f32.mrb[90].mxu1 }
0x19bc   :  { %v8731_v23 = vpop.f32.mrb[91].mxu1 }
0x19bd   :  { %v17908_v10 = vpack.c.bf16 %v15548_v21, %v8731_v23  ;;  %v11814_v21 = vld [vmem:[%s22356_s14 + $0x20] sm:$0xff] }
0x19be   :  { %15462 = vmatprep.mubr.msk.f32.mxu0 %vm281_vm0, %v11814_v21 }
0x19bf   :  { %v15551_v49 = vpop.f32.mrb[92].mxu1 }
0x19c0   :  { %v8741_v11 = vpop.f32.mrb[93].mxu1 }
0x19c1   :  { %v17912_v55 = vpack.c.bf16 %v15551_v49, %v8741_v11 }
0x19db   :  { %v15646_v57 = vpop.f32.mrb[94].mxu1 }
0x19dc   :  { %v9073_v60 = vpop.f32.mrb[95].mxu1 }
0x19dd   :  { %v21889_v41 = vpack.c.bf16 %v15646_v57, %v9073_v60 }
0x19df   :  { %v15649_v51 = vpop.f32.mrb[96].mxu1 }
0x19e0   :  { %v9083_v1 = vpop.f32.mrb[97].mxu1 }
0x19e1   :  { %v21891_v34 = vpack.c.bf16 %v15649_v51, %v9083_v1 }
0x19fb   :  { %v15695_v5 = vpop.f32.mrb[98].mxu1 }
0x19fc   :  { %v9244_v14 = vpop.f32.mrb[99].mxu1 }
0x19fd   :  { %v21893_v26 = vpack.c.bf16 %v15695_v5, %v9244_v14  ;;  %v11819_v14 = vld [vmem:[%s22356_s14 + $0x38] sm:$0xff]  ;;  %v11822_v5 = vld [vmem:[%s22356_s14 + $0x40] sm:$0xff] }
0x19ff   :  { %v15698_v19 = vpop.f32.mrb[100].mxu1 }
0x1a00   :  { %v9254_v8 = vpop.f32.mrb[101].mxu1 }
0x1a01   :  { %v21895_v18 = vpack.c.bf16 %v15698_v19, %v9254_v8  ;;  %v11815_v19 = vld [vmem:[%s22356_s14 + $0x28] sm:$0xff]  ;;  %v11818_v8 = vld [vmem:[%s22356_s14 + $0x30] sm:$0xff] }
0x1a82   :  { %v15450_v60 = vpop.f32.mrb[112].mxu0 }
0x1a83   :  { %v8389_v57 = vpop.f32.mrb[113].mxu0 }
0x1a84   :  { %v17828_v23 = vpack.c.bf16 %v15450_v60, %v8389_v57 }
0x1a86   :  { %v15453_v49 = vpop.f32.mrb[114].mxu0  ;;  %17829 = vmatprep.subr.bf16.mxu0 %v17828_v23 }
0x1a87   :  { %v8399_v1 = vpop.f32.mrb[115].mxu0  ;;  %17831 = vmatpush3.bf16.msra.mxu0 %v17828_v23  ;;  %v11827_v23 = vld [vmem:[%s22356_s14 + $0x58] sm:$0xff] }
0x1a88   :  { %v17832_v51 = vpack.c.bf16 %v15453_v49, %v8399_v1  ;;  %v11830_v49 = vld [vmem:[%s22356_s14 + $0x60] sm:$0xff]  ;;  %v11831_v1 = vld [vmem:[%s22356_s14 + $0x68] sm:$0xff] }
0x1a8a   :  { %17833 = vmatprep.subr.bf16.mxu0 %v17832_v51 }
0x1a8b   :  { %17835 = vmatpush3.bf16.msra.mxu0 %v17832_v51  ;;  %v11834_v51 = vld [vmem:[%s22356_s14 + $0x70] sm:$0xff] }
0x1a8c   :  { %17869 = vmatprep.subr.bf16.mxu0 %v17868_v61 }
0x1a8e   :  { %15463 = vmatmul.mubr.msk.f32.vlgmr.msra.gmra.mrb[110].mxu0 %vm281_vm0, %v11815_v19 }
0x1a8f   :  { %17871 = vmatpush3.bf16.msra.mxu0 %v17868_v61  ;;  %15511 = vmatprep.mubr.msk.f32.mxu0 %vm281_vm0, %v11818_v8  ;;  %v11823_v61 = vld [vmem:[%s22356_s14 + $0x48] sm:$0xff] }
0x1a90   :  { %17873 = vmatprep.subr.bf16.mxu0 %v17872_v13 }
0x1a93   :  { %17875 = vmatpush3.bf16.msra.mxu0 %v17872_v13  ;;  %v11826_v13 = vld [vmem:[%s22356_s14 + $0x50] sm:$0xff] }
0x1a94   :  { %17909 = vmatprep.subr.bf16.mxu0 %v17908_v10 }
0x1a96   :  { %15512 = vmatmul.mubr.msk.f32.vlgmr.msra.gmra.mrb[110].mxu0 %vm281_vm0, %v11819_v14 }
0x1a97   :  { %17911 = vmatpush3.bf16.msra.mxu0 %v17908_v10  ;;  %15560 = vmatprep.mubr.msk.f32.mxu0 %vm281_vm0, %v11822_v5 }
0x1a98   :  { %17913 = vmatprep.subr.bf16.mxu0 %v17912_v55 }
0x1a9b   :  { %17915 = vmatpush3.bf16.msra.mxu0 %v17912_v55 }
0x1a9c   :  { %17917 = vmatprep.subr.bf16.mxu0 %v21477_v17 }
0x1a9e   :  { %15561 = vmatmul.mubr.msk.f32.vlgmr.msra.gmra.mrb[110].mxu0 %vm281_vm0, %v11823_v61 }
0x1a9f   :  { %17919 = vmatpush3.bf16.msra.mxu0 %v21477_v17  ;;  %15595 = vmatprep.mubr.f32.mxu0 %v21749_v58 }
0x1aa0   :  { %17921 = vmatprep.subr.bf16.mxu0 %v21494_v52 }
0x1aa3   :  { %17923 = vmatpush3.bf16.msra.mxu0 %v21494_v52 }
0x1aa4   :  { %17925 = vmatprep.subr.bf16.mxu0 %v21509_v42 }
0x1aa7   :  { %17927 = vmatpush3.bf16.msra.mxu0 %v21509_v42 }
0x1aa8   :  { %17929 = vmatprep.subr.bf16.mxu0 %v21521_v2 }
0x1aab   :  { %17931 = vmatpush3.bf16.msra.mxu0 %v21521_v2 }
0x1aac   :  { %17933 = vmatprep.subr.bf16.mxu0 %v21531_v50 }
0x1aaf   :  { %17935 = vmatpush3.bf16.msra.mxu0 %v21531_v50 }
0x1ab0   :  { %17937 = vmatprep.subr.bf16.mxu0 %v21541_v7 }
0x1ab3   :  { %17939 = vmatpush3.bf16.msra.mxu0 %v21541_v7 }
0x1ab4   :  { %17941 = vmatprep.subr.bf16.mxu0 %v21551_v35 }
0x1ab7   :  { %17943 = vmatpush3.bf16.msra.mxu0 %v21551_v35 }
0x1ab8   :  { %17945 = vmatprep.subr.bf16.mxu0 %v21561_v62 }
0x1abb   :  { %17947 = vmatpush3.bf16.msra.mxu0 %v21561_v62 }
0x1abe   :  { %15596 = vmatmul.mubr.f32.vlgmr.msra.gmra.mrb[116].mxu0 %v21752_v20 }
0x1abf   :  { %15598 = vmatprep.mubr.f32.mxu0 %v21765_v43 }
0x1ac2   :  { %15599 = vmatmul.mubr.f32.gmra.mrb[118].mxu0 %v21769_v29 }
0x1ac3   :  { %15609 = vmatprep.mubr.msk.f32.mxu0 %vm281_vm0, %v11826_v13  ;;  %v22672_v13 = vld [vmem:[#allocation3_spill] sm:$0xff] }
0x1b91   :  { %v15597_v10 = vpop.f32.mrb[116].mxu0 }
0x1b92   :  { %v8902_v11 = vpop.f32.mrb[117].mxu0 }
0x1b93   :  { %v17948_v55 = vpack.c.bf16 %v15597_v10, %v8902_v11  ;;  %v22673_v10 = vld [vmem:[#allocation4_spill] sm:$0xff]  ;;  %v22674_v11 = vld [vmem:[#allocation5_spill] sm:$0xff] }
0x1b95   :  { %v15600_v21 = vpop.f32.mrb[118].mxu0  ;;  %17949 = vmatprep.subr.bf16.mxu0 %v17948_v55 }
0x1b96   :  { %v8912_v60 = vpop.f32.mrb[119].mxu0  ;;  %17951 = vmatpush3.bf16.msra.mxu0 %v17948_v55  ;;  %v22675_v55 = vld [vmem:[#allocation6_spill] sm:$0xff] }
0x1b97   :  { %v17952_v57 = vpack.c.bf16 %v15600_v21, %v8912_v60  ;;  %v22676_v21 = vld [vmem:[#allocation7_spill] sm:$0xff]  ;;  %v22677_v60 = vld [vmem:[#allocation8_spill] sm:$0xff] }
0x1b99   :  { %17953 = vmatprep.subr.bf16.mxu0 %v17952_v57 }
0x1b9a   :  { %17955 = vmatpush3.bf16.msra.mxu0 %v17952_v57  ;;  %v22678_v57 = vld [vmem:[#allocation9_spill] sm:$0xff] }
0x1b9b   :  { %17989 = vmatprep.subr.bf16.mxu0 %v21889_v41 }
0x1b9d   :  { %15610 = vmatmul.mubr.msk.f32.vlgmr.msra.gmra.mrb[110].mxu0 %vm281_vm0, %v11827_v23 }
0x1b9e   :  { %17991 = vmatpush3.bf16.msra.mxu0 %v21889_v41  ;;  %15658 = vmatprep.mubr.msk.f32.mxu0 %vm281_vm0, %v11830_v49  ;;  %v11835_v41 = vld [vmem:[%s22356_s14 + $0x78] sm:$0xff] }
0x1b9f   :  { %17993 = vmatprep.subr.bf16.mxu0 %v21891_v34 }
0x1ba2   :  { %17995 = vmatpush3.bf16.msra.mxu0 %v21891_v34 }
0x1ba3   :  { %18029 = vmatprep.subr.bf16.mxu0 %v21893_v26 }
0x1ba5   :  { %15659 = vmatmul.mubr.msk.f32.vlgmr.msra.gmra.mrb[110].mxu0 %vm281_vm0, %v11831_v1 }
0x1ba6   :  { %18031 = vmatpush3.bf16.msra.mxu0 %v21893_v26  ;;  %15707 = vmatprep.mubr.msk.f32.mxu0 %vm281_vm0, %v11834_v51  ;;  %v11838_v26 = vld [vmem:[%s22356_s14 + $0x80] sm:$0xff] }
0x1ba7   :  { %18033 = vmatprep.subr.bf16.mxu0 %v21895_v18 }
0x1baa   :  { %18035 = vmatpush3.bf16.msra.mxu0 %v21895_v18  ;;  %v22670_v18 = vld [vmem:[#allocation42_spill] sm:$0xff] }
0x1bab   :  { %18037 = vmatprep.subr.bf16.mxu0 %v21616_v39 }
0x1bad   :  { %15708 = vmatmul.mubr.msk.f32.vlgmr.msra.gmra.mrb[110].mxu0 %vm281_vm0, %v11835_v41 }
0x1bae   :  { %18039 = vmatpush3.bf16.msra.mxu0 %v21616_v39  ;;  %15742 = vmatprep.mubr.f32.mxu0 %v21749_v58  ;;  %v22669_v58 = vld [vmem:[#allocation41_spill] sm:$0xff] }
0x1baf   :  { %18041 = vmatprep.subr.bf16.mxu0 %v21634_v9 }
0x1bb2   :  { %18043 = vmatpush3.bf16.msra.mxu0 %v21634_v9 }
0x1bb3   :  { %18045 = vmatprep.subr.bf16.mxu0 %v21649_v6 }
0x1bb6   :  { %18047 = vmatpush3.bf16.msra.mxu0 %v21649_v6 }
0x1bb7   :  { %18049 = vmatprep.subr.bf16.mxu0 %v21661_v16 }
0x1bba   :  { %18051 = vmatpush3.bf16.msra.mxu0 %v21661_v16 }
0x1bbb   :  { %18053 = vmatprep.subr.bf16.mxu0 %v21671_v53 }
0x1bbe   :  { %18055 = vmatpush3.bf16.msra.mxu0 %v21671_v53 }
0x1bbf   :  { %18057 = vmatprep.subr.bf16.mxu0 %v21681_v63 }
0x1bc2   :  { %18059 = vmatpush3.bf16.msra.mxu0 %v21681_v63 }
0x1bc3   :  { %18061 = vmatprep.subr.bf16.mxu0 %v22669_v58 }
0x1bc6   :  { %18063 = vmatpush3.bf16.msra.mxu0 %v22669_v58 }
0x1bc7   :  { %18065 = vmatprep.subr.bf16.mxu0 %v22670_v18 }
0x1bca   :  { %18067 = vmatpush3.bf16.msra.mxu0 %v22670_v18 }
0x1bcd   :  { %15743 = vmatmul.mubr.f32.vlgmr.msra.gmra.mrb[120].mxu0 %v21752_v20  ;;  %v11839_v20 = vld [vmem:[%s22356_s14 + $0x88] sm:$0xff] }
0x1bce   :  { %15745 = vmatprep.mubr.f32.mxu0 %v21765_v43  ;;  %v22671_v43 = vld [vmem:[#allocation2_spill] sm:$0xff] }
0x1bd1   :  { %15746 = vmatmul.mubr.f32.gmra.mrb[122].mxu0 %v21769_v29  ;;  %v9525_v29 = vld [vmem:[%s22357_s15 + $0x18] sm:$0xff] }
0x1bd2   :  { %15756 = vmatprep.mubr.msk.f32.mxu0 %vm281_vm0, %v11838_v26 }
0x1ca0   :  { %v15744_v34 = vpop.f32.mrb[120].mxu0 }
0x1ca1   :  { %v9415_v19 = vpop.f32.mrb[121].mxu0 }
0x1ca2   :  { %v18068_v8 = vpack.c.bf16 %v15744_v34, %v9415_v19 }
0x1ca4   :  { %v15747_v14 = vpop.f32.mrb[122].mxu0  ;;  %18069 = vmatprep.subr.bf16.mxu0 %v18068_v8 }
0x1ca5   :  { %v9425_v5 = vpop.f32.mrb[123].mxu0  ;;  %18071 = vmatpush3.bf16.msra.mxu0 %v18068_v8 }
0x1ca6   :  { %v18072_v61 = vpack.c.bf16 %v15747_v14, %v9425_v5  ;;  %v22694_v5 = vld [vmem:[#allocation33_spill] sm:$0xff] }
0x1ca8   :  { %18073 = vmatprep.subr.bf16.mxu0 %v18072_v61 }
0x1ca9   :  { %18075 = vmatpush3.bf16.msra.mxu0 %v18072_v61  ;;  %v22695_v61 = vld [vmem:[#allocation34_spill] sm:$0xff] }
0x1caa   :  { %18113 = vmatprep.subr.bf16.mxu0 %v20710_v3 }
0x1cac   :  { %15757 = vmatmul.mubr.msk.f32.vlgmr.msra.gmra.mrb[110].mxu0 %vm281_vm0, %v11839_v20  ;;  %v22696_v20 = vld [vmem:[#allocation35_spill] sm:$0xff] }
0x1cad   :  { %18115 = vmatpush3.bf16.msra.mxu0 %v20710_v3  ;;  %v9522_v3 = vld [vmem:[%s22357_s15] sm:$0xff] }
0x1cae   :  { %18117 = vmatprep.subr.bf16.mxu0 %v20723_v28  ;;  %15763 = vmatprep.mubr.msk.f32.mxu1 %vm3500_vm1, %v9522_v3 }
0x1cb1   :  { %18119 = vmatpush3.bf16.msra.mxu0 %v20723_v28 }
0x1cb2   :  { %18121 = vmatprep.subr.bf16.mxu0 %v20750_v38 }
0x1cb5   :  { %18123 = vmatpush3.bf16.msra.mxu0 %v20750_v38 }
0x1cb6   :  { %18125 = vmatprep.subr.bf16.mxu0 %v20770_v25 }
0x1cb9   :  { %18127 = vmatpush3.bf16.msra.mxu0 %v20770_v25 }
0x1cba   :  { %18129 = vmatprep.subr.bf16.mxu0 %v20790_v12 }
0x1cbd   :  { %18131 = vmatpush3.bf16.msra.mxu0 %v20790_v12 }
0x1cbe   :  { %18133 = vmatprep.subr.bf16.mxu0 %v20810_v56 }
0x1cc1   :  { %18135 = vmatpush3.bf16.msra.mxu0 %v20810_v56 }
0x1cc2   :  { %18137 = vmatprep.subr.bf16.mxu0 %v20830_v37 }
0x1cc5   :  { %18139 = vmatpush3.bf16.msra.mxu0 %v20830_v37  ;;  %v9523_v37 = vld [vmem:[%s22357_s15 + $0x8] sm:$0xff] }
0x1cc6   :  { %18141 = vmatprep.subr.bf16.mxu0 %v20850_v32 }
0x1cc9   :  { %18143 = vmatpush3.bf16.msra.mxu0 %v20850_v32  ;;  %v9524_v32 = vld [vmem:[%s22357_s15 + $0x10] sm:$0xff] }
0x1cca   :  { %18161 = vmatprep.subr.bf16.mxu0 %v21337_v36 }
0x1d7f   :  { %v15758_v28 = vpop.f32.mrb[110].mxu0 }
0x1d80   :  { %v9521_v38 = vmax.f32 %v15758_v28, 0.0  ;;  %v9509_v25 = vpop.f32.mrb[111].mxu0 }
0x1d81   :  { %v9520_v12 = vmax.f32 %v9509_v25, 0.0 }
0x1d83   :  { %v18076_v56 = vpack.c.bf16 %v9521_v38, %v9520_v12 }
0x1d85   :  { %18077 = vmatprep.subr.bf16.mxu1 %v18076_v56 }
0x1d86   :  { %18079 = vmatpush3.bf16.msra.mxu1 %v18076_v56 }
0x1d87   :  { %18081 = vmatprep.subr.bf16.mxu1 %v22671_v43 }
0x1d89   :  { %15764 = vmatmul.mubr.msk.f32.vlgmr.msra.gmra.mrb[102].mxu1 %vm3500_vm1, %v9523_v37 }
0x1d8a   :  { %15766 = vmatprep.mubr.msk.f32.mxu1 %vm3500_vm1, %v9524_v32  ;;  %18083 = vmatpush3.bf16.msra.mxu1 %v22671_v43 }
0x1d8b   :  { %18085 = vmatprep.subr.bf16.mxu1 %v22672_v13 }
0x1d8d   :  { %15767 = vmatmul.mubr.msk.f32.gmra.mrb[104].mxu1 %vm3500_vm1, %v9525_v29 }
0x1d8e   :  { %18087 = vmatpush3.bf16.msra.mxu1 %v22672_v13 }
0x1d8f   :  { %18089 = vmatprep.subr.bf16.mxu1 %v22673_v10 }
0x1d92   :  { %18091 = vmatpush3.bf16.msra.mxu1 %v22673_v10 }
0x1d93   :  { %18093 = vmatprep.subr.bf16.mxu1 %v22674_v11 }
0x1d96   :  { %18095 = vmatpush3.bf16.msra.mxu1 %v22674_v11  ;;  %v11847_v11 = vld [vmem:[%s22358_s16 + $0x18] sm:$0xff] }
0x1d97   :  { %18097 = vmatprep.subr.bf16.mxu1 %v22675_v55 }
0x1d9a   :  { %18099 = vmatpush3.bf16.msra.mxu1 %v22675_v55  ;;  %v9716_v55 = vld [vmem:[%s22358_s16] sm:$0xff] }
0x1d9b   :  { %18101 = vmatprep.subr.bf16.mxu1 %v22676_v21 }
0x1d9e   :  { %18103 = vmatpush3.bf16.msra.mxu1 %v22676_v21  ;;  %v9717_v21 = vld [vmem:[%s22358_s16 + $0x8] sm:$0xff] }
0x1d9f   :  { %18105 = vmatprep.subr.bf16.mxu1 %v22677_v60 }
0x1da2   :  { %18107 = vmatpush3.bf16.msra.mxu1 %v22677_v60  ;;  %v11852_v60 = vld [vmem:[%s22358_s16 + $0x20] sm:$0xff] }
0x1da3   :  { %18109 = vmatprep.subr.bf16.mxu1 %v22678_v57 }
0x1da6   :  { %18111 = vmatpush3.bf16.msra.mxu1 %v22678_v57 }
0x1e5c   :  { %v15765_v23 = vpop.f32.mrb[102].mxu1 }
0x1e5d   :  { %v22051_v49 = vadd.f32 %v15765_v23, %v21743_v31  ;;  %v9604_v1 = vpop.f32.mrb[103].mxu1 }
0x1e5e   :  { %v22054_v51 = vadd.f32 %v9604_v1, %v21746_v47 }
0x1e5f   :  { %v22060_v34 = vmax.f32 %v22051_v49, 0.0 }
0x1e60   :  { %v22057_v41 = vmax.f32 %v22054_v51, 0.0  ;;  %v15768_v26 = vpop.f32.mrb[104].mxu1 }
0x1e61   :  { %v22063_v19 = vadd.f32 %v15768_v26, %v21755_v54  ;;  %v9614_v8 = vpop.f32.mrb[105].mxu1  ;;  %v22688_v54 = vld [vmem:[#allocation27_spill] sm:$0xff] }
0x1e62   :  { %v22066_v14 = vadd.f32 %v9614_v8, %v21758_v59  ;;  %15801 = vmatprep.mubr.f32.mxu1 %v22057_v41  ;;  %15839 = vmatprep.mubr.f32.mxu0 %v22057_v41  ;;  %v22689_v59 = vld [vmem:[#allocation28_spill] sm:$0xff] }
0x1e63   :  { %15802 = vmatmul.mubr.f32.vlgmr.msra.gmra.mrb[106].mxu1 %v22060_v34  ;;  %15840 = vmatmul.mubr.f32.vlgmr.msra.gmra.mrb[124].mxu0 %v22060_v34  ;;  %v22077_v47 = vmax.f32 %v22063_v19, 0.0 }
0x1e64   :  { %v22073_v31 = vmax.f32 %v22066_v14, 0.0  ;;  %18163 = vmatpush3.bf16.msra.mxu0 %v21337_v36  ;;  %v22685_v36 = vld [vmem:[#allocation24_spill] sm:$0xff] }
0x1e65   :  { %18165 = vmatprep.subr.bf16.mxu0 %v21354_v24 }
0x1e66   :  { %15804 = vmatprep.mubr.f32.mxu1 %v22073_v31  ;;  %15842 = vmatprep.mubr.f32.mxu0 %v22073_v31 }
0x1e67   :  { %15805 = vmatmul.mubr.f32.gmra.mrb[108].mxu1 %v22077_v47  ;;  %15843 = vmatmul.mubr.f32.gmra.mrb[126].mxu0 %v22077_v47 }
0x1e68   :  { %18167 = vmatpush3.bf16.msra.mxu0 %v21354_v24  ;;  %15899 = vmatprep.mubr.f32.mxu0 %v22057_v41  ;;  %v22686_v24 = vld [vmem:[#allocation25_spill] sm:$0xff] }
0x1e69   :  { %18169 = vmatprep.subr.bf16.mxu0 %v21369_v46 }
0x1e6c   :  { %18171 = vmatpush3.bf16.msra.mxu0 %v21369_v46  ;;  %v22687_v46 = vld [vmem:[#allocation26_spill] sm:$0xff] }
0x1e6d   :  { %18173 = vmatprep.subr.bf16.mxu0 %v22664_v27 }
0x1e70   :  { %18175 = vmatpush3.bf16.msra.mxu0 %v22664_v27  ;;  %v11846_v27 = vld [vmem:[%s22358_s16 + $0x10] sm:$0xff] }
0x1e71   :  { %18177 = vmatprep.subr.bf16.mxu0 %v22665_v40  ;;  %15853 = vmatprep.mubr.msk.f32.mxu1 %vm281_vm0, %v11846_v27  ;;  %v22703_v27 = vld [vmem:[#allocation16_spill] sm:$0xff] }
0x1e74   :  { %18179 = vmatpush3.bf16.msra.mxu0 %v22665_v40  ;;  %v22690_v40 = vld [vmem:[#allocation29_spill] sm:$0xff] }
0x1e75   :  { %18181 = vmatprep.subr.bf16.mxu0 %v22666_v15 }
0x1e78   :  { %18183 = vmatpush3.bf16.msra.mxu0 %v22666_v15  ;;  %v22691_v15 = vld [vmem:[#allocation30_spill] sm:$0xff] }
0x1e79   :  { %18185 = vmatprep.subr.bf16.mxu0 %v22667_v48 }
0x1e7c   :  { %18187 = vmatpush3.bf16.msra.mxu0 %v22667_v48  ;;  %v22692_v48 = vld [vmem:[#allocation31_spill] sm:$0xff] }
0x1e7d   :  { %18189 = vmatprep.subr.bf16.mxu0 %v22668_v0 }
0x1e80   :  { %18191 = vmatpush3.bf16.msra.mxu0 %v22668_v0  ;;  %v22693_v0 = vld [vmem:[#allocation32_spill] sm:$0xff] }
0x1e81   :  { %18241 = vmatprep.subr.bf16.mxu0 %v20977_v33 }
0x1e83   :  { %15900 = vmatmul.mubr.f32.vlgmr.msra.gmra.mrb[128].mxu0 %v22060_v34 }
0x1e84   :  { %15902 = vmatprep.mubr.f32.mxu0 %v22073_v31  ;;  %18243 = vmatpush3.bf16.msra.mxu0 %v20977_v33  ;;  %v22679_v33 = vld [vmem:[#allocation18_spill] sm:$0xff] }
0x1e85   :  { %18245 = vmatprep.subr.bf16.mxu0 %v20987_v45 }
0x1e87   :  { %15903 = vmatmul.mubr.f32.gmra.mrb[130].mxu0 %v22077_v47 }
0x1e88   :  { %18247 = vmatpush3.bf16.msra.mxu0 %v20987_v45  ;;  %15997 = vmatprep.mubr.f32.mxu0 %v22057_v41  ;;  %v22680_v45 = vld [vmem:[#allocation19_spill] sm:$0xff] }
0x1e89   :  { %18249 = vmatprep.subr.bf16.mxu0 %v21001_v22 }
0x1e8c   :  { %18251 = vmatpush3.bf16.msra.mxu0 %v21001_v22  ;;  %v22681_v22 = vld [vmem:[#allocation20_spill] sm:$0xff] }
0x1e8d   :  { %18253 = vmatprep.subr.bf16.mxu0 %v21015_v44 }
0x1e90   :  { %18255 = vmatpush3.bf16.msra.mxu0 %v21015_v44  ;;  %v22682_v44 = vld [vmem:[#allocation21_spill] sm:$0xff] }
0x1e91   :  { %18257 = vmatprep.subr.bf16.mxu0 %v21030_v4 }
0x1e94   :  { %18259 = vmatpush3.bf16.msra.mxu0 %v21030_v4  ;;  %v22683_v4 = vld [vmem:[#allocation22_spill] sm:$0xff] }
0x1e95   :  { %18261 = vmatprep.subr.bf16.mxu0 %v21044_v30 }
0x1e98   :  { %18263 = vmatpush3.bf16.msra.mxu0 %v21044_v30  ;;  %v22684_v30 = vld [vmem:[#allocation23_spill] sm:$0xff] }
0x1e99   :  { %18265 = vmatprep.subr.bf16.mxu0 %v22679_v33 }
0x1e9c   :  { %18267 = vmatpush3.bf16.msra.mxu0 %v22679_v33 }
0x1e9d   :  { %18269 = vmatprep.subr.bf16.mxu0 %v22680_v45 }
0x1ea0   :  { %18271 = vmatpush3.bf16.msra.mxu0 %v22680_v45  ;;  %v11853_v45 = vld [vmem:[%s22358_s16 + $0x28] sm:$0xff] }
0x1ea1   :  { %18321 = vmatprep.subr.bf16.mxu0 %v22681_v22 }
0x1ea3   :  { %15998 = vmatmul.mubr.f32.vlgmr.msra.gmra.mrb[132].mxu0 %v22060_v34 }
0x1ea4   :  { %16000 = vmatprep.mubr.f32.mxu0 %v22073_v31  ;;  %18323 = vmatpush3.bf16.msra.mxu0 %v22681_v22  ;;  %v22697_v22 = vld [vmem:[#allocation10_spill] sm:$0xff] }
0x1ea5   :  { %18325 = vmatprep.subr.bf16.mxu0 %v22682_v44 }
0x1ea7   :  { %16001 = vmatmul.mubr.f32.gmra.mrb[134].mxu0 %v22077_v47 }
0x1ea8   :  { %18327 = vmatpush3.bf16.msra.mxu0 %v22682_v44  ;;  %16095 = vmatprep.mubr.f32.mxu0 %v22057_v41  ;;  %v22698_v44 = vld [vmem:[#allocation11_spill] sm:$0xff] }
0x1ea9   :  { %18329 = vmatprep.subr.bf16.mxu0 %v22683_v4 }
0x1eac   :  { %18331 = vmatpush3.bf16.msra.mxu0 %v22683_v4  ;;  %v22699_v4 = vld [vmem:[#allocation12_spill] sm:$0xff] }
0x1ead   :  { %18333 = vmatprep.subr.bf16.mxu0 %v22684_v30 }
0x1eb0   :  { %18335 = vmatpush3.bf16.msra.mxu0 %v22684_v30  ;;  %v22700_v30 = vld [vmem:[#allocation13_spill] sm:$0xff] }
0x1eb1   :  { %18337 = vmatprep.subr.bf16.mxu0 %v22685_v36 }
0x1eb4   :  { %18339 = vmatpush3.bf16.msra.mxu0 %v22685_v36  ;;  %v22701_v36 = vld [vmem:[#allocation14_spill] sm:$0xff] }
0x1eb5   :  { %18341 = vmatprep.subr.bf16.mxu0 %v22686_v24 }
0x1eb8   :  { %18343 = vmatpush3.bf16.msra.mxu0 %v22686_v24  ;;  %v22702_v24 = vld [vmem:[#allocation15_spill] sm:$0xff] }
0x1eb9   :  { %18345 = vmatprep.subr.bf16.mxu0 %v22687_v46 }
0x1ebc   :  { %18347 = vmatpush3.bf16.msra.mxu0 %v22687_v46 }
0x1ebd   :  { %18349 = vmatprep.subr.bf16.mxu0 %v22688_v54 }
0x1ec0   :  { %18351 = vmatpush3.bf16.msra.mxu0 %v22688_v54 }
0x1ec1   :  { %18361 = vmatprep.subr.bf16.mxu0 %v22689_v59 }
0x1ec3   :  { %16096 = vmatmul.mubr.f32.vlgmr.msra.gmra.mrb[136].mxu0 %v22060_v34 }
0x1ec4   :  { %16098 = vmatprep.mubr.f32.mxu0 %v22073_v31  ;;  %18363 = vmatpush3.bf16.msra.mxu0 %v22689_v59 }
0x1ec5   :  { %18365 = vmatprep.subr.bf16.mxu0 %v22690_v40 }
0x1ec7   :  { %16099 = vmatmul.mubr.f32.gmra.mrb[138].mxu0 %v22077_v47 }
0x1ec8   :  { %18367 = vmatpush3.bf16.msra.mxu0 %v22690_v40  ;;  %16144 = vmatprep.mubr.f32.mxu0 %v22057_v41 }
0x1ec9   :  { %18369 = vmatprep.subr.bf16.mxu0 %v22691_v15 }
0x1ecc   :  { %18371 = vmatpush3.bf16.msra.mxu0 %v22691_v15 }
0x1ecd   :  { %18373 = vmatprep.subr.bf16.mxu0 %v22692_v48 }
0x1ed0   :  { %18375 = vmatpush3.bf16.msra.mxu0 %v22692_v48 }
0x1ed1   :  { %18377 = vmatprep.subr.bf16.mxu0 %v22693_v0 }
0x1ed4   :  { %18379 = vmatpush3.bf16.msra.mxu0 %v22693_v0  ;;  %v22704_v0 = vld [vmem:[#allocation17_spill] sm:$0xff] }
0x1ed5   :  { %18381 = vmatprep.subr.bf16.mxu0 %v22694_v5 }
0x1ed8   :  { %18383 = vmatpush3.bf16.msra.mxu0 %v22694_v5 }
0x1ed9   :  { %18385 = vmatprep.subr.bf16.mxu0 %v22695_v61 }
0x1edc   :  { %18387 = vmatpush3.bf16.msra.mxu0 %v22695_v61 }
0x1edd   :  { %18389 = vmatprep.subr.bf16.mxu0 %v22696_v20 }
0x1ee0   :  { %18391 = vmatpush3.bf16.msra.mxu0 %v22696_v20 }
0x1ee3   :  { %16145 = vmatmul.mubr.f32.vlgmr.msra.gmra.mrb[140].mxu0 %v22060_v34 }
0x1ee4   :  { %16147 = vmatprep.mubr.f32.mxu0 %v22073_v31 }
0x1ee7   :  { %16148 = vmatmul.mubr.f32.gmra.mrb[142].mxu0 %v22077_v47 }
0x1f36   :  { %v15803_v3 = vpop.f32.mrb[106].mxu1  ;;  %v15841_v28 = vpop.f32.mrb[124].mxu0 }
0x1f37   :  { %v9697_v38 = vpop.f32.mrb[107].mxu1  ;;  %v9784_v25 = vpop.f32.mrb[125].mxu0 }
0x1f38   :  { %v18152_v12 = vpack.c.bf16 %v15803_v3, %v9697_v38  ;;  %v18144_v56 = vpack.c.bf16 %v15841_v28, %v9784_v25 }
0x1f3a   :  { %v15806_v37 = vpop.f32.mrb[108].mxu1  ;;  %v15844_v32 = vpop.f32.mrb[126].mxu0  ;;  %18145 = vmatprep.subr.bf16.mxu1 %v18144_v56 }
0x1f3b   :  { %v9707_v43 = vpop.f32.mrb[109].mxu1  ;;  %v9794_v29 = vpop.f32.mrb[127].mxu0  ;;  %18147 = vmatpush3.bf16.msra.mxu1 %v18144_v56 }
0x1f3c   :  { %v18156_v13 = vpack.c.bf16 %v15806_v37, %v9707_v43  ;;  %v18148_v10 = vpack.c.bf16 %v15844_v32, %v9794_v29  ;;  %v11856_v29 = vld [vmem:[%s22358_s16 + $0x30] sm:$0xff] }
0x1f3e   :  { %18149 = vmatprep.subr.bf16.mxu1 %v18148_v10 }
0x1f3f   :  { %18151 = vmatpush3.bf16.msra.mxu1 %v18148_v10 }
0x1f40   :  { %18153 = vmatprep.subr.bf16.mxu1 %v18152_v12 }
0x1f42   :  { %15854 = vmatmul.mubr.msk.f32.vlgmr.msra.gmra.mrb[110].mxu1 %vm281_vm0, %v11847_v11 }
0x1f43   :  { %18155 = vmatpush3.bf16.msra.mxu1 %v18152_v12  ;;  %15864 = vmatprep.mubr.msk.f32.mxu1 %vm281_vm0, %v9716_v55 }
0x1f44   :  { %18157 = vmatprep.subr.bf16.mxu1 %v18156_v13 }
0x1f47   :  { %18159 = vmatpush3.bf16.msra.mxu1 %v18156_v13 }
0x1f4a   :  { %15865 = vmatmul.mubr.msk.f32.vlgmr.msra.gmra.mrb[110].mxu1 %vm281_vm0, %v9717_v21 }
0x1f4b   :  { %15913 = vmatprep.mubr.msk.f32.mxu1 %vm281_vm0, %v11852_v60 }
0x1f56   :  { %v15901_v57 = vpop.f32.mrb[128].mxu0 }
0x1f57   :  { %v10034_v23 = vpop.f32.mrb[129].mxu0 }
0x1f58   :  { %v18192_v1 = vpack.c.bf16 %v15901_v57, %v10034_v23  ;;  %v11857_v57 = vld [vmem:[%s22358_s16 + $0x38] sm:$0xff]  ;;  %v11860_v23 = vld [vmem:[%s22358_s16 + $0x40] sm:$0xff] }
0x1f5a   :  { %v15904_v26 = vpop.f32.mrb[130].mxu0  ;;  %18193 = vmatprep.subr.bf16.mxu1 %v18192_v1 }
0x1f5b   :  { %v10044_v8 = vpop.f32.mrb[131].mxu0  ;;  %18195 = vmatpush3.bf16.msra.mxu1 %v18192_v1  ;;  %v11861_v1 = vld [vmem:[%s22358_s16 + $0x48] sm:$0xff] }
0x1f5c   :  { %v18196_v33 = vpack.c.bf16 %v15904_v26, %v10044_v8  ;;  %v11868_v26 = vld [vmem:[%s22358_s16 + $0x60] sm:$0xff]  ;;  %v11869_v8 = vld [vmem:[%s22358_s16 + $0x68] sm:$0xff] }
0x1f5e   :  { %18197 = vmatprep.subr.bf16.mxu1 %v18196_v33 }
0x1f5f   :  { %18199 = vmatpush3.bf16.msra.mxu1 %v18196_v33  ;;  %v11872_v33 = vld [vmem:[%s22358_s16 + $0x70] sm:$0xff] }
0x1f60   :  { %18201 = vmatprep.subr.bf16.mxu1 %v22697_v22 }
0x1f62   :  { %15914 = vmatmul.mubr.msk.f32.vlgmr.msra.gmra.mrb[110].mxu1 %vm281_vm0, %v11853_v45  ;;  %v11873_v45 = vld [vmem:[%s22358_s16 + $0x78] sm:$0xff] }
0x1f63   :  { %18203 = vmatpush3.bf16.msra.mxu1 %v22697_v22  ;;  %15948 = vmatprep.mubr.f32.mxu1 %v22057_v41 }
0x1f64   :  { %18205 = vmatprep.subr.bf16.mxu1 %v22698_v44 }
0x1f67   :  { %18207 = vmatpush3.bf16.msra.mxu1 %v22698_v44 }
0x1f68   :  { %18209 = vmatprep.subr.bf16.mxu1 %v22699_v4 }
0x1f6b   :  { %18211 = vmatpush3.bf16.msra.mxu1 %v22699_v4  ;;  %v11168_v4 = vld [vmem:[%s22359_s17 + $0x8] sm:$0xff] }
0x1f6c   :  { %18213 = vmatprep.subr.bf16.mxu1 %v22700_v30 }
0x1f6f   :  { %18215 = vmatpush3.bf16.msra.mxu1 %v22700_v30  ;;  %v11169_v30 = vld [vmem:[%s22359_s17 + $0x10] sm:$0xff] }
0x1f70   :  { %18217 = vmatprep.subr.bf16.mxu1 %v22701_v36 }
0x1f73   :  { %18219 = vmatpush3.bf16.msra.mxu1 %v22701_v36  ;;  %v11170_v36 = vld [vmem:[%s22359_s17 + $0x18] sm:$0xff] }
0x1f74   :  { %18221 = vmatprep.subr.bf16.mxu1 %v22702_v24 }
0x1f76   :  { %v15999_v46 = vpop.f32.mrb[132].mxu0 }
0x1f77   :  { %18223 = vmatpush3.bf16.msra.mxu1 %v22702_v24  ;;  %v10376_v54 = vpop.f32.mrb[133].mxu0 }
0x1f78   :  { %v18272_v59 = vpack.c.bf16 %v15999_v46, %v10376_v54  ;;  %18225 = vmatprep.subr.bf16.mxu1 %v22703_v27 }
0x1f7a   :  { %v16002_v40 = vpop.f32.mrb[134].mxu0 }
0x1f7b   :  { %18227 = vmatpush3.bf16.msra.mxu1 %v22703_v27  ;;  %v10386_v15 = vpop.f32.mrb[135].mxu0 }
0x1f7c   :  { %v18276_v48 = vpack.c.bf16 %v16002_v40, %v10386_v15  ;;  %18229 = vmatprep.subr.bf16.mxu1 %v22704_v0 }
0x1f7f   :  { %18231 = vmatpush3.bf16.msra.mxu1 %v22704_v0 }
0x1f82   :  { %15949 = vmatmul.mubr.f32.vlgmr.msra.gmra.mrb[112].mxu1 %v22060_v34 }
0x1f83   :  { %15951 = vmatprep.mubr.f32.mxu1 %v22073_v31 }
0x1f86   :  { %15952 = vmatmul.mubr.f32.gmra.mrb[114].mxu1 %v22077_v47 }
0x1f87   :  { %15962 = vmatprep.mubr.msk.f32.mxu1 %vm281_vm0, %v11856_v29 }
0x1f96   :  { %v16097_v5 = vpop.f32.mrb[136].mxu0 }
0x1f97   :  { %v10718_v61 = vpop.f32.mrb[137].mxu0 }
0x1f98   :  { %v22205_v20 = vpack.c.bf16 %v16097_v5, %v10718_v61 }
0x1f9a   :  { %v16100_v3 = vpop.f32.mrb[138].mxu0 }
0x1f9b   :  { %v10728_v28 = vpop.f32.mrb[139].mxu0 }
0x1f9c   :  { %v22207_v38 = vpack.c.bf16 %v16100_v3, %v10728_v28 }
0x1fb6   :  { %v16146_v25 = vpop.f32.mrb[140].mxu0 }
0x1fb7   :  { %v10889_v12 = vpop.f32.mrb[141].mxu0 }
0x1fb8   :  { %v22209_v56 = vpack.c.bf16 %v16146_v25, %v10889_v12 }
0x1fba   :  { %v16149_v37 = vpop.f32.mrb[142].mxu0 }
0x1fbb   :  { %v10899_v32 = vpop.f32.mrb[143].mxu0 }
0x1fbc   :  { %v22211_v43 = vpack.c.bf16 %v16149_v37, %v10899_v32 }
0x2055   :  { %v15950_v13 = vpop.f32.mrb[112].mxu1 }
0x2056   :  { %v10205_v10 = vpop.f32.mrb[113].mxu1 }
0x2057   :  { %v18232_v11 = vpack.c.bf16 %v15950_v13, %v10205_v10 }
0x2059   :  { %v15953_v55 = vpop.f32.mrb[114].mxu1  ;;  %18233 = vmatprep.subr.bf16.mxu1 %v18232_v11 }
0x205a   :  { %v10215_v21 = vpop.f32.mrb[115].mxu1  ;;  %18235 = vmatpush3.bf16.msra.mxu1 %v18232_v11 }
0x205b   :  { %v18236_v60 = vpack.c.bf16 %v15953_v55, %v10215_v21 }
0x205d   :  { %18237 = vmatprep.subr.bf16.mxu1 %v18236_v60 }
0x205e   :  { %18239 = vmatpush3.bf16.msra.mxu1 %v18236_v60 }
0x205f   :  { %18273 = vmatprep.subr.bf16.mxu1 %v18272_v59 }
0x2061   :  { %15963 = vmatmul.mubr.msk.f32.vlgmr.msra.gmra.mrb[110].mxu1 %vm281_vm0, %v11857_v57 }
0x2062   :  { %18275 = vmatpush3.bf16.msra.mxu1 %v18272_v59  ;;  %16011 = vmatprep.mubr.msk.f32.mxu1 %vm281_vm0, %v11860_v23 }
0x2063   :  { %18277 = vmatprep.subr.bf16.mxu1 %v18276_v48 }
0x2066   :  { %18279 = vmatpush3.bf16.msra.mxu1 %v18276_v48 }
0x2067   :  { %18281 = vmatprep.subr.bf16.mxu1 %v21477_v17 }
0x2069   :  { %16012 = vmatmul.mubr.msk.f32.vlgmr.msra.gmra.mrb[110].mxu1 %vm281_vm0, %v11861_v1 }
0x206a   :  { %18283 = vmatpush3.bf16.msra.mxu1 %v21477_v17  ;;  %16046 = vmatprep.mubr.f32.mxu1 %v22057_v41  ;;  %v11864_v17 = vld [vmem:[%s22358_s16 + $0x50] sm:$0xff] }
0x206b   :  { %18285 = vmatprep.subr.bf16.mxu1 %v21494_v52 }
0x206e   :  { %18287 = vmatpush3.bf16.msra.mxu1 %v21494_v52 }
0x206f   :  { %18289 = vmatprep.subr.bf16.mxu1 %v21509_v42 }
0x2072   :  { %18291 = vmatpush3.bf16.msra.mxu1 %v21509_v42 }
0x2073   :  { %18293 = vmatprep.subr.bf16.mxu1 %v21521_v2 }
0x2076   :  { %18295 = vmatpush3.bf16.msra.mxu1 %v21521_v2 }
0x2077   :  { %18297 = vmatprep.subr.bf16.mxu1 %v21531_v50 }
0x207a   :  { %18299 = vmatpush3.bf16.msra.mxu1 %v21531_v50 }
0x207b   :  { %18301 = vmatprep.subr.bf16.mxu1 %v21541_v7 }
0x207e   :  { %18303 = vmatpush3.bf16.msra.mxu1 %v21541_v7 }
0x207f   :  { %18305 = vmatprep.subr.bf16.mxu1 %v21551_v35 }
0x2082   :  { %18307 = vmatpush3.bf16.msra.mxu1 %v21551_v35 }
0x2083   :  { %18309 = vmatprep.subr.bf16.mxu1 %v21561_v62 }
0x2086   :  { %18311 = vmatpush3.bf16.msra.mxu1 %v21561_v62  ;;  %v11865_v62 = vld [vmem:[%s22358_s16 + $0x58] sm:$0xff] }
0x2089   :  { %16047 = vmatmul.mubr.f32.vlgmr.msra.gmra.mrb[116].mxu1 %v22060_v34 }
0x208a   :  { %16049 = vmatprep.mubr.f32.mxu1 %v22073_v31 }
0x208d   :  { %16050 = vmatmul.mubr.f32.gmra.mrb[118].mxu1 %v22077_v47 }
0x208e   :  { %16060 = vmatprep.mubr.msk.f32.mxu1 %vm281_vm0, %v11864_v17 }
0x215c   :  { %v16048_v52 = vpop.f32.mrb[116].mxu1 }
0x215d   :  { %v10547_v42 = vpop.f32.mrb[117].mxu1 }
0x215e   :  { %v18312_v2 = vpack.c.bf16 %v16048_v52, %v10547_v42 }
0x2160   :  { %v16051_v50 = vpop.f32.mrb[118].mxu1  ;;  %18313 = vmatprep.subr.bf16.mxu1 %v18312_v2 }
0x2161   :  { %v10557_v7 = vpop.f32.mrb[119].mxu1  ;;  %18315 = vmatpush3.bf16.msra.mxu1 %v18312_v2 }
0x2162   :  { %v18316_v35 = vpack.c.bf16 %v16051_v50, %v10557_v7 }
0x2164   :  { %18317 = vmatprep.subr.bf16.mxu1 %v18316_v35 }
0x2165   :  { %18319 = vmatpush3.bf16.msra.mxu1 %v18316_v35 }
0x2166   :  { %18353 = vmatprep.subr.bf16.mxu1 %v22205_v20 }
0x2168   :  { %16061 = vmatmul.mubr.msk.f32.vlgmr.msra.gmra.mrb[110].mxu1 %vm281_vm0, %v11865_v62 }
0x2169   :  { %18355 = vmatpush3.bf16.msra.mxu1 %v22205_v20  ;;  %16109 = vmatprep.mubr.msk.f32.mxu1 %vm281_vm0, %v11868_v26 }
0x216a   :  { %18357 = vmatprep.subr.bf16.mxu1 %v22207_v38 }
0x216d   :  { %18359 = vmatpush3.bf16.msra.mxu1 %v22207_v38 }
0x216e   :  { %18393 = vmatprep.subr.bf16.mxu1 %v22209_v56 }
0x2170   :  { %16110 = vmatmul.mubr.msk.f32.vlgmr.msra.gmra.mrb[110].mxu1 %vm281_vm0, %v11869_v8 }
0x2171   :  { %18395 = vmatpush3.bf16.msra.mxu1 %v22209_v56  ;;  %16158 = vmatprep.mubr.msk.f32.mxu1 %vm281_vm0, %v11872_v33 }
0x2172   :  { %18397 = vmatprep.subr.bf16.mxu1 %v22211_v43 }
0x2175   :  { %18399 = vmatpush3.bf16.msra.mxu1 %v22211_v43 }
0x2176   :  { %18401 = vmatprep.subr.bf16.mxu1 %v21616_v39 }
0x2178   :  { %16159 = vmatmul.mubr.msk.f32.vlgmr.msra.gmra.mrb[110].mxu1 %vm281_vm0, %v11873_v45 }
0x2179   :  { %18403 = vmatpush3.bf16.msra.mxu1 %v21616_v39  ;;  %16193 = vmatprep.mubr.f32.mxu1 %v22057_v41  ;;  %v11876_v39 = vld [vmem:[%s22358_s16 + $0x80] sm:$0xff] }
0x217a   :  { %18405 = vmatprep.subr.bf16.mxu1 %v21634_v9  ;;  %v11167_v41 = vld [vmem:[%s22359_s17] sm:$0xff] }
0x217b   :  { %16214 = vmatprep.mubr.msk.f32.mxu0 %vm3500_vm1, %v11167_v41 }
0x217d   :  { %18407 = vmatpush3.bf16.msra.mxu1 %v21634_v9 }
0x217e   :  { %18409 = vmatprep.subr.bf16.mxu1 %v21649_v6 }
0x2181   :  { %18411 = vmatpush3.bf16.msra.mxu1 %v21649_v6 }
0x2182   :  { %18413 = vmatprep.subr.bf16.mxu1 %v21661_v16 }
0x2185   :  { %18415 = vmatpush3.bf16.msra.mxu1 %v21661_v16 }
0x2186   :  { %18417 = vmatprep.subr.bf16.mxu1 %v21671_v53 }
0x2189   :  { %18419 = vmatpush3.bf16.msra.mxu1 %v21671_v53 }
0x218a   :  { %18421 = vmatprep.subr.bf16.mxu1 %v21681_v63 }
0x218d   :  { %18423 = vmatpush3.bf16.msra.mxu1 %v21681_v63 }
0x218e   :  { %18425 = vmatprep.subr.bf16.mxu1 %v22669_v58 }
0x2191   :  { %18427 = vmatpush3.bf16.msra.mxu1 %v22669_v58 }
0x2192   :  { %18429 = vmatprep.subr.bf16.mxu1 %v22670_v18 }
0x2195   :  { %18431 = vmatpush3.bf16.msra.mxu1 %v22670_v18  ;;  %v11877_v18 = vld [vmem:[%s22358_s16 + $0x88] sm:$0xff] }
0x2198   :  { %16194 = vmatmul.mubr.f32.vlgmr.msra.gmra.mrb[120].mxu1 %v22060_v34 }
0x2199   :  { %16196 = vmatprep.mubr.f32.mxu1 %v22073_v31 }
0x219c   :  { %16197 = vmatmul.mubr.f32.gmra.mrb[122].mxu1 %v22077_v47 }
0x219d   :  { %16207 = vmatprep.mubr.msk.f32.mxu1 %vm281_vm0, %v11876_v39 }
0x226b   :  { %v16195_v9 = vpop.f32.mrb[120].mxu1 }
0x226c   :  { %v11060_v6 = vpop.f32.mrb[121].mxu1 }
0x226d   :  { %v18432_v16 = vpack.c.bf16 %v16195_v9, %v11060_v6 }
0x226f   :  { %v16198_v53 = vpop.f32.mrb[122].mxu1  ;;  %18433 = vmatprep.subr.bf16.mxu1 %v18432_v16 }
0x2270   :  { %v11070_v63 = vpop.f32.mrb[123].mxu1  ;;  %18435 = vmatpush3.bf16.msra.mxu1 %v18432_v16 }
0x2271   :  { %v18436_v58 = vpack.c.bf16 %v16198_v53, %v11070_v63 }
0x2273   :  { %18437 = vmatprep.subr.bf16.mxu1 %v18436_v58 }
0x2274   :  { %18439 = vmatpush3.bf16.msra.mxu1 %v18436_v58 }
0x2277   :  { %16208 = vmatmul.mubr.msk.f32.vlgmr.msra.gmra.mrb[110].mxu1 %vm281_vm0, %v11877_v18 }
0x234a   :  { %v16209_v34 = vpop.f32.mrb[110].mxu1 }
0x234b   :  { %v11166_v31 = vmax.f32 %v16209_v34, 0.0  ;;  %v11154_v47 = vpop.f32.mrb[111].mxu1 }
0x234c   :  { %v11165_v22 = vmax.f32 %v11154_v47, 0.0 }
0x234e   :  { %v18440_v44 = vpack.c.bf16 %v11166_v31, %v11165_v22 }
0x2350   :  { %18441 = vmatprep.subr.bf16.mxu0 %v18440_v44 }
0x2351   :  { %18443 = vmatpush3.bf16.msra.mxu0 %v18440_v44 }
0x2354   :  { %16215 = vmatmul.mubr.msk.f32.vlgmr.msra.gmra.mrb[144].mxu0 %vm3500_vm1, %v11168_v4 }
0x2355   :  { %16217 = vmatprep.mubr.msk.f32.mxu0 %vm3500_vm1, %v11169_v30 }
0x2358   :  { %16218 = vmatmul.mubr.msk.f32.gmra.mrb[146].mxu0 %vm3500_vm1, %v11170_v36 }
0x2427   :  { %v16216_v24 = vpop.f32.mrb[144].mxu0 }
0x2428   :  { %v11269_v46 = vadd.f32 %v16216_v24, %v22051_v49  ;;  %v11249_v54 = vpop.f32.mrb[145].mxu0 }
0x2429   :  { %v11268_v59 = vadd.f32 %v11249_v54, %v22054_v51 }
0x242a   :  { %v11273_v27 = vmax.f32 %v11269_v46, 0.0 }
0x242b   :  { %v11272_v40 = vmax.f32 %v11268_v59, 0.0  ;;  %v16219_v15 = vpop.f32.mrb[146].mxu0 }
0x242c   :  { %11277 = vst [vmem:[%s22360_s18 + $0x8] sm:$0xff] %v11273_v27  ;;  %v11271_v48 = vadd.f32 %v16219_v15, %v22063_v19  ;;  %v11259_v0 = vpop.f32.mrb[147].mxu0 }
0x242d   :  { %11276 = vst [vmem:[%s22360_s18] sm:$0xff] %v11272_v40  ;;  %v11270_v5 = vadd.f32 %v11259_v0, %v22066_v14 }
0x242e   :  { %v11275_v49 = vmax.f32 %v11271_v48, 0.0 }
0x242f   :  { %v11274_v61 = vmax.f32 %v11270_v5, 0.0 }
0x2430   :  { %11279 = vst [vmem:[%s22360_s18 + $0x18] sm:$0xff] %v11275_v49 }
0x2431   :  { %11278 = vst [vmem:[%s22360_s18 + $0x10] sm:$0xff] %v11274_v61 }

// kernel: tile.13
= control target key start
LH: loop header
LB: loop body
LE: loop exit
PB: predicated region body
PF: predicated region fallthrough
CT: control target
= control target key end

     0   :  { %s22_s0 = inlined_call_operand.vmem [shape: f32[16], index: 0, kind: input, shape index: {}]   ;;  %s23_s1 = inlined_call_operand.vmem [shape: f32[4,16], index: 1, kind: output, shape index: {}]  }
   0x1   :  { %v4_v0 = vld [vmem:[%s22_s0] ss:$0 sm:$0xff] }
   0x2   :  { %5 = vst [vmem:[%s23_s1] sm:$0xf] %v4_v0 }

// kernel: tile.0
= control target key start
LH: loop header
LB: loop body
LE: loop exit
PB: predicated region body
PF: predicated region fallthrough
CT: control target
= control target key end

     0   :  { %s176_s8 = smov 125   ;;  %s177_s9 = smov 126   ;;  %vm7_vm0 = vcmask 7168   ;;  %s331_s0 = inlined_call_operand.vmem [shape: f32[4,16], index: 0, kind: input, shape index: {}]   ;;  %s332_s1 = inlined_call_operand.vmem [shape: f32[64,1], index: 1, kind: output, shape index: {}]  }
   0x1   :  { %v4_v0 = vld [vmem:[%s331_s0] sm:$0xf]  ;;  %s175_s0 = smov 127   ;;  %s178_s10 = smov 124  }
   0x2   :  { %5 = vst [vmem:[#allocation0] sm:$0xf] %v4_v0  ;;  %s179_s11 = smov 123   ;;  %s180_s12 = smov 122  }
   0x3   :  { %s181_s13 = smov 121   ;;  %s182_s14 = smov 120  }
   0x4   :  { %s183_s19 = smov 119   ;;  %s184_s20 = smov 118  }
   0x5   :  { %s185_s21 = smov 117   ;;  %s186_s22 = smov 116  }
   0x6   :  { %s187_s23 = smov 115   ;;  %s188_s24 = smov 114  }
   0x7   :  { %s189_s25 = smov 113  }
   0x9   :  { %v10_v1 = vld [vmem:[#allocation0] sm:$0xf]  }
   0xa   :  { %v26_v2 = vld [vmem:[#allocation0] sm:$0xf]   ;;  %11 = vrot.lane.b32.xlu0 %v10_v1, %s175_s0 }
   0xb   :  { %27 = vrot.lane.b32.xlu1 %v26_v2, %s176_s8  ;;  %v18_v3 = vld [vmem:[#allocation0] sm:$0xf]  }
   0xc   :  { %v34_v4 = vld [vmem:[#allocation0] sm:$0xf]  }
   0xd   :  { %v42_v5 = vld [vmem:[#allocation0] sm:$0xf]  }
   0xe   :  { %19 = vrot.lane.b32.xlu0 %v18_v3, %s177_s9  ;;  %v50_v6 = vld [vmem:[#allocation0] sm:$0xf]  }
   0xf   :  { %35 = vrot.lane.b32.xlu1 %v34_v4, %s178_s10  ;;  %v58_v7 = vld [vmem:[#allocation0] sm:$0xf]  }
  0x10   :  { %v66_v8 = vld [vmem:[#allocation0] sm:$0xf]  }
  0x11   :  { %v74_v9 = vld [vmem:[#allocation0] sm:$0xf]  }
  0x12   :  { %43 = vrot.lane.b32.xlu0 %v42_v5, %s179_s11  ;;  %v82_v10 = vld [vmem:[#allocation0] sm:$0xf]  }
  0x13   :  { %51 = vrot.lane.b32.xlu1 %v50_v6, %s180_s12  ;;  %v6_v11 = vld [vmem:[#allocation0] sm:$0xf]  }
  0x14   :  { %8 = vst.msk [vmem:[%s332_s1] ss:$16 sm:$0x3] %vm7_vm0, %v6_v11   ;;  %9 = vst.msk [vmem:[%s332_s1] ss:$16 sm:$0xc] %vm7_vm0, %v6_v11  }
  0x15   :  { %v90_v12 = vld [vmem:[#allocation0] sm:$0xf]  }
  0x16   :  { %59 = vrot.lane.b32.xlu0 %v58_v7, %s181_s13  ;;  %v98_v13 = vld [vmem:[#allocation0] sm:$0xf]  }
  0x17   :  { %67 = vrot.lane.b32.xlu1 %v66_v8, %s182_s14  ;;  %v106_v14 = vld [vmem:[#allocation0] sm:$0xf]  }
  0x18   :  { %v114_v15 = vld [vmem:[#allocation0] sm:$0xf]  }
  0x19   :  { %v122_v16 = vld [vmem:[#allocation0] sm:$0xf]  }
  0x1a   :  { %75 = vrot.lane.b32.xlu0 %v74_v9, %s183_s19 }
  0x1b   :  { %83 = vrot.lane.b32.xlu1 %v82_v10, %s184_s20 }
  0x1e   :  { %91 = vrot.lane.b32.xlu0 %v90_v12, %s185_s21 }
  0x1f   :  { %99 = vrot.lane.b32.xlu1 %v98_v13, %s186_s22 }
  0x22   :  { %107 = vrot.lane.b32.xlu0 %v106_v14, %s187_s23 }
  0x23   :  { %115 = vrot.lane.b32.xlu1 %v114_v15, %s188_s24 }
  0x26   :  { %123 = vrot.lane.b32.xlu0 %v122_v16, %s189_s25 }
  0x7c   :  { %v12_v17 = vpop.permute.xlu0 %11  }
  0x7d   :  { %v28_v18 = vpop.permute.xlu1 %27   ;;  %130 = vst.msk [vmem:[%s332_s1 + $0x1] ss:$16 sm:$0x3] %vm7_vm0, %v12_v17   ;;  %131 = vst.msk [vmem:[%s332_s1 + $0x1] ss:$16 sm:$0xc] %vm7_vm0, %v12_v17  }
  0x7e   :  { %134 = vst.msk [vmem:[%s332_s1 + $0x3] ss:$16 sm:$0x3] %vm7_vm0, %v28_v18   ;;  %135 = vst.msk [vmem:[%s332_s1 + $0x3] ss:$16 sm:$0xc] %vm7_vm0, %v28_v18  }
  0x80   :  { %v20_v19 = vpop.permute.xlu0 %19  }
  0x81   :  { %v36_v20 = vpop.permute.xlu1 %35   ;;  %132 = vst.msk [vmem:[%s332_s1 + $0x2] ss:$16 sm:$0x3] %vm7_vm0, %v20_v19   ;;  %133 = vst.msk [vmem:[%s332_s1 + $0x2] ss:$16 sm:$0xc] %vm7_vm0, %v20_v19  }
  0x82   :  { %136 = vst.msk [vmem:[%s332_s1 + $0x4] ss:$16 sm:$0x3] %vm7_vm0, %v36_v20   ;;  %137 = vst.msk [vmem:[%s332_s1 + $0x4] ss:$16 sm:$0xc] %vm7_vm0, %v36_v20  }
  0x84   :  { %v44_v21 = vpop.permute.xlu0 %43  }
  0x85   :  { %v52_v22 = vpop.permute.xlu1 %51   ;;  %138 = vst.msk [vmem:[%s332_s1 + $0x5] ss:$16 sm:$0x3] %vm7_vm0, %v44_v21   ;;  %139 = vst.msk [vmem:[%s332_s1 + $0x5] ss:$16 sm:$0xc] %vm7_vm0, %v44_v21  }
  0x86   :  { %140 = vst.msk [vmem:[%s332_s1 + $0x6] ss:$16 sm:$0x3] %vm7_vm0, %v52_v22   ;;  %141 = vst.msk [vmem:[%s332_s1 + $0x6] ss:$16 sm:$0xc] %vm7_vm0, %v52_v22  }
  0x88   :  { %v60_v23 = vpop.permute.xlu0 %59  }
  0x89   :  { %v68_v24 = vpop.permute.xlu1 %67   ;;  %142 = vst.msk [vmem:[%s332_s1 + $0x7] ss:$16 sm:$0x3] %vm7_vm0, %v60_v23   ;;  %143 = vst.msk [vmem:[%s332_s1 + $0x7] ss:$16 sm:$0xc] %vm7_vm0, %v60_v23  }
  0x8a   :  { %144 = vst.msk [vmem:[%s332_s1 + $0x8] ss:$16 sm:$0x3] %vm7_vm0, %v68_v24   ;;  %145 = vst.msk [vmem:[%s332_s1 + $0x8] ss:$16 sm:$0xc] %vm7_vm0, %v68_v24  }
  0x8c   :  { %v76_v25 = vpop.permute.xlu0 %75  }
  0x8d   :  { %v84_v26 = vpop.permute.xlu1 %83   ;;  %146 = vst.msk [vmem:[%s332_s1 + $0x9] ss:$16 sm:$0x3] %vm7_vm0, %v76_v25   ;;  %147 = vst.msk [vmem:[%s332_s1 + $0x9] ss:$16 sm:$0xc] %vm7_vm0, %v76_v25  }
  0x8e   :  { %148 = vst.msk [vmem:[%s332_s1 + $0xa] ss:$16 sm:$0x3] %vm7_vm0, %v84_v26   ;;  %149 = vst.msk [vmem:[%s332_s1 + $0xa] ss:$16 sm:$0xc] %vm7_vm0, %v84_v26  }
  0x90   :  { %v92_v27 = vpop.permute.xlu0 %91  }
  0x91   :  { %v100_v28 = vpop.permute.xlu1 %99   ;;  %150 = vst.msk [vmem:[%s332_s1 + $0xb] ss:$16 sm:$0x3] %vm7_vm0, %v92_v27   ;;  %151 = vst.msk [vmem:[%s332_s1 + $0xb] ss:$16 sm:$0xc] %vm7_vm0, %v92_v27  }
  0x92   :  { %152 = vst.msk [vmem:[%s332_s1 + $0xc] ss:$16 sm:$0x3] %vm7_vm0, %v100_v28   ;;  %153 = vst.msk [vmem:[%s332_s1 + $0xc] ss:$16 sm:$0xc] %vm7_vm0, %v100_v28  }
  0x94   :  { %v108_v29 = vpop.permute.xlu0 %107  }
  0x95   :  { %v116_v30 = vpop.permute.xlu1 %115   ;;  %154 = vst.msk [vmem:[%s332_s1 + $0xd] ss:$16 sm:$0x3] %vm7_vm0, %v108_v29   ;;  %155 = vst.msk [vmem:[%s332_s1 + $0xd] ss:$16 sm:$0xc] %vm7_vm0, %v108_v29  }
  0x96   :  { %156 = vst.msk [vmem:[%s332_s1 + $0xe] ss:$16 sm:$0x3] %vm7_vm0, %v116_v30   ;;  %157 = vst.msk [vmem:[%s332_s1 + $0xe] ss:$16 sm:$0xc] %vm7_vm0, %v116_v30  }
  0x98   :  { %v124_v31 = vpop.permute.xlu0 %123  }
  0x99   :  { %158 = vst.msk [vmem:[%s332_s1 + $0xf] ss:$16 sm:$0x3] %vm7_vm0, %v124_v31   ;;  %159 = vst.msk [vmem:[%s332_s1 + $0xf] ss:$16 sm:$0xc] %vm7_vm0, %v124_v31  }

// kernel: model_forward.8
= control target key start
LH: loop header
LB: loop body
LE: loop exit
PB: predicated region body
PF: predicated region fallthrough
CT: control target
= control target key end

     0   :  { %v591_v1 = vmov 0   ;;  %vm283_vm0 = vcmask 261120   ;;  %s754_s1 = inlined_call_operand.vmem [shape: bf16[288,128], index: 1, kind: input, shape index: {}]   ;;  %s755_s0 = inlined_call_operand.vmem [shape: bf16[64,288], index: 0, kind: input, shape index: {}]   ;;  %s756_s2 = inlined_call_operand.vmem [shape: f32[64,1], index: 2, kind: input, shape index: {}]   ;;  %s757_s3 = inlined_call_operand.vmem [shape: f32[64,128], index: 3, kind: output, shape index: {}]  }
   0x1   :  { %v557_v0 = vld [vmem:[%s754_s1 + $0x40] sm:$0xff]   ;;  %556 = vset.pattern.permute.xlu1 %v591_v1  ;;  %555 = vset.pattern.permute.xlu0 %v591_v1  ;;  %v559_v3 = vld [vmem:[%s754_s1 + $0x48] sm:$0xff]   ;;  %v561_v5 = vld [vmem:[%s754_s1 + $0x50] sm:$0xff]  }
   0x2   :  { %v558_v2 = vld [vmem:[%s754_s1] sm:$0xff]   ;;  %480 = vmatprep.subr.bf16.mxu0 %v557_v0  ;;  %538 = vmatprep.subr.bf16.mxu1 %v557_v0  ;;  %v560_v4 = vld [vmem:[%s754_s1 + $0x8] sm:$0xff]   ;;  %v562_v6 = vld [vmem:[%s754_s1 + $0x10] sm:$0xff]  }
   0x3   :  { %481 = vmatpush3.bf16.msra.mxu0 %v558_v2  ;;  %546 = vmatpush3.bf16.msra.mxu1 %v558_v2  ;;  %v563_v7 = vld [vmem:[%s754_s1 + $0x58] sm:$0xff]   ;;  %v565_v9 = vld [vmem:[%s754_s1 + $0x60] sm:$0xff]   ;;  %v567_v11 = vld [vmem:[%s754_s1 + $0x68] sm:$0xff]  }
   0x4   :  { %482 = vmatprep.subr.bf16.mxu0 %v559_v3  ;;  %539 = vmatprep.subr.bf16.mxu1 %v559_v3  ;;  %v564_v8 = vld [vmem:[%s754_s1 + $0x18] sm:$0xff]   ;;  %v566_v10 = vld [vmem:[%s754_s1 + $0x20] sm:$0xff]   ;;  %v568_v14 = vld [vmem:[%s754_s1 + $0x28] sm:$0xff]  }
   0x5   :  { %v575_v12 = vld [vmem:[%s755_s0 + $0x4] ss:$12 sps:$4 sm:$0xff]   ;;  %v578_v13 = vld [vmem:[%s755_s0 + $0x4c] ss:$12 sps:$4 sm:$0xff]   ;;  %v576_v23 = vld [vmem:[%s755_s0 + $0x48] ss:$12 sps:$4 sm:$0xff]  }
   0x6   :  { %v569_v15 = vld [vmem:[%s754_s1 + $0x70] sm:$0xff]   ;;  %328 = vmatprep.mubr.bf16.mxu0 %v575_v12  ;;  %352 = vmatprep.mubr.bf16.mxu1 %v578_v13  ;;  %v571_v17 = vld [vmem:[%s754_s1 + $0x78] sm:$0xff]   ;;  %v67_v20 = vld [vmem:[%s756_s2] sm:$0xff] }
   0x7   :  { %483 = vmatpush3.bf16.msra.mxu0 %v560_v4  ;;  %547 = vmatpush3.bf16.msra.mxu1 %v560_v4  ;;  %v570_v16 = vld [vmem:[%s754_s1 + $0x30] sm:$0xff]   ;;  %v572_v18 = vld [vmem:[%s754_s1 + $0x38] sm:$0xff]   ;;  %v579_v21 = vld [vmem:[%s754_s1 + $0x80] sm:$0xff]  }
   0x8   :  { %484 = vmatprep.subr.bf16.mxu0 %v561_v5  ;;  %540 = vmatprep.subr.bf16.mxu1 %v561_v5  ;;  %v69_v19 = vld [vmem:[%s756_s2 + $0x10] sm:$0xff]  ;;  %v573_v22 = vld [vmem:[%s755_s0] ss:$12 sps:$4 sm:$0xff]   ;;  %v70_v24 = vld [vmem:[%s756_s2 + $0x18] sm:$0xff] }
   0x9   :  { %87 = vperm.xlu1 %556, %v69_v19   ;;  %77 = vperm.xlu0 %555, %v67_v20   ;;  %v68_v25 = vld [vmem:[%s756_s2 + $0x8] sm:$0xff]  ;;  %v71_v30 = vld [vmem:[%s756_s2 + $0x20] sm:$0xff]  ;;  %v74_v33 = vld [vmem:[%s756_s2 + $0x38] sm:$0xff] }
   0xa   :  { %v581_v26 = vld [vmem:[%s755_s0 + $0x1c] ss:$12 sps:$4 sm:$0xff]   ;;  %v584_v31 = vld [vmem:[%s755_s0 + $0x18] ss:$12 sps:$4 sm:$0xff]   ;;  %v585_v32 = vld [vmem:[%s755_s0 + $0x20] ss:$12 sps:$4 sm:$0xff]  }
   0xb   :  { %485 = vmatpush3.bf16.msra.mxu0 %v562_v6  ;;  %548 = vmatpush3.bf16.msra.mxu1 %v562_v6  ;;  %v580_v27 = vld [vmem:[%s754_s1 + $0x88] sm:$0xff]   ;;  %v73_v34 = vld [vmem:[%s756_s2 + $0x30] sm:$0xff]  ;;  %v588_v36 = vld [vmem:[%s755_s0 + $0x38] ss:$12 sps:$4 sm:$0xff]  }
   0xc   :  { %486 = vmatprep.subr.bf16.mxu0 %v563_v7  ;;  %541 = vmatprep.subr.bf16.mxu1 %v563_v7  ;;  %v583_v28 = vld [vmem:[%s755_s0 + $0x8] ss:$12 sps:$4 sm:$0xff]   ;;  %v589_v37 = vld [vmem:[%s755_s0 + $0x30] ss:$12 sps:$4 sm:$0xff]  }
   0xd   :  { %92 = vperm.xlu1 %556, %v70_v24   ;;  %82 = vperm.xlu0 %555, %v68_v25   ;;  %v72_v29 = vld [vmem:[%s756_s2 + $0x28] sm:$0xff]  ;;  %v586_v35 = vld [vmem:[%s755_s0 + $0x34] ss:$12 sps:$4 sm:$0xff]   ;;  %v590_v38 = vld [vmem:[%s755_s0 + $0x50] ss:$12 sps:$4 sm:$0xff]  }
   0xf   :  { %487 = vmatpush3.bf16.msra.mxu0 %v564_v8  ;;  %549 = vmatpush3.bf16.msra.mxu1 %v564_v8 }
  0x10   :  { %488 = vmatprep.subr.bf16.mxu0 %v565_v9  ;;  %542 = vmatprep.subr.bf16.mxu1 %v565_v9 }
  0x11   :  { %102 = vperm.xlu1 %556, %v72_v29   ;;  %97 = vperm.xlu0 %555, %v71_v30  }
  0x13   :  { %489 = vmatpush3.bf16.msra.mxu0 %v566_v10  ;;  %550 = vmatpush3.bf16.msra.mxu1 %v566_v10 }
  0x14   :  { %490 = vmatprep.subr.bf16.mxu0 %v567_v11  ;;  %543 = vmatprep.subr.bf16.mxu1 %v567_v11 }
  0x15   :  { %112 = vperm.xlu1 %556, %v74_v33   ;;  %107 = vperm.xlu0 %555, %v73_v34  }
  0x17   :  { %491 = vmatpush3.bf16.msra.mxu0 %v568_v14  ;;  %551 = vmatpush3.bf16.msra.mxu1 %v568_v14 }
  0x18   :  { %492 = vmatprep.subr.bf16.mxu0 %v569_v15  ;;  %544 = vmatprep.subr.bf16.mxu1 %v569_v15 }
  0x1b   :  { %493 = vmatpush3.bf16.msra.mxu0 %v570_v16  ;;  %552 = vmatpush3.bf16.msra.mxu1 %v570_v16 }
  0x1c   :  { %494 = vmatprep.subr.bf16.mxu0 %v571_v17  ;;  %545 = vmatprep.subr.bf16.mxu1 %v571_v17 }
  0x1f   :  { %495 = vmatpush3.bf16.msra.mxu0 %v572_v18  ;;  %553 = vmatpush3.bf16.msra.mxu1 %v572_v18 }
  0x20   :  { %526 = vmatprep.subr.bf16.mxu1 %v579_v21 }
  0x22   :  { %329 = vmatmul.mubr.bf16.vlgmr.msra.gmra.mrb[0].mxu0 %v573_v22  ;;  %353 = vmatmul.mubr.bf16.vlgmr.msra.gmra.mrb[0].mxu1 %v576_v23 }
  0x23   :  { %527 = vmatpush3.bf16.msra.mxu1 %v579_v21  ;;  %336 = vmatprep.mubr.bf16.mxu0 %v581_v26 }
  0x24   :  { %528 = vmatprep.subr.bf16.mxu1 %v580_v27  ;;  %530 = vmatprep.mubr.msk.bf16.mxu1 %vm283_vm0, %v583_v28 }
  0x27   :  { %529 = vmatpush3.bf16.msra.mxu1 %v580_v27 }
  0x2a   :  { %337 = vmatmul.mubr.bf16.gmra.mrb[4].mxu0 %v584_v31  ;;  %531 = vmatmul.mubr.msk.bf16.vlgmr.msra.gmra.mrb[4].mxu1 %vm283_vm0, %v585_v32 }
  0x2b   :  { %344 = vmatprep.mubr.bf16.mxu0 %v586_v35  ;;  %534 = vmatprep.mubr.msk.bf16.mxu1 %vm283_vm0, %v588_v36 }
  0x32   :  { %345 = vmatmul.mubr.bf16.gmra.mrb[8].mxu0 %v589_v37  ;;  %535 = vmatmul.mubr.msk.bf16.gmra.mrb[8].mxu1 %vm283_vm0, %v590_v38 }
  0x88   :  { %v88_v39 = vpop.permute.xlu1 %87  ;;  %v78_v40 = vpop.permute.xlu0 %77 }
  0x8c   :  { %v93_v41 = vpop.permute.xlu1 %92  ;;  %v83_v42 = vpop.permute.xlu0 %82 }
  0x90   :  { %v98_v55 = vpop.permute.xlu0 %97  ;;  %v103_v56 = vpop.permute.xlu1 %102 }
  0x94   :  { %v108_v5 = vpop.permute.xlu0 %107  ;;  %v113_v10 = vpop.permute.xlu1 %112 }
  0xf5   :  { %v496_v43 = vpop.f32.mrb[0].mxu0  ;;  %v514_v44 = vpop.f32.mrb[0].mxu1 }
  0xf6   :  { %v497_v45 = vpop.f32.mrb[1].mxu0  ;;  %v515_v46 = vpop.f32.mrb[1].mxu1 }
  0xf7   :  { %v498_v47 = vadd.f32 %v497_v45, %v496_v43  ;;  %v499_v48 = vpop.f32.mrb[2].mxu0  ;;  %v516_v49 = vadd.f32 %v515_v46, %v514_v44  ;;  %v517_v50 = vpop.f32.mrb[2].mxu1 }
  0xf8   :  { %v500_v51 = vpop.f32.mrb[3].mxu0  ;;  %v518_v52 = vpop.f32.mrb[3].mxu1 }
  0xf9   :  { %v501_v53 = vadd.f32 %v500_v51, %v499_v48  ;;  %v519_v54 = vadd.f32 %v518_v52, %v517_v50  ;;  %v331_v59 = vadd.f32 %v498_v47, %v78_v40  ;;  %v355_v14 = vadd.f32 %v516_v49, %v108_v5 }
  0xfb   :  { %v334_v2 = vadd.f32 %v501_v53, %v83_v42  ;;  %v358_v19 = vadd.f32 %v519_v54, %v113_v10 }
  0xfd   :  { %v502_v57 = vpop.f32.mrb[4].mxu0  ;;  %v532_v58 = vpop.f32.mrb[4].mxu1 }
  0xfe   :  { %v503_v60 = vpop.f32.mrb[5].mxu0  ;;  %v395_v61 = vpop.f32.mrb[5].mxu1 }
  0xff   :  { %v504_v62 = vadd.f32 %v503_v60, %v502_v57  ;;  %v396_v63 = vadd.f32 %v395_v61, %v331_v59  ;;  %v505_v0 = vpop.f32.mrb[6].mxu0  ;;  %v533_v1 = vpop.f32.mrb[6].mxu1 }
 0x100   :  { %v506_v3 = vpop.f32.mrb[7].mxu0  ;;  %v398_v4 = vpop.f32.mrb[7].mxu1 }
 0x101   :  { %v339_v6 = vadd.f32 %v504_v62, %v88_v39  ;;  %v426_v7 = vmax.f32 %v396_v63, 0.0  ;;  %v507_v8 = vadd.f32 %v506_v3, %v505_v0  ;;  %v399_v9 = vadd.f32 %v398_v4, %v334_v2 }
 0x103   :  { %v404_v11 = vadd.f32 %v532_v58, %v339_v6  ;;  %434 = vst [vmem:[%s757_s3] sm:$0xff] %v426_v7  ;;  %v342_v12 = vadd.f32 %v507_v8, %v93_v41  ;;  %v427_v13 = vmax.f32 %v399_v9, 0.0 }
 0x105   :  { %v428_v15 = vmax.f32 %v404_v11, 0.0  ;;  %v407_v16 = vadd.f32 %v533_v1, %v342_v12  ;;  %435 = vst [vmem:[%s757_s3 + $0x8] sm:$0xff] %v427_v13  ;;  %v508_v17 = vpop.f32.mrb[8].mxu0  ;;  %v536_v18 = vpop.f32.mrb[8].mxu1 }
 0x106   :  { %v420_v20 = vadd.f32 %v536_v18, %v355_v14  ;;  %v509_v21 = vpop.f32.mrb[9].mxu0  ;;  %v411_v22 = vpop.f32.mrb[9].mxu1 }
 0x107   :  { %436 = vst [vmem:[%s757_s3 + $0x10] sm:$0xff] %v428_v15  ;;  %v429_v23 = vmax.f32 %v407_v16, 0.0  ;;  %v510_v24 = vadd.f32 %v509_v21, %v508_v17  ;;  %v511_v25 = vpop.f32.mrb[10].mxu0  ;;  %v537_v26 = vpop.f32.mrb[10].mxu1 }
 0x108   :  { %v432_v27 = vmax.f32 %v420_v20, 0.0  ;;  %v423_v28 = vadd.f32 %v537_v26, %v358_v19  ;;  %v512_v29 = vpop.f32.mrb[11].mxu0  ;;  %v414_v30 = vpop.f32.mrb[11].mxu1 }
 0x109   :  { %437 = vst [vmem:[%s757_s3 + $0x18] sm:$0xff] %v429_v23  ;;  %v347_v31 = vadd.f32 %v510_v24, %v98_v55  ;;  %v513_v32 = vadd.f32 %v512_v29, %v511_v25 }
 0x10a   :  { %440 = vst [vmem:[%s757_s3 + $0x30] sm:$0xff] %v432_v27  ;;  %v433_v33 = vmax.f32 %v423_v28, 0.0 }
 0x10b   :  { %v412_v34 = vadd.f32 %v411_v22, %v347_v31  ;;  %v350_v35 = vadd.f32 %v513_v32, %v103_v56 }
 0x10c   :  { %441 = vst [vmem:[%s757_s3 + $0x38] sm:$0xff] %v433_v33 }
 0x10d   :  { %v430_v36 = vmax.f32 %v412_v34, 0.0  ;;  %v415_v37 = vadd.f32 %v414_v30, %v350_v35 }
 0x10f   :  { %438 = vst [vmem:[%s757_s3 + $0x20] sm:$0xff] %v430_v36  ;;  %v431_v38 = vmax.f32 %v415_v37, 0.0 }
 0x111   :  { %439 = vst [vmem:[%s757_s3 + $0x28] sm:$0xff] %v431_v38 }

// kernel: tile.18
= control target key start
LH: loop header
LB: loop body
LE: loop exit
PB: predicated region body
PF: predicated region fallthrough
CT: control target
= control target key end

     0   :  { %s22_s0 = inlined_call_operand.vmem [shape: f32[3], index: 0, kind: input, shape index: {}]   ;;  %s23_s1 = inlined_call_operand.vmem [shape: f32[4,3], index: 1, kind: output, shape index: {}]  }
   0x1   :  { %v4_v0 = vld [vmem:[%s22_s0] ss:$0 sm:$0xff] }
   0x2   :  { %5 = vst [vmem:[%s23_s1] sm:$0xf] %v4_v0 }

// kernel: tile.1
= control target key start
LH: loop header
LB: loop body
LE: loop exit
PB: predicated region body
PF: predicated region fallthrough
CT: control target
= control target key end

     0   :  { %vm7_vm0 = vcmask 7168   ;;  %s26_s10 = smov 126   ;;  %s49_s0 = inlined_call_operand.vmem [shape: f32[4,3], index: 0, kind: input, shape index: {}]   ;;  %s50_s1 = inlined_call_operand.vmem [shape: f32[12,1], index: 1, kind: output, shape index: {}]  }
   0x1   :  { %v4_v0 = vld [vmem:[%s49_s0] sm:$0xf]  ;;  %s25_s0 = smov 127  }
   0x2   :  { %5 = vst [vmem:[#allocation0] sm:$0xf] %v4_v0 }
   0x9   :  { %v9_v1 = vld [vmem:[#allocation0] sm:$0xf]  }
   0xa   :  { %v6_v2 = vld [vmem:[#allocation0] sm:$0xf]   ;;  %10 = vrot.lane.b32.xlu0 %v9_v1, %s25_s0 }
   0xb   :  { %8 = vst.msk [vmem:[%s50_s1] ss:$3 sm:$0xf] %vm7_vm0, %v6_v2   ;;  %v15_v3 = vld [vmem:[#allocation0] sm:$0xf]  }
   0xe   :  { %16 = vrot.lane.b32.xlu0 %v15_v3, %s26_s10 }
  0x7c   :  { %v11_v4 = vpop.permute.xlu0 %10  }
  0x7d   :  { %21 = vst.msk [vmem:[%s50_s1 + $0x1] ss:$3 sm:$0xf] %vm7_vm0, %v11_v4  }
  0x80   :  { %v17_v5 = vpop.permute.xlu0 %16  }
  0x81   :  { %22 = vst.msk [vmem:[%s50_s1 + $0x2] ss:$3 sm:$0xf] %vm7_vm0, %v17_v5  }

// kernel: model_forward.9
= control target key start
LH: loop header
LB: loop body
LE: loop exit
PB: predicated region body
PF: predicated region fallthrough
CT: control target
= control target key end

     0   :  { %v455_v1 = vmov 0   ;;  %vm254_vm0 = vcmask 130048   ;;  %s620_s1 = inlined_call_operand.vmem [shape: bf16[144,512], index: 1, kind: input, shape index: {}]   ;;  %s621_s0 = inlined_call_operand.vmem [shape: bf16[12,144], index: 0, kind: input, shape index: {}]   ;;  %s622_s2 = inlined_call_operand.vmem [shape: f32[12,1], index: 2, kind: input, shape index: {}]   ;;  %s623_s3 = inlined_call_operand.vmem [shape: f32[12,512], index: 3, kind: output, shape index: {}]  }
   0x1   :  { %v398_v0 = vld [vmem:[%s620_s1 + $0x4] ss:$16 sps:$4 sm:$0xff]   ;;  %397 = vset.pattern.permute.xlu0 %v455_v1  ;;  %v400_v2 = vld [vmem:[%s620_s1 + $0xc] ss:$16 sps:$4 sm:$0xff]   ;;  %v402_v3 = vld [vmem:[%s620_s1] ss:$16 sps:$4 sm:$0xff]  }
   0x2   :  { %258 = vmatprep.subr.bf16.mxu0 %v398_v0  ;;  %v403_v4 = vld [vmem:[%s620_s1 + $0x8] ss:$16 sps:$4 sm:$0xff]   ;;  %301 = vmatprep.subr.bf16.mxu1 %v400_v2  ;;  %v404_v5 = vld [vmem:[%s620_s1 + $0x24] ss:$16 sps:$4 sm:$0xff]   ;;  %v406_v6 = vld [vmem:[%s620_s1 + $0x2c] ss:$16 sps:$4 sm:$0xff]  }
   0x3   :  { %259 = vmatpush1.bf16.msra.mxu0 %v402_v3  ;;  %302 = vmatpush1.bf16.msra.mxu1 %v403_v4  ;;  %v408_v7 = vld [vmem:[%s620_s1 + $0x20] ss:$16 sps:$4 sm:$0xff]   ;;  %v409_v8 = vld [vmem:[%s620_s1 + $0x28] ss:$16 sps:$4 sm:$0xff]   ;;  %v410_v9 = vld [vmem:[%s620_s1 + $0x44] ss:$16 sps:$4 sm:$0xff]  }
   0x4   :  { %260 = vmatprep.subr.bf16.mxu0 %v404_v5  ;;  %303 = vmatprep.subr.bf16.mxu1 %v406_v6  ;;  %v412_v10 = vld [vmem:[%s620_s1 + $0x4c] ss:$16 sps:$4 sm:$0xff]   ;;  %v414_v11 = vld [vmem:[%s620_s1 + $0x40] ss:$16 sps:$4 sm:$0xff]   ;;  %v415_v12 = vld [vmem:[%s620_s1 + $0x48] ss:$16 sps:$4 sm:$0xff]  }
   0x5   :  { %v416_v13 = vld [vmem:[%s620_s1 + $0x64] ss:$16 sps:$4 sm:$0xff]   ;;  %v418_v14 = vld [vmem:[%s620_s1 + $0x6c] ss:$16 sps:$4 sm:$0xff]   ;;  %v420_v15 = vld [vmem:[%s620_s1 + $0x60] ss:$16 sps:$4 sm:$0xff]  }
   0x6   :  { %v421_v16 = vld [vmem:[%s620_s1 + $0x68] ss:$16 sps:$4 sm:$0xff]   ;;  %v422_v17 = vld [vmem:[%s620_s1 + $0x84] ss:$16 sps:$4 sm:$0xff]   ;;  %v424_v18 = vld [vmem:[%s620_s1 + $0x8c] ss:$16 sps:$4 sm:$0xff]  }
   0x7   :  { %261 = vmatpush1.bf16.msra.mxu0 %v408_v7  ;;  %304 = vmatpush1.bf16.msra.mxu1 %v409_v8  ;;  %v426_v19 = vld [vmem:[%s620_s1 + $0x80] ss:$16 sps:$4 sm:$0xff]   ;;  %v427_v20 = vld [vmem:[%s620_s1 + $0x88] ss:$16 sps:$4 sm:$0xff]   ;;  %v428_v21 = vld [vmem:[%s620_s1 + $0xa4] ss:$16 sps:$4 sm:$0xff]  }
   0x8   :  { %262 = vmatprep.subr.bf16.mxu0 %v410_v9  ;;  %305 = vmatprep.subr.bf16.mxu1 %v412_v10  ;;  %v430_v22 = vld [vmem:[%s620_s1 + $0xac] ss:$16 sps:$4 sm:$0xff]   ;;  %v432_v23 = vld [vmem:[%s620_s1 + $0xa0] ss:$16 sps:$4 sm:$0xff]   ;;  %v433_v24 = vld [vmem:[%s620_s1 + $0xa8] ss:$16 sps:$4 sm:$0xff]  }
   0x9   :  { %v434_v25 = vld [vmem:[%s620_s1 + $0xc4] ss:$16 sps:$4 sm:$0xff]   ;;  %v436_v26 = vld [vmem:[%s620_s1 + $0xcc] ss:$16 sps:$4 sm:$0xff]   ;;  %v438_v27 = vld [vmem:[%s620_s1 + $0xc0] ss:$16 sps:$4 sm:$0xff]  }
   0xa   :  { %v439_v28 = vld [vmem:[%s620_s1 + $0xc8] ss:$16 sps:$4 sm:$0xff]   ;;  %v440_v29 = vld [vmem:[%s620_s1 + $0xe4] ss:$16 sps:$4 sm:$0xff]   ;;  %v442_v30 = vld [vmem:[%s620_s1 + $0xec] ss:$16 sps:$4 sm:$0xff]  }
   0xb   :  { %263 = vmatpush1.bf16.msra.mxu0 %v414_v11  ;;  %306 = vmatpush1.bf16.msra.mxu1 %v415_v12  ;;  %v454_v31 = vld [vmem:[%s621_s0 + $0x4] ss:$8 sps:$4 sm:$0x3f]   ;;  %v54_v33 = vld [vmem:[%s622_s2 + $0x8] sm:$0xf] }
   0xc   :  { %264 = vmatprep.subr.bf16.mxu0 %v416_v13  ;;  %307 = vmatprep.subr.bf16.mxu1 %v418_v14  ;;  %v53_v32 = vld [vmem:[%s622_s2] sm:$0xff]  ;;  %v445_v35 = vld [vmem:[%s620_s1 + $0xe8] ss:$16 sps:$4 sm:$0xff]   ;;  %v448_v37 = vld [vmem:[%s620_s1 + $0x10c] ss:$16 sps:$4 sm:$0xff]  }
   0xd   :  { %57 = vperm.xlu0 %397, %v53_v32   ;;  %394 = vmatprep.mubr.msk.bf16.mxu0 %vm254_vm0, %v454_v31  ;;  %v444_v34 = vld [vmem:[%s620_s1 + $0xe0] ss:$16 sps:$4 sm:$0xff]   ;;  %v446_v36 = vld [vmem:[%s620_s1 + $0x104] ss:$16 sps:$4 sm:$0xff]   ;;  %v451_v39 = vld [vmem:[%s620_s1 + $0x108] ss:$16 sps:$4 sm:$0xff]  }
   0xe   :  { %395 = vmatprep.mubr.msk.bf16.mxu1 %vm254_vm0, %v454_v31  ;;  %v450_v38 = vld [vmem:[%s620_s1 + $0x100] ss:$16 sps:$4 sm:$0xff]  }
   0xf   :  { %265 = vmatpush1.bf16.msra.mxu0 %v420_v15  ;;  %308 = vmatpush1.bf16.msra.mxu1 %v421_v16  ;;  %v452_v40 = vld [vmem:[%s621_s0] ss:$8 sps:$4 sm:$0x3f]  }
  0x10   :  { %266 = vmatprep.subr.bf16.mxu0 %v422_v17  ;;  %309 = vmatprep.subr.bf16.mxu1 %v424_v18 }
  0x11   :  { %62 = vperm.xlu0 %397, %v54_v33  }
  0x13   :  { %267 = vmatpush1.bf16.msra.mxu0 %v426_v19  ;;  %310 = vmatpush1.bf16.msra.mxu1 %v427_v20 }
  0x14   :  { %268 = vmatprep.subr.bf16.mxu0 %v428_v21  ;;  %311 = vmatprep.subr.bf16.mxu1 %v430_v22 }
  0x17   :  { %269 = vmatpush1.bf16.msra.mxu0 %v432_v23  ;;  %312 = vmatpush1.bf16.msra.mxu1 %v433_v24 }
  0x18   :  { %270 = vmatprep.subr.bf16.mxu0 %v434_v25  ;;  %313 = vmatprep.subr.bf16.mxu1 %v436_v26 }
  0x1b   :  { %271 = vmatpush1.bf16.msra.mxu0 %v438_v27  ;;  %314 = vmatpush1.bf16.msra.mxu1 %v439_v28 }
  0x1c   :  { %272 = vmatprep.subr.bf16.mxu0 %v440_v29  ;;  %315 = vmatprep.subr.bf16.mxu1 %v442_v30 }
  0x1f   :  { %273 = vmatpush1.bf16.msra.mxu0 %v444_v34  ;;  %316 = vmatpush1.bf16.msra.mxu1 %v445_v35 }
  0x20   :  { %274 = vmatprep.subr.bf16.mxu0 %v446_v36  ;;  %317 = vmatprep.subr.bf16.mxu1 %v448_v37 }
  0x23   :  { %275 = vmatpush1.bf16.msra.mxu0 %v450_v38  ;;  %318 = vmatpush1.bf16.msra.mxu1 %v451_v39 }
  0x26   :  { %291 = vmatmul.mubr.bf16.vlgmr.msra.gmra.mrb[0].mxu0 %v452_v40  ;;  %334 = vmatmul.mubr.bf16.vlgmr.msra.gmra.mrb[0].mxu1 %v452_v40 }
  0x8c   :  { %v58_v41 = vpop.permute.xlu0 %57 }
  0x90   :  { %v63_v42 = vpop.permute.xlu0 %62 }
  0xf9   :  { %v292_v43 = vpop.f32.mrb[0].mxu0  ;;  %v335_v44 = vpop.f32.mrb[0].mxu1 }
  0xfa   :  { %v293_v45 = vadd.f32 %v292_v43, %v58_v41  ;;  %v336_v46 = vadd.f32 %v335_v44, %v58_v41  ;;  %v294_v47 = vpop.f32.mrb[1].mxu0  ;;  %v337_v48 = vpop.f32.mrb[1].mxu1 }
  0xfb   :  { %v295_v49 = vadd.f32 %v294_v47, %v58_v41  ;;  %v338_v50 = vadd.f32 %v337_v48, %v58_v41  ;;  %v296_v51 = vpop.f32.mrb[2].mxu0  ;;  %v339_v52 = vpop.f32.mrb[2].mxu1 }
  0xfc   :  { %344 = vst [vmem:[%s623_s3] sm:$0xff] %v293_v45  ;;  %346 = vst [vmem:[%s623_s3 + $0x10] sm:$0xff] %v336_v46  ;;  %v297_v53 = vadd.f32 %v296_v51, %v63_v42  ;;  %v340_v54 = vadd.f32 %v339_v52, %v63_v42  ;;  %v298_v55 = vpop.f32.mrb[3].mxu0  ;;  %v341_v56 = vpop.f32.mrb[3].mxu1 }
  0xfd   :  { %345 = vst [vmem:[%s623_s3 + $0x8] sm:$0xff] %v295_v49  ;;  %347 = vst [vmem:[%s623_s3 + $0x18] sm:$0xff] %v338_v50  ;;  %v299_v57 = vadd.f32 %v298_v55, %v63_v42  ;;  %v342_v58 = vadd.f32 %v341_v56, %v63_v42 }
  0xfe   :  { %348 = vst [vmem:[%s623_s3 + $0x20] sm:$0xf] %v297_v53  ;;  %350 = vst [vmem:[%s623_s3 + $0x30] sm:$0xf] %v340_v54 }
  0xff   :  { %349 = vst [vmem:[%s623_s3 + $0x28] sm:$0xf] %v299_v57  ;;  %351 = vst [vmem:[%s623_s3 + $0x38] sm:$0xf] %v342_v58 }

</bundles_post_ra>
